<compile_context>
chip_gen: v7x
topology: tpu7x:2x2x1
jax: 0.10.0
libtpu: 0.0.40
codegen_flags: <defaults>
</compile_context>

<pallas_src>
import functools

import jax
import jax.numpy as jnp
from jax import lax
from jax.experimental import pallas as pl
from jax.experimental.pallas import tpu as pltpu

FEAT_DIM = 2048       # encoder output dim expected by the projection head
HIDDEN_DIM = 512      # projection head hidden dim
PROJ_DIM = 128        # projection_dim
LANE = 128


def _round_up(a, b):
    return ((a + b - 1) // b) * b


def simclr_kernel(x_ref, we_ref, be_ref, w1_ref, b1_ref, w2_ref, b2_ref,
                  h_ref, z_ref, pool_acc_ref, *, hw, ts, inv_hw, needs_mask):
    """Grid: (batch tile i [parallel], spatial tile k [arbitrary reduction])."""
    k = pl.program_id(1)
    last = pl.num_programs(1) - 1

    # ---- init pool accumulator at the start of each spatial sweep ----------
    @pl.when(k == 0)
    def _init():
        pool_acc_ref[...] = jnp.zeros_like(pool_acc_ref)

    # ---- streamed global-average-pool ---------------------------------------
    # Accumulate 128-lane slabs with plain VPU adds (no per-step cross-lane
    # reduce); the single XLU reduction happens once in the finalize.
    num_slabs = ts // LANE

    def _accumulate(masked, valid_lanes=None, lane_idx=None):
        part = None
        for j in range(num_slabs):                       # static unroll, VPU only
            slab = x_ref[:, :, j * LANE:(j + 1) * LANE].astype(jnp.float32)
            if masked:
                slab = jnp.where(lane_idx < (valid_lanes - j * LANE), slab, 0.0)
            part = slab if part is None else part + slab
        pool_acc_ref[...] += part                        # (TN, C, 128) f32

    if needs_mask:
        lane_idx = lax.broadcasted_iota(jnp.int32, (1, 1, LANE), 2)
        valid_lanes = hw - k * ts                        # real lanes in this tile

        @pl.when(k != last)                              # interior tiles: no selects
        def _full():
            _accumulate(False)

        @pl.when(k == last)                              # ragged tail: mask OOB lanes
        def _tail():
            _accumulate(True, valid_lanes, lane_idx)
    else:
        _accumulate(False)

    # ---- on the last spatial tile: encoder Linear + projection head ---------
    @pl.when(k == last)
    def _finalize():
        # single cross-lane reduce per batch tile, then fold the 1/(H*W) scale
        pooled = jnp.sum(pool_acc_ref[...], axis=-1) * inv_hw        # (TN, C) f32

        # encoder stand-in: Linear(C, 2048); f32 operands, f32 accumulation
        h = jnp.dot(pooled, we_ref[...],
                    preferred_element_type=jnp.float32) + be_ref[...]
        h_ref[...] = h.astype(h_ref.dtype)

        # projection head: Linear(2048, 512) -> ReLU -> Linear(512, 128)
        a = jnp.maximum(
            jnp.dot(h, w1_ref[...], preferred_element_type=jnp.float32)
            + b1_ref[...], 0.0)
        z = jnp.dot(a, w2_ref[...],
                    preferred_element_type=jnp.float32) + b2_ref[...]
        z_ref[...] = z.astype(z_ref.dtype)


def simclr_forward(x, params, *, tn_max=256, ts_max=2048, h_dtype=jnp.float32):
    """x: (N, C, H, W) float32 (NCHW).  Returns (h, z) like the PyTorch module.

    h_dtype=jnp.bfloat16 halves the h writeback if the caller only needs z.
    """
    N, C, H, W = x.shape
    HW = H * W
    we, be, w1, b1, w2, b2 = params
    itemsize = jnp.dtype(x.dtype).itemsize

    # --- batch tile: expose >=2 tiles (v7x has 2 TCs) when N allows; exact
    #     fit (no padding / partial blocks) for tiny N. ------------------------
    if N <= 8:
        tn = N
    else:
        tn = min(tn_max, _round_up(pl.cdiv(N, 2), 8))

    # --- spatial tile: multiple of 128 lanes, sized so the double-buffered x
    #     tile stays within ~24 MiB of VMEM (C is sublane-padded to 8). --------
    c_pad = _round_up(C, 8)
    x_tile_budget = 12 << 20                              # per pipeline buffer
    ts_cap = max(LANE, (x_tile_budget // max(1, tn * c_pad * itemsize))
                 // LANE * LANE)
    ts = min(_round_up(HW, LANE), ts_max, ts_cap)

    grid = (pl.cdiv(N, tn), pl.cdiv(HW, ts))
    needs_mask = (grid[1] * ts != HW)                     # ragged spatial tail?

    # Metadata-only reshape: no cast, no pad, no extra HBM pass over x.
    x3 = x.reshape(N, C, HW)

    flops = int(2 * N * (C * FEAT_DIM + FEAT_DIM * HIDDEN_DIM
                         + HIDDEN_DIM * PROJ_DIM) + N * C * HW)
    bytes_accessed = int(
        x3.size * itemsize
        + (we.size + w1.size + w2.size + be.size + b1.size + b2.size) * 4
        + N * FEAT_DIM * jnp.dtype(h_dtype).itemsize
        + N * PROJ_DIM * 4)

    kernel = functools.partial(simclr_kernel, hw=HW, ts=ts,
                               inv_hw=float(1.0 / HW), needs_mask=needs_mask)

    def _call(single_buffer_consts):
        def const_spec(shape):
            nd = len(shape)
            if single_buffer_consts:
                # Constant block index -> fetched once; single buffer saves VMEM.
                return pl.BlockSpec(shape, lambda *_: (0,) * nd,
                                    pipeline_mode=pl.Buffered(1))
            return pl.BlockSpec(shape, lambda *_: (0,) * nd)

        return pl.pallas_call(
            kernel,
            out_shape=(
                jax.ShapeDtypeStruct((N, FEAT_DIM), h_dtype),
                jax.ShapeDtypeStruct((N, PROJ_DIM), jnp.float32),
            ),
            grid=grid,
            in_specs=[
                pl.BlockSpec((tn, C, ts), lambda i, k: (i, 0, k)),   # x stream
                const_spec((C, FEAT_DIM)),                           # we
                const_spec((1, FEAT_DIM)),                           # be
                const_spec((FEAT_DIM, HIDDEN_DIM)),                  # w1
                const_spec((1, HIDDEN_DIM)),                         # b1
                const_spec((HIDDEN_DIM, PROJ_DIM)),                  # w2
                const_spec((1, PROJ_DIM)),                           # b2
            ],
            out_specs=(
                pl.BlockSpec((tn, FEAT_DIM), lambda i, k: (i, 0)),   # h
                pl.BlockSpec((tn, PROJ_DIM), lambda i, k: (i, 0)),   # z
            ),
            scratch_shapes=[pltpu.VMEM((tn, C, LANE), jnp.float32)], # pool acc
            compiler_params=pltpu.CompilerParams(
                dimension_semantics=("parallel", "arbitrary"),
                # Working set (2x x-tile + weights + outs + acc) < 48 MiB:
                # fits v7x's 64 MiB/TC, ample on v5e/v6e's 128 MiB.
                vmem_limit_bytes=48 << 20),
            cost_estimate=pl.CostEstimate(flops=flops, transcendentals=0,
                                          bytes_accessed=bytes_accessed),
        )(x3, we, be, w1, b1, w2, b2)

    try:
        return _call(True)
    except Exception:
        # jax versions without per-BlockSpec pipeline_mode / Buffered(1):
        # fall back to default double-buffered constants (~4.5 MiB extra VMEM).
        return _call(False)


def make_params(key, in_channels):
    """Deterministic parameter init (same shapes as the PyTorch module)."""
    k_we, k_w1, k_w2 = jax.random.split(key, 3)
    # encoder stand-in Linear(C, 2048)
    we = jax.random.normal(k_we, (in_channels, FEAT_DIM), jnp.float32) \
        * (in_channels ** -0.5)
    be = jnp.zeros((1, FEAT_DIM), jnp.float32)
    # projection head: Linear(2048, 512) -> ReLU -> Linear(512, 128)
    w1 = jax.random.normal(k_w1, (FEAT_DIM, HIDDEN_DIM), jnp.float32) \
        * (FEAT_DIM ** -0.5)
    b1 = jnp.zeros((1, HIDDEN_DIM), jnp.float32)
    w2 = jax.random.normal(k_w2, (HIDDEN_DIM, PROJ_DIM), jnp.float32) \
        * (HIDDEN_DIM ** -0.5)
    b2 = jnp.zeros((1, PROJ_DIM), jnp.float32)
    return we, be, w1, b1, w2, b2


def reference_forward(x, params):
    """Pure-JAX f32 reference (GAP -> Linear -> [Linear, ReLU, Linear])."""
    we, be, w1, b1, w2, b2 = params
    N, C, H, W = x.shape
    pooled = jnp.mean(x.reshape(N, C, H * W), axis=-1)
    h = pooled @ we + be
    a = jnp.maximum(h @ w1 + b1, 0.0)
    z = a @ w2 + b2
    return h, z


if __name__ == "__main__":
    key = jax.random.PRNGKey(0)
    k_x, k_p = jax.random.split(key)

    # Small NCHW input: batch=2, channels=4, spatial=16x16.
    x = jax.random.normal(k_x, (2, 4, 16, 16), jnp.float32)
    params = make_params(k_p, in_channels=4)

    h, z = simclr_forward(x, params)
    jax.block_until_ready((h, z))

    # Sanity check against the pure-JAX f32 reference (MXU vs XLA matmul
    # precision differ slightly, hence the modest tolerances).
    h_ref, z_ref = reference_forward(x, params)
    assert h.shape == (2, FEAT_DIM) and z.shape == (2, PROJ_DIM)
    assert jnp.allclose(h, h_ref, rtol=2e-2, atol=1e-3), \
        float(jnp.max(jnp.abs(h - h_ref)))
    assert jnp.allclose(z, z_ref, rtol=2e-2, atol=1e-3), \
        float(jnp.max(jnp.abs(z - z_ref)))

    print("KERNEL_OK")
</pallas_src>

<mosaic_0001>
module attributes {stable_mosaic.version = 11 : i64} {
  func.func @simclr_kernel(%arg0: i32, %arg1: i32, %arg2: memref<2x4x256xf32, #tpu.memory_space<vmem>>, %arg3: memref<4x2048xf32, #tpu.memory_space<vmem>>, %arg4: memref<1x2048xf32, #tpu.memory_space<vmem>>, %arg5: memref<2048x512xf32, #tpu.memory_space<vmem>>, %arg6: memref<1x512xf32, #tpu.memory_space<vmem>>, %arg7: memref<512x128xf32, #tpu.memory_space<vmem>>, %arg8: memref<1x128xf32, #tpu.memory_space<vmem>>, %arg9: memref<2x2048xf32, #tpu.memory_space<vmem>>, %arg10: memref<2x128xf32, #tpu.memory_space<vmem>>, %arg11: memref<2x4x128xf32, #tpu.memory_space<vmem>>) attributes {dimension_semantics = [#tpu.dimension_semantics<parallel>, #tpu.dimension_semantics<arbitrary>], iteration_bounds = array<i64: 1, 1>, scalar_prefetch = 0 : i64, scratch_operands = 1 : i64, tpu.core_type = #tpu.core_type<tc>, window_params = [{transform_indices = @transform_0, window_bounds = array<i64: 2, 4, 256>}, {pipeline_mode = #tpu.pipeline_mode<synchronous>, transform_indices = @transform_1, window_bounds = array<i64: 4, 2048>}, {pipeline_mode = #tpu.pipeline_mode<synchronous>, transform_indices = @transform_2, window_bounds = array<i64: 1, 2048>}, {pipeline_mode = #tpu.pipeline_mode<synchronous>, transform_indices = @transform_3, window_bounds = array<i64: 2048, 512>}, {pipeline_mode = #tpu.pipeline_mode<synchronous>, transform_indices = @transform_4, window_bounds = array<i64: 1, 512>}, {pipeline_mode = #tpu.pipeline_mode<synchronous>, transform_indices = @transform_5, window_bounds = array<i64: 512, 128>}, {pipeline_mode = #tpu.pipeline_mode<synchronous>, transform_indices = @transform_6, window_bounds = array<i64: 1, 128>}, {transform_indices = @transform_7, window_bounds = array<i64: 2, 2048>}, {transform_indices = @transform_8, window_bounds = array<i64: 2, 128>}]} {
    %c0_i32 = arith.constant 0 : i32
    %0 = arith.cmpi eq, %arg1, %c0_i32 : i32
    %1 = arith.extui %0 : i1 to i32
    %c0_i32_0 = arith.constant 0 : i32
    %2 = arith.cmpi ne, %1, %c0_i32_0 : i32
    scf.if %2 {
      %cst = arith.constant 0.000000e+00 : f32
      %12 = vector.broadcast %cst : f32 to vector<2x4x128xf32>
      %c0_13 = arith.constant 0 : index
      %c0_14 = arith.constant 0 : index
      %c0_15 = arith.constant 0 : index
      %13 = vector.load %arg11[%c0_13, %c0_14, %c0_15] : memref<2x4x128xf32, #tpu.memory_space<vmem>>, vector<2x4x128xf32>
      tpu.vector_store %arg11[%c0_13, %c0_14, %c0_15], %12 {strides = array<i32>} : memref<2x4x128xf32, #tpu.memory_space<vmem>>, vector<2x4x128xf32>,
    } else {
    }
    %c0 = arith.constant 0 : index
    %c0_1 = arith.constant 0 : index
    %c0_2 = arith.constant 0 : index
    %3 = vector.load %arg2[%c0, %c0_1, %c0_2] : memref<2x4x256xf32, #tpu.memory_space<vmem>>, vector<2x4x128xf32>
    %c0_3 = arith.constant 0 : index
    %c0_4 = arith.constant 0 : index
    %c128 = arith.constant 128 : index
    %4 = vector.load %arg2[%c0_3, %c0_4, %c128] : memref<2x4x256xf32, #tpu.memory_space<vmem>>, vector<2x4x128xf32>
    %5 = arith.addf %3, %4 : vector<2x4x128xf32>
    %c0_5 = arith.constant 0 : index
    %c0_6 = arith.constant 0 : index
    %c0_7 = arith.constant 0 : index
    %6 = vector.load %arg11[%c0_5, %c0_6, %c0_7] : memref<2x4x128xf32, #tpu.memory_space<vmem>>, vector<2x4x128xf32>
    %7 = arith.addf %6, %5 : vector<2x4x128xf32>
    %c0_8 = arith.constant 0 : index
    %c0_9 = arith.constant 0 : index
    %c0_10 = arith.constant 0 : index
    %8 = vector.load %arg11[%c0_8, %c0_9, %c0_10] : memref<2x4x128xf32, #tpu.memory_space<vmem>>, vector<2x4x128xf32>
    tpu.vector_store %arg11[%c0_8, %c0_9, %c0_10], %7 {strides = array<i32>} : memref<2x4x128xf32, #tpu.memory_space<vmem>>, vector<2x4x128xf32>,
    %c0_i32_11 = arith.constant 0 : i32
    %9 = arith.cmpi eq, %arg1, %c0_i32_11 : i32
    %10 = arith.extui %9 : i1 to i32
    %c0_i32_12 = arith.constant 0 : i32
    %11 = arith.cmpi ne, %10, %c0_i32_12 : i32
    scf.if %11 {
      %c0_13 = arith.constant 0 : index
      %c0_14 = arith.constant 0 : index
      %c0_15 = arith.constant 0 : index
      %12 = vector.load %arg11[%c0_13, %c0_14, %c0_15] : memref<2x4x128xf32, #tpu.memory_space<vmem>>, vector<2x4x128xf32>
      %cst = arith.constant dense<0.000000e+00> : vector<2x4xf32>
      %13 = vector.multi_reduction <add>, %12, %cst [2] : vector<2x4x128xf32> to vector<2x4xf32>
      %cst_16 = arith.constant 3.906250e-03 : f32
      %14 = vector.broadcast %cst_16 : f32 to vector<2x4xf32>
      %15 = arith.mulf %13, %14 : vector<2x4xf32>
      %c0_17 = arith.constant 0 : index
      %c0_18 = arith.constant 0 : index
      %16 = vector.load %arg3[%c0_17, %c0_18] : memref<4x2048xf32, #tpu.memory_space<vmem>>, vector<4x2048xf32>
      %cst_19 = arith.constant dense<0.000000e+00> : vector<2x2048xf32>
      %17 = tpu.matmul %15, %16, %cst_19 {dimension_numbers = #tpu.dot_dimension_numbers<[1], [0], [0], [1], [0, 0, 1, 1], [], []>} : vector<2x4xf32>, vector<4x2048xf32>, vector<2x2048xf32> -> vector<2x2048xf32>
      %c0_20 = arith.constant 0 : index
      %c0_21 = arith.constant 0 : index
      %18 = vector.load %arg4[%c0_20, %c0_21] : memref<1x2048xf32, #tpu.memory_space<vmem>>, vector<1x2048xf32>
      %19 = vector.broadcast %18 : vector<1x2048xf32> to vector<2x2048xf32>
      %20 = arith.addf %17, %19 : vector<2x2048xf32>
      %c0_22 = arith.constant 0 : index
      %c0_23 = arith.constant 0 : index
      %21 = vector.load %arg9[%c0_22, %c0_23] : memref<2x2048xf32, #tpu.memory_space<vmem>>, vector<2x2048xf32>
      tpu.vector_store %arg9[%c0_22, %c0_23], %20 {strides = array<i32>} : memref<2x2048xf32, #tpu.memory_space<vmem>>, vector<2x2048xf32>,
      %c0_24 = arith.constant 0 : index
      %c0_25 = arith.constant 0 : index
      %22 = vector.load %arg5[%c0_24, %c0_25] : memref<2048x512xf32, #tpu.memory_space<vmem>>, vector<2048x512xf32>
      %cst_26 = arith.constant dense<0.000000e+00> : vector<2x512xf32>
      %23 = tpu.matmul %20, %22, %cst_26 {dimension_numbers = #tpu.dot_dimension_numbers<[1], [0], [0], [1], [0, 0, 1, 1], [], []>} : vector<2x2048xf32>, vector<2048x512xf32>, vector<2x512xf32> -> vector<2x512xf32>
      %c0_27 = arith.constant 0 : index
      %c0_28 = arith.constant 0 : index
      %24 = vector.load %arg6[%c0_27, %c0_28] : memref<1x512xf32, #tpu.memory_space<vmem>>, vector<1x512xf32>
      %25 = vector.broadcast %24 : vector<1x512xf32> to vector<2x512xf32>
      %26 = arith.addf %23, %25 : vector<2x512xf32>
      %cst_29 = arith.constant 0.000000e+00 : f32
      %27 = vector.broadcast %cst_29 : f32 to vector<2x512xf32>
      %28 = arith.maximumf %26, %27 : vector<2x512xf32>
      %c0_30 = arith.constant 0 : index
      %c0_31 = arith.constant 0 : index
      %29 = vector.load %arg7[%c0_30, %c0_31] : memref<512x128xf32, #tpu.memory_space<vmem>>, vector<512x128xf32>
      %cst_32 = arith.constant dense<0.000000e+00> : vector<2x128xf32>
      %30 = tpu.matmul %28, %29, %cst_32 {dimension_numbers = #tpu.dot_dimension_numbers<[1], [0], [0], [1], [0, 0, 1, 1], [], []>} : vector<2x512xf32>, vector<512x128xf32>, vector<2x128xf32> -> vector<2x128xf32>
      %c0_33 = arith.constant 0 : index
      %c0_34 = arith.constant 0 : index
      %31 = vector.load %arg8[%c0_33, %c0_34] : memref<1x128xf32, #tpu.memory_space<vmem>>, vector<1x128xf32>
      %32 = vector.broadcast %31 : vector<1x128xf32> to vector<2x128xf32>
      %33 = arith.addf %30, %32 : vector<2x128xf32>
      %c0_35 = arith.constant 0 : index
      %c0_36 = arith.constant 0 : index
      %34 = vector.load %arg10[%c0_35, %c0_36] : memref<2x128xf32, #tpu.memory_space<vmem>>, vector<2x128xf32>
      tpu.vector_store %arg10[%c0_35, %c0_36], %33 {strides = array<i32>} : memref<2x128xf32, #tpu.memory_space<vmem>>, vector<2x128xf32>,
    } else {
    }
    return
  }
  func.func @transform_0(%arg0: i32, %arg1: i32) -> (i32, i32, i32) {
    %c0_i32 = arith.constant 0 : i32
    %c0_i32_0 = arith.constant 0 : i32
    return %arg0, %c0_i32, %arg1 : i32, i32, i32
  }
  func.func @transform_1(%arg0: i32, %arg1: i32) -> (i32, i32) {
    %c0_i32 = arith.constant 0 : i32
    %c0_i32_0 = arith.constant 0 : i32
    %c0_i32_1 = arith.constant 0 : i32
    return %c0_i32, %c0_i32_0 : i32, i32
  }
  func.func @transform_2(%arg0: i32, %arg1: i32) -> (i32, i32) {
    %c0_i32 = arith.constant 0 : i32
    %c0_i32_0 = arith.constant 0 : i32
    %c0_i32_1 = arith.constant 0 : i32
    return %c0_i32, %c0_i32_0 : i32, i32
  }
  func.func @transform_3(%arg0: i32, %arg1: i32) -> (i32, i32) {
    %c0_i32 = arith.constant 0 : i32
    %c0_i32_0 = arith.constant 0 : i32
    %c0_i32_1 = arith.constant 0 : i32
    return %c0_i32, %c0_i32_0 : i32, i32
  }
  func.func @transform_4(%arg0: i32, %arg1: i32) -> (i32, i32) {
    %c0_i32 = arith.constant 0 : i32
    %c0_i32_0 = arith.constant 0 : i32
    %c0_i32_1 = arith.constant 0 : i32
    return %c0_i32, %c0_i32_0 : i32, i32
  }
  func.func @transform_5(%arg0: i32, %arg1: i32) -> (i32, i32) {
    %c0_i32 = arith.constant 0 : i32
    %c0_i32_0 = arith.constant 0 : i32
    %c0_i32_1 = arith.constant 0 : i32
    return %c0_i32, %c0_i32_0 : i32, i32
  }
  func.func @transform_6(%arg0: i32, %arg1: i32) -> (i32, i32) {
    %c0_i32 = arith.constant 0 : i32
    %c0_i32_0 = arith.constant 0 : i32
    %c0_i32_1 = arith.constant 0 : i32
    return %c0_i32, %c0_i32_0 : i32, i32
  }
  func.func @transform_7(%arg0: i32, %arg1: i32) -> (i32, i32) {
    %c0_i32 = arith.constant 0 : i32
    %c0_i32_0 = arith.constant 0 : i32
    return %arg0, %c0_i32 : i32, i32
  }
  func.func @transform_8(%arg0: i32, %arg1: i32) -> (i32, i32) {
    %c0_i32 = arith.constant 0 : i32
    %c0_i32_0 = arith.constant 0 : i32
    return %arg0, %c0_i32 : i32, i32
  }
}

module attributes {stable_mosaic.version = 11 : i64} {
  func.func @simclr_kernel(%arg0: i32, %arg1: i32, %arg2: memref<2x4x256xf32, #tpu.memory_space<vmem>>, %arg3: memref<4x2048xf32, #tpu.memory_space<vmem>>, %arg4: memref<1x2048xf32, #tpu.memory_space<vmem>>, %arg5: memref<2048x512xf32, #tpu.memory_space<vmem>>, %arg6: memref<1x512xf32, #tpu.memory_space<vmem>>, %arg7: memref<512x128xf32, #tpu.memory_space<vmem>>, %arg8: memref<1x128xf32, #tpu.memory_space<vmem>>, %arg9: memref<2x2048xf32, #tpu.memory_space<vmem>>, %arg10: memref<2x128xf32, #tpu.memory_space<vmem>>, %arg11: memref<2x4x128xf32, #tpu.memory_space<vmem>>) attributes {dimension_semantics = [#tpu.dimension_semantics<parallel>, #tpu.dimension_semantics<arbitrary>], iteration_bounds = array<i64: 1, 1>, scalar_prefetch = 0 : i64, scratch_operands = 1 : i64, tpu.core_type = #tpu.core_type<tc>, window_params = [{transform_indices = @transform_0, window_bounds = array<i64: 2, 4, 256>}, {pipeline_mode = #tpu.pipeline_mode<synchronous>, transform_indices = @transform_1, window_bounds = array<i64: 4, 2048>}, {pipeline_mode = #tpu.pipeline_mode<synchronous>, transform_indices = @transform_2, window_bounds = array<i64: 1, 2048>}, {pipeline_mode = #tpu.pipeline_mode<synchronous>, transform_indices = @transform_3, window_bounds = array<i64: 2048, 512>}, {pipeline_mode = #tpu.pipeline_mode<synchronous>, transform_indices = @transform_4, window_bounds = array<i64: 1, 512>}, {pipeline_mode = #tpu.pipeline_mode<synchronous>, transform_indices = @transform_5, window_bounds = array<i64: 512, 128>}, {pipeline_mode = #tpu.pipeline_mode<synchronous>, transform_indices = @transform_6, window_bounds = array<i64: 1, 128>}, {transform_indices = @transform_7, window_bounds = array<i64: 2, 2048>}, {transform_indices = @transform_8, window_bounds = array<i64: 2, 128>}]} {
    %c0_i32 = arith.constant 0 : i32
    %0 = arith.cmpi eq, %arg1, %c0_i32 : i32
    %1 = arith.extui %0 : i1 to i32
    %c0_i32_0 = arith.constant 0 : i32
    %2 = arith.cmpi ne, %1, %c0_i32_0 : i32
    scf.if %2 {
      %cst = arith.constant 0.000000e+00 : f32
      %12 = vector.broadcast %cst : f32 to vector<2x4x128xf32>
      %c0_13 = arith.constant 0 : index
      %c0_14 = arith.constant 0 : index
      %c0_15 = arith.constant 0 : index
      %13 = vector.load %arg11[%c0_13, %c0_14, %c0_15] : memref<2x4x128xf32, #tpu.memory_space<vmem>>, vector<2x4x128xf32>
      tpu.vector_store %arg11[%c0_13, %c0_14, %c0_15], %12 {strides = array<i32>} : memref<2x4x128xf32, #tpu.memory_space<vmem>>, vector<2x4x128xf32>,
    } else {
    }
    %c0 = arith.constant 0 : index
    %c0_1 = arith.constant 0 : index
    %c0_2 = arith.constant 0 : index
    %3 = vector.load %arg2[%c0, %c0_1, %c0_2] : memref<2x4x256xf32, #tpu.memory_space<vmem>>, vector<2x4x128xf32>
    %c0_3 = arith.constant 0 : index
    %c0_4 = arith.constant 0 : index
    %c128 = arith.constant 128 : index
    %4 = vector.load %arg2[%c0_3, %c0_4, %c128] : memref<2x4x256xf32, #tpu.memory_space<vmem>>, vector<2x4x128xf32>
    %5 = arith.addf %3, %4 : vector<2x4x128xf32>
    %c0_5 = arith.constant 0 : index
    %c0_6 = arith.constant 0 : index
    %c0_7 = arith.constant 0 : index
    %6 = vector.load %arg11[%c0_5, %c0_6, %c0_7] : memref<2x4x128xf32, #tpu.memory_space<vmem>>, vector<2x4x128xf32>
    %7 = arith.addf %6, %5 : vector<2x4x128xf32>
    %c0_8 = arith.constant 0 : index
    %c0_9 = arith.constant 0 : index
    %c0_10 = arith.constant 0 : index
    %8 = vector.load %arg11[%c0_8, %c0_9, %c0_10] : memref<2x4x128xf32, #tpu.memory_space<vmem>>, vector<2x4x128xf32>
    tpu.vector_store %arg11[%c0_8, %c0_9, %c0_10], %7 {strides = array<i32>} : memref<2x4x128xf32, #tpu.memory_space<vmem>>, vector<2x4x128xf32>,
    %c0_i32_11 = arith.constant 0 : i32
    %9 = arith.cmpi eq, %arg1, %c0_i32_11 : i32
    %10 = arith.extui %9 : i1 to i32
    %c0_i32_12 = arith.constant 0 : i32
    %11 = arith.cmpi ne, %10, %c0_i32_12 : i32
    scf.if %11 {
      %c0_13 = arith.constant 0 : index
      %c0_14 = arith.constant 0 : index
      %c0_15 = arith.constant 0 : index
      %12 = vector.load %arg11[%c0_13, %c0_14, %c0_15] : memref<2x4x128xf32, #tpu.memory_space<vmem>>, vector<2x4x128xf32>
      %cst = arith.constant dense<0.000000e+00> : vector<2x4xf32>
      %13 = vector.multi_reduction <add>, %12, %cst [2] : vector<2x4x128xf32> to vector<2x4xf32>
      %cst_16 = arith.constant 3.906250e-03 : f32
      %14 = vector.broadcast %cst_16 : f32 to vector<2x4xf32>
      %15 = arith.mulf %13, %14 : vector<2x4xf32>
      %c0_17 = arith.constant 0 : index
      %c0_18 = arith.constant 0 : index
      %16 = vector.load %arg3[%c0_17, %c0_18] : memref<4x2048xf32, #tpu.memory_space<vmem>>, vector<4x2048xf32>
      %cst_19 = arith.constant dense<0.000000e+00> : vector<2x2048xf32>
      %17 = tpu.matmul %15, %16, %cst_19 {dimension_numbers = #tpu.dot_dimension_numbers<[1], [0], [0], [1], [0, 0, 1, 1], [], []>} : vector<2x4xf32>, vector<4x2048xf32>, vector<2x2048xf32> -> vector<2x2048xf32>
      %c0_20 = arith.constant 0 : index
      %c0_21 = arith.constant 0 : index
      %18 = vector.load %arg4[%c0_20, %c0_21] : memref<1x2048xf32, #tpu.memory_space<vmem>>, vector<1x2048xf32>
      %19 = vector.broadcast %18 : vector<1x2048xf32> to vector<2x2048xf32>
      %20 = arith.addf %17, %19 : vector<2x2048xf32>
      %c0_22 = arith.constant 0 : index
      %c0_23 = arith.constant 0 : index
      %21 = vector.load %arg9[%c0_22, %c0_23] : memref<2x2048xf32, #tpu.memory_space<vmem>>, vector<2x2048xf32>
      tpu.vector_store %arg9[%c0_22, %c0_23], %20 {strides = array<i32>} : memref<2x2048xf32, #tpu.memory_space<vmem>>, vector<2x2048xf32>,
      %c0_24 = arith.constant 0 : index
      %c0_25 = arith.constant 0 : index
      %22 = vector.load %arg5[%c0_24, %c0_25] : memref<2048x512xf32, #tpu.memory_space<vmem>>, vector<2048x512xf32>
      %cst_26 = arith.constant dense<0.000000e+00> : vector<2x512xf32>
      %23 = tpu.matmul %20, %22, %cst_26 {dimension_numbers = #tpu.dot_dimension_numbers<[1], [0], [0], [1], [0, 0, 1, 1], [], []>} : vector<2x2048xf32>, vector<2048x512xf32>, vector<2x512xf32> -> vector<2x512xf32>
      %c0_27 = arith.constant 0 : index
      %c0_28 = arith.constant 0 : index
      %24 = vector.load %arg6[%c0_27, %c0_28] : memref<1x512xf32, #tpu.memory_space<vmem>>, vector<1x512xf32>
      %25 = vector.broadcast %24 : vector<1x512xf32> to vector<2x512xf32>
      %26 = arith.addf %23, %25 : vector<2x512xf32>
      %cst_29 = arith.constant 0.000000e+00 : f32
      %27 = vector.broadcast %cst_29 : f32 to vector<2x512xf32>
      %28 = arith.maximumf %26, %27 : vector<2x512xf32>
      %c0_30 = arith.constant 0 : index
      %c0_31 = arith.constant 0 : index
      %29 = vector.load %arg7[%c0_30, %c0_31] : memref<512x128xf32, #tpu.memory_space<vmem>>, vector<512x128xf32>
      %cst_32 = arith.constant dense<0.000000e+00> : vector<2x128xf32>
      %30 = tpu.matmul %28, %29, %cst_32 {dimension_numbers = #tpu.dot_dimension_numbers<[1], [0], [0], [1], [0, 0, 1, 1], [], []>} : vector<2x512xf32>, vector<512x128xf32>, vector<2x128xf32> -> vector<2x128xf32>
      %c0_33 = arith.constant 0 : index
      %c0_34 = arith.constant 0 : index
      %31 = vector.load %arg8[%c0_33, %c0_34] : memref<1x128xf32, #tpu.memory_space<vmem>>, vector<1x128xf32>
      %32 = vector.broadcast %31 : vector<1x128xf32> to vector<2x128xf32>
      %33 = arith.addf %30, %32 : vector<2x128xf32>
      %c0_35 = arith.constant 0 : index
      %c0_36 = arith.constant 0 : index
      %34 = vector.load %arg10[%c0_35, %c0_36] : memref<2x128xf32, #tpu.memory_space<vmem>>, vector<2x128xf32>
      tpu.vector_store %arg10[%c0_35, %c0_36], %33 {strides = array<i32>} : memref<2x128xf32, #tpu.memory_space<vmem>>, vector<2x128xf32>,
    } else {
    }
    return
  }
  func.func @transform_0(%arg0: i32, %arg1: i32) -> (i32, i32, i32) {
    %c0_i32 = arith.constant 0 : i32
    %c0_i32_0 = arith.constant 0 : i32
    return %arg0, %c0_i32, %arg1 : i32, i32, i32
  }
  func.func @transform_1(%arg0: i32, %arg1: i32) -> (i32, i32) {
    %c0_i32 = arith.constant 0 : i32
    %c0_i32_0 = arith.constant 0 : i32
    %c0_i32_1 = arith.constant 0 : i32
    return %c0_i32, %c0_i32_0 : i32, i32
  }
  func.func @transform_2(%arg0: i32, %arg1: i32) -> (i32, i32) {
    %c0_i32 = arith.constant 0 : i32
    %c0_i32_0 = arith.constant 0 : i32
    %c0_i32_1 = arith.constant 0 : i32
    return %c0_i32, %c0_i32_0 : i32, i32
  }
  func.func @transform_3(%arg0: i32, %arg1: i32) -> (i32, i32) {
    %c0_i32 = arith.constant 0 : i32
    %c0_i32_0 = arith.constant 0 : i32
    %c0_i32_1 = arith.constant 0 : i32
    return %c0_i32, %c0_i32_0 : i32, i32
  }
  func.func @transform_4(%arg0: i32, %arg1: i32) -> (i32, i32) {
    %c0_i32 = arith.constant 0 : i32
    %c0_i32_0 = arith.constant 0 : i32
    %c0_i32_1 = arith.constant 0 : i32
    return %c0_i32, %c0_i32_0 : i32, i32
  }
  func.func @transform_5(%arg0: i32, %arg1: i32) -> (i32, i32) {
    %c0_i32 = arith.constant 0 : i32
    %c0_i32_0 = arith.constant 0 : i32
    %c0_i32_1 = arith.constant 0 : i32
    return %c0_i32, %c0_i32_0 : i32, i32
  }
  func.func @transform_6(%arg0: i32, %arg1: i32) -> (i32, i32) {
    %c0_i32 = arith.constant 0 : i32
    %c0_i32_0 = arith.constant 0 : i32
    %c0_i32_1 = arith.constant 0 : i32
    return %c0_i32, %c0_i32_0 : i32, i32
  }
  func.func @transform_7(%arg0: i32, %arg1: i32) -> (i32, i32) {
    %c0_i32 = arith.constant 0 : i32
    %c0_i32_0 = arith.constant 0 : i32
    return %arg0, %c0_i32 : i32, i32
  }
  func.func @transform_8(%arg0: i32, %arg1: i32) -> (i32, i32) {
    %c0_i32 = arith.constant 0 : i32
    %c0_i32_0 = arith.constant 0 : i32
    return %arg0, %c0_i32 : i32, i32
  }
}

</mosaic_0001>

<bundles_post_ra>
// kernel: tpu_custom_call.1
= control target key start
LH: loop header
LB: loop body
LE: loop exit
PB: predicated region body
PF: predicated region fallthrough
CT: control target
= control target key end

     0   :  { %14 = vsyncpa [#allocation4], 0  ;;  %s5240_s0 = inlined_call_operand.hbm [shape: f32[2,4,256], index: 0, kind: input, shape index: {}]   ;;  %s5241_s1 = inlined_call_operand.hbm [shape: f32[4,2048], index: 1, kind: input, shape index: {}]   ;;  %s5242_s2 = inlined_call_operand.hbm [shape: f32[1,2048], index: 2, kind: input, shape index: {}]   ;;  %s5243_s3 = inlined_call_operand.hbm [shape: f32[2048,512], index: 3, kind: input, shape index: {}]   ;;  %s5244_s4 = inlined_call_operand.hbm [shape: f32[1,512], index: 4, kind: input, shape index: {}]   ;;  %s5245_s5 = inlined_call_operand.hbm [shape: f32[512,128], index: 5, kind: input, shape index: {}]   ;;  %s5246_s6 = inlined_call_operand.hbm [shape: f32[1,128], index: 6, kind: input, shape index: {}]   ;;  %s5247_s7 = inlined_call_operand.hbm [shape: f32[2,2048], index: 7, kind: output, shape index: {0}]   ;;  %s5248_s8 = inlined_call_operand.hbm [shape: f32[2,128], index: 8, kind: output, shape index: {1}]  }
   0x1   :  { %15 = vsyncpa [#allocation7], 0 }
   0x2   :  { %16 = vsyncpa [#allocation10], 0 }
   0x3   :  { %17 = vsyncpa [#allocation13], 0 }
   0x4   :  { %18 = vsyncpa [#allocation5], 0 }
   0x5   :  { %19 = vsyncpa [#allocation17], 0  ;;  %s4844_s27 = smov [#allocation6]   ;;  %s4845_s29 = smov [#allocation9]  }
   0x6   :  { %s38_s28 = sshll.u32 %s4844_s27, 4  ;;  %s57_s30 = sshll.u32 %s4845_s29, 4  ;;  %s39_s28 = int_to_ptr.vmem [resolvable:$true] %s38_s28  ;;  %s4904_s30 = int_to_ptr.vmem [resolvable:$true] %s57_s30 }
   0x7   :  { %s4634_s11 = scalar_lea.hbm %s5241_s1, 1024 }
   0x8   :  { %p4635_p0 = scmp.ne.s32.totalorder %s5241_s1, %s4634_s11  ;;  %p4638_p1 = scmp.lt.u32.totalorder %s4634_s11, %s5241_s1 }
   0xa   :  { %p4640_p2 = pnand %p4638_p1, %p4635_p0 }
   0xc   :  { %4643 = shalt.err (!%p4640_p2)
}
   0xd   :  { %s4644_s16 = scalar_lea.vmem %s39_s28, 1024  ;;  %p4649_p4 = scmp.lt.s32.totalorder %s39_s28, %s39_s28 }
   0xe   :  { %p4645_p3 = scmp.ne.s32.totalorder %s39_s28, %s4644_s16  ;;  %p4650_p5 = scmp.lt.s32.totalorder %s4644_s16, %s4644_s16 }
  0x10   :  { %p4651_p6 = por %p4650_p5, %p4649_p4 }
  0x12   :  { %p4652_p7 = pnand %p4651_p6, %p4645_p3 }
  0x14   :  { %4655 = shalt.err (!%p4652_p7)
}
  0x15   :  { %41 = dma.hbm_to_vmem [thread:$0]  %s5241_s1, 1024, %s39_s28, [#allocation7]  }
  0x16   :  { %s4656_s21 = scalar_lea.hbm %s5243_s3, 131072 }
  0x17   :  { %p4657_p8 = scmp.ne.s32.totalorder %s5243_s3, %s4656_s21  ;;  %p4660_p9 = scmp.lt.u32.totalorder %s4656_s21, %s5243_s3 }
  0x19   :  { %p4662_p10 = pnand %p4660_p9, %p4657_p8 }
  0x1b   :  { %4665 = shalt.err (!%p4662_p10)
}
  0x1c   :  { %s4666_s26 = scalar_lea.vmem %s4904_s30, 131072  ;;  %p4671_p12 = scmp.lt.s32.totalorder %s4904_s30, %s4904_s30 }
  0x1d   :  { %p4667_p11 = scmp.ne.s32.totalorder %s4904_s30, %s4666_s26  ;;  %p4672_p13 = scmp.lt.s32.totalorder %s4666_s26, %s4666_s26 }
  0x1f   :  { %p4673_p0 = por %p4672_p13, %p4671_p12 }
  0x21   :  { %p4674_p1 = pnand %p4673_p0, %p4667_p11 }
  0x23   :  { %4677 = shalt.err (!%p4674_p1)
}
  0x24   :  { %s4846_s1 = smov 512   ;;  %s4847_s27 = smov 32  }
  0x25   :  { %63 = dma.hbm_to_vmem [thread:$0]  %s5243_s3, 131072, %s4904_s30, [#allocation10], %s4846_s1, %s4846_s1, %s4847_s27  }
  0x26   :  { %s4848_s9 = smov [#allocation12]   ;;  %s4849_s11 = smov [#allocation3]  }
  0x27   :  { %s79_s10 = sshll.u32 %s4848_s9, 4  ;;  %s25_s12 = sshll.u32 %s4849_s11, 4  ;;  %s80_s10 = int_to_ptr.vmem [resolvable:$true] %s79_s10  ;;  %s4935_s12 = int_to_ptr.vmem [resolvable:$true] %s25_s12 }
  0x28   :  { %s4678_s15 = scalar_lea.hbm %s5245_s5, 8192 }
  0x29   :  { %p4679_p2 = scmp.ne.s32.totalorder %s5245_s5, %s4678_s15  ;;  %p4682_p3 = scmp.lt.u32.totalorder %s4678_s15, %s5245_s5 }
  0x2b   :  { %p4684_p4 = pnand %p4682_p3, %p4679_p2 }
  0x2d   :  { %4687 = shalt.err (!%p4684_p4)
}
  0x2e   :  { %s4688_s3 = scalar_lea.vmem %s80_s10, 8192  ;;  %p4693_p6 = scmp.lt.s32.totalorder %s80_s10, %s80_s10 }
  0x2f   :  { %p4689_p5 = scmp.ne.s32.totalorder %s80_s10, %s4688_s3  ;;  %p4694_p7 = scmp.lt.s32.totalorder %s4688_s3, %s4688_s3 }
  0x31   :  { %p4695_p8 = por %p4694_p7, %p4693_p6 }
  0x33   :  { %p4696_p9 = pnand %p4695_p8, %p4689_p5 }
  0x35   :  { %4699 = shalt.err (!%p4696_p9)
}
  0x36   :  { %s4850_s30 = smov 128   ;;  %s4851_s20 = smov 8  }
  0x37   :  { %85 = dma.hbm_to_vmem [thread:$0]  %s5245_s5, 8192, %s80_s10, [#allocation13], %s4850_s30, %s4850_s30, %s4851_s20  }
  0x38   :  { %s4700_s25 = scalar_lea.hbm %s5240_s0, 256 }
  0x39   :  { %p4701_p10 = scmp.ne.s32.totalorder %s5240_s0, %s4700_s25  ;;  %p4704_p11 = scmp.lt.u32.totalorder %s4700_s25, %s5240_s0 }
  0x3b   :  { %p4706_p12 = pnand %p4704_p11, %p4701_p10 }
  0x3d   :  { %4709 = shalt.err (!%p4706_p12)
}
  0x3e   :  { %s4710_s29 = scalar_lea.vmem %s4935_s12, 256  ;;  %p4715_p0 = scmp.lt.s32.totalorder %s4935_s12, %s4935_s12 }
  0x3f   :  { %p4711_p13 = scmp.ne.s32.totalorder %s4935_s12, %s4710_s29  ;;  %p4716_p1 = scmp.lt.s32.totalorder %s4710_s29, %s4710_s29 }
  0x41   :  { %p4717_p2 = por %p4716_p1, %p4715_p0 }
  0x43   :  { %p4718_p3 = pnand %p4717_p2, %p4711_p13 }
  0x45   :  { %4721 = shalt.err (!%p4718_p3)
}
  0x46   :  { %31 = dma.hbm_to_vmem [thread:$0]  %s5240_s0, 256, %s4935_s12, [#allocation4], %s4850_s30, %s4850_s30, %s4851_s20  }
  0x47   :  { %s4852_s10 = smov [#allocation8]   ;;  %s4853_s13 = smov [#allocation11]  }
  0x48   :  { %s48_s11 = sshll.u32 %s4852_s10, 4  ;;  %s70_s14 = sshll.u32 %s4853_s13, 4  ;;  %s49_s11 = int_to_ptr.vmem [resolvable:$true] %s48_s11  ;;  %s71_s14 = int_to_ptr.vmem [resolvable:$true] %s70_s14 }
  0x49   :  { %s4722_s17 = scalar_lea.hbm %s5242_s2, 256 }
  0x4a   :  { %p4723_p4 = scmp.ne.s32.totalorder %s5242_s2, %s4722_s17  ;;  %p4726_p5 = scmp.lt.u32.totalorder %s4722_s17, %s5242_s2 }
  0x4c   :  { %p4728_p6 = pnand %p4726_p5, %p4723_p4 }
  0x4e   :  { %4731 = shalt.err (!%p4728_p6)
}
  0x4f   :  { %s4732_s0 = scalar_lea.vmem %s49_s11, 256  ;;  %p4737_p8 = scmp.lt.s32.totalorder %s49_s11, %s49_s11 }
  0x50   :  { %p4733_p7 = scmp.ne.s32.totalorder %s49_s11, %s4732_s0  ;;  %p4738_p9 = scmp.lt.s32.totalorder %s4732_s0, %s4732_s0 }
  0x52   :  { %p4739_p10 = por %p4738_p9, %p4737_p8 }
  0x54   :  { %p4740_p11 = pnand %p4739_p10, %p4733_p7 }
  0x56   :  { %4743 = shalt.err (!%p4740_p11)
}
  0x57   :  { %51 = dma.hbm_to_vmem [thread:$0]  %s5242_s2, 256, %s49_s11, [#allocation7]  }
  0x58   :  { %s4744_s23 = scalar_lea.hbm %s5244_s4, 64 }
  0x59   :  { %p4745_p12 = scmp.ne.s32.totalorder %s5244_s4, %s4744_s23  ;;  %p4748_p13 = scmp.lt.u32.totalorder %s4744_s23, %s5244_s4 }
  0x5b   :  { %p4750_p0 = pnand %p4748_p13, %p4745_p12 }
  0x5d   :  { %4753 = shalt.err (!%p4750_p0)
}
  0x5e   :  { %s4754_s27 = scalar_lea.vmem %s71_s14, 64  ;;  %p4759_p2 = scmp.lt.s32.totalorder %s71_s14, %s71_s14 }
  0x5f   :  { %p4755_p1 = scmp.ne.s32.totalorder %s71_s14, %s4754_s27  ;;  %p4760_p3 = scmp.lt.s32.totalorder %s4754_s27, %s4754_s27 }
  0x61   :  { %p4761_p4 = por %p4760_p3, %p4759_p2 }
  0x63   :  { %p4762_p5 = pnand %p4761_p4, %p4755_p1 }
  0x65   :  { %4765 = shalt.err (!%p4762_p5)
}
  0x66   :  { %73 = dma.hbm_to_vmem [thread:$0]  %s5244_s4, 64, %s71_s14, [#allocation10]  }
  0x67   :  { %s4854_s29 = smov [#allocation14]   ;;  %s4766_s11 = scalar_lea.hbm %s5246_s6, 16 }
  0x68   :  { %s92_s5 = sshll.u32 %s4854_s29, 4  ;;  %p4767_p6 = scmp.ne.s32.totalorder %s5246_s6, %s4766_s11  ;;  %s93_s5 = int_to_ptr.vmem [resolvable:$true] %s92_s5 }
  0x69   :  { %p4770_p7 = scmp.lt.u32.totalorder %s4766_s11, %s5246_s6 }
  0x6b   :  { %p4772_p8 = pnand %p4770_p7, %p4767_p6 }
  0x6d   :  { %4775 = shalt.err (!%p4772_p8)
}
  0x6e   :  { %s4776_s18 = scalar_lea.vmem %s93_s5, 16  ;;  %s4780_s4 = scalar_lea.vmem %s93_s5, 32 }
  0x6f   :  { %p4777_p9 = scmp.ne.s32.totalorder %s93_s5, %s4776_s18  ;;  %p4781_p10 = scmp.lt.s32.totalorder %s93_s5, %s93_s5 }
  0x70   :  { %p4782_p11 = scmp.lt.s32.totalorder %s4780_s4, %s4776_s18 }
  0x72   :  { %p4783_p12 = por %p4782_p11, %p4781_p10 }
  0x74   :  { %p4784_p13 = pnand %p4783_p12, %p4777_p9 }
  0x76   :  { %4787 = shalt.err (!%p4784_p13)
}
  0x77   :  { %95 = dma.hbm_to_vmem [thread:$0]  %s5246_s6, 16, %s93_s5, [#allocation13]  }
  0x78   :  { %4832 = dma.done.wait [#allocation4], 256  }
  0x79   :  { %4833 = vsyncadd [#allocation4], 4294967040 }
  0x7a   :  { %4834 = dma.done.wait [#allocation7], 1280  }
  0x7b   :  { %4835 = vsyncadd [#allocation7], 4294966016 }
  0x7c   :  { %4836 = dma.done.wait [#allocation10], 131136  }
  0x7d   :  { %4837 = vsyncadd [#allocation10], 4294836160 }
  0x7e   :  { %4838 = dma.done.wait [#allocation13], 8208  }
  0x7f   :  { %4839 = vsyncadd [#allocation13], 4294959088  ;;  %v4855_v0 = vmov 0.0   ;;  %v123_v1 = vld [vmem:[#allocation3] sm:$0xf]  ;;  %vm140_vm0 = vcmask 1043456   ;;  %v161_v23 = vlaneseq }
  0x80   :  { %121 = vst [vmem:[#allocation2] sm:$0xf] %v4855_v0  ;;  %122 = vst [vmem:[#allocation2 + $0x4] sm:$0xf] %v4855_v0  ;;  %370 = vmatprep.mubr.f32.mxu0 %v4855_v0  ;;  %441 = vmatprep.mubr.f32.mxu1 %v4855_v0  ;;  %v125_v2 = vld [vmem:[#allocation3 + $0x4] sm:$0xf] }
  0x81   :  { %v124_v3 = vld [vmem:[#allocation3 + $0x8] sm:$0xf]  ;;  %v127_v4 = vadd.f32 %v125_v2, %v123_v1  ;;  %v126_v6 = vld [vmem:[#allocation3 + $0xc] sm:$0xf]  ;;  %v149_v15 = vld [vmem:[#allocation6] sm:$0xff]  ;;  %v5014_v24 = vshrl.u32 %v161_v23, 7 }
  0x82   :  { %v128_v8 = vadd.f32 %v126_v6, %v124_v3  ;;  %v150_v16 = vld [vmem:[#allocation6 + $0x8] sm:$0xff]  ;;  %v263_v17 = vcombine.high %v149_v15, %v149_v15  ;;  %v151_v19 = vld [vmem:[#allocation6 + $0x10] sm:$0xff]  ;;  %v152_v20 = vld [vmem:[#allocation6 + $0x18] sm:$0xff]  ;;  %v244_v25 = vand.u32 127, %v161_v23  ;;  %vm253_vm1 = vcmask 1041409   ;;  %s4857_s6 = smov [#allocation15]  }
  0x83   :  { %v264_v18 = vcombine.high %v150_v16, %v150_v16  ;;  %v265_v21 = vcombine.high %v151_v19, %v151_v19  ;;  %v266_v22 = vcombine.high %v152_v20, %v152_v20  ;;  %v153_v31 = vld [vmem:[#allocation6 + $0x20] sm:$0xff]  ;;  %v154_v32 = vld [vmem:[#allocation6 + $0x28] sm:$0xff]  ;;  %vm271_vm2 = vcmask 31744   ;;  %v155_v38 = vld [vmem:[#allocation6 + $0x30] sm:$0xff]  ;;  %s3370_s3 = sshll.u32 %s4857_s6, 4  ;;  %s3371_s3 = int_to_ptr.vmem [resolvable:$true] %s3370_s3 }
  0x84   :  { %3396 = vmatprep.subr.msk.mxu0 %vm140_vm0, %v263_v17  ;;  %v247_v27 = vsub.s32 %v244_v25, %v5014_v24  ;;  %v267_v36 = vcombine.high %v153_v31, %v153_v31  ;;  %v268_v37 = vcombine.high %v154_v32, %v154_v32  ;;  %v156_v39 = vld [vmem:[#allocation6 + $0x38] sm:$0xff]  ;;  %v269_v40 = vcombine.high %v155_v38, %v155_v38  ;;  %v969_v44 = vld [vmem:[#allocation9 + $0x18] sm:$0xff]  ;;  %v966_v46 = vld [vmem:[#allocation9] sm:$0xff]  ;;  %s4788_s21 = scalar_lea.vmem %s3371_s3, 512  ;;  %p4793_p1 = scmp.lt.s32.totalorder %s3371_s3, %s3371_s3 }
  0x85   :  { %3399 = vmatprep.subr.msk.mxu1 %vm140_vm0, %v264_v18  ;;  %3397 = vmatpush1.msk.msra.mxu0 %vm140_vm0, %v149_v15  ;;  %v270_v41 = vcombine.high %v156_v39, %v156_v39  ;;  %v967_v42 = vld [vmem:[#allocation9 + $0x8] sm:$0xff]  ;;  %v973_v45 = vld [vmem:[#allocation9 + $0x38] sm:$0xff]  ;;  %v970_v47 = vld [vmem:[#allocation9 + $0x20] sm:$0xff]  ;;  %p4789_p0 = scmp.ne.s32.totalorder %s3371_s3, %s4788_s21  ;;  %p4794_p2 = scmp.lt.s32.totalorder %s4788_s21, %s4788_s21 }
  0x86   :  { %3400 = vmatpush1.msk.msra.mxu1 %vm140_vm0, %v150_v16  ;;  %3402 = vmatprep.subr.msk.mxu0 %vm140_vm0, %v265_v21  ;;  %v971_v43 = vld [vmem:[#allocation9 + $0x28] sm:$0xff]  ;;  %v968_v48 = vld [vmem:[#allocation9 + $0x10] sm:$0xff]  ;;  %v4003_v52 = vpack.c.bf16 %v973_v45, %v969_v44  ;;  %v977_v54 = vld [vmem:[#allocation9 + $0x58] sm:$0xff]  ;;  %v3493_v56 = vpack.c.bf16 %v970_v47, %v966_v46 }
  0x87   :  { %v129_v5 = vld [vmem:[#allocation2] sm:$0xf]  ;;  %v130_v7 = vld [vmem:[#allocation2 + $0x4] sm:$0xf]  ;;  %3405 = vmatprep.subr.msk.mxu1 %vm140_vm0, %v266_v22  ;;  %v972_v49 = vld [vmem:[#allocation9 + $0x30] sm:$0xff]  ;;  %v3491_v51 = vpack.c.bf16 %v971_v43, %v967_v42  ;;  %p4795_p3 = por %p4794_p2, %p4793_p1 }
  0x88   :  { %v131_v9 = vadd.f32 %v129_v5, %v127_v4  ;;  %v132_v10 = vadd.f32 %v130_v7, %v128_v8  ;;  %v975_v50 = vld [vmem:[#allocation9 + $0x48] sm:$0xff]  ;;  %v981_v55 = vld [vmem:[#allocation9 + $0x78] sm:$0xff]  ;;  %v4005_v57 = vpack.c.bf16 %v972_v49, %v968_v48  ;;  %v974_v58 = vld [vmem:[#allocation9 + $0x40] sm:$0xff] }
  0x89   :  { %v979_v53 = vld [vmem:[#allocation9 + $0x68] sm:$0xff]  ;;  %v978_v59 = vld [vmem:[#allocation9 + $0x60] sm:$0xff]  ;;  %v4007_v61 = vpack.c.bf16 %v981_v55, %v977_v54  ;;  %v976_v62 = vld [vmem:[#allocation9 + $0x50] sm:$0xff]  ;;  %p4796_p4 = pnand %p4795_p3, %p4789_p0 }
  0x8a   :  { %133 = vst [vmem:[#allocation2] sm:$0xf] %v131_v9  ;;  %134 = vst [vmem:[#allocation2 + $0x4] sm:$0xf] %v132_v10  ;;  %v3495_v60 = vpack.c.bf16 %v979_v53, %v975_v50  ;;  %v980_v63 = vld [vmem:[#allocation9 + $0x70] sm:$0xff]  ;;  %v983_v1 = vld [vmem:[#allocation9 + $0x88] sm:$0xff]  ;;  %v3497_v5 = vpack.c.bf16 %v978_v59, %v974_v58 }
  0x8b   :  { %v987_v2 = vld [vmem:[#allocation9 + $0xa8] sm:$0xff]  ;;  %v985_v3 = vld [vmem:[#allocation9 + $0x98] sm:$0xff]  ;;  %v4009_v6 = vpack.c.bf16 %v980_v63, %v976_v62  ;;  %v982_v7 = vld [vmem:[#allocation9 + $0x80] sm:$0xff] }
  0x8c   :  { %v989_v4 = vld [vmem:[#allocation9 + $0xb8] sm:$0xff]  ;;  %v3499_v8 = vpack.c.bf16 %v987_v2, %v983_v1  ;;  %v984_v10 = vld [vmem:[#allocation9 + $0x90] sm:$0xff]  ;;  %v990_v18 = vld [vmem:[#allocation9 + $0xc0] sm:$0xff] }
  0x8d   :  { %v4011_v9 = vpack.c.bf16 %v989_v4, %v985_v3  ;;  %v997_v15 = vld [vmem:[#allocation9 + $0xf8] sm:$0xff]  ;;  %v992_v22 = vld [vmem:[#allocation9 + $0xd0] sm:$0xff]  ;;  %v999_v25 = vld [vmem:[#allocation9 + $0x108] sm:$0xff] }
  0x8e   :  { %v996_v23 = vld [vmem:[#allocation9 + $0xf0] sm:$0xff]  ;;  %v1006_v43 = vld [vmem:[#allocation9 + $0x140] sm:$0xff]  ;;  %v1015_v49 = vld [vmem:[#allocation9 + $0x188] sm:$0xff] }
  0x8f   :  { %v1010_v44 = vld [vmem:[#allocation9 + $0x160] sm:$0xff]  ;;  %v1008_v47 = vld [vmem:[#allocation9 + $0x150] sm:$0xff]  ;;  %v1019_v50 = vld [vmem:[#allocation9 + $0x1a8] sm:$0xff] }
  0x90   :  { %v1012_v48 = vld [vmem:[#allocation9 + $0x170] sm:$0xff]  ;;  %v3513_v53 = vpack.c.bf16 %v1010_v44, %v1006_v43  ;;  %v1014_v55 = vld [vmem:[#allocation9 + $0x180] sm:$0xff]  ;;  %v1027_v62 = vld [vmem:[#allocation9 + $0x1e8] sm:$0xff] }
  0x91   :  { %v138_v11 = vld [vmem:[#allocation2] sm:$0xf]  ;;  %v139_v13 = vld [vmem:[#allocation2 + $0x4] sm:$0xf]  ;;  %v4025_v54 = vpack.c.bf16 %v1012_v48, %v1008_v47  ;;  %v1016_v59 = vld [vmem:[#allocation9 + $0x190] sm:$0xff] }
  0x92   :  { %v141_v12 = vsel %vm140_vm0, %v138_v11, 0.0  ;;  %v144_v14 = vsel %vm140_vm0, %v139_v13, 0.0  ;;  %v988_v11 = vld [vmem:[#allocation9 + $0xb0] sm:$0xff]  ;;  %v995_v13 = vld [vmem:[#allocation9 + $0xe8] sm:$0xff]  ;;  %v1025_v63 = vld [vmem:[#allocation9 + $0x1d8] sm:$0xff] }
  0x93   :  { %142 = vadd.xlane.f32.xlu0 %v141_v12  ;;  %v991_v12 = vld [vmem:[#allocation9 + $0xc8] sm:$0xff]  ;;  %v4013_v17 = vpack.c.bf16 %v988_v11, %v984_v10  ;;  %v1029_v1 = vld [vmem:[#allocation9 + $0x1f8] sm:$0xff]  ;;  %v1022_v4 = vld [vmem:[#allocation9 + $0x1c0] sm:$0xff] }
  0x94   :  { %v1035_v10 = vld [vmem:[#allocation9 + $0x228] sm:$0xff]  ;;  %v1033_v11 = vld [vmem:[#allocation9 + $0x218] sm:$0xff]  ;;  %v1048_v44 = vld [vmem:[#allocation9 + $0x290] sm:$0xff] }
  0x95   :  { %v1059_v47 = vld [vmem:[#allocation9 + $0x2e8] sm:$0xff]  ;;  %v1057_v48 = vld [vmem:[#allocation9 + $0x2d8] sm:$0xff] }
  0x97   :  { %145 = vadd.xlane.f32.xlu0 %v144_v14  ;;  %v993_v14 = vld [vmem:[#allocation9 + $0xd8] sm:$0xff] }
  0x98   :  { %v4015_v21 = vpack.c.bf16 %v997_v15, %v993_v14  ;;  %v1030_v15 = vld [vmem:[#allocation9 + $0x200] sm:$0xff] }
 0x120   :  { %v143_v26 = vpop.xlane.xlu0 %142 }
 0x121   :  { %v147_v28 = vmul.f32 0.00390625, %v143_v26  ;;  %v1003_v26 = vld [vmem:[#allocation9 + $0x128] sm:$0xff] }
 0x123   :  { %v248_v33 = vrot.slane %v147_v28, %v247_v27  ;;  %v1005_v28 = vld [vmem:[#allocation9 + $0x138] sm:$0xff] }
 0x124   :  { %v146_v29 = vpop.xlane.xlu0 %145 }
 0x125   :  { %v148_v30 = vmul.f32 0.00390625, %v146_v29 }
 0x127   :  { %v252_v34 = vrot.slane %v148_v30, %v247_v27  ;;  %v1001_v27 = vld [vmem:[#allocation9 + $0x118] sm:$0xff]  ;;  %v4017_v30 = vpack.c.bf16 %v996_v23, %v992_v22  ;;  %v1043_v22 = vld [vmem:[#allocation9 + $0x268] sm:$0xff] }
 0x128   :  { %v1041_v23 = vld [vmem:[#allocation9 + $0x258] sm:$0xff] }
 0x129   :  { %v254_v35 = vsel %vm253_vm1, %v252_v34, %v248_v33  ;;  %v3507_v33 = vpack.c.bf16 %v1003_v26, %v999_v25  ;;  %v4019_v34 = vpack.c.bf16 %v1005_v28, %v1001_v27  ;;  %v1045_v25 = vld [vmem:[#allocation9 + $0x278] sm:$0xff]  ;;  %v1038_v28 = vld [vmem:[#allocation9 + $0x240] sm:$0xff] }
 0x12a   :  { %3398 = vmatmul.mubr.msk.f32.vlgmr.msra.gmra.mrb[0].mxu0 %vm271_vm2, %v254_v35  ;;  %3401 = vmatmul.mubr.msk.f32.vlgmr.msra.gmra.mrb[0].mxu1 %vm271_vm2, %v254_v35 }
 0x12b   :  { %3403 = vmatpush1.msk.msra.mxu0 %vm140_vm0, %v151_v19  ;;  %512 = vmatprep.mubr.f32.mxu0 %v4855_v0  ;;  %v994_v19 = vld [vmem:[#allocation9 + $0xe0] sm:$0xff] }
 0x12c   :  { %3406 = vmatpush1.msk.msra.mxu1 %vm140_vm0, %v152_v20  ;;  %583 = vmatprep.mubr.f32.mxu1 %v4855_v0  ;;  %v3503_v20 = vpack.c.bf16 %v995_v13, %v991_v12  ;;  %v3505_v29 = vpack.c.bf16 %v994_v19, %v990_v18  ;;  %v1037_v12 = vld [vmem:[#allocation9 + $0x238] sm:$0xff]  ;;  %v1032_v19 = vld [vmem:[#allocation9 + $0x210] sm:$0xff] }
 0x12d   :  { %3408 = vmatprep.subr.msk.mxu0 %vm140_vm0, %v267_v36  ;;  %3411 = vmatprep.subr.msk.mxu1 %vm140_vm0, %v268_v37  ;;  %v1004_v36 = vld [vmem:[#allocation9 + $0x130] sm:$0xff]  ;;  %v1007_v37 = vld [vmem:[#allocation9 + $0x148] sm:$0xff]  ;;  %v4035_v18 = vpack.c.bf16 %v1037_v12, %v1033_v11  ;;  %v1070_v12 = vld [vmem:[#allocation9 + $0x340] sm:$0xff] }
 0x12e   :  { %3404 = vmatmul.mubr.msk.f32.vlgmr.msra.gmra.mrb[2].mxu0 %vm271_vm2, %v254_v35  ;;  %3407 = vmatmul.mubr.msk.f32.vlgmr.msra.gmra.mrb[2].mxu1 %vm271_vm2, %v254_v35 }
 0x12f   :  { %3409 = vmatpush1.msk.msra.mxu0 %vm140_vm0, %v153_v31  ;;  %654 = vmatprep.mubr.f32.mxu0 %v4855_v0  ;;  %v998_v31 = vld [vmem:[#allocation9 + $0x100] sm:$0xff] }
 0x130   :  { %3412 = vmatpush1.msk.msra.mxu1 %vm140_vm0, %v154_v32  ;;  %725 = vmatprep.mubr.f32.mxu1 %v4855_v0  ;;  %v1002_v32 = vld [vmem:[#allocation9 + $0x120] sm:$0xff] }
 0x131   :  { %3414 = vmatprep.subr.msk.mxu0 %vm140_vm0, %v269_v40  ;;  %3417 = vmatprep.subr.msk.mxu1 %vm140_vm0, %v270_v41  ;;  %v1013_v40 = vld [vmem:[#allocation9 + $0x178] sm:$0xff]  ;;  %v3509_v41 = vpack.c.bf16 %v1002_v32, %v998_v31  ;;  %v4039_v31 = vpack.c.bf16 %v1045_v25, %v1041_v23  ;;  %v1040_v32 = vld [vmem:[#allocation9 + $0x250] sm:$0xff]  ;;  %v1078_v25 = vld [vmem:[#allocation9 + $0x380] sm:$0xff] }
 0x132   :  { %3410 = vmatmul.mubr.msk.f32.vlgmr.msra.gmra.mrb[4].mxu0 %vm271_vm2, %v254_v35  ;;  %3413 = vmatmul.mubr.msk.f32.vlgmr.msra.gmra.mrb[4].mxu1 %vm271_vm2, %v254_v35 }
 0x133   :  { %3415 = vmatpush1.msk.msra.mxu0 %vm140_vm0, %v155_v38  ;;  %796 = vmatprep.mubr.f32.mxu0 %v4855_v0  ;;  %v1011_v38 = vld [vmem:[#allocation9 + $0x168] sm:$0xff] }
 0x134   :  { %3418 = vmatpush1.msk.msra.mxu1 %vm140_vm0, %v156_v39  ;;  %867 = vmatprep.mubr.f32.mxu1 %v4855_v0  ;;  %v986_v0 = vld [vmem:[#allocation9 + $0xa0] sm:$0xff]  ;;  %v1009_v39 = vld [vmem:[#allocation9 + $0x158] sm:$0xff]  ;;  %v3511_v45 = vpack.c.bf16 %v1011_v38, %v1007_v37 }
 0x135   :  { %3492 = vmatprep.subr.bf16.mxu0 %v3491_v51  ;;  %4004 = vmatprep.subr.bf16.mxu1 %v4003_v52  ;;  %v3501_v16 = vpack.c.bf16 %v986_v0, %v982_v7  ;;  %v4023_v46 = vpack.c.bf16 %v1013_v40, %v1009_v39  ;;  %v1017_v51 = vld [vmem:[#allocation9 + $0x198] sm:$0xff]  ;;  %v4031_v7 = vpack.c.bf16 %v1029_v1, %v1025_v63  ;;  %v1024_v0 = vld [vmem:[#allocation9 + $0x1d0] sm:$0xff]  ;;  %v1046_v40 = vld [vmem:[#allocation9 + $0x280] sm:$0xff] }
 0x136   :  { %3416 = vmatmul.mubr.msk.f32.vlgmr.msra.gmra.mrb[6].mxu0 %vm271_vm2, %v254_v35  ;;  %3419 = vmatmul.mubr.msk.f32.vlgmr.msra.gmra.mrb[6].mxu1 %vm271_vm2, %v254_v35  ;;  %v1000_v35 = vld [vmem:[#allocation9 + $0x110] sm:$0xff]  ;;  %v1021_v52 = vld [vmem:[#allocation9 + $0x1b8] sm:$0xff]  ;;  %v1062_v1 = vld [vmem:[#allocation9 + $0x300] sm:$0xff] }
 0x137   :  { %3494 = vmatpush1.bf16.msra.mxu0 %v3493_v56  ;;  %4006 = vmatpush1.bf16.msra.mxu1 %v4005_v57  ;;  %v4021_v42 = vpack.c.bf16 %v1004_v36, %v1000_v35  ;;  %v1018_v56 = vld [vmem:[#allocation9 + $0x1a0] sm:$0xff]  ;;  %v3515_v57 = vpack.c.bf16 %v1019_v50, %v1015_v49  ;;  %v4027_v58 = vpack.c.bf16 %v1021_v52, %v1017_v51  ;;  %v1051_v35 = vld [vmem:[#allocation9 + $0x2a8] sm:$0xff]  ;;  %v1049_v36 = vld [vmem:[#allocation9 + $0x298] sm:$0xff] }
 0x138   :  { %3496 = vmatprep.subr.bf16.mxu0 %v3495_v60  ;;  %4008 = vmatprep.subr.bf16.mxu1 %v4007_v61  ;;  %v1020_v60 = vld [vmem:[#allocation9 + $0x1b0] sm:$0xff]  ;;  %v1023_v61 = vld [vmem:[#allocation9 + $0x1c8] sm:$0xff]  ;;  %v3517_v2 = vpack.c.bf16 %v1018_v56, %v1014_v55  ;;  %v1053_v37 = vld [vmem:[#allocation9 + $0x2b8] sm:$0xff] }
 0x139   :  { %v4029_v3 = vpack.c.bf16 %v1020_v60, %v1016_v59  ;;  %v4043_v43 = vpack.c.bf16 %v1053_v37, %v1049_v36  ;;  %v1061_v49 = vld [vmem:[#allocation9 + $0x2f8] sm:$0xff]  ;;  %v1054_v52 = vld [vmem:[#allocation9 + $0x2c0] sm:$0xff]  ;;  %v1056_v56 = vld [vmem:[#allocation9 + $0x2d0] sm:$0xff] }
 0x13a   :  { %v4047_v55 = vpack.c.bf16 %v1061_v49, %v1057_v48  ;;  %v1067_v59 = vld [vmem:[#allocation9 + $0x328] sm:$0xff]  ;;  %v1065_v60 = vld [vmem:[#allocation9 + $0x318] sm:$0xff] }
 0x13b   :  { %3498 = vmatpush1.bf16.msra.mxu0 %v3497_v5  ;;  %4010 = vmatpush1.bf16.msra.mxu1 %v4009_v6  ;;  %v1026_v5 = vld [vmem:[#allocation9 + $0x1e0] sm:$0xff]  ;;  %v3519_v6 = vpack.c.bf16 %v1027_v62, %v1023_v61  ;;  %v1069_v61 = vld [vmem:[#allocation9 + $0x338] sm:$0xff] }
 0x13c   :  { %3500 = vmatprep.subr.bf16.mxu0 %v3499_v8  ;;  %4012 = vmatprep.subr.bf16.mxu1 %v4011_v9  ;;  %v1028_v8 = vld [vmem:[#allocation9 + $0x1f0] sm:$0xff]  ;;  %v1031_v9 = vld [vmem:[#allocation9 + $0x208] sm:$0xff]  ;;  %v3521_v13 = vpack.c.bf16 %v1026_v5, %v1022_v4  ;;  %v4051_v4 = vpack.c.bf16 %v1069_v61, %v1065_v60  ;;  %v1093_v37 = vld [vmem:[#allocation9 + $0x3f8] sm:$0xff]  ;;  %v183_v61 = vsub.s32 5, %v5014_v24 }
 0x13d   :  { %v4033_v14 = vpack.c.bf16 %v1028_v8, %v1024_v0  ;;  %v1064_v5 = vld [vmem:[#allocation9 + $0x310] sm:$0xff]  ;;  %v1075_v0 = vld [vmem:[#allocation9 + $0x368] sm:$0xff]  ;;  %v1073_v8 = vld [vmem:[#allocation9 + $0x358] sm:$0xff] }
 0x13e   :  { %v1101_v49 = vld [vmem:[#allocation9 + $0x438] sm:$0xff] }
 0x13f   :  { %3502 = vmatpush1.bf16.msra.mxu0 %v3501_v16  ;;  %4014 = vmatpush1.bf16.msra.mxu1 %v4013_v17  ;;  %v1034_v16 = vld [vmem:[#allocation9 + $0x220] sm:$0xff]  ;;  %v3523_v17 = vpack.c.bf16 %v1035_v10, %v1031_v9  ;;  %v1077_v9 = vld [vmem:[#allocation9 + $0x378] sm:$0xff] }
 0x140   :  { %3504 = vmatprep.subr.bf16.mxu0 %v3503_v20  ;;  %4016 = vmatprep.subr.bf16.mxu1 %v4015_v21  ;;  %v1036_v20 = vld [vmem:[#allocation9 + $0x230] sm:$0xff]  ;;  %v1039_v21 = vld [vmem:[#allocation9 + $0x248] sm:$0xff]  ;;  %v3525_v26 = vpack.c.bf16 %v1034_v16, %v1030_v15  ;;  %v4055_v15 = vpack.c.bf16 %v1077_v9, %v1073_v8 }
 0x141   :  { %v4037_v27 = vpack.c.bf16 %v1036_v20, %v1032_v19  ;;  %v1072_v16 = vld [vmem:[#allocation9 + $0x350] sm:$0xff]  ;;  %v1083_v19 = vld [vmem:[#allocation9 + $0x3a8] sm:$0xff]  ;;  %v1081_v20 = vld [vmem:[#allocation9 + $0x398] sm:$0xff] }
 0x142   :  { %v5067_v8 = vld [vmem:[#allocation9 + $0x448] sm:$0xff] }
 0x143   :  { %3506 = vmatpush1.bf16.msra.mxu0 %v3505_v29  ;;  %4018 = vmatpush1.bf16.msra.mxu1 %v4017_v30  ;;  %v1042_v29 = vld [vmem:[#allocation9 + $0x260] sm:$0xff]  ;;  %v3527_v30 = vpack.c.bf16 %v1043_v22, %v1039_v21  ;;  %v1085_v21 = vld [vmem:[#allocation9 + $0x3b8] sm:$0xff]  ;;  %v5069_v9 = vld [vmem:[#allocation9 + $0x468] sm:$0xff] }
 0x144   :  { %3508 = vmatprep.subr.bf16.mxu0 %v3507_v33  ;;  %4020 = vmatprep.subr.bf16.mxu1 %v4019_v34  ;;  %v1044_v33 = vld [vmem:[#allocation9 + $0x270] sm:$0xff]  ;;  %v1047_v34 = vld [vmem:[#allocation9 + $0x288] sm:$0xff]  ;;  %v3529_v38 = vpack.c.bf16 %v1042_v29, %v1038_v28  ;;  %v1082_v28 = vld [vmem:[#allocation9 + $0x3a0] sm:$0xff] }
 0x145   :  { %v4041_v39 = vpack.c.bf16 %v1044_v33, %v1040_v32  ;;  %v1080_v29 = vld [vmem:[#allocation9 + $0x390] sm:$0xff]  ;;  %v1087_v33 = vld [vmem:[#allocation9 + $0x3c8] sm:$0xff] }
 0x147   :  { %3510 = vmatpush1.bf16.msra.mxu0 %v3509_v41  ;;  %4022 = vmatpush1.bf16.msra.mxu1 %v4021_v42  ;;  %v1050_v41 = vld [vmem:[#allocation9 + $0x2a0] sm:$0xff]  ;;  %v3531_v42 = vpack.c.bf16 %v1051_v35, %v1047_v34  ;;  %v1091_v34 = vld [vmem:[#allocation9 + $0x3e8] sm:$0xff]  ;;  %v1089_v35 = vld [vmem:[#allocation9 + $0x3d8] sm:$0xff] }
 0x148   :  { %3512 = vmatprep.subr.bf16.mxu0 %v3511_v45  ;;  %4024 = vmatprep.subr.bf16.mxu1 %v4023_v46  ;;  %v1052_v45 = vld [vmem:[#allocation9 + $0x2b0] sm:$0xff]  ;;  %v1055_v46 = vld [vmem:[#allocation9 + $0x2c8] sm:$0xff]  ;;  %v3533_v50 = vpack.c.bf16 %v1050_v41, %v1046_v40  ;;  %v3551_v36 = vpack.c.bf16 %v1091_v34, %v1087_v33  ;;  %v4063_v40 = vpack.c.bf16 %v1093_v37, %v1089_v35 }
 0x149   :  { %v4045_v51 = vpack.c.bf16 %v1052_v45, %v1048_v44  ;;  %v1095_v45 = vld [vmem:[#allocation9 + $0x408] sm:$0xff] }
 0x14a   :  { %v5104_v33 = vld [vmem:[#allocation9 + $0x4a8] sm:$0xff] }
 0x14b   :  { %3514 = vmatpush1.bf16.msra.mxu0 %v3513_v53  ;;  %4026 = vmatpush1.bf16.msra.mxu1 %v4025_v54  ;;  %v1058_v53 = vld [vmem:[#allocation9 + $0x2e0] sm:$0xff]  ;;  %v3535_v54 = vpack.c.bf16 %v1059_v47, %v1055_v46  ;;  %v1099_v46 = vld [vmem:[#allocation9 + $0x428] sm:$0xff]  ;;  %v1097_v47 = vld [vmem:[#allocation9 + $0x418] sm:$0xff] }
 0x14c   :  { %3516 = vmatprep.subr.bf16.mxu0 %v3515_v57  ;;  %4028 = vmatprep.subr.bf16.mxu1 %v4027_v58  ;;  %v1060_v57 = vld [vmem:[#allocation9 + $0x2f0] sm:$0xff]  ;;  %v1063_v58 = vld [vmem:[#allocation9 + $0x308] sm:$0xff]  ;;  %v3537_v62 = vpack.c.bf16 %v1058_v53, %v1054_v52  ;;  %v3555_v48 = vpack.c.bf16 %v1099_v46, %v1095_v45  ;;  %v5042_v53 = vsub.s32 0, %v5014_v24 }
 0x14d   :  { %v4049_v63 = vpack.c.bf16 %v1060_v57, %v1056_v56  ;;  %v5048_v56 = vsub.s32 1, %v5014_v24  ;;  %v5051_v57 = vsub.s32 3, %v5014_v24 }
 0x14f   :  { %3518 = vmatpush1.bf16.msra.mxu0 %v3517_v2  ;;  %4030 = vmatpush1.bf16.msra.mxu1 %v4029_v3  ;;  %v1066_v2 = vld [vmem:[#allocation9 + $0x320] sm:$0xff]  ;;  %v3539_v3 = vpack.c.bf16 %v1067_v59, %v1063_v58  ;;  %v179_v58 = vsub.s32 4, %v5014_v24  ;;  %v187_v59 = vsub.s32 6, %v5014_v24 }
 0x150   :  { %3520 = vmatprep.subr.bf16.mxu0 %v3519_v6  ;;  %4032 = vmatprep.subr.bf16.mxu1 %v4031_v7  ;;  %v1068_v6 = vld [vmem:[#allocation9 + $0x330] sm:$0xff]  ;;  %v1071_v7 = vld [vmem:[#allocation9 + $0x348] sm:$0xff]  ;;  %v3541_v10 = vpack.c.bf16 %v1066_v2, %v1062_v1  ;;  %v5059_v1 = vld [vmem:[#allocation9 + $0x420] sm:$0xff] }
 0x151   :  { %v4053_v11 = vpack.c.bf16 %v1068_v6, %v1064_v5  ;;  %v1100_v5 = vld [vmem:[#allocation9 + $0x430] sm:$0xff] }
 0x153   :  { %3522 = vmatpush1.bf16.msra.mxu0 %v3521_v13  ;;  %4034 = vmatpush1.bf16.msra.mxu1 %v4033_v14  ;;  %v1074_v13 = vld [vmem:[#allocation9 + $0x360] sm:$0xff]  ;;  %v3543_v14 = vpack.c.bf16 %v1075_v0, %v1071_v7  ;;  %v5065_v0 = vld [vmem:[#allocation8 + $0x8] sm:$0xff] }
 0x154   :  { %3524 = vmatprep.subr.bf16.mxu0 %v3523_v17  ;;  %4036 = vmatprep.subr.bf16.mxu1 %v4035_v18  ;;  %v1076_v17 = vld [vmem:[#allocation9 + $0x370] sm:$0xff]  ;;  %v1079_v18 = vld [vmem:[#allocation9 + $0x388] sm:$0xff]  ;;  %v3545_v22 = vpack.c.bf16 %v1074_v13, %v1070_v12  ;;  %v5077_v13 = vld [vmem:[#allocation9 + $0x458] sm:$0xff] }
 0x155   :  { %v4057_v23 = vpack.c.bf16 %v1076_v17, %v1072_v16 }
 0x157   :  { %3526 = vmatpush1.bf16.msra.mxu0 %v3525_v26  ;;  %4038 = vmatpush1.bf16.msra.mxu1 %v4037_v27  ;;  %v3547_v26 = vpack.c.bf16 %v1083_v19, %v1079_v18  ;;  %v4059_v27 = vpack.c.bf16 %v1085_v21, %v1081_v20 }
 0x158   :  { %3528 = vmatprep.subr.bf16.mxu0 %v3527_v30  ;;  %4040 = vmatprep.subr.bf16.mxu1 %v4039_v31  ;;  %v1084_v30 = vld [vmem:[#allocation9 + $0x3b0] sm:$0xff]  ;;  %v3549_v31 = vpack.c.bf16 %v1082_v28, %v1078_v25 }
 0x159   :  { %v4061_v32 = vpack.c.bf16 %v1084_v30, %v1080_v29  ;;  %v5094_v25 = vld [vmem:[#allocation9 + $0x470] sm:$0xff]  ;;  %v196_v30 = vrot.slane %v5065_v0, %v5042_v53 }
 0x15b   :  { %3530 = vmatpush1.bf16.msra.mxu0 %v3529_v38  ;;  %4042 = vmatpush1.bf16.msra.mxu1 %v4041_v39  ;;  %v1086_v38 = vld [vmem:[#allocation9 + $0x3c0] sm:$0xff] }
 0x15c   :  { %3532 = vmatprep.subr.bf16.mxu0 %v3531_v42  ;;  %4044 = vmatprep.subr.bf16.mxu1 %v4043_v43  ;;  %v1090_v39 = vld [vmem:[#allocation9 + $0x3e0] sm:$0xff]  ;;  %v1088_v42 = vld [vmem:[#allocation9 + $0x3d0] sm:$0xff] }
 0x15d   :  { %v3553_v41 = vpack.c.bf16 %v1090_v39, %v1086_v38  ;;  %v1092_v43 = vld [vmem:[#allocation9 + $0x3f0] sm:$0xff]  ;;  %v200_v38 = vrot.slane %v5065_v0, %v5048_v56  ;;  %v208_v39 = vrot.slane %v5065_v0, %v5051_v57 }
 0x15e   :  { %v4065_v44 = vpack.c.bf16 %v1092_v43, %v1088_v42  ;;  %v5118_v42 = vld [vmem:[#allocation9 + $0x498] sm:$0xff] }
 0x15f   :  { %3534 = vmatpush1.bf16.msra.mxu0 %v3533_v50  ;;  %4046 = vmatpush1.bf16.msra.mxu1 %v4045_v51  ;;  %v4067_v50 = vpack.c.bf16 %v1101_v49, %v1097_v47  ;;  %v4856_v51 = vmov 1983009808   ;;  %v5123_v49 = vld [vmem:[#allocation9 + $0x480] sm:$0xff] }
 0x160   :  { %3536 = vmatprep.subr.bf16.mxu0 %v3535_v54  ;;  %4048 = vmatprep.subr.bf16.mxu1 %v4047_v55  ;;  %v893_v52 = vunpack.c.l.s4 %v4856_v51  ;;  %v5045_v54 = vsub.s32 2, %v5014_v24  ;;  %v157_v55 = vld [vmem:[#allocation8] sm:$0xff] }
 0x161   :  { %v164_v2 = vrot.slane %v157_v55, %v5042_v53  ;;  %v168_v6 = vrot.slane %v157_v55, %v5048_v56  ;;  %v176_v7 = vrot.slane %v157_v55, %v5051_v57  ;;  %v184_v19 = vrot.slane %v157_v55, %v183_v61 }
 0x162   :  { %v894_v60 = vunpack.c.0.s8 %v893_v52 }
 0x163   :  { %3538 = vmatpush1.bf16.msra.mxu0 %v3537_v62  ;;  %4050 = vmatpush1.bf16.msra.mxu1 %v4049_v63  ;;  %v191_v62 = vsub.s32 7, %v5014_v24  ;;  %v5057_v63 = vld [vmem:[#allocation9 + $0x400] sm:$0xff] }
 0x164   :  { %3540 = vmatprep.subr.bf16.mxu0 %v3539_v3  ;;  %4052 = vmatprep.subr.bf16.mxu1 %v4051_v4  ;;  %v172_v3 = vrot.slane %v157_v55, %v5045_v54  ;;  %v1096_v4 = vld [vmem:[#allocation9 + $0x410] sm:$0xff]  ;;  %v3557_v12 = vpack.c.bf16 %v5059_v1, %v5057_v63  ;;  %v5084_v18 = vsub.s32 %v894_v60, %v5014_v24 }
 0x165   :  { %v192_v20 = vrot.slane %v157_v55, %v191_v62  ;;  %v4069_v21 = vpack.c.bf16 %v1100_v5, %v1096_v4  ;;  %v212_v63 = vrot.slane %v5065_v0, %v179_v58  ;;  %v220_v5 = vrot.slane %v5065_v0, %v187_v59 }
 0x167   :  { %3542 = vmatpush1.bf16.msra.mxu0 %v3541_v10  ;;  %4054 = vmatpush1.bf16.msra.mxu1 %v4053_v11  ;;  %v180_v10 = vrot.slane %v157_v55, %v179_v58  ;;  %v188_v11 = vrot.slane %v157_v55, %v187_v59  ;;  %v1123_v59 = vld [vmem:[#allocation9 + $0x4e8] sm:$0xff] }
 0x168   :  { %3544 = vmatprep.subr.bf16.mxu0 %v3543_v14  ;;  %4056 = vmatprep.subr.bf16.mxu1 %v4055_v15  ;;  %v5079_v14 = vld [vmem:[#allocation9 + $0x478] sm:$0xff]  ;;  %v5081_v15 = vld [vmem:[#allocation9 + $0x440] sm:$0xff] }
 0x169   :  { %v4071_v37 = vpack.c.bf16 %v5079_v14, %v5077_v13  ;;  %v1116_v13 = vld [vmem:[#allocation9 + $0x4b0] sm:$0xff]  ;;  %v1119_v14 = vld [vmem:[#allocation9 + $0x4c8] sm:$0xff] }
 0x16a   :  { %v3567_v24 = vpack.c.bf16 %v1123_v59, %v1119_v14 }
 0x16b   :  { %3546 = vmatpush1.bf16.msra.mxu0 %v3545_v22  ;;  %4058 = vmatpush1.bf16.msra.mxu1 %v4057_v23  ;;  %v5090_v22 = vld [vmem:[#allocation9 + $0x460] sm:$0xff]  ;;  %v5092_v23 = vld [vmem:[#allocation9 + $0x450] sm:$0xff] }
 0x16c   :  { %3548 = vmatprep.subr.bf16.mxu0 %v3547_v26  ;;  %4060 = vmatprep.subr.bf16.mxu1 %v4059_v27 }
 0x16f   :  { %3550 = vmatpush1.bf16.msra.mxu0 %v3549_v31  ;;  %4062 = vmatpush1.bf16.msra.mxu1 %v4061_v32  ;;  %v3559_v31 = vpack.c.bf16 %v5069_v9, %v5067_v8  ;;  %v5102_v32 = vld [vmem:[#allocation9 + $0x488] sm:$0xff] }
 0x170   :  { %3552 = vmatprep.subr.bf16.mxu0 %v3551_v36  ;;  %4064 = vmatprep.subr.bf16.mxu1 %v4063_v40  ;;  %v204_v36 = vrot.slane %v5065_v0, %v5045_v54  ;;  %v3561_v40 = vpack.c.bf16 %v5090_v22, %v5081_v15  ;;  %v3563_v47 = vpack.c.bf16 %v5104_v33, %v5102_v32  ;;  %v1121_v22 = vld [vmem:[#allocation9 + $0x4d8] sm:$0xff]  ;;  %v1120_v32 = vld [vmem:[#allocation9 + $0x4d0] sm:$0xff] }
 0x173   :  { %3554 = vmatpush1.bf16.msra.mxu0 %v3553_v41  ;;  %4066 = vmatpush1.bf16.msra.mxu1 %v4065_v44  ;;  %v4073_v41 = vpack.c.bf16 %v5094_v25, %v5092_v23  ;;  %v1125_v23 = vld [vmem:[#allocation9 + $0x4f8] sm:$0xff] }
 0x174   :  { %3556 = vmatprep.subr.bf16.mxu0 %v3555_v48  ;;  %4068 = vmatprep.subr.bf16.mxu1 %v4067_v50  ;;  %v1117_v48 = vld [vmem:[#allocation9 + $0x4b8] sm:$0xff]  ;;  %v5125_v50 = vld [vmem:[#allocation9 + $0x4a0] sm:$0xff] }
 0x175   :  { %v3565_v58 = vpack.c.bf16 %v5125_v50, %v5123_v49 }
 0x1fd   :  { %v372_v16 = vpop.f32.mrb[0].mxu0  ;;  %v443_v17 = vpop.f32.mrb[0].mxu1 }
 0x1fe   :  { %v373_v26 = vadd.f32 %v372_v16, %v164_v2  ;;  %v5096_v27 = vadd.f32 %v443_v17, %v172_v3  ;;  %v374_v28 = vpop.f32.mrb[1].mxu0  ;;  %v445_v29 = vpop.f32.mrb[1].mxu1 }
 0x1ff   :  { %v375_v34 = vadd.f32 %v374_v28, %v168_v6  ;;  %v446_v35 = vadd.f32 %v445_v29, %v176_v7  ;;  %v4075_v6 = vpack.c.bf16 %v1117_v48, %v5118_v42  ;;  %v1112_v7 = vld [vmem:[#allocation9 + $0x490] sm:$0xff] }
 0x201   :  { %v890_v43 = vcombine.low %v373_v26, %v375_v34  ;;  %v891_v44 = vcombine.low %v5096_v27, %v446_v35  ;;  %v514_v45 = vpop.f32.mrb[2].mxu0  ;;  %v585_v46 = vpop.f32.mrb[2].mxu1  ;;  %2076 = vmatprep.mubr.f32.mxu0 %v375_v34  ;;  %2644 = vmatprep.mubr.f32.mxu1 %v375_v34 }
 0x202   :  { %v5127_v51 = vadd.f32 %v514_v45, %v180_v10  ;;  %v5129_v52 = vadd.f32 %v585_v46, %v188_v11  ;;  %v516_v55 = vpop.f32.mrb[3].mxu0  ;;  %v587_v60 = vpop.f32.mrb[3].mxu1  ;;  %2077 = vmatmul.mubr.f32.vlgmr.msra.gmra.mrb[8].mxu0 %v373_v26  ;;  %2645 = vmatmul.mubr.f32.vlgmr.msra.gmra.mrb[8].mxu1 %v373_v26  ;;  %v1129_v45 = vld [vmem:[#allocation9 + $0x518] sm:$0xff] }
 0x203   :  { %v898_v1 = vrot.slane %v890_v43, %v5084_v18  ;;  %v905_v2 = vrot.slane %v891_v44, %v5084_v18  ;;  %v5136_v3 = vadd.f32 %v516_v55, %v184_v19  ;;  %v5138_v4 = vadd.f32 %v587_v60, %v192_v20  ;;  %3558 = vmatpush1.bf16.msra.mxu0 %v3557_v12  ;;  %v1133_v46 = vld [vmem:[#allocation9 + $0x538] sm:$0xff] }
 0x204   :  { %4070 = vmatpush1.bf16.msra.mxu1 %v4069_v21  ;;  %2147 = vmatprep.mubr.f32.mxu0 %v446_v35  ;;  %v216_v20 = vrot.slane %v5065_v0, %v183_v61  ;;  %v224_v21 = vrot.slane %v5065_v0, %v191_v62  ;;  %v4077_v61 = vpack.c.bf16 %v1116_v13, %v1112_v7 }
 0x205   :  { %v906_v8 = vcombine.low %v898_v1, %v905_v2  ;;  %v907_v9 = vcombine.low %v5127_v51, %v5136_v3  ;;  %v908_v10 = vcombine.low %v5129_v52, %v5138_v4  ;;  %2715 = vmatprep.mubr.f32.mxu1 %v446_v35  ;;  %v656_v11 = vpop.f32.mrb[4].mxu0  ;;  %v727_v12 = vpop.f32.mrb[4].mxu1  ;;  %3560 = vmatprep.subr.bf16.mxu0 %v3559_v31  ;;  %v1122_v31 = vld [vmem:[#allocation9 + $0x4e0] sm:$0xff]  ;;  %v1128_v2 = vld [vmem:[#allocation9 + $0x510] sm:$0xff] }
 0x206   :  { %v5150_v15 = vadd.f32 %v656_v11, %v196_v30  ;;  %v5152_v16 = vadd.f32 %v727_v12, %v204_v36  ;;  %4072 = vmatprep.subr.bf16.mxu1 %v4071_v37  ;;  %v658_v17 = vpop.f32.mrb[5].mxu0  ;;  %v729_v19 = vpop.f32.mrb[5].mxu1  ;;  %v1118_v30 = vld [vmem:[#allocation9 + $0x4c0] sm:$0xff]  ;;  %v4079_v36 = vpack.c.bf16 %v1125_v23, %v1121_v22  ;;  %v1124_v37 = vld [vmem:[#allocation9 + $0x4f0] sm:$0xff]  ;;  %v1139_v11 = vld [vmem:[#allocation9 + $0x568] sm:$0xff] }
 0x207   :  { %962 = vst [vmem:[#allocation15] sm:$0xff] %v906_v8  ;;  %v915_v25 = vrot.slane %v907_v9, %v5084_v18  ;;  %v922_v26 = vrot.slane %v908_v10, %v5084_v18  ;;  %v5162_v28 = vadd.f32 %v658_v17, %v200_v38  ;;  %v5164_v29 = vadd.f32 %v729_v19, %v208_v39  ;;  %v1127_v38 = vld [vmem:[#allocation9 + $0x508] sm:$0xff]  ;;  %v1130_v1 = vld [vmem:[#allocation9 + $0x520] sm:$0xff]  ;;  %v1132_v9 = vld [vmem:[#allocation9 + $0x530] sm:$0xff] }
 0x208   :  { %3562 = vmatpush1.bf16.msra.mxu0 %v3561_v40  ;;  %4074 = vmatpush1.bf16.msra.mxu1 %v4073_v41  ;;  %v1131_v39 = vld [vmem:[#allocation9 + $0x528] sm:$0xff]  ;;  %v3569_v44 = vpack.c.bf16 %v1122_v31, %v1118_v30  ;;  %v4081_v55 = vpack.c.bf16 %v1124_v37, %v1120_v32  ;;  %v4083_v8 = vpack.c.bf16 %v1133_v46, %v1129_v45  ;;  %v1141_v12 = vld [vmem:[#allocation9 + $0x578] sm:$0xff]  ;;  %v1136_v22 = vld [vmem:[#allocation9 + $0x550] sm:$0xff] }
 0x209   :  { %3564 = vmatprep.subr.bf16.mxu0 %v3563_v47  ;;  %v923_v62 = vcombine.low %v915_v25, %v922_v26  ;;  %v924_v0 = vcombine.low %v5150_v15, %v5162_v28  ;;  %v925_v33 = vcombine.low %v5152_v16, %v5164_v29  ;;  %v798_v34 = vpop.f32.mrb[6].mxu0  ;;  %v869_v35 = vpop.f32.mrb[6].mxu1  ;;  %4076 = vmatprep.subr.bf16.mxu1 %v4075_v6  ;;  %v1135_v10 = vld [vmem:[#allocation9 + $0x548] sm:$0xff]  ;;  %v1140_v26 = vld [vmem:[#allocation9 + $0x570] sm:$0xff]  ;;  %v1150_v46 = vld [vmem:[#allocation9 + $0x5c0] sm:$0xff] }
 0x20a   :  { %v5170_v40 = vadd.f32 %v798_v34, %v212_v63  ;;  %v5172_v41 = vadd.f32 %v869_v35, %v220_v5  ;;  %v800_v42 = vpop.f32.mrb[7].mxu0  ;;  %v871_v43 = vpop.f32.mrb[7].mxu1  ;;  %v3571_v60 = vpack.c.bf16 %v1131_v39, %v1127_v38  ;;  %v1126_v63 = vld [vmem:[#allocation9 + $0x500] sm:$0xff]  ;;  %v4085_v17 = vpack.c.bf16 %v1132_v9, %v1128_v2  ;;  %v1143_v30 = vld [vmem:[#allocation9 + $0x588] sm:$0xff]  ;;  %v1144_v34 = vld [vmem:[#allocation9 + $0x590] sm:$0xff] }
 0x20b   :  { %963 = vst [vmem:[#allocation15 + $0x8] sm:$0xff] %v923_v62  ;;  %v932_v47 = vrot.slane %v924_v0, %v5084_v18  ;;  %v939_v48 = vrot.slane %v925_v33, %v5084_v18  ;;  %v5176_v49 = vadd.f32 %v800_v42, %v216_v20  ;;  %v5178_v50 = vadd.f32 %v871_v43, %v224_v21  ;;  %v1134_v20 = vld [vmem:[#allocation9 + $0x540] sm:$0xff]  ;;  %v1147_v31 = vld [vmem:[#allocation9 + $0x5a8] sm:$0xff]  ;;  %v1153_v39 = vld [vmem:[#allocation9 + $0x5d8] sm:$0xff] }
 0x20c   :  { %3566 = vmatpush1.bf16.msra.mxu0 %v3565_v58  ;;  %4078 = vmatpush1.bf16.msra.mxu1 %v4077_v61  ;;  %v1137_v58 = vld [vmem:[#allocation9 + $0x558] sm:$0xff]  ;;  %v3573_v59 = vpack.c.bf16 %v1130_v1, %v1126_v63  ;;  %v3575_v19 = vpack.c.bf16 %v1139_v11, %v1135_v10  ;;  %v1138_v21 = vld [vmem:[#allocation9 + $0x560] sm:$0xff]  ;;  %v4089_v32 = vpack.c.bf16 %v1140_v26, %v1136_v22  ;;  %v1151_v37 = vld [vmem:[#allocation9 + $0x5c8] sm:$0xff] }
 0x20d   :  { %3568 = vmatprep.subr.bf16.mxu0 %v3567_v24  ;;  %v940_v5 = vcombine.low %v932_v47, %v939_v48  ;;  %v941_v6 = vcombine.low %v5170_v40, %v5176_v49  ;;  %v942_v7 = vcombine.low %v5172_v41, %v5178_v50  ;;  %4080 = vmatprep.subr.bf16.mxu1 %v4079_v36  ;;  %v1145_v61 = vld [vmem:[#allocation9 + $0x598] sm:$0xff]  ;;  %v1142_v0 = vld [vmem:[#allocation9 + $0x580] sm:$0xff]  ;;  %v1148_v36 = vld [vmem:[#allocation9 + $0x5b0] sm:$0xff] }
 0x20e   :  { %v4087_v25 = vpack.c.bf16 %v1141_v12, %v1137_v58  ;;  %v1149_v24 = vld [vmem:[#allocation9 + $0x5b8] sm:$0xff]  ;;  %v3579_v62 = vpack.c.bf16 %v1147_v31, %v1143_v30  ;;  %v1146_v33 = vld [vmem:[#allocation9 + $0x5a0] sm:$0xff]  ;;  %v1155_v38 = vld [vmem:[#allocation9 + $0x5e8] sm:$0xff] }
 0x20f   :  { %964 = vst [vmem:[#allocation15 + $0x10] sm:$0xff] %v940_v5  ;;  %v949_v13 = vrot.slane %v941_v6, %v5084_v18  ;;  %v956_v14 = vrot.slane %v942_v7, %v5084_v18  ;;  %v3577_v18 = vpack.c.bf16 %v1138_v21, %v1134_v20  ;;  %v4091_v35 = vpack.c.bf16 %v1149_v24, %v1145_v61  ;;  %v1157_v42 = vld [vmem:[#allocation9 + $0x5f8] sm:$0xff]  ;;  %v1154_v47 = vld [vmem:[#allocation9 + $0x5e0] sm:$0xff]  ;;  %v1152_v48 = vld [vmem:[#allocation9 + $0x5d0] sm:$0xff] }
 0x210   :  { %3570 = vmatpush1.bf16.msra.mxu0 %v3569_v44  ;;  %4082 = vmatpush1.bf16.msra.mxu1 %v4081_v55  ;;  %v3581_v43 = vpack.c.bf16 %v1146_v33, %v1142_v0  ;;  %v4093_v44 = vpack.c.bf16 %v1148_v36, %v1144_v34  ;;  %v3583_v45 = vpack.c.bf16 %v1155_v38, %v1151_v37  ;;  %v1159_v63 = vld [vmem:[#allocation9 + $0x608] sm:$0xff]  ;;  %v1161_v2 = vld [vmem:[#allocation9 + $0x618] sm:$0xff]  ;;  %v1158_v9 = vld [vmem:[#allocation9 + $0x600] sm:$0xff] }
 0x211   :  { %3572 = vmatprep.subr.bf16.mxu0 %v3571_v60  ;;  %v957_v23 = vcombine.low %v949_v13, %v956_v14  ;;  %4084 = vmatprep.subr.bf16.mxu1 %v4083_v8  ;;  %v4095_v55 = vpack.c.bf16 %v1157_v42, %v1153_v39  ;;  %v1156_v60 = vld [vmem:[#allocation9 + $0x5f0] sm:$0xff]  ;;  %v1163_v1 = vld [vmem:[#allocation9 + $0x628] sm:$0xff]  ;;  %v1165_v5 = vld [vmem:[#allocation9 + $0x638] sm:$0xff]  ;;  %v3585_v6 = vpack.c.bf16 %v1154_v47, %v1150_v46 }
 0x212   :  { %v4097_v7 = vpack.c.bf16 %v1156_v60, %v1152_v48  ;;  %v3587_v8 = vpack.c.bf16 %v1163_v1, %v1159_v63  ;;  %v1162_v10 = vld [vmem:[#allocation9 + $0x620] sm:$0xff]  ;;  %v1160_v11 = vld [vmem:[#allocation9 + $0x610] sm:$0xff]  ;;  %v4099_v58 = vpack.c.bf16 %v1165_v5, %v1161_v2  ;;  %v1167_v13 = vld [vmem:[#allocation9 + $0x648] sm:$0xff] }
 0x213   :  { %965 = vst [vmem:[#allocation15 + $0x18] sm:$0xff] %v957_v23  ;;  %v1164_v12 = vld [vmem:[#allocation9 + $0x630] sm:$0xff]  ;;  %v1171_v14 = vld [vmem:[#allocation9 + $0x668] sm:$0xff]  ;;  %v1166_v22 = vld [vmem:[#allocation9 + $0x640] sm:$0xff] }
 0x214   :  { %3574 = vmatpush1.bf16.msra.mxu0 %v3573_v59  ;;  %4086 = vmatpush1.bf16.msra.mxu1 %v4085_v17  ;;  %v1169_v59 = vld [vmem:[#allocation9 + $0x658] sm:$0xff]  ;;  %v4101_v20 = vpack.c.bf16 %v1164_v12, %v1160_v11  ;;  %v3591_v21 = vpack.c.bf16 %v1171_v14, %v1167_v13  ;;  %v1170_v23 = vld [vmem:[#allocation9 + $0x660] sm:$0xff]  ;;  %v1172_v30 = vld [vmem:[#allocation9 + $0x670] sm:$0xff] }
 0x215   :  { %3576 = vmatprep.subr.bf16.mxu0 %v3575_v19  ;;  %4088 = vmatprep.subr.bf16.mxu1 %v4087_v25  ;;  %v1173_v17 = vld [vmem:[#allocation9 + $0x678] sm:$0xff]  ;;  %v3589_v19 = vpack.c.bf16 %v1162_v10, %v1158_v9  ;;  %v1168_v25 = vld [vmem:[#allocation9 + $0x650] sm:$0xff]  ;;  %v1175_v31 = vld [vmem:[#allocation9 + $0x688] sm:$0xff] }
 0x216   :  { %v4103_v26 = vpack.c.bf16 %v1173_v17, %v1169_v59  ;;  %v1179_v61 = vld [vmem:[#allocation9 + $0x6a8] sm:$0xff]  ;;  %v1177_v24 = vld [vmem:[#allocation9 + $0x698] sm:$0xff]  ;;  %v1174_v33 = vld [vmem:[#allocation9 + $0x680] sm:$0xff] }
 0x217   :  { %v3595_v0 = vpack.c.bf16 %v1179_v61, %v1175_v31  ;;  %v1178_v34 = vld [vmem:[#allocation9 + $0x6a0] sm:$0xff]  ;;  %v1180_v37 = vld [vmem:[#allocation9 + $0x6b0] sm:$0xff]  ;;  %v1183_v38 = vld [vmem:[#allocation9 + $0x6c8] sm:$0xff] }
 0x218   :  { %3578 = vmatpush1.bf16.msra.mxu0 %v3577_v18  ;;  %4090 = vmatpush1.bf16.msra.mxu1 %v4089_v32  ;;  %v1181_v18 = vld [vmem:[#allocation9 + $0x6b8] sm:$0xff]  ;;  %v3593_v32 = vpack.c.bf16 %v1170_v23, %v1166_v22  ;;  %v1187_v39 = vld [vmem:[#allocation9 + $0x6e8] sm:$0xff]  ;;  %v1182_v47 = vld [vmem:[#allocation9 + $0x6c0] sm:$0xff] }
 0x219   :  { %3580 = vmatprep.subr.bf16.mxu0 %v3579_v62  ;;  %4092 = vmatprep.subr.bf16.mxu1 %v4091_v35  ;;  %v4105_v62 = vpack.c.bf16 %v1172_v30, %v1168_v25  ;;  %v1176_v35 = vld [vmem:[#allocation9 + $0x690] sm:$0xff]  ;;  %v4107_v36 = vpack.c.bf16 %v1181_v18, %v1177_v24  ;;  %v1185_v42 = vld [vmem:[#allocation9 + $0x6d8] sm:$0xff]  ;;  %v3599_v46 = vpack.c.bf16 %v1187_v39, %v1183_v38  ;;  %v1186_v48 = vld [vmem:[#allocation9 + $0x6e0] sm:$0xff] }
 0x21a   :  { %v1188_v63 = vld [vmem:[#allocation9 + $0x6f0] sm:$0xff]  ;;  %v1191_v1 = vld [vmem:[#allocation9 + $0x708] sm:$0xff]  ;;  %v1193_v5 = vld [vmem:[#allocation9 + $0x718] sm:$0xff] }
 0x21b   :  { %v1195_v2 = vld [vmem:[#allocation9 + $0x728] sm:$0xff]  ;;  %v1190_v10 = vld [vmem:[#allocation9 + $0x700] sm:$0xff]  ;;  %v1196_v13 = vld [vmem:[#allocation9 + $0x730] sm:$0xff] }
 0x21c   :  { %3582 = vmatpush1.bf16.msra.mxu0 %v3581_v43  ;;  %4094 = vmatpush1.bf16.msra.mxu1 %v4093_v44  ;;  %v1189_v43 = vld [vmem:[#allocation9 + $0x6f8] sm:$0xff]  ;;  %v3597_v44 = vpack.c.bf16 %v1178_v34, %v1174_v33  ;;  %v3603_v9 = vpack.c.bf16 %v1195_v2, %v1191_v1  ;;  %v1194_v11 = vld [vmem:[#allocation9 + $0x720] sm:$0xff]  ;;  %v1199_v14 = vld [vmem:[#allocation9 + $0x748] sm:$0xff] }
 0x21d   :  { %3584 = vmatprep.subr.bf16.mxu0 %v3583_v45  ;;  %4096 = vmatprep.subr.bf16.mxu1 %v4095_v55  ;;  %v4109_v45 = vpack.c.bf16 %v1180_v37, %v1176_v35  ;;  %v1184_v55 = vld [vmem:[#allocation9 + $0x6d0] sm:$0xff]  ;;  %v4111_v60 = vpack.c.bf16 %v1189_v43, %v1185_v42  ;;  %v1203_v59 = vld [vmem:[#allocation9 + $0x768] sm:$0xff]  ;;  %v1201_v17 = vld [vmem:[#allocation9 + $0x758] sm:$0xff] }
 0x21e   :  { %v3607_v22 = vpack.c.bf16 %v1203_v59, %v1199_v14  ;;  %v1198_v23 = vld [vmem:[#allocation9 + $0x740] sm:$0xff]  ;;  %v1204_v31 = vld [vmem:[#allocation9 + $0x770] sm:$0xff]  ;;  %v1207_v61 = vld [vmem:[#allocation9 + $0x788] sm:$0xff] }
 0x21f   :  { %v1202_v25 = vld [vmem:[#allocation9 + $0x760] sm:$0xff]  ;;  %v1211_v24 = vld [vmem:[#allocation9 + $0x7a8] sm:$0xff]  ;;  %v1209_v18 = vld [vmem:[#allocation9 + $0x798] sm:$0xff] }
 0x220   :  { %3586 = vmatpush1.bf16.msra.mxu0 %v3585_v6  ;;  %4098 = vmatpush1.bf16.msra.mxu1 %v4097_v7  ;;  %v1197_v6 = vld [vmem:[#allocation9 + $0x738] sm:$0xff]  ;;  %v3601_v7 = vpack.c.bf16 %v1186_v48, %v1182_v47  ;;  %v3611_v33 = vpack.c.bf16 %v1211_v24, %v1207_v61  ;;  %v1206_v34 = vld [vmem:[#allocation9 + $0x780] sm:$0xff]  ;;  %v1212_v38 = vld [vmem:[#allocation9 + $0x7b0] sm:$0xff] }
 0x221   :  { %3588 = vmatprep.subr.bf16.mxu0 %v3587_v8  ;;  %4100 = vmatprep.subr.bf16.mxu1 %v4099_v58  ;;  %v4113_v8 = vpack.c.bf16 %v1188_v63, %v1184_v55  ;;  %v1192_v58 = vld [vmem:[#allocation9 + $0x710] sm:$0xff]  ;;  %v4115_v12 = vpack.c.bf16 %v1197_v6, %v1193_v5  ;;  %v1210_v35 = vld [vmem:[#allocation9 + $0x7a0] sm:$0xff]  ;;  %v1215_v39 = vld [vmem:[#allocation9 + $0x7c8] sm:$0xff] }
 0x222   :  { %v1219_v42 = vld [vmem:[#allocation9 + $0x7e8] sm:$0xff]  ;;  %v1217_v43 = vld [vmem:[#allocation9 + $0x7d8] sm:$0xff]  ;;  %v1214_v48 = vld [vmem:[#allocation9 + $0x7c0] sm:$0xff] }
 0x223   :  { %v3615_v47 = vpack.c.bf16 %v1219_v42, %v1215_v39  ;;  %v1218_v55 = vld [vmem:[#allocation9 + $0x7e0] sm:$0xff]  ;;  %v1220_v1 = vld [vmem:[#allocation9 + $0x7f0] sm:$0xff]  ;;  %v1223_v2 = vld [vmem:[#allocation9 + $0x808] sm:$0xff] }
 0x224   :  { %3590 = vmatpush1.bf16.msra.mxu0 %v3589_v19  ;;  %4102 = vmatpush1.bf16.msra.mxu1 %v4101_v20  ;;  %v1205_v19 = vld [vmem:[#allocation9 + $0x778] sm:$0xff]  ;;  %v3605_v20 = vpack.c.bf16 %v1194_v11, %v1190_v10  ;;  %v1227_v5 = vld [vmem:[#allocation9 + $0x828] sm:$0xff]  ;;  %v1222_v11 = vld [vmem:[#allocation9 + $0x800] sm:$0xff] }
 0x225   :  { %3592 = vmatprep.subr.bf16.mxu0 %v3591_v21  ;;  %4104 = vmatprep.subr.bf16.mxu1 %v4103_v26  ;;  %v4117_v21 = vpack.c.bf16 %v1196_v13, %v1192_v58  ;;  %v1200_v26 = vld [vmem:[#allocation9 + $0x750] sm:$0xff]  ;;  %v4119_v30 = vpack.c.bf16 %v1205_v19, %v1201_v17  ;;  %v1225_v6 = vld [vmem:[#allocation9 + $0x818] sm:$0xff]  ;;  %v3619_v10 = vpack.c.bf16 %v1227_v5, %v1223_v2  ;;  %v1226_v58 = vld [vmem:[#allocation9 + $0x820] sm:$0xff] }
 0x226   :  { %v1224_v13 = vld [vmem:[#allocation9 + $0x810] sm:$0xff]  ;;  %v1231_v59 = vld [vmem:[#allocation9 + $0x848] sm:$0xff]  ;;  %v3621_v19 = vpack.c.bf16 %v1226_v58, %v1222_v11  ;;  %v1257_v5 = vld [vmem:[#allocation9 + $0x918] sm:$0xff] }
 0x227   :  { %v1228_v14 = vld [vmem:[#allocation9 + $0x830] sm:$0xff]  ;;  %v1235_v17 = vld [vmem:[#allocation9 + $0x868] sm:$0xff]  ;;  %v1258_v11 = vld [vmem:[#allocation9 + $0x920] sm:$0xff] }
 0x228   :  { %3594 = vmatpush1.bf16.msra.mxu0 %v3593_v32  ;;  %4106 = vmatpush1.bf16.msra.mxu1 %v4105_v62  ;;  %v1213_v32 = vld [vmem:[#allocation9 + $0x7b8] sm:$0xff]  ;;  %v3609_v62 = vpack.c.bf16 %v1202_v25, %v1198_v23  ;;  %v1230_v23 = vld [vmem:[#allocation9 + $0x840] sm:$0xff]  ;;  %v1239_v61 = vld [vmem:[#allocation9 + $0x888] sm:$0xff] }
 0x229   :  { %3596 = vmatprep.subr.bf16.mxu0 %v3595_v0  ;;  %4108 = vmatprep.subr.bf16.mxu1 %v4107_v36  ;;  %v4121_v0 = vpack.c.bf16 %v1204_v31, %v1200_v26  ;;  %v1208_v36 = vld [vmem:[#allocation9 + $0x790] sm:$0xff]  ;;  %v4123_v37 = vpack.c.bf16 %v1213_v32, %v1209_v18  ;;  %v1234_v25 = vld [vmem:[#allocation9 + $0x860] sm:$0xff]  ;;  %v1243_v24 = vld [vmem:[#allocation9 + $0x8a8] sm:$0xff] }
 0x22a   :  { %v1232_v26 = vld [vmem:[#allocation9 + $0x850] sm:$0xff]  ;;  %v1241_v32 = vld [vmem:[#allocation9 + $0x898] sm:$0xff]  ;;  %v1247_v42 = vld [vmem:[#allocation9 + $0x8c8] sm:$0xff] }
 0x22b   :  { %v1236_v31 = vld [vmem:[#allocation9 + $0x870] sm:$0xff]  ;;  %v1259_v2 = vld [vmem:[#allocation9 + $0x928] sm:$0xff] }
 0x22c   :  { %3598 = vmatpush1.bf16.msra.mxu0 %v3597_v44  ;;  %4110 = vmatpush1.bf16.msra.mxu1 %v4109_v45  ;;  %v1221_v44 = vld [vmem:[#allocation9 + $0x7f8] sm:$0xff]  ;;  %v3613_v45 = vpack.c.bf16 %v1210_v35, %v1206_v34  ;;  %v3627_v34 = vpack.c.bf16 %v1243_v24, %v1239_v61  ;;  %v1238_v35 = vld [vmem:[#allocation9 + $0x880] sm:$0xff]  ;;  %v1244_v39 = vld [vmem:[#allocation9 + $0x8b0] sm:$0xff] }
 0x22d   :  { %3600 = vmatprep.subr.bf16.mxu0 %v3599_v46  ;;  %4112 = vmatprep.subr.bf16.mxu1 %v4111_v60  ;;  %v4125_v46 = vpack.c.bf16 %v1212_v38, %v1208_v36  ;;  %v1216_v60 = vld [vmem:[#allocation9 + $0x7d0] sm:$0xff]  ;;  %v4127_v63 = vpack.c.bf16 %v1221_v44, %v1217_v43  ;;  %v1242_v36 = vld [vmem:[#allocation9 + $0x8a0] sm:$0xff]  ;;  %v1251_v43 = vld [vmem:[#allocation9 + $0x8e8] sm:$0xff] }
 0x22e   :  { %v1249_v44 = vld [vmem:[#allocation9 + $0x8d8] sm:$0xff]  ;;  %v1256_v58 = vld [vmem:[#allocation9 + $0x910] sm:$0xff]  ;;  %v1271_v61 = vld [vmem:[#allocation9 + $0x988] sm:$0xff] }
 0x22f   :  { %v1275_v24 = vld [vmem:[#allocation9 + $0x9a8] sm:$0xff] }
 0x230   :  { %3602 = vmatpush1.bf16.msra.mxu0 %v3601_v7  ;;  %4114 = vmatpush1.bf16.msra.mxu1 %v4113_v8  ;;  %v1229_v7 = vld [vmem:[#allocation9 + $0x838] sm:$0xff]  ;;  %v3617_v8 = vpack.c.bf16 %v1218_v55, %v1214_v48  ;;  %v1246_v48 = vld [vmem:[#allocation9 + $0x8c0] sm:$0xff] }
 0x231   :  { %3604 = vmatprep.subr.bf16.mxu0 %v3603_v9  ;;  %4116 = vmatprep.subr.bf16.mxu1 %v4115_v12  ;;  %v4129_v9 = vpack.c.bf16 %v1220_v1, %v1216_v60  ;;  %v4131_v12 = vpack.c.bf16 %v1229_v7, %v1225_v6  ;;  %v1250_v55 = vld [vmem:[#allocation9 + $0x8e0] sm:$0xff]  ;;  %v1248_v60 = vld [vmem:[#allocation9 + $0x8d0] sm:$0xff]  ;;  %v1255_v1 = vld [vmem:[#allocation9 + $0x908] sm:$0xff] }
 0x232   :  { %v1261_v6 = vld [vmem:[#allocation9 + $0x938] sm:$0xff]  ;;  %v3633_v7 = vpack.c.bf16 %v1250_v55, %v1246_v48  ;;  %v1282_v48 = vld [vmem:[#allocation9 + $0x9e0] sm:$0xff]  ;;  %v1280_v55 = vld [vmem:[#allocation9 + $0x9d0] sm:$0xff] }
 0x234   :  { %3606 = vmatpush1.bf16.msra.mxu0 %v3605_v20  ;;  %4118 = vmatpush1.bf16.msra.mxu1 %v4117_v21  ;;  %v1233_v20 = vld [vmem:[#allocation9 + $0x858] sm:$0xff] }
 0x235   :  { %3608 = vmatprep.subr.bf16.mxu0 %v3607_v22  ;;  %4120 = vmatprep.subr.bf16.mxu1 %v4119_v30  ;;  %v1237_v21 = vld [vmem:[#allocation9 + $0x878] sm:$0xff]  ;;  %v4133_v22 = vpack.c.bf16 %v1228_v14, %v1224_v13  ;;  %v3623_v30 = vpack.c.bf16 %v1235_v17, %v1231_v59  ;;  %v1260_v13 = vld [vmem:[#allocation9 + $0x930] sm:$0xff]  ;;  %v1263_v14 = vld [vmem:[#allocation9 + $0x948] sm:$0xff] }
 0x236   :  { %v4135_v18 = vpack.c.bf16 %v1237_v21, %v1233_v20  ;;  %v1267_v59 = vld [vmem:[#allocation9 + $0x968] sm:$0xff]  ;;  %v1265_v17 = vld [vmem:[#allocation9 + $0x958] sm:$0xff]  ;;  %v4149_v21 = vpack.c.bf16 %v1260_v13, %v1256_v58 }
 0x237   :  { %v1295_v13 = vld [vmem:[#allocation9 + $0xa48] sm:$0xff] }
 0x238   :  { %3610 = vmatpush1.bf16.msra.mxu0 %v3609_v62  ;;  %4122 = vmatpush1.bf16.msra.mxu1 %v4121_v0  ;;  %v1245_v62 = vld [vmem:[#allocation9 + $0x8b8] sm:$0xff]  ;;  %v3625_v0 = vpack.c.bf16 %v1234_v25, %v1230_v23  ;;  %v1262_v23 = vld [vmem:[#allocation9 + $0x940] sm:$0xff] }
 0x239   :  { %3612 = vmatprep.subr.bf16.mxu0 %v3611_v33  ;;  %4124 = vmatprep.subr.bf16.mxu1 %v4123_v37  ;;  %v4137_v33 = vpack.c.bf16 %v1236_v31, %v1232_v26  ;;  %v1240_v37 = vld [vmem:[#allocation9 + $0x890] sm:$0xff]  ;;  %v4139_v38 = vpack.c.bf16 %v1245_v62, %v1241_v32  ;;  %v1266_v25 = vld [vmem:[#allocation9 + $0x960] sm:$0xff]  ;;  %v1277_v32 = vld [vmem:[#allocation9 + $0x9b8] sm:$0xff] }
 0x23a   :  { %v1264_v26 = vld [vmem:[#allocation9 + $0x950] sm:$0xff]  ;;  %v3641_v62 = vpack.c.bf16 %v1266_v25, %v1262_v23  ;;  %v1298_v23 = vld [vmem:[#allocation9 + $0xa60] sm:$0xff] }
 0x23b   :  { %v1268_v31 = vld [vmem:[#allocation9 + $0x970] sm:$0xff] }
 0x23c   :  { %3614 = vmatpush1.bf16.msra.mxu0 %v3613_v45  ;;  %4126 = vmatpush1.bf16.msra.mxu1 %v4125_v46  ;;  %v3629_v45 = vpack.c.bf16 %v1242_v36, %v1238_v35  ;;  %v4141_v46 = vpack.c.bf16 %v1244_v39, %v1240_v37  ;;  %v1274_v35 = vld [vmem:[#allocation9 + $0x9a0] sm:$0xff]  ;;  %v1272_v36 = vld [vmem:[#allocation9 + $0x990] sm:$0xff]  ;;  %v1279_v39 = vld [vmem:[#allocation9 + $0x9c8] sm:$0xff] }
 0x23d   :  { %3616 = vmatprep.subr.bf16.mxu0 %v3615_v47  ;;  %4128 = vmatprep.subr.bf16.mxu1 %v4127_v63  ;;  %v3631_v47 = vpack.c.bf16 %v1251_v43, %v1247_v42  ;;  %v1283_v42 = vld [vmem:[#allocation9 + $0x9e8] sm:$0xff]  ;;  %v1281_v43 = vld [vmem:[#allocation9 + $0x9d8] sm:$0xff]  ;;  %v1296_v25 = vld [vmem:[#allocation9 + $0xa50] sm:$0xff] }
 0x240   :  { %3618 = vmatpush1.bf16.msra.mxu0 %v3617_v8  ;;  %4130 = vmatpush1.bf16.msra.mxu1 %v4129_v9  ;;  %v3635_v9 = vpack.c.bf16 %v1259_v2, %v1255_v1  ;;  %v1291_v1 = vld [vmem:[#allocation9 + $0xa28] sm:$0xff]  ;;  %v1289_v2 = vld [vmem:[#allocation9 + $0xa18] sm:$0xff] }
 0x241   :  { %3620 = vmatprep.subr.bf16.mxu0 %v3619_v10  ;;  %4132 = vmatprep.subr.bf16.mxu1 %v4131_v12  ;;  %v1254_v10 = vld [vmem:[#allocation9 + $0x900] sm:$0xff]  ;;  %v4147_v12 = vpack.c.bf16 %v1261_v6, %v1257_v5  ;;  %v1293_v5 = vld [vmem:[#allocation9 + $0xa38] sm:$0xff] }
 0x242   :  { %v3637_v20 = vpack.c.bf16 %v1258_v11, %v1254_v10  ;;  %v1290_v10 = vld [vmem:[#allocation9 + $0xa20] sm:$0xff]  ;;  %v1288_v11 = vld [vmem:[#allocation9 + $0xa10] sm:$0xff]  ;;  %v4163_v58 = vpack.c.bf16 %v1293_v5, %v1289_v2  ;;  %v1325_v2 = vld [vmem:[#allocation9 + $0xb38] sm:$0xff] }
 0x243   :  { %2148 = vmatmul.mubr.f32.vlgmr.msra.gmra.mrb[8].mxu0 %v5096_v27  ;;  %2716 = vmatmul.mubr.f32.vlgmr.msra.gmra.mrb[8].mxu1 %v5096_v27  ;;  %v1253_v27 = vld [vmem:[#allocation9 + $0x8f8] sm:$0xff] }
 0x244   :  { %3622 = vmatpush1.bf16.msra.mxu0 %v3621_v19  ;;  %2218 = vmatprep.mubr.f32.mxu0 %v5136_v3  ;;  %v4143_v63 = vpack.c.bf16 %v1253_v27, %v1249_v44  ;;  %v1269_v19 = vld [vmem:[#allocation9 + $0x978] sm:$0xff] }
 0x245   :  { %4134 = vmatpush1.bf16.msra.mxu1 %v4133_v22  ;;  %2786 = vmatprep.mubr.f32.mxu1 %v5136_v3  ;;  %v1252_v3 = vld [vmem:[#allocation9 + $0x8f0] sm:$0xff]  ;;  %v3639_v22 = vpack.c.bf16 %v1267_v59, %v1263_v14  ;;  %v1285_v44 = vld [vmem:[#allocation9 + $0x9f8] sm:$0xff]  ;;  %v1299_v14 = vld [vmem:[#allocation9 + $0xa68] sm:$0xff] }
 0x246   :  { %3624 = vmatprep.subr.bf16.mxu0 %v3623_v30  ;;  %4136 = vmatprep.subr.bf16.mxu1 %v4135_v18  ;;  %v4145_v8 = vpack.c.bf16 %v1252_v3, %v1248_v60  ;;  %v4151_v30 = vpack.c.bf16 %v1269_v19, %v1265_v17  ;;  %v1273_v18 = vld [vmem:[#allocation9 + $0x998] sm:$0xff]  ;;  %v4159_v60 = vpack.c.bf16 %v1285_v44, %v1281_v43  ;;  %v1287_v3 = vld [vmem:[#allocation9 + $0xa08] sm:$0xff] }
 0x247   :  { %v4155_v37 = vpack.c.bf16 %v1277_v32, %v1273_v18  ;;  %v1297_v59 = vld [vmem:[#allocation9 + $0xa58] sm:$0xff] }
 0x248   :  { %3626 = vmatpush1.bf16.msra.mxu0 %v3625_v0  ;;  %v4153_v0 = vpack.c.bf16 %v1268_v31, %v1264_v26  ;;  %v1301_v17 = vld [vmem:[#allocation9 + $0xa78] sm:$0xff]  ;;  %v1303_v31 = vld [vmem:[#allocation9 + $0xa88] sm:$0xff] }
 0x249   :  { %4138 = vmatpush1.bf16.msra.mxu1 %v4137_v33  ;;  %3628 = vmatprep.subr.bf16.mxu0 %v3627_v34  ;;  %v3643_v33 = vpack.c.bf16 %v1275_v24, %v1271_v61  ;;  %v1270_v34 = vld [vmem:[#allocation9 + $0x980] sm:$0xff]  ;;  %v4167_v26 = vpack.c.bf16 %v1301_v17, %v1297_v59  ;;  %v1307_v61 = vld [vmem:[#allocation9 + $0xaa8] sm:$0xff]  ;;  %v1305_v24 = vld [vmem:[#allocation9 + $0xa98] sm:$0xff] }
 0x24a   :  { %4140 = vmatprep.subr.bf16.mxu1 %v4139_v38  ;;  %v1276_v38 = vld [vmem:[#allocation9 + $0x9b0] sm:$0xff]  ;;  %v3645_v27 = vpack.c.bf16 %v1274_v35, %v1270_v34  ;;  %v1309_v18 = vld [vmem:[#allocation9 + $0xab8] sm:$0xff]  ;;  %v1306_v34 = vld [vmem:[#allocation9 + $0xaa0] sm:$0xff] }
 0x24b   :  { %v1304_v35 = vld [vmem:[#allocation9 + $0xa90] sm:$0xff]  ;;  %v1317_v43 = vld [vmem:[#allocation9 + $0xaf8] sm:$0xff] }
 0x24c   :  { %3630 = vmatpush1.bf16.msra.mxu0 %v3629_v45  ;;  %v4157_v45 = vpack.c.bf16 %v1276_v38, %v1272_v36  ;;  %v4171_v36 = vpack.c.bf16 %v1309_v18, %v1305_v24  ;;  %v1311_v38 = vld [vmem:[#allocation9 + $0xac8] sm:$0xff]  ;;  %v1333_v59 = vld [vmem:[#allocation9 + $0xb78] sm:$0xff] }
 0x24d   :  { %4142 = vmatpush1.bf16.msra.mxu1 %v4141_v46  ;;  %3632 = vmatprep.subr.bf16.mxu0 %v3631_v47  ;;  %v3647_v46 = vpack.c.bf16 %v1283_v42, %v1279_v39  ;;  %v1278_v47 = vld [vmem:[#allocation9 + $0x9c0] sm:$0xff]  ;;  %v1315_v39 = vld [vmem:[#allocation9 + $0xae8] sm:$0xff]  ;;  %v1313_v42 = vld [vmem:[#allocation9 + $0xad8] sm:$0xff] }
 0x24e   :  { %4144 = vmatprep.subr.bf16.mxu1 %v4143_v63  ;;  %v1284_v63 = vld [vmem:[#allocation9 + $0x9f0] sm:$0xff]  ;;  %v3649_v6 = vpack.c.bf16 %v1282_v48, %v1278_v47  ;;  %v1314_v47 = vld [vmem:[#allocation9 + $0xae0] sm:$0xff]  ;;  %v1341_v24 = vld [vmem:[#allocation9 + $0xbb8] sm:$0xff] }
 0x24f   :  { %v1312_v48 = vld [vmem:[#allocation9 + $0xad0] sm:$0xff] }
 0x250   :  { %3634 = vmatpush1.bf16.msra.mxu0 %v3633_v7  ;;  %v4161_v7 = vpack.c.bf16 %v1284_v63, %v1280_v55  ;;  %v4175_v55 = vpack.c.bf16 %v1317_v43, %v1313_v42  ;;  %v1319_v63 = vld [vmem:[#allocation9 + $0xb08] sm:$0xff]  ;;  %v1349_v42 = vld [vmem:[#allocation9 + $0xbf8] sm:$0xff] }
 0x251   :  { %4146 = vmatpush1.bf16.msra.mxu1 %v4145_v8  ;;  %3636 = vmatprep.subr.bf16.mxu0 %v3635_v9  ;;  %v3651_v8 = vpack.c.bf16 %v1291_v1, %v1287_v3  ;;  %v1286_v9 = vld [vmem:[#allocation9 + $0xa00] sm:$0xff]  ;;  %v1323_v3 = vld [vmem:[#allocation9 + $0xb28] sm:$0xff]  ;;  %v1321_v1 = vld [vmem:[#allocation9 + $0xb18] sm:$0xff] }
 0x252   :  { %4148 = vmatprep.subr.bf16.mxu1 %v4147_v12  ;;  %v1292_v12 = vld [vmem:[#allocation9 + $0xa30] sm:$0xff]  ;;  %v3653_v19 = vpack.c.bf16 %v1290_v10, %v1286_v9  ;;  %v1322_v9 = vld [vmem:[#allocation9 + $0xb20] sm:$0xff] }
 0x253   :  { %v1320_v10 = vld [vmem:[#allocation9 + $0xb10] sm:$0xff] }
 0x254   :  { %3638 = vmatpush1.bf16.msra.mxu0 %v3637_v20  ;;  %v4165_v20 = vpack.c.bf16 %v1292_v12, %v1288_v11  ;;  %v4179_v11 = vpack.c.bf16 %v1325_v2, %v1321_v1  ;;  %v1327_v12 = vld [vmem:[#allocation9 + $0xb48] sm:$0xff]  ;;  %v1357_v1 = vld [vmem:[#allocation9 + $0xc38] sm:$0xff] }
 0x255   :  { %4150 = vmatpush1.bf16.msra.mxu1 %v4149_v21  ;;  %3640 = vmatprep.subr.bf16.mxu0 %v3639_v22  ;;  %v3655_v21 = vpack.c.bf16 %v1299_v14, %v1295_v13  ;;  %v1294_v22 = vld [vmem:[#allocation9 + $0xa40] sm:$0xff]  ;;  %v1331_v13 = vld [vmem:[#allocation9 + $0xb68] sm:$0xff]  ;;  %v1329_v14 = vld [vmem:[#allocation9 + $0xb58] sm:$0xff] }
 0x256   :  { %4152 = vmatprep.subr.bf16.mxu1 %v4151_v30  ;;  %v1300_v30 = vld [vmem:[#allocation9 + $0xa70] sm:$0xff]  ;;  %v3657_v32 = vpack.c.bf16 %v1298_v23, %v1294_v22  ;;  %v1330_v22 = vld [vmem:[#allocation9 + $0xb60] sm:$0xff] }
 0x257   :  { %v1328_v23 = vld [vmem:[#allocation9 + $0xb50] sm:$0xff] }
 0x258   :  { %3642 = vmatpush1.bf16.msra.mxu0 %v3641_v62  ;;  %v4169_v62 = vpack.c.bf16 %v1300_v30, %v1296_v25  ;;  %v4183_v25 = vpack.c.bf16 %v1333_v59, %v1329_v14  ;;  %v1335_v30 = vld [vmem:[#allocation9 + $0xb88] sm:$0xff]  ;;  %v1361_v14 = vld [vmem:[#allocation9 + $0xc58] sm:$0xff] }
 0x259   :  { %4154 = vmatpush1.bf16.msra.mxu1 %v4153_v0  ;;  %3644 = vmatprep.subr.bf16.mxu0 %v3643_v33  ;;  %v3659_v0 = vpack.c.bf16 %v1307_v61, %v1303_v31  ;;  %v1302_v33 = vld [vmem:[#allocation9 + $0xa80] sm:$0xff]  ;;  %v1339_v31 = vld [vmem:[#allocation9 + $0xba8] sm:$0xff]  ;;  %v1337_v61 = vld [vmem:[#allocation9 + $0xb98] sm:$0xff] }
 0x25a   :  { %4156 = vmatprep.subr.bf16.mxu1 %v4155_v37  ;;  %v1308_v37 = vld [vmem:[#allocation9 + $0xab0] sm:$0xff]  ;;  %v3661_v44 = vpack.c.bf16 %v1306_v34, %v1302_v33  ;;  %v1338_v33 = vld [vmem:[#allocation9 + $0xba0] sm:$0xff]  ;;  %v1365_v59 = vld [vmem:[#allocation9 + $0xc78] sm:$0xff] }
 0x25b   :  { %v1336_v34 = vld [vmem:[#allocation9 + $0xb90] sm:$0xff] }
 0x25c   :  { %3646 = vmatpush1.bf16.msra.mxu0 %v3645_v27  ;;  %v4173_v27 = vpack.c.bf16 %v1308_v37, %v1304_v35  ;;  %v4187_v35 = vpack.c.bf16 %v1341_v24, %v1337_v61  ;;  %v1343_v37 = vld [vmem:[#allocation9 + $0xbc8] sm:$0xff]  ;;  %v1373_v61 = vld [vmem:[#allocation9 + $0xcb8] sm:$0xff] }
 0x25d   :  { %4158 = vmatpush1.bf16.msra.mxu1 %v4157_v45  ;;  %3648 = vmatprep.subr.bf16.mxu0 %v3647_v46  ;;  %v3663_v45 = vpack.c.bf16 %v1315_v39, %v1311_v38  ;;  %v1310_v46 = vld [vmem:[#allocation9 + $0xac0] sm:$0xff]  ;;  %v1347_v38 = vld [vmem:[#allocation9 + $0xbe8] sm:$0xff]  ;;  %v1345_v39 = vld [vmem:[#allocation9 + $0xbd8] sm:$0xff] }
 0x25e   :  { %4160 = vmatprep.subr.bf16.mxu1 %v4159_v60  ;;  %v1316_v60 = vld [vmem:[#allocation9 + $0xaf0] sm:$0xff]  ;;  %v3665_v5 = vpack.c.bf16 %v1314_v47, %v1310_v46  ;;  %v1346_v46 = vld [vmem:[#allocation9 + $0xbe0] sm:$0xff] }
 0x25f   :  { %v1344_v47 = vld [vmem:[#allocation9 + $0xbd0] sm:$0xff] }
 0x260   :  { %3650 = vmatpush1.bf16.msra.mxu0 %v3649_v6  ;;  %v4177_v6 = vpack.c.bf16 %v1316_v60, %v1312_v48  ;;  %v4191_v48 = vpack.c.bf16 %v1349_v42, %v1345_v39  ;;  %v1351_v60 = vld [vmem:[#allocation9 + $0xc08] sm:$0xff] }
 0x261   :  { %4162 = vmatpush1.bf16.msra.mxu1 %v4161_v7  ;;  %3652 = vmatprep.subr.bf16.mxu0 %v3651_v8  ;;  %v3667_v7 = vpack.c.bf16 %v1323_v3, %v1319_v63  ;;  %v1318_v8 = vld [vmem:[#allocation9 + $0xb00] sm:$0xff]  ;;  %v1355_v63 = vld [vmem:[#allocation9 + $0xc28] sm:$0xff]  ;;  %v1353_v3 = vld [vmem:[#allocation9 + $0xc18] sm:$0xff] }
 0x262   :  { %4164 = vmatprep.subr.bf16.mxu1 %v4163_v58  ;;  %v1324_v58 = vld [vmem:[#allocation9 + $0xb30] sm:$0xff]  ;;  %v3669_v17 = vpack.c.bf16 %v1322_v9, %v1318_v8  ;;  %v1354_v8 = vld [vmem:[#allocation9 + $0xc20] sm:$0xff]  ;;  %v4195_v9 = vpack.c.bf16 %v1357_v1, %v1353_v3 }
 0x264   :  { %3654 = vmatpush1.bf16.msra.mxu0 %v3653_v19  ;;  %v4181_v19 = vpack.c.bf16 %v1324_v58, %v1320_v10  ;;  %v1352_v10 = vld [vmem:[#allocation9 + $0xc10] sm:$0xff]  ;;  %v1359_v58 = vld [vmem:[#allocation9 + $0xc48] sm:$0xff] }
 0x265   :  { %4166 = vmatpush1.bf16.msra.mxu1 %v4165_v20  ;;  %3656 = vmatprep.subr.bf16.mxu0 %v3655_v21  ;;  %v3671_v20 = vpack.c.bf16 %v1331_v13, %v1327_v12  ;;  %v1326_v21 = vld [vmem:[#allocation9 + $0xb40] sm:$0xff]  ;;  %v1363_v12 = vld [vmem:[#allocation9 + $0xc68] sm:$0xff] }
 0x266   :  { %4168 = vmatprep.subr.bf16.mxu1 %v4167_v26  ;;  %v1332_v26 = vld [vmem:[#allocation9 + $0xb70] sm:$0xff]  ;;  %v3673_v18 = vpack.c.bf16 %v1330_v22, %v1326_v21  ;;  %v3687_v22 = vpack.c.bf16 %v1363_v12, %v1359_v58  ;;  %v1397_v58 = vld [vmem:[#allocation9 + $0xd78] sm:$0xff] }
 0x267   :  { %v1360_v21 = vld [vmem:[#allocation9 + $0xc50] sm:$0xff] }
 0x268   :  { %3658 = vmatpush1.bf16.msra.mxu0 %v3657_v32  ;;  %v4185_v32 = vpack.c.bf16 %v1332_v26, %v1328_v23  ;;  %v1364_v23 = vld [vmem:[#allocation9 + $0xc70] sm:$0xff]  ;;  %v1371_v26 = vld [vmem:[#allocation9 + $0xca8] sm:$0xff] }
 0x269   :  { %4170 = vmatpush1.bf16.msra.mxu1 %v4169_v62  ;;  %3660 = vmatprep.subr.bf16.mxu0 %v3659_v0  ;;  %v3675_v62 = vpack.c.bf16 %v1339_v31, %v1335_v30  ;;  %v1334_v0 = vld [vmem:[#allocation9 + $0xb80] sm:$0xff]  ;;  %v4199_v30 = vpack.c.bf16 %v1365_v59, %v1361_v14  ;;  %v1369_v31 = vld [vmem:[#allocation9 + $0xc98] sm:$0xff] }
 0x26a   :  { %4172 = vmatprep.subr.bf16.mxu1 %v4171_v36  ;;  %v1340_v36 = vld [vmem:[#allocation9 + $0xbb0] sm:$0xff]  ;;  %v3677_v43 = vpack.c.bf16 %v1338_v33, %v1334_v0  ;;  %v1370_v0 = vld [vmem:[#allocation9 + $0xca0] sm:$0xff] }
 0x26b   :  { %v1368_v33 = vld [vmem:[#allocation9 + $0xc90] sm:$0xff]  ;;  %v1390_v59 = vld [vmem:[#allocation9 + $0xd40] sm:$0xff] }
 0x26c   :  { %3662 = vmatpush1.bf16.msra.mxu0 %v3661_v44  ;;  %v4189_v44 = vpack.c.bf16 %v1340_v36, %v1336_v34  ;;  %v4203_v34 = vpack.c.bf16 %v1373_v61, %v1369_v31  ;;  %v1375_v36 = vld [vmem:[#allocation9 + $0xcc8] sm:$0xff] }
 0x26d   :  { %4174 = vmatpush1.bf16.msra.mxu1 %v4173_v27  ;;  %3664 = vmatprep.subr.bf16.mxu0 %v3663_v45  ;;  %v3679_v27 = vpack.c.bf16 %v1347_v38, %v1343_v37  ;;  %v1342_v45 = vld [vmem:[#allocation9 + $0xbc0] sm:$0xff]  ;;  %v1379_v37 = vld [vmem:[#allocation9 + $0xce8] sm:$0xff]  ;;  %v1377_v38 = vld [vmem:[#allocation9 + $0xcd8] sm:$0xff] }
 0x26e   :  { %4176 = vmatprep.subr.bf16.mxu1 %v4175_v55  ;;  %v1348_v55 = vld [vmem:[#allocation9 + $0xbf0] sm:$0xff]  ;;  %v3681_v2 = vpack.c.bf16 %v1346_v46, %v1342_v45 }
 0x26f   :  { %v1376_v45 = vld [vmem:[#allocation9 + $0xcd0] sm:$0xff] }
 0x270   :  { %3666 = vmatpush1.bf16.msra.mxu0 %v3665_v5  ;;  %v4193_v5 = vpack.c.bf16 %v1348_v55, %v1344_v47  ;;  %v1383_v47 = vld [vmem:[#allocation9 + $0xd08] sm:$0xff]  ;;  %v1385_v55 = vld [vmem:[#allocation9 + $0xd18] sm:$0xff] }
 0x271   :  { %4178 = vmatpush1.bf16.msra.mxu1 %v4177_v6  ;;  %3668 = vmatprep.subr.bf16.mxu0 %v3667_v7  ;;  %v3683_v6 = vpack.c.bf16 %v1355_v63, %v1351_v60  ;;  %v1350_v7 = vld [vmem:[#allocation9 + $0xc00] sm:$0xff]  ;;  %v1389_v60 = vld [vmem:[#allocation9 + $0xd38] sm:$0xff] }
 0x272   :  { %4180 = vmatprep.subr.bf16.mxu1 %v4179_v11  ;;  %v1356_v11 = vld [vmem:[#allocation9 + $0xc30] sm:$0xff]  ;;  %v3685_v13 = vpack.c.bf16 %v1354_v8, %v1350_v7  ;;  %v4211_v7 = vpack.c.bf16 %v1389_v60, %v1385_v55 }
 0x273   :  { %v1388_v8 = vld [vmem:[#allocation9 + $0xd30] sm:$0xff] }
 0x274   :  { %3670 = vmatpush1.bf16.msra.mxu0 %v3669_v17  ;;  %v4197_v17 = vpack.c.bf16 %v1356_v11, %v1352_v10  ;;  %v1395_v10 = vld [vmem:[#allocation9 + $0xd68] sm:$0xff]  ;;  %v1393_v11 = vld [vmem:[#allocation9 + $0xd58] sm:$0xff] }
 0x275   :  { %4182 = vmatpush1.bf16.msra.mxu1 %v4181_v19  ;;  %3672 = vmatprep.subr.bf16.mxu0 %v3671_v20  ;;  %v1358_v19 = vld [vmem:[#allocation9 + $0xc40] sm:$0xff] }
 0x276   :  { %4184 = vmatprep.subr.bf16.mxu1 %v4183_v25  ;;  %v1362_v20 = vld [vmem:[#allocation9 + $0xc60] sm:$0xff]  ;;  %v1367_v25 = vld [vmem:[#allocation9 + $0xc88] sm:$0xff] }
 0x277   :  { %v3689_v24 = vpack.c.bf16 %v1362_v20, %v1358_v19  ;;  %v1392_v19 = vld [vmem:[#allocation9 + $0xd50] sm:$0xff]  ;;  %v4215_v20 = vpack.c.bf16 %v1397_v58, %v1393_v11 }
 0x278   :  { %3674 = vmatpush1.bf16.msra.mxu0 %v3673_v18  ;;  %v4201_v18 = vpack.c.bf16 %v1364_v23, %v1360_v21  ;;  %v1396_v21 = vld [vmem:[#allocation9 + $0xd70] sm:$0xff]  ;;  %v1403_v23 = vld [vmem:[#allocation9 + $0xda8] sm:$0xff] }
 0x279   :  { %4186 = vmatpush1.bf16.msra.mxu1 %v4185_v32  ;;  %3676 = vmatprep.subr.bf16.mxu0 %v3675_v62  ;;  %v3691_v32 = vpack.c.bf16 %v1371_v26, %v1367_v25  ;;  %v1366_v62 = vld [vmem:[#allocation9 + $0xc80] sm:$0xff]  ;;  %v1401_v25 = vld [vmem:[#allocation9 + $0xd98] sm:$0xff]  ;;  %v4217_v31 = vpack.c.bf16 %v1396_v21, %v1392_v19  ;;  %v1431_v19 = vld [vmem:[#allocation9 + $0xe88] sm:$0xff] }
 0x27a   :  { %4188 = vmatprep.subr.bf16.mxu1 %v4187_v35  ;;  %v1372_v35 = vld [vmem:[#allocation9 + $0xcb0] sm:$0xff]  ;;  %v3693_v39 = vpack.c.bf16 %v1370_v0, %v1366_v62  ;;  %v1405_v26 = vld [vmem:[#allocation9 + $0xdb8] sm:$0xff] }
 0x27b   :  { %v4205_v42 = vpack.c.bf16 %v1372_v35, %v1368_v33  ;;  %v4219_v62 = vpack.c.bf16 %v1405_v26, %v1401_v25  ;;  %v1404_v0 = vld [vmem:[#allocation9 + $0xdb0] sm:$0xff]  ;;  %v1407_v33 = vld [vmem:[#allocation9 + $0xdc8] sm:$0xff]  ;;  %v1409_v35 = vld [vmem:[#allocation9 + $0xdd8] sm:$0xff] }
 0x27c   :  { %3678 = vmatpush1.bf16.msra.mxu0 %v3677_v43  ;;  %v3695_v43 = vpack.c.bf16 %v1379_v37, %v1375_v36  ;;  %v1413_v36 = vld [vmem:[#allocation9 + $0xdf8] sm:$0xff] }
 0x27d   :  { %4190 = vmatpush1.bf16.msra.mxu1 %v4189_v44  ;;  %3680 = vmatprep.subr.bf16.mxu0 %v3679_v27  ;;  %v1374_v44 = vld [vmem:[#allocation9 + $0xcc0] sm:$0xff]  ;;  %v1433_v21 = vld [vmem:[#allocation9 + $0xe98] sm:$0xff] }
 0x27e   :  { %4192 = vmatprep.subr.bf16.mxu1 %v4191_v48  ;;  %v1378_v27 = vld [vmem:[#allocation9 + $0xce0] sm:$0xff]  ;;  %v1387_v48 = vld [vmem:[#allocation9 + $0xd28] sm:$0xff] }
 0x27f   :  { %v3697_v63 = vpack.c.bf16 %v1378_v27, %v1374_v44  ;;  %v3699_v1 = vpack.c.bf16 %v1387_v48, %v1383_v47  ;;  %v4223_v44 = vpack.c.bf16 %v1413_v36, %v1409_v35  ;;  %v1412_v27 = vld [vmem:[#allocation9 + $0xdf0] sm:$0xff]  ;;  %v1421_v47 = vld [vmem:[#allocation9 + $0xe38] sm:$0xff] }
 0x280   :  { %3682 = vmatpush1.bf16.msra.mxu0 %v3681_v2  ;;  %v1382_v2 = vld [vmem:[#allocation9 + $0xd00] sm:$0xff] }
 0x281   :  { %4194 = vmatpush1.bf16.msra.mxu1 %v4193_v5  ;;  %3684 = vmatprep.subr.bf16.mxu0 %v3683_v6  ;;  %v1386_v5 = vld [vmem:[#allocation9 + $0xd20] sm:$0xff]  ;;  %v1384_v6 = vld [vmem:[#allocation9 + $0xd10] sm:$0xff] }
 0x282   :  { %4196 = vmatprep.subr.bf16.mxu1 %v4195_v9  ;;  %v1391_v9 = vld [vmem:[#allocation9 + $0xd48] sm:$0xff]  ;;  %v3701_v12 = vpack.c.bf16 %v1386_v5, %v1382_v2  ;;  %v1420_v5 = vld [vmem:[#allocation9 + $0xe30] sm:$0xff] }
 0x283   :  { %2219 = vmatmul.mubr.f32.vlgmr.msra.gmra.mrb[8].mxu0 %v5127_v51  ;;  %v3703_v14 = vpack.c.bf16 %v1395_v10, %v1391_v9  ;;  %v1429_v9 = vld [vmem:[#allocation9 + $0xe78] sm:$0xff] }
 0x284   :  { %2787 = vmatmul.mubr.f32.vlgmr.msra.gmra.mrb[8].mxu1 %v5127_v51  ;;  %3686 = vmatpush1.bf16.msra.mxu0 %v3685_v13  ;;  %v1381_v51 = vld [vmem:[#allocation9 + $0xcf8] sm:$0xff]  ;;  %v4213_v13 = vpack.c.bf16 %v1388_v8, %v1384_v6  ;;  %v1423_v6 = vld [vmem:[#allocation9 + $0xe48] sm:$0xff] }
 0x285   :  { %2289 = vmatprep.mubr.f32.mxu0 %v5138_v4  ;;  %4198 = vmatpush1.bf16.msra.mxu1 %v4197_v17  ;;  %v4207_v46 = vpack.c.bf16 %v1381_v51, %v1377_v38  ;;  %v1394_v17 = vld [vmem:[#allocation9 + $0xd60] sm:$0xff]  ;;  %v1425_v8 = vld [vmem:[#allocation9 + $0xe58] sm:$0xff] }
 0x286   :  { %2857 = vmatprep.mubr.f32.mxu1 %v5138_v4  ;;  %3688 = vmatprep.subr.bf16.mxu0 %v3687_v22  ;;  %v1380_v4 = vld [vmem:[#allocation9 + $0xcf0] sm:$0xff]  ;;  %v1399_v22 = vld [vmem:[#allocation9 + $0xd88] sm:$0xff] }
 0x287   :  { %4200 = vmatprep.subr.bf16.mxu1 %v4199_v30  ;;  %v4209_v3 = vpack.c.bf16 %v1380_v4, %v1376_v45  ;;  %v3705_v30 = vpack.c.bf16 %v1394_v17, %v1390_v59  ;;  %v3707_v61 = vpack.c.bf16 %v1403_v23, %v1399_v22  ;;  %v1415_v45 = vld [vmem:[#allocation9 + $0xe08] sm:$0xff]  ;;  %v1417_v4 = vld [vmem:[#allocation9 + $0xe18] sm:$0xff]  ;;  %v4231_v59 = vpack.c.bf16 %v1429_v9, %v1425_v8  ;;  %v1428_v17 = vld [vmem:[#allocation9 + $0xe70] sm:$0xff] }
 0x288   :  { %3690 = vmatpush1.bf16.msra.mxu0 %v3689_v24  ;;  %v1398_v24 = vld [vmem:[#allocation9 + $0xd80] sm:$0xff]  ;;  %v4227_v2 = vpack.c.bf16 %v1421_v47, %v1417_v4  ;;  %v1437_v22 = vld [vmem:[#allocation9 + $0xeb8] sm:$0xff] }
 0x289   :  { %4202 = vmatpush1.bf16.msra.mxu1 %v4201_v18  ;;  %3692 = vmatprep.subr.bf16.mxu0 %v3691_v32  ;;  %v1402_v18 = vld [vmem:[#allocation9 + $0xda0] sm:$0xff]  ;;  %v1400_v32 = vld [vmem:[#allocation9 + $0xd90] sm:$0xff] }
 0x28a   :  { %4204 = vmatprep.subr.bf16.mxu1 %v4203_v34  ;;  %v1411_v34 = vld [vmem:[#allocation9 + $0xde8] sm:$0xff]  ;;  %v3709_v37 = vpack.c.bf16 %v1402_v18, %v1398_v24  ;;  %v4221_v38 = vpack.c.bf16 %v1404_v0, %v1400_v32  ;;  %v4235_v24 = vpack.c.bf16 %v1437_v22, %v1433_v21  ;;  %v1436_v18 = vld [vmem:[#allocation9 + $0xeb0] sm:$0xff]  ;;  %v1441_v0 = vld [vmem:[#allocation9 + $0xed8] sm:$0xff] }
 0x28b   :  { %v3711_v51 = vpack.c.bf16 %v1411_v34, %v1407_v33  ;;  %v1439_v32 = vld [vmem:[#allocation9 + $0xec8] sm:$0xff]  ;;  %v1445_v33 = vld [vmem:[#allocation9 + $0xef8] sm:$0xff] }
 0x28c   :  { %3694 = vmatpush1.bf16.msra.mxu0 %v3693_v39  ;;  %v1406_v39 = vld [vmem:[#allocation9 + $0xdc0] sm:$0xff] }
 0x28d   :  { %4206 = vmatpush1.bf16.msra.mxu1 %v4205_v42  ;;  %3696 = vmatprep.subr.bf16.mxu0 %v3695_v43  ;;  %v1410_v42 = vld [vmem:[#allocation9 + $0xde0] sm:$0xff]  ;;  %v1408_v43 = vld [vmem:[#allocation9 + $0xdd0] sm:$0xff] }
 0x28e   :  { %4208 = vmatprep.subr.bf16.mxu1 %v4207_v46  ;;  %v1419_v46 = vld [vmem:[#allocation9 + $0xe28] sm:$0xff]  ;;  %v3713_v48 = vpack.c.bf16 %v1410_v42, %v1406_v39  ;;  %v4225_v55 = vpack.c.bf16 %v1412_v27, %v1408_v43  ;;  %v4239_v39 = vpack.c.bf16 %v1445_v33, %v1441_v0  ;;  %v1444_v42 = vld [vmem:[#allocation9 + $0xef0] sm:$0xff]  ;;  %v1449_v27 = vld [vmem:[#allocation9 + $0xf18] sm:$0xff] }
 0x28f   :  { %v3715_v60 = vpack.c.bf16 %v1419_v46, %v1415_v45  ;;  %v1447_v43 = vld [vmem:[#allocation9 + $0xf08] sm:$0xff]  ;;  %v1453_v45 = vld [vmem:[#allocation9 + $0xf38] sm:$0xff] }
 0x290   :  { %3698 = vmatpush1.bf16.msra.mxu0 %v3697_v63  ;;  %v1414_v63 = vld [vmem:[#allocation9 + $0xe00] sm:$0xff] }
 0x291   :  { %4210 = vmatpush1.bf16.msra.mxu1 %v4209_v3  ;;  %3700 = vmatprep.subr.bf16.mxu0 %v3699_v1  ;;  %v1418_v3 = vld [vmem:[#allocation9 + $0xe20] sm:$0xff]  ;;  %v1416_v1 = vld [vmem:[#allocation9 + $0xe10] sm:$0xff] }
 0x292   :  { %4212 = vmatprep.subr.bf16.mxu1 %v4211_v7  ;;  %v1427_v7 = vld [vmem:[#allocation9 + $0xe68] sm:$0xff]  ;;  %v3717_v10 = vpack.c.bf16 %v1418_v3, %v1414_v63  ;;  %v4229_v11 = vpack.c.bf16 %v1420_v5, %v1416_v1  ;;  %v4243_v63 = vpack.c.bf16 %v1453_v45, %v1449_v27  ;;  %v1452_v3 = vld [vmem:[#allocation9 + $0xf30] sm:$0xff]  ;;  %v1457_v5 = vld [vmem:[#allocation9 + $0xf58] sm:$0xff] }
 0x293   :  { %v3719_v58 = vpack.c.bf16 %v1427_v7, %v1423_v6  ;;  %v1455_v1 = vld [vmem:[#allocation9 + $0xf48] sm:$0xff]  ;;  %v1461_v6 = vld [vmem:[#allocation9 + $0xf78] sm:$0xff] }
 0x294   :  { %3702 = vmatpush1.bf16.msra.mxu0 %v3701_v12  ;;  %v1422_v12 = vld [vmem:[#allocation9 + $0xe40] sm:$0xff] }
 0x295   :  { %4214 = vmatpush1.bf16.msra.mxu1 %v4213_v13  ;;  %3704 = vmatprep.subr.bf16.mxu0 %v3703_v14  ;;  %v1426_v13 = vld [vmem:[#allocation9 + $0xe60] sm:$0xff]  ;;  %v1424_v14 = vld [vmem:[#allocation9 + $0xe50] sm:$0xff] }
 0x296   :  { %4216 = vmatprep.subr.bf16.mxu1 %v4215_v20  ;;  %v1435_v20 = vld [vmem:[#allocation9 + $0xea8] sm:$0xff]  ;;  %v3721_v23 = vpack.c.bf16 %v1426_v13, %v1422_v12  ;;  %v4233_v25 = vpack.c.bf16 %v1428_v17, %v1424_v14  ;;  %v4247_v12 = vpack.c.bf16 %v1461_v6, %v1457_v5  ;;  %v1460_v13 = vld [vmem:[#allocation9 + $0xf70] sm:$0xff]  ;;  %v1465_v17 = vld [vmem:[#allocation9 + $0xf98] sm:$0xff] }
 0x297   :  { %v3723_v26 = vpack.c.bf16 %v1435_v20, %v1431_v19  ;;  %v1463_v14 = vld [vmem:[#allocation9 + $0xf88] sm:$0xff]  ;;  %v1469_v19 = vld [vmem:[#allocation9 + $0xfb8] sm:$0xff]  ;;  %v1486_v6 = vld [vmem:[#allocation9 + $0x1040] sm:$0xff] }
 0x298   :  { %3706 = vmatpush1.bf16.msra.mxu0 %v3705_v30  ;;  %v1430_v30 = vld [vmem:[#allocation9 + $0xe80] sm:$0xff] }
 0x299   :  { %4218 = vmatpush1.bf16.msra.mxu1 %v4217_v31  ;;  %3708 = vmatprep.subr.bf16.mxu0 %v3707_v61  ;;  %v1434_v31 = vld [vmem:[#allocation9 + $0xea0] sm:$0xff]  ;;  %v1432_v61 = vld [vmem:[#allocation9 + $0xe90] sm:$0xff] }
 0x29a   :  { %4220 = vmatprep.subr.bf16.mxu1 %v4219_v62  ;;  %v1443_v62 = vld [vmem:[#allocation9 + $0xee8] sm:$0xff]  ;;  %v3725_v34 = vpack.c.bf16 %v1434_v31, %v1430_v30  ;;  %v4237_v35 = vpack.c.bf16 %v1436_v18, %v1432_v61  ;;  %v4251_v30 = vpack.c.bf16 %v1469_v19, %v1465_v17  ;;  %v1468_v31 = vld [vmem:[#allocation9 + $0xfb0] sm:$0xff]  ;;  %v1473_v18 = vld [vmem:[#allocation9 + $0xfd8] sm:$0xff] }
 0x29b   :  { %v3727_v36 = vpack.c.bf16 %v1443_v62, %v1439_v32  ;;  %v1471_v61 = vld [vmem:[#allocation9 + $0xfc8] sm:$0xff]  ;;  %v1477_v32 = vld [vmem:[#allocation9 + $0xff8] sm:$0xff] }
 0x29c   :  { %3710 = vmatpush1.bf16.msra.mxu0 %v3709_v37  ;;  %v1438_v37 = vld [vmem:[#allocation9 + $0xec0] sm:$0xff] }
 0x29d   :  { %4222 = vmatpush1.bf16.msra.mxu1 %v4221_v38  ;;  %3712 = vmatprep.subr.bf16.mxu0 %v3711_v51  ;;  %v1442_v38 = vld [vmem:[#allocation9 + $0xee0] sm:$0xff]  ;;  %v1440_v51 = vld [vmem:[#allocation9 + $0xed0] sm:$0xff] }
 0x29e   :  { %4224 = vmatprep.subr.bf16.mxu1 %v4223_v44  ;;  %v1451_v44 = vld [vmem:[#allocation9 + $0xf28] sm:$0xff]  ;;  %v3729_v46 = vpack.c.bf16 %v1442_v38, %v1438_v37  ;;  %v4241_v4 = vpack.c.bf16 %v1444_v42, %v1440_v51  ;;  %v4255_v37 = vpack.c.bf16 %v1477_v32, %v1473_v18  ;;  %v1476_v38 = vld [vmem:[#allocation9 + $0xff0] sm:$0xff]  ;;  %v1481_v42 = vld [vmem:[#allocation9 + $0x1018] sm:$0xff] }
 0x29f   :  { %v3731_v47 = vpack.c.bf16 %v1451_v44, %v1447_v43  ;;  %v1479_v51 = vld [vmem:[#allocation9 + $0x1008] sm:$0xff]  ;;  %v1485_v43 = vld [vmem:[#allocation9 + $0x1038] sm:$0xff]  ;;  %v1502_v32 = vld [vmem:[#allocation9 + $0x10c0] sm:$0xff] }
 0x2a0   :  { %3714 = vmatpush1.bf16.msra.mxu0 %v3713_v48  ;;  %v1446_v48 = vld [vmem:[#allocation9 + $0xf00] sm:$0xff] }
 0x2a1   :  { %4226 = vmatpush1.bf16.msra.mxu1 %v4225_v55  ;;  %3716 = vmatprep.subr.bf16.mxu0 %v3715_v60  ;;  %v1450_v55 = vld [vmem:[#allocation9 + $0xf20] sm:$0xff]  ;;  %v1448_v60 = vld [vmem:[#allocation9 + $0xf10] sm:$0xff] }
 0x2a2   :  { %4228 = vmatprep.subr.bf16.mxu1 %v4227_v2  ;;  %v1459_v2 = vld [vmem:[#allocation9 + $0xf68] sm:$0xff]  ;;  %v3733_v7 = vpack.c.bf16 %v1450_v55, %v1446_v48  ;;  %v4245_v8 = vpack.c.bf16 %v1452_v3, %v1448_v60  ;;  %v1480_v48 = vld [vmem:[#allocation9 + $0x1010] sm:$0xff] }
 0x2a3   :  { %v3735_v9 = vpack.c.bf16 %v1459_v2, %v1455_v1  ;;  %v1484_v55 = vld [vmem:[#allocation9 + $0x1030] sm:$0xff]  ;;  %v1487_v60 = vld [vmem:[#allocation9 + $0x1048] sm:$0xff]  ;;  %v1489_v1 = vld [vmem:[#allocation9 + $0x1058] sm:$0xff] }
 0x2a4   :  { %3718 = vmatpush1.bf16.msra.mxu0 %v3717_v10  ;;  %v1454_v10 = vld [vmem:[#allocation9 + $0xf40] sm:$0xff]  ;;  %v1493_v2 = vld [vmem:[#allocation9 + $0x1078] sm:$0xff]  ;;  %v4261_v5 = vpack.c.bf16 %v1484_v55, %v1480_v48 }
 0x2a5   :  { %4230 = vmatpush1.bf16.msra.mxu1 %v4229_v11  ;;  %3720 = vmatprep.subr.bf16.mxu0 %v3719_v58  ;;  %v1458_v11 = vld [vmem:[#allocation9 + $0xf60] sm:$0xff]  ;;  %v1456_v58 = vld [vmem:[#allocation9 + $0xf50] sm:$0xff]  ;;  %v1525_v48 = vld [vmem:[#allocation9 + $0x1178] sm:$0xff] }
 0x2a6   :  { %4232 = vmatprep.subr.bf16.mxu1 %v4231_v59  ;;  %v1467_v59 = vld [vmem:[#allocation9 + $0xfa8] sm:$0xff]  ;;  %v3737_v20 = vpack.c.bf16 %v1458_v11, %v1454_v10  ;;  %v4249_v21 = vpack.c.bf16 %v1460_v13, %v1456_v58  ;;  %v1492_v10 = vld [vmem:[#allocation9 + $0x1070] sm:$0xff]  ;;  %v1497_v13 = vld [vmem:[#allocation9 + $0x1098] sm:$0xff] }
 0x2a7   :  { %v3739_v22 = vpack.c.bf16 %v1467_v59, %v1463_v14  ;;  %v1495_v11 = vld [vmem:[#allocation9 + $0x1088] sm:$0xff]  ;;  %v1501_v14 = vld [vmem:[#allocation9 + $0x10b8] sm:$0xff] }
 0x2a8   :  { %3722 = vmatpush1.bf16.msra.mxu0 %v3721_v23  ;;  %v1462_v23 = vld [vmem:[#allocation9 + $0xf80] sm:$0xff]  ;;  %v1499_v58 = vld [vmem:[#allocation9 + $0x10a8] sm:$0xff] }
 0x2a9   :  { %4234 = vmatpush1.bf16.msra.mxu1 %v4233_v25  ;;  %3724 = vmatprep.subr.bf16.mxu0 %v3723_v26  ;;  %v1466_v25 = vld [vmem:[#allocation9 + $0xfa0] sm:$0xff]  ;;  %v1464_v26 = vld [vmem:[#allocation9 + $0xf90] sm:$0xff]  ;;  %v3755_v19 = vpack.c.bf16 %v1499_v58, %v1495_v11 }
 0x2aa   :  { %4236 = vmatprep.subr.bf16.mxu1 %v4235_v24  ;;  %v1475_v24 = vld [vmem:[#allocation9 + $0xfe8] sm:$0xff]  ;;  %v3741_v62 = vpack.c.bf16 %v1466_v25, %v1462_v23  ;;  %v4253_v0 = vpack.c.bf16 %v1468_v31, %v1464_v26  ;;  %v4267_v23 = vpack.c.bf16 %v1501_v14, %v1497_v13  ;;  %v1500_v25 = vld [vmem:[#allocation9 + $0x10b0] sm:$0xff]  ;;  %v1505_v31 = vld [vmem:[#allocation9 + $0x10d8] sm:$0xff] }
 0x2ab   :  { %v3743_v33 = vpack.c.bf16 %v1475_v24, %v1471_v61  ;;  %v1503_v26 = vld [vmem:[#allocation9 + $0x10c8] sm:$0xff]  ;;  %v1526_v13 = vld [vmem:[#allocation9 + $0x1180] sm:$0xff] }
 0x2ac   :  { %3726 = vmatpush1.bf16.msra.mxu0 %v3725_v34  ;;  %v1470_v34 = vld [vmem:[#allocation9 + $0xfc0] sm:$0xff] }
 0x2ad   :  { %4238 = vmatpush1.bf16.msra.mxu1 %v4237_v35  ;;  %3728 = vmatprep.subr.bf16.mxu0 %v3727_v36  ;;  %v1474_v35 = vld [vmem:[#allocation9 + $0xfe0] sm:$0xff]  ;;  %v1472_v36 = vld [vmem:[#allocation9 + $0xfd0] sm:$0xff] }
 0x2ae   :  { %4240 = vmatprep.subr.bf16.mxu1 %v4239_v39  ;;  %v1483_v39 = vld [vmem:[#allocation9 + $0x1028] sm:$0xff]  ;;  %v3745_v44 = vpack.c.bf16 %v1474_v35, %v1470_v34  ;;  %v4257_v27 = vpack.c.bf16 %v1476_v38, %v1472_v36  ;;  %v1513_v36 = vld [vmem:[#allocation9 + $0x1118] sm:$0xff]  ;;  %v1530_v14 = vld [vmem:[#allocation9 + $0x11a0] sm:$0xff] }
 0x2af   :  { %v3747_v45 = vpack.c.bf16 %v1483_v39, %v1479_v51  ;;  %v1511_v34 = vld [vmem:[#allocation9 + $0x1108] sm:$0xff] }
 0x2b0   :  { %3730 = vmatpush1.bf16.msra.mxu0 %v3729_v46  ;;  %v1478_v46 = vld [vmem:[#allocation9 + $0x1000] sm:$0xff]  ;;  %v1515_v35 = vld [vmem:[#allocation9 + $0x1128] sm:$0xff] }
 0x2b1   :  { %4242 = vmatpush1.bf16.msra.mxu1 %v4241_v4  ;;  %3732 = vmatprep.subr.bf16.mxu0 %v3731_v47  ;;  %v1482_v4 = vld [vmem:[#allocation9 + $0x1020] sm:$0xff]  ;;  %v4259_v47 = vpack.c.bf16 %v1485_v43, %v1481_v42  ;;  %v3763_v39 = vpack.c.bf16 %v1515_v35, %v1511_v34 }
 0x2b2   :  { %4244 = vmatprep.subr.bf16.mxu1 %v4243_v63  ;;  %v1491_v63 = vld [vmem:[#allocation9 + $0x1068] sm:$0xff]  ;;  %v3749_v3 = vpack.c.bf16 %v1482_v4, %v1478_v46  ;;  %v1510_v42 = vld [vmem:[#allocation9 + $0x1100] sm:$0xff] }
 0x2b3   :  { %v1514_v43 = vld [vmem:[#allocation9 + $0x1120] sm:$0xff]  ;;  %v1519_v46 = vld [vmem:[#allocation9 + $0x1148] sm:$0xff] }
 0x2b4   :  { %3734 = vmatpush1.bf16.msra.mxu0 %v3733_v7  ;;  %v1490_v7 = vld [vmem:[#allocation9 + $0x1060] sm:$0xff]  ;;  %v1523_v4 = vld [vmem:[#allocation9 + $0x1168] sm:$0xff]  ;;  %v3765_v55 = vpack.c.bf16 %v1514_v43, %v1510_v42 }
 0x2b5   :  { %4246 = vmatpush1.bf16.msra.mxu1 %v4245_v8  ;;  %3736 = vmatprep.subr.bf16.mxu0 %v3735_v9  ;;  %v1488_v8 = vld [vmem:[#allocation9 + $0x1050] sm:$0xff]  ;;  %v3751_v9 = vpack.c.bf16 %v1491_v63, %v1487_v60  ;;  %v3753_v59 = vpack.c.bf16 %v1490_v7, %v1486_v6  ;;  %v3767_v63 = vpack.c.bf16 %v1523_v4, %v1519_v46  ;;  %v1527_v7 = vld [vmem:[#allocation9 + $0x1188] sm:$0xff] }
 0x2b6   :  { %4248 = vmatprep.subr.bf16.mxu1 %v4247_v12  ;;  %v4263_v12 = vpack.c.bf16 %v1493_v2, %v1489_v1  ;;  %v4265_v17 = vpack.c.bf16 %v1492_v10, %v1488_v8  ;;  %v1522_v1 = vld [vmem:[#allocation9 + $0x1160] sm:$0xff]  ;;  %v1520_v2 = vld [vmem:[#allocation9 + $0x1150] sm:$0xff]  ;;  %v1531_v8 = vld [vmem:[#allocation9 + $0x11a8] sm:$0xff] }
 0x2b7   :  { %v1524_v6 = vld [vmem:[#allocation9 + $0x1170] sm:$0xff]  ;;  %v1533_v10 = vld [vmem:[#allocation9 + $0x11b8] sm:$0xff]  ;;  %v1551_v42 = vld [vmem:[#allocation9 + $0x1248] sm:$0xff] }
 0x2b8   :  { %3738 = vmatpush1.bf16.msra.mxu0 %v3737_v20  ;;  %v1494_v20 = vld [vmem:[#allocation9 + $0x1080] sm:$0xff]  ;;  %v4281_v58 = vpack.c.bf16 %v1524_v6, %v1520_v2  ;;  %v1555_v43 = vld [vmem:[#allocation9 + $0x1268] sm:$0xff]  ;;  %v1561_v2 = vld [vmem:[#allocation9 + $0x1298] sm:$0xff] }
 0x2b9   :  { %4250 = vmatpush1.bf16.msra.mxu1 %v4249_v21  ;;  %3740 = vmatprep.subr.bf16.mxu0 %v3739_v22  ;;  %v1498_v21 = vld [vmem:[#allocation9 + $0x10a0] sm:$0xff]  ;;  %v1496_v22 = vld [vmem:[#allocation9 + $0x1090] sm:$0xff]  ;;  %v3783_v4 = vpack.c.bf16 %v1555_v43, %v1551_v42 }
 0x2ba   :  { %4252 = vmatprep.subr.bf16.mxu1 %v4251_v30  ;;  %v1507_v30 = vld [vmem:[#allocation9 + $0x10e8] sm:$0xff]  ;;  %v3757_v61 = vpack.c.bf16 %v1498_v21, %v1494_v20  ;;  %v4269_v24 = vpack.c.bf16 %v1500_v25, %v1496_v22  ;;  %v1537_v22 = vld [vmem:[#allocation9 + $0x11d8] sm:$0xff]  ;;  %v3773_v25 = vpack.c.bf16 %v1530_v14, %v1526_v13 }
 0x2bb   :  { %v3759_v18 = vpack.c.bf16 %v1507_v30, %v1503_v26  ;;  %v1535_v20 = vld [vmem:[#allocation9 + $0x11c8] sm:$0xff] }
 0x2bc   :  { %3742 = vmatpush1.bf16.msra.mxu0 %v3741_v62  ;;  %v1506_v62 = vld [vmem:[#allocation9 + $0x10e0] sm:$0xff]  ;;  %v1539_v21 = vld [vmem:[#allocation9 + $0x11e8] sm:$0xff] }
 0x2bd   :  { %4254 = vmatpush1.bf16.msra.mxu1 %v4253_v0  ;;  %3744 = vmatprep.subr.bf16.mxu0 %v3743_v33  ;;  %v1504_v0 = vld [vmem:[#allocation9 + $0x10d0] sm:$0xff]  ;;  %v3761_v38 = vpack.c.bf16 %v1506_v62, %v1502_v32  ;;  %v3775_v30 = vpack.c.bf16 %v1539_v21, %v1535_v20  ;;  %v1543_v32 = vld [vmem:[#allocation9 + $0x1208] sm:$0xff] }
 0x2be   :  { %4256 = vmatprep.subr.bf16.mxu1 %v4255_v37  ;;  %v1517_v37 = vld [vmem:[#allocation9 + $0x1138] sm:$0xff]  ;;  %v1547_v62 = vld [vmem:[#allocation9 + $0x1228] sm:$0xff] }
 0x2bf   :  { %v3779_v35 = vpack.c.bf16 %v1547_v62, %v1543_v32  ;;  %v1567_v13 = vld [vmem:[#allocation9 + $0x12c8] sm:$0xff] }
 0x2c0   :  { %3746 = vmatpush1.bf16.msra.mxu0 %v3745_v44  ;;  %v1512_v44 = vld [vmem:[#allocation9 + $0x1110] sm:$0xff]  ;;  %v1571_v14 = vld [vmem:[#allocation9 + $0x12e8] sm:$0xff] }
 0x2c1   :  { %4258 = vmatpush1.bf16.msra.mxu1 %v4257_v27  ;;  %3748 = vmatprep.subr.bf16.mxu0 %v3747_v45  ;;  %v4275_v27 = vpack.c.bf16 %v1517_v37, %v1513_v36  ;;  %v1516_v45 = vld [vmem:[#allocation9 + $0x1130] sm:$0xff]  ;;  %v1542_v36 = vld [vmem:[#allocation9 + $0x1200] sm:$0xff]  ;;  %v3791_v21 = vpack.c.bf16 %v1571_v14, %v1567_v13 }
 0x2c2   :  { %4260 = vmatprep.subr.bf16.mxu1 %v4259_v47  ;;  %v1521_v47 = vld [vmem:[#allocation9 + $0x1158] sm:$0xff]  ;;  %v4277_v60 = vpack.c.bf16 %v1516_v45, %v1512_v44  ;;  %v1546_v37 = vld [vmem:[#allocation9 + $0x1220] sm:$0xff] }
 0x2c3   :  { %2290 = vmatmul.mubr.f32.vlgmr.msra.gmra.mrb[8].mxu0 %v5129_v52  ;;  %v1553_v44 = vld [vmem:[#allocation9 + $0x1258] sm:$0xff]  ;;  %v3781_v45 = vpack.c.bf16 %v1546_v37, %v1542_v36  ;;  %v1583_v36 = vld [vmem:[#allocation9 + $0x1348] sm:$0xff] }
 0x2c4   :  { %2858 = vmatmul.mubr.f32.vlgmr.msra.gmra.mrb[8].mxu1 %v5129_v52  ;;  %3750 = vmatpush1.bf16.msra.mxu0 %v3749_v3  ;;  %v1509_v52 = vld [vmem:[#allocation9 + $0x10f8] sm:$0xff]  ;;  %v1518_v3 = vld [vmem:[#allocation9 + $0x1140] sm:$0xff]  ;;  %v1587_v37 = vld [vmem:[#allocation9 + $0x1368] sm:$0xff] }
 0x2c5   :  { %2360 = vmatprep.mubr.f32.mxu0 %v5162_v28  ;;  %4262 = vmatpush1.bf16.msra.mxu1 %v4261_v5  ;;  %v4271_v33 = vpack.c.bf16 %v1509_v52, %v1505_v31  ;;  %v4279_v5 = vpack.c.bf16 %v1525_v48, %v1521_v47  ;;  %v3769_v11 = vpack.c.bf16 %v1522_v1, %v1518_v3  ;;  %v1534_v31 = vld [vmem:[#allocation9 + $0x11c0] sm:$0xff]  ;;  %v1559_v3 = vld [vmem:[#allocation9 + $0x1288] sm:$0xff] }
 0x2c6   :  { %2928 = vmatprep.mubr.f32.mxu1 %v5162_v28  ;;  %3752 = vmatprep.subr.bf16.mxu0 %v3751_v9  ;;  %v1508_v28 = vld [vmem:[#allocation9 + $0x10f0] sm:$0xff]  ;;  %v1529_v9 = vld [vmem:[#allocation9 + $0x1198] sm:$0xff]  ;;  %v1538_v52 = vld [vmem:[#allocation9 + $0x11e0] sm:$0xff]  ;;  %v3799_v43 = vpack.c.bf16 %v1587_v37, %v1583_v36 }
 0x2c7   :  { %4264 = vmatprep.subr.bf16.mxu1 %v4263_v12  ;;  %v4273_v51 = vpack.c.bf16 %v1508_v28, %v1504_v0  ;;  %v3771_v12 = vpack.c.bf16 %v1531_v8, %v1527_v7  ;;  %v1545_v0 = vld [vmem:[#allocation9 + $0x1218] sm:$0xff]  ;;  %v3777_v28 = vpack.c.bf16 %v1538_v52, %v1534_v31  ;;  %v1550_v47 = vld [vmem:[#allocation9 + $0x1240] sm:$0xff]  ;;  %v1563_v1 = vld [vmem:[#allocation9 + $0x12a8] sm:$0xff] }
 0x2c8   :  { %3754 = vmatpush1.bf16.msra.mxu0 %v3753_v59  ;;  %v1528_v59 = vld [vmem:[#allocation9 + $0x1190] sm:$0xff]  ;;  %v1554_v48 = vld [vmem:[#allocation9 + $0x1260] sm:$0xff]  ;;  %v3787_v8 = vpack.c.bf16 %v1563_v1, %v1559_v3  ;;  %v1575_v31 = vld [vmem:[#allocation9 + $0x1308] sm:$0xff] }
 0x2c9   :  { %4266 = vmatpush1.bf16.msra.mxu1 %v4265_v17  ;;  %3756 = vmatprep.subr.bf16.mxu0 %v3755_v19  ;;  %v4283_v17 = vpack.c.bf16 %v1533_v10, %v1529_v9  ;;  %v1532_v19 = vld [vmem:[#allocation9 + $0x11b0] sm:$0xff]  ;;  %v3785_v6 = vpack.c.bf16 %v1554_v48, %v1550_v47  ;;  %v1558_v9 = vld [vmem:[#allocation9 + $0x1280] sm:$0xff]  ;;  %v1579_v52 = vld [vmem:[#allocation9 + $0x1328] sm:$0xff] }
 0x2ca   :  { %4268 = vmatprep.subr.bf16.mxu1 %v4267_v23  ;;  %v1541_v23 = vld [vmem:[#allocation9 + $0x11f8] sm:$0xff]  ;;  %v4285_v26 = vpack.c.bf16 %v1532_v19, %v1528_v59  ;;  %v1562_v10 = vld [vmem:[#allocation9 + $0x12a0] sm:$0xff]  ;;  %v3795_v62 = vpack.c.bf16 %v1579_v52, %v1575_v31  ;;  %v1591_v47 = vld [vmem:[#allocation9 + $0x1388] sm:$0xff] }
 0x2cb   :  { %v1569_v59 = vld [vmem:[#allocation9 + $0x12d8] sm:$0xff]  ;;  %v3789_v19 = vpack.c.bf16 %v1562_v10, %v1558_v9  ;;  %v1595_v48 = vld [vmem:[#allocation9 + $0x13a8] sm:$0xff]  ;;  %v1614_v37 = vld [vmem:[#allocation9 + $0x1440] sm:$0xff] }
 0x2cc   :  { %3758 = vmatpush1.bf16.msra.mxu0 %v3757_v61  ;;  %v1536_v61 = vld [vmem:[#allocation9 + $0x11d0] sm:$0xff]  ;;  %v3803_v1 = vpack.c.bf16 %v1595_v48, %v1591_v47  ;;  %v1599_v9 = vld [vmem:[#allocation9 + $0x13c8] sm:$0xff] }
 0x2cd   :  { %4270 = vmatpush1.bf16.msra.mxu1 %v4269_v24  ;;  %3760 = vmatprep.subr.bf16.mxu0 %v3759_v18  ;;  %v4287_v24 = vpack.c.bf16 %v1541_v23, %v1537_v22  ;;  %v1540_v18 = vld [vmem:[#allocation9 + $0x11f0] sm:$0xff]  ;;  %v1566_v22 = vld [vmem:[#allocation9 + $0x12c0] sm:$0xff]  ;;  %v1603_v10 = vld [vmem:[#allocation9 + $0x13e8] sm:$0xff] }
 0x2ce   :  { %4272 = vmatprep.subr.bf16.mxu1 %v4271_v33  ;;  %v1549_v33 = vld [vmem:[#allocation9 + $0x1238] sm:$0xff]  ;;  %v4289_v34 = vpack.c.bf16 %v1540_v18, %v1536_v61  ;;  %v1570_v23 = vld [vmem:[#allocation9 + $0x12e0] sm:$0xff]  ;;  %v3807_v14 = vpack.c.bf16 %v1603_v10, %v1599_v9 }
 0x2cf   :  { %v1577_v61 = vld [vmem:[#allocation9 + $0x1318] sm:$0xff]  ;;  %v3793_v18 = vpack.c.bf16 %v1570_v23, %v1566_v22  ;;  %v1607_v22 = vld [vmem:[#allocation9 + $0x1408] sm:$0xff]  ;;  %v1630_v10 = vld [vmem:[#allocation9 + $0x14c0] sm:$0xff] }
 0x2d0   :  { %3762 = vmatpush1.bf16.msra.mxu0 %v3761_v38  ;;  %v1544_v38 = vld [vmem:[#allocation9 + $0x1210] sm:$0xff]  ;;  %v1611_v23 = vld [vmem:[#allocation9 + $0x1428] sm:$0xff] }
 0x2d1   :  { %4274 = vmatpush1.bf16.msra.mxu1 %v4273_v51  ;;  %3764 = vmatprep.subr.bf16.mxu0 %v3763_v39  ;;  %v4291_v51 = vpack.c.bf16 %v1549_v33, %v1545_v0  ;;  %v1548_v39 = vld [vmem:[#allocation9 + $0x1230] sm:$0xff]  ;;  %v1574_v0 = vld [vmem:[#allocation9 + $0x1300] sm:$0xff]  ;;  %v3811_v52 = vpack.c.bf16 %v1611_v23, %v1607_v22 }
 0x2d2   :  { %4276 = vmatprep.subr.bf16.mxu1 %v4275_v27  ;;  %v1557_v27 = vld [vmem:[#allocation9 + $0x1278] sm:$0xff]  ;;  %v4293_v46 = vpack.c.bf16 %v1548_v39, %v1544_v38  ;;  %v1578_v33 = vld [vmem:[#allocation9 + $0x1320] sm:$0xff] }
 0x2d3   :  { %v1585_v38 = vld [vmem:[#allocation9 + $0x1358] sm:$0xff]  ;;  %v3797_v39 = vpack.c.bf16 %v1578_v33, %v1574_v0  ;;  %v1615_v0 = vld [vmem:[#allocation9 + $0x1448] sm:$0xff]  ;;  %v1638_v22 = vld [vmem:[#allocation9 + $0x1500] sm:$0xff] }
 0x2d4   :  { %3766 = vmatpush1.bf16.msra.mxu0 %v3765_v55  ;;  %v1552_v55 = vld [vmem:[#allocation9 + $0x1250] sm:$0xff]  ;;  %v1619_v33 = vld [vmem:[#allocation9 + $0x1468] sm:$0xff]  ;;  %v1642_v23 = vld [vmem:[#allocation9 + $0x1520] sm:$0xff] }
 0x2d5   :  { %4278 = vmatpush1.bf16.msra.mxu1 %v4277_v60  ;;  %3768 = vmatprep.subr.bf16.mxu0 %v3767_v63  ;;  %v4295_v60 = vpack.c.bf16 %v1557_v27, %v1553_v44  ;;  %v1556_v63 = vld [vmem:[#allocation9 + $0x1270] sm:$0xff]  ;;  %v1582_v44 = vld [vmem:[#allocation9 + $0x1340] sm:$0xff] }
 0x2d6   :  { %4280 = vmatprep.subr.bf16.mxu1 %v4279_v5  ;;  %v1565_v5 = vld [vmem:[#allocation9 + $0x12b8] sm:$0xff]  ;;  %v4297_v7 = vpack.c.bf16 %v1556_v63, %v1552_v55  ;;  %v1586_v27 = vld [vmem:[#allocation9 + $0x1360] sm:$0xff] }
 0x2d7   :  { %v1593_v55 = vld [vmem:[#allocation9 + $0x1398] sm:$0xff]  ;;  %v3801_v63 = vpack.c.bf16 %v1586_v27, %v1582_v44  ;;  %v1627_v44 = vld [vmem:[#allocation9 + $0x14a8] sm:$0xff] }
 0x2d8   :  { %3770 = vmatpush1.bf16.msra.mxu0 %v3769_v11  ;;  %v1560_v11 = vld [vmem:[#allocation9 + $0x1290] sm:$0xff] }
 0x2d9   :  { %4282 = vmatpush1.bf16.msra.mxu1 %v4281_v58  ;;  %3772 = vmatprep.subr.bf16.mxu0 %v3771_v12  ;;  %v4299_v58 = vpack.c.bf16 %v1565_v5, %v1561_v2  ;;  %v1564_v12 = vld [vmem:[#allocation9 + $0x12b0] sm:$0xff]  ;;  %v1590_v2 = vld [vmem:[#allocation9 + $0x1380] sm:$0xff] }
 0x2da   :  { %4284 = vmatprep.subr.bf16.mxu1 %v4283_v17  ;;  %v1573_v17 = vld [vmem:[#allocation9 + $0x12f8] sm:$0xff]  ;;  %v4301_v20 = vpack.c.bf16 %v1564_v12, %v1560_v11  ;;  %v1594_v5 = vld [vmem:[#allocation9 + $0x13a0] sm:$0xff] }
 0x2db   :  { %v1601_v11 = vld [vmem:[#allocation9 + $0x13d8] sm:$0xff]  ;;  %v3805_v12 = vpack.c.bf16 %v1594_v5, %v1590_v2  ;;  %v1631_v2 = vld [vmem:[#allocation9 + $0x14c8] sm:$0xff] }
 0x2dc   :  { %3774 = vmatpush1.bf16.msra.mxu0 %v3773_v25  ;;  %v1568_v25 = vld [vmem:[#allocation9 + $0x12d0] sm:$0xff]  ;;  %v1635_v5 = vld [vmem:[#allocation9 + $0x14e8] sm:$0xff] }
 0x2dd   :  { %4286 = vmatpush1.bf16.msra.mxu1 %v4285_v26  ;;  %3776 = vmatprep.subr.bf16.mxu0 %v3775_v30  ;;  %v4303_v26 = vpack.c.bf16 %v1573_v17, %v1569_v59  ;;  %v1572_v30 = vld [vmem:[#allocation9 + $0x12f0] sm:$0xff]  ;;  %v1598_v59 = vld [vmem:[#allocation9 + $0x13c0] sm:$0xff]  ;;  %v3823_v9 = vpack.c.bf16 %v1635_v5, %v1631_v2 }
 0x2de   :  { %4288 = vmatprep.subr.bf16.mxu1 %v4287_v24  ;;  %v1581_v24 = vld [vmem:[#allocation9 + $0x1338] sm:$0xff]  ;;  %v4305_v32 = vpack.c.bf16 %v1572_v30, %v1568_v25  ;;  %v1602_v17 = vld [vmem:[#allocation9 + $0x13e0] sm:$0xff] }
 0x2df   :  { %v1609_v25 = vld [vmem:[#allocation9 + $0x1418] sm:$0xff]  ;;  %v3809_v30 = vpack.c.bf16 %v1602_v17, %v1598_v59  ;;  %v1662_v2 = vld [vmem:[#allocation9 + $0x15c0] sm:$0xff] }
 0x2e0   :  { %3778 = vmatpush1.bf16.msra.mxu0 %v3777_v28  ;;  %v1576_v28 = vld [vmem:[#allocation9 + $0x1310] sm:$0xff]  ;;  %v1641_v59 = vld [vmem:[#allocation9 + $0x1518] sm:$0xff]  ;;  %v1666_v5 = vld [vmem:[#allocation9 + $0x15e0] sm:$0xff] }
 0x2e1   :  { %4290 = vmatpush1.bf16.msra.mxu1 %v4289_v34  ;;  %3780 = vmatprep.subr.bf16.mxu0 %v3779_v35  ;;  %v4307_v34 = vpack.c.bf16 %v1581_v24, %v1577_v61  ;;  %v1580_v35 = vld [vmem:[#allocation9 + $0x1330] sm:$0xff]  ;;  %v1606_v61 = vld [vmem:[#allocation9 + $0x1400] sm:$0xff]  ;;  %v1645_v17 = vld [vmem:[#allocation9 + $0x1538] sm:$0xff] }
 0x2e2   :  { %4292 = vmatprep.subr.bf16.mxu1 %v4291_v51  ;;  %v1589_v51 = vld [vmem:[#allocation9 + $0x1378] sm:$0xff]  ;;  %v4309_v42 = vpack.c.bf16 %v1580_v35, %v1576_v28  ;;  %v1610_v24 = vld [vmem:[#allocation9 + $0x1420] sm:$0xff] }
 0x2e3   :  { %v3813_v28 = vpack.c.bf16 %v1610_v24, %v1606_v61  ;;  %v1621_v35 = vld [vmem:[#allocation9 + $0x1478] sm:$0xff] }
 0x2e4   :  { %3782 = vmatpush1.bf16.msra.mxu0 %v3781_v45  ;;  %v1584_v45 = vld [vmem:[#allocation9 + $0x1350] sm:$0xff]  ;;  %v1649_v61 = vld [vmem:[#allocation9 + $0x1558] sm:$0xff] }
 0x2e5   :  { %4294 = vmatpush1.bf16.msra.mxu1 %v4293_v46  ;;  %3784 = vmatprep.subr.bf16.mxu0 %v3783_v4  ;;  %v4311_v46 = vpack.c.bf16 %v1589_v51, %v1585_v38  ;;  %v1588_v4 = vld [vmem:[#allocation9 + $0x1370] sm:$0xff]  ;;  %v1618_v38 = vld [vmem:[#allocation9 + $0x1460] sm:$0xff]  ;;  %v1653_v24 = vld [vmem:[#allocation9 + $0x1578] sm:$0xff] }
 0x2e6   :  { %4296 = vmatprep.subr.bf16.mxu1 %v4295_v60  ;;  %v1597_v60 = vld [vmem:[#allocation9 + $0x13b8] sm:$0xff]  ;;  %v4313_v3 = vpack.c.bf16 %v1588_v4, %v1584_v45  ;;  %v1616_v51 = vld [vmem:[#allocation9 + $0x1450] sm:$0xff]  ;;  %v3817_v4 = vpack.c.bf16 %v1618_v38, %v1614_v37  ;;  %v1659_v37 = vld [vmem:[#allocation9 + $0x15a8] sm:$0xff] }
 0x2e7   :  { %v1625_v45 = vld [vmem:[#allocation9 + $0x1498] sm:$0xff] }
 0x2e8   :  { %3786 = vmatpush1.bf16.msra.mxu0 %v3785_v6  ;;  %v1592_v6 = vld [vmem:[#allocation9 + $0x1390] sm:$0xff]  ;;  %v1657_v38 = vld [vmem:[#allocation9 + $0x1598] sm:$0xff] }
 0x2e9   :  { %4298 = vmatpush1.bf16.msra.mxu1 %v4297_v7  ;;  %3788 = vmatprep.subr.bf16.mxu0 %v3787_v8  ;;  %v4315_v7 = vpack.c.bf16 %v1597_v60, %v1593_v55  ;;  %v1596_v8 = vld [vmem:[#allocation9 + $0x13b0] sm:$0xff]  ;;  %v1622_v55 = vld [vmem:[#allocation9 + $0x1480] sm:$0xff] }
 0x2ea   :  { %4300 = vmatprep.subr.bf16.mxu1 %v4299_v58  ;;  %v1605_v58 = vld [vmem:[#allocation9 + $0x13f8] sm:$0xff]  ;;  %v4317_v13 = vpack.c.bf16 %v1596_v8, %v1592_v6  ;;  %v1626_v60 = vld [vmem:[#allocation9 + $0x14a0] sm:$0xff] }
 0x2eb   :  { %v1633_v6 = vld [vmem:[#allocation9 + $0x14d8] sm:$0xff] }
 0x2ec   :  { %3790 = vmatpush1.bf16.msra.mxu0 %v3789_v19  ;;  %v1600_v19 = vld [vmem:[#allocation9 + $0x13d0] sm:$0xff] }
 0x2ed   :  { %4302 = vmatpush1.bf16.msra.mxu1 %v4301_v20  ;;  %3792 = vmatprep.subr.bf16.mxu0 %v3791_v21  ;;  %v4319_v20 = vpack.c.bf16 %v1605_v58, %v1601_v11  ;;  %v1604_v21 = vld [vmem:[#allocation9 + $0x13f0] sm:$0xff]  ;;  %v1634_v11 = vld [vmem:[#allocation9 + $0x14e0] sm:$0xff] }
 0x2ee   :  { %4304 = vmatprep.subr.bf16.mxu1 %v4303_v26  ;;  %v1613_v26 = vld [vmem:[#allocation9 + $0x1438] sm:$0xff]  ;;  %v4321_v31 = vpack.c.bf16 %v1604_v21, %v1600_v19  ;;  %v1632_v58 = vld [vmem:[#allocation9 + $0x14d0] sm:$0xff]  ;;  %v3825_v19 = vpack.c.bf16 %v1634_v11, %v1630_v10 }
 0x2ef   :  { %v1673_v10 = vld [vmem:[#allocation9 + $0x1618] sm:$0xff] }
 0x2f0   :  { %3794 = vmatpush1.bf16.msra.mxu0 %v3793_v18  ;;  %v4323_v18 = vpack.c.bf16 %v1613_v26, %v1609_v25  ;;  %v1640_v25 = vld [vmem:[#allocation9 + $0x1510] sm:$0xff]  ;;  %v4339_v26 = vpack.c.bf16 %v1645_v17, %v1641_v59  ;;  %v1677_v11 = vld [vmem:[#allocation9 + $0x1638] sm:$0xff] }
 0x2f1   :  { %4306 = vmatpush1.bf16.msra.mxu1 %v4305_v32  ;;  %3796 = vmatprep.subr.bf16.mxu0 %v3795_v62  ;;  %v1608_v32 = vld [vmem:[#allocation9 + $0x1410] sm:$0xff]  ;;  %v4355_v17 = vpack.c.bf16 %v1677_v11, %v1673_v10 }
 0x2f2   :  { %4308 = vmatprep.subr.bf16.mxu1 %v4307_v34  ;;  %v1612_v62 = vld [vmem:[#allocation9 + $0x1430] sm:$0xff]  ;;  %v1617_v34 = vld [vmem:[#allocation9 + $0x1458] sm:$0xff] }
 0x2f3   :  { %v4325_v36 = vpack.c.bf16 %v1612_v62, %v1608_v32  ;;  %v4327_v27 = vpack.c.bf16 %v1621_v35, %v1617_v34  ;;  %v4343_v34 = vpack.c.bf16 %v1653_v24, %v1649_v61  ;;  %v1652_v35 = vld [vmem:[#allocation9 + $0x1570] sm:$0xff] }
 0x2f4   :  { %3798 = vmatpush1.bf16.msra.mxu0 %v3797_v39  ;;  %v3815_v39 = vpack.c.bf16 %v1619_v33, %v1615_v0  ;;  %v1646_v0 = vld [vmem:[#allocation9 + $0x1540] sm:$0xff]  ;;  %v1672_v59 = vld [vmem:[#allocation9 + $0x1610] sm:$0xff] }
 0x2f5   :  { %4310 = vmatpush1.bf16.msra.mxu1 %v4309_v42  ;;  %3800 = vmatprep.subr.bf16.mxu0 %v3799_v43  ;;  %v1620_v42 = vld [vmem:[#allocation9 + $0x1470] sm:$0xff]  ;;  %v1623_v43 = vld [vmem:[#allocation9 + $0x1488] sm:$0xff]  ;;  %v1650_v33 = vld [vmem:[#allocation9 + $0x1560] sm:$0xff] }
 0x2f6   :  { %4312 = vmatprep.subr.bf16.mxu1 %v4311_v46  ;;  %v1629_v46 = vld [vmem:[#allocation9 + $0x14b8] sm:$0xff]  ;;  %v4329_v47 = vpack.c.bf16 %v1620_v42, %v1616_v51  ;;  %v3819_v48 = vpack.c.bf16 %v1627_v44, %v1623_v43  ;;  %v1654_v44 = vld [vmem:[#allocation9 + $0x1580] sm:$0xff]  ;;  %v1680_v61 = vld [vmem:[#allocation9 + $0x1650] sm:$0xff] }
 0x2f7   :  { %v1661_v51 = vld [vmem:[#allocation9 + $0x15b8] sm:$0xff]  ;;  %v1704_v10 = vld [vmem:[#allocation9 + $0x1710] sm:$0xff] }
 0x2f8   :  { %3802 = vmatpush1.bf16.msra.mxu0 %v3801_v63  ;;  %v1624_v63 = vld [vmem:[#allocation9 + $0x1490] sm:$0xff] }
 0x2f9   :  { %4314 = vmatpush1.bf16.msra.mxu1 %v4313_v3  ;;  %3804 = vmatprep.subr.bf16.mxu0 %v3803_v1  ;;  %v4331_v3 = vpack.c.bf16 %v1629_v46, %v1625_v45  ;;  %v1628_v1 = vld [vmem:[#allocation9 + $0x14b0] sm:$0xff]  ;;  %v4347_v46 = vpack.c.bf16 %v1661_v51, %v1657_v38 }
 0x2fa   :  { %4316 = vmatprep.subr.bf16.mxu1 %v4315_v7  ;;  %v3821_v7 = vpack.c.bf16 %v1626_v60, %v1622_v55  ;;  %v4333_v8 = vpack.c.bf16 %v1628_v1, %v1624_v63  ;;  %v1656_v45 = vld [vmem:[#allocation9 + $0x1590] sm:$0xff]  ;;  %v1665_v55 = vld [vmem:[#allocation9 + $0x15d8] sm:$0xff] }
 0x2fb   :  { %v1669_v60 = vld [vmem:[#allocation9 + $0x15f8] sm:$0xff]  ;;  %v1688_v38 = vld [vmem:[#allocation9 + $0x1690] sm:$0xff] }
 0x2fc   :  { %3806 = vmatpush1.bf16.msra.mxu0 %v3805_v12 }
 0x2fd   :  { %4318 = vmatpush1.bf16.msra.mxu1 %v4317_v13  ;;  %3808 = vmatprep.subr.bf16.mxu0 %v3807_v14  ;;  %v1639_v13 = vld [vmem:[#allocation9 + $0x1508] sm:$0xff] }
 0x2fe   :  { %4320 = vmatprep.subr.bf16.mxu1 %v4319_v20  ;;  %v1643_v14 = vld [vmem:[#allocation9 + $0x1528] sm:$0xff] }
 0x2ff   :  { %v3827_v21 = vpack.c.bf16 %v1643_v14, %v1639_v13  ;;  %v1670_v13 = vld [vmem:[#allocation9 + $0x1600] sm:$0xff] }
 0x300   :  { %3810 = vmatpush1.bf16.msra.mxu0 %v3809_v30  ;;  %v1644_v30 = vld [vmem:[#allocation9 + $0x1530] sm:$0xff]  ;;  %v1674_v14 = vld [vmem:[#allocation9 + $0x1620] sm:$0xff] }
 0x301   :  { %4322 = vmatpush1.bf16.msra.mxu1 %v4321_v31  ;;  %3812 = vmatprep.subr.bf16.mxu0 %v3811_v52  ;;  %v1647_v31 = vld [vmem:[#allocation9 + $0x1548] sm:$0xff]  ;;  %v4341_v32 = vpack.c.bf16 %v1644_v30, %v1640_v25  ;;  %v3845_v25 = vpack.c.bf16 %v1674_v14, %v1670_v13  ;;  %v1713_v13 = vld [vmem:[#allocation9 + $0x1758] sm:$0xff] }
 0x302   :  { %4324 = vmatprep.subr.bf16.mxu1 %v4323_v18  ;;  %v1651_v52 = vld [vmem:[#allocation9 + $0x1568] sm:$0xff]  ;;  %v3829_v18 = vpack.c.bf16 %v1642_v23, %v1638_v22  ;;  %v1681_v22 = vld [vmem:[#allocation9 + $0x1658] sm:$0xff] }
 0x303   :  { %2361 = vmatmul.mubr.f32.vlgmr.msra.gmra.mrb[8].mxu0 %v5150_v15  ;;  %v3831_v62 = vpack.c.bf16 %v1651_v52, %v1647_v31  ;;  %v1685_v23 = vld [vmem:[#allocation9 + $0x1678] sm:$0xff]  ;;  %v1678_v31 = vld [vmem:[#allocation9 + $0x1640] sm:$0xff] }
 0x304   :  { %2929 = vmatmul.mubr.f32.vlgmr.msra.gmra.mrb[8].mxu1 %v5150_v15  ;;  %3814 = vmatpush1.bf16.msra.mxu0 %v3813_v28  ;;  %v1637_v15 = vld [vmem:[#allocation9 + $0x14f8] sm:$0xff]  ;;  %v1648_v28 = vld [vmem:[#allocation9 + $0x1550] sm:$0xff]  ;;  %v1682_v52 = vld [vmem:[#allocation9 + $0x1660] sm:$0xff]  ;;  %v4359_v24 = vpack.c.bf16 %v1685_v23, %v1681_v22 }
 0x305   :  { %2431 = vmatprep.mubr.f32.mxu0 %v5164_v29  ;;  %4326 = vmatpush1.bf16.msra.mxu1 %v4325_v36  ;;  %v4335_v12 = vpack.c.bf16 %v1637_v15, %v1633_v6  ;;  %v1655_v36 = vld [vmem:[#allocation9 + $0x1588] sm:$0xff]  ;;  %v4345_v42 = vpack.c.bf16 %v1652_v35, %v1648_v28  ;;  %v1664_v6 = vld [vmem:[#allocation9 + $0x15d0] sm:$0xff]  ;;  %v4351_v15 = vpack.c.bf16 %v1669_v60, %v1665_v55  ;;  %v1717_v14 = vld [vmem:[#allocation9 + $0x1778] sm:$0xff] }
 0x306   :  { %2999 = vmatprep.mubr.f32.mxu1 %v5164_v29  ;;  %3816 = vmatprep.subr.bf16.mxu0 %v3815_v39  ;;  %v1636_v29 = vld [vmem:[#allocation9 + $0x14f0] sm:$0xff]  ;;  %v3833_v39 = vpack.c.bf16 %v1650_v33, %v1646_v0  ;;  %v3835_v43 = vpack.c.bf16 %v1659_v37, %v1655_v36  ;;  %v1689_v0 = vld [vmem:[#allocation9 + $0x1698] sm:$0xff]  ;;  %v3849_v28 = vpack.c.bf16 %v1682_v52, %v1678_v31  ;;  %v1686_v36 = vld [vmem:[#allocation9 + $0x1680] sm:$0xff] }
 0x307   :  { %4328 = vmatprep.subr.bf16.mxu1 %v4327_v27  ;;  %v4337_v20 = vpack.c.bf16 %v1636_v29, %v1632_v58  ;;  %v1658_v27 = vld [vmem:[#allocation9 + $0x15a0] sm:$0xff]  ;;  %v3841_v58 = vpack.c.bf16 %v1666_v5, %v1662_v2  ;;  %v1693_v33 = vld [vmem:[#allocation9 + $0x16b8] sm:$0xff]  ;;  %v1696_v55 = vld [vmem:[#allocation9 + $0x16d0] sm:$0xff]  ;;  %v4375_v23 = vpack.c.bf16 %v1717_v14, %v1713_v13 }
 0x308   :  { %3818 = vmatpush1.bf16.msra.mxu0 %v3817_v4  ;;  %v1660_v4 = vld [vmem:[#allocation9 + $0x15b0] sm:$0xff]  ;;  %v3837_v63 = vpack.c.bf16 %v1658_v27, %v1654_v44  ;;  %v1690_v37 = vld [vmem:[#allocation9 + $0x16a0] sm:$0xff]  ;;  %v4363_v51 = vpack.c.bf16 %v1693_v33, %v1689_v0  ;;  %v1697_v44 = vld [vmem:[#allocation9 + $0x16d8] sm:$0xff] }
 0x309   :  { %4330 = vmatpush1.bf16.msra.mxu1 %v4329_v47  ;;  %3820 = vmatprep.subr.bf16.mxu0 %v3819_v48  ;;  %v1663_v47 = vld [vmem:[#allocation9 + $0x15c8] sm:$0xff]  ;;  %v1701_v27 = vld [vmem:[#allocation9 + $0x16f8] sm:$0xff]  ;;  %v1712_v22 = vld [vmem:[#allocation9 + $0x1750] sm:$0xff] }
 0x30a   :  { %4332 = vmatprep.subr.bf16.mxu1 %v4331_v3  ;;  %v1667_v48 = vld [vmem:[#allocation9 + $0x15e8] sm:$0xff]  ;;  %v4349_v3 = vpack.c.bf16 %v1660_v4, %v1656_v45  ;;  %v3853_v45 = vpack.c.bf16 %v1690_v37, %v1686_v36  ;;  %v4367_v60 = vpack.c.bf16 %v1701_v27, %v1697_v44  ;;  %v1705_v2 = vld [vmem:[#allocation9 + $0x1718] sm:$0xff]  ;;  %v1720_v0 = vld [vmem:[#allocation9 + $0x1790] sm:$0xff] }
 0x30b   :  { %v3839_v1 = vpack.c.bf16 %v1667_v48, %v1663_v47  ;;  %v1694_v47 = vld [vmem:[#allocation9 + $0x16c0] sm:$0xff]  ;;  %v1709_v5 = vld [vmem:[#allocation9 + $0x1738] sm:$0xff]  ;;  %v1728_v44 = vld [vmem:[#allocation9 + $0x17d0] sm:$0xff] }
 0x30c   :  { %3822 = vmatpush1.bf16.msra.mxu0 %v3821_v7  ;;  %v1668_v7 = vld [vmem:[#allocation9 + $0x15f0] sm:$0xff]  ;;  %v1698_v48 = vld [vmem:[#allocation9 + $0x16e0] sm:$0xff]  ;;  %v4371_v11 = vpack.c.bf16 %v1709_v5, %v1705_v2  ;;  %v1721_v31 = vld [vmem:[#allocation9 + $0x1798] sm:$0xff] }
 0x30d   :  { %4334 = vmatpush1.bf16.msra.mxu1 %v4333_v8  ;;  %3824 = vmatprep.subr.bf16.mxu0 %v3823_v9  ;;  %v1671_v8 = vld [vmem:[#allocation9 + $0x1608] sm:$0xff]  ;;  %v1725_v52 = vld [vmem:[#allocation9 + $0x17b8] sm:$0xff]  ;;  %v1736_v5 = vld [vmem:[#allocation9 + $0x1810] sm:$0xff] }
 0x30e   :  { %4336 = vmatprep.subr.bf16.mxu1 %v4335_v12  ;;  %v1675_v9 = vld [vmem:[#allocation9 + $0x1628] sm:$0xff]  ;;  %v4353_v12 = vpack.c.bf16 %v1668_v7, %v1664_v6  ;;  %v3857_v6 = vpack.c.bf16 %v1698_v48, %v1694_v47  ;;  %v4379_v33 = vpack.c.bf16 %v1725_v52, %v1721_v31  ;;  %v1729_v36 = vld [vmem:[#allocation9 + $0x17d8] sm:$0xff]  ;;  %v1748_v14 = vld [vmem:[#allocation9 + $0x1870] sm:$0xff] }
 0x30f   :  { %v3843_v29 = vpack.c.bf16 %v1675_v9, %v1671_v8  ;;  %v1702_v8 = vld [vmem:[#allocation9 + $0x1700] sm:$0xff]  ;;  %v1733_v37 = vld [vmem:[#allocation9 + $0x17f8] sm:$0xff]  ;;  %v1752_v31 = vld [vmem:[#allocation9 + $0x1890] sm:$0xff] }
 0x310   :  { %3826 = vmatpush1.bf16.msra.mxu0 %v3825_v19  ;;  %v1676_v19 = vld [vmem:[#allocation9 + $0x1630] sm:$0xff]  ;;  %v1706_v9 = vld [vmem:[#allocation9 + $0x1720] sm:$0xff]  ;;  %v4383_v27 = vpack.c.bf16 %v1733_v37, %v1729_v36  ;;  %v1737_v47 = vld [vmem:[#allocation9 + $0x1818] sm:$0xff] }
 0x311   :  { %4338 = vmatpush1.bf16.msra.mxu1 %v4337_v20  ;;  %3828 = vmatprep.subr.bf16.mxu0 %v3827_v21  ;;  %v1679_v20 = vld [vmem:[#allocation9 + $0x1648] sm:$0xff]  ;;  %v1741_v48 = vld [vmem:[#allocation9 + $0x1838] sm:$0xff] }
 0x312   :  { %4340 = vmatprep.subr.bf16.mxu1 %v4339_v26  ;;  %v1683_v21 = vld [vmem:[#allocation9 + $0x1668] sm:$0xff]  ;;  %v4357_v26 = vpack.c.bf16 %v1676_v19, %v1672_v59  ;;  %v3861_v59 = vpack.c.bf16 %v1706_v9, %v1702_v8  ;;  %v4387_v2 = vpack.c.bf16 %v1741_v48, %v1737_v47  ;;  %v1745_v9 = vld [vmem:[#allocation9 + $0x1858] sm:$0xff]  ;;  %v1772_v47 = vld [vmem:[#allocation9 + $0x1930] sm:$0xff] }
 0x313   :  { %v3847_v30 = vpack.c.bf16 %v1683_v21, %v1679_v20  ;;  %v1710_v20 = vld [vmem:[#allocation9 + $0x1740] sm:$0xff]  ;;  %v1767_v37 = vld [vmem:[#allocation9 + $0x1908] sm:$0xff] }
 0x314   :  { %3830 = vmatpush1.bf16.msra.mxu0 %v3829_v18  ;;  %v1684_v18 = vld [vmem:[#allocation9 + $0x1670] sm:$0xff]  ;;  %v1714_v21 = vld [vmem:[#allocation9 + $0x1760] sm:$0xff]  ;;  %v1775_v48 = vld [vmem:[#allocation9 + $0x1948] sm:$0xff] }
 0x315   :  { %4342 = vmatpush1.bf16.msra.mxu1 %v4341_v32  ;;  %3832 = vmatprep.subr.bf16.mxu0 %v3831_v62  ;;  %v1687_v32 = vld [vmem:[#allocation9 + $0x1688] sm:$0xff] }
 0x316   :  { %4344 = vmatprep.subr.bf16.mxu1 %v4343_v34  ;;  %v1691_v62 = vld [vmem:[#allocation9 + $0x16a8] sm:$0xff]  ;;  %v4361_v34 = vpack.c.bf16 %v1684_v18, %v1680_v61  ;;  %v3865_v61 = vpack.c.bf16 %v1714_v21, %v1710_v20  ;;  %v1753_v20 = vld [vmem:[#allocation9 + $0x1898] sm:$0xff] }
 0x317   :  { %v3851_v35 = vpack.c.bf16 %v1691_v62, %v1687_v32  ;;  %v1718_v32 = vld [vmem:[#allocation9 + $0x1780] sm:$0xff]  ;;  %v1757_v21 = vld [vmem:[#allocation9 + $0x18b8] sm:$0xff] }
 0x318   :  { %3834 = vmatpush1.bf16.msra.mxu0 %v3833_v39  ;;  %v1692_v39 = vld [vmem:[#allocation9 + $0x16b0] sm:$0xff]  ;;  %v1722_v62 = vld [vmem:[#allocation9 + $0x17a0] sm:$0xff]  ;;  %v4395_v52 = vpack.c.bf16 %v1757_v21, %v1753_v20  ;;  %v1791_v21 = vld [vmem:[#allocation9 + $0x19c8] sm:$0xff] }
 0x319   :  { %4346 = vmatpush1.bf16.msra.mxu1 %v4345_v42  ;;  %3836 = vmatprep.subr.bf16.mxu0 %v3835_v43  ;;  %v1695_v42 = vld [vmem:[#allocation9 + $0x16c8] sm:$0xff]  ;;  %v1788_v20 = vld [vmem:[#allocation9 + $0x19b0] sm:$0xff] }
 0x31a   :  { %4348 = vmatprep.subr.bf16.mxu1 %v4347_v46  ;;  %v1699_v43 = vld [vmem:[#allocation9 + $0x16e8] sm:$0xff]  ;;  %v4365_v46 = vpack.c.bf16 %v1692_v39, %v1688_v38  ;;  %v3869_v38 = vpack.c.bf16 %v1722_v62, %v1718_v32  ;;  %v1761_v32 = vld [vmem:[#allocation9 + $0x18d8] sm:$0xff] }
 0x31b   :  { %v3855_v4 = vpack.c.bf16 %v1699_v43, %v1695_v42  ;;  %v1726_v42 = vld [vmem:[#allocation9 + $0x17c0] sm:$0xff] }
 0x31c   :  { %3838 = vmatpush1.bf16.msra.mxu0 %v3837_v63  ;;  %v1700_v63 = vld [vmem:[#allocation9 + $0x16f0] sm:$0xff]  ;;  %v1730_v43 = vld [vmem:[#allocation9 + $0x17e0] sm:$0xff] }
 0x31d   :  { %4350 = vmatpush1.bf16.msra.mxu1 %v4349_v3  ;;  %3840 = vmatprep.subr.bf16.mxu0 %v3839_v1  ;;  %v1703_v3 = vld [vmem:[#allocation9 + $0x1708] sm:$0xff] }
 0x31e   :  { %4352 = vmatprep.subr.bf16.mxu1 %v4351_v15  ;;  %v1707_v1 = vld [vmem:[#allocation9 + $0x1728] sm:$0xff]  ;;  %v4369_v15 = vpack.c.bf16 %v1700_v63, %v1696_v55  ;;  %v3873_v55 = vpack.c.bf16 %v1730_v43, %v1726_v42 }
 0x31f   :  { %v3859_v7 = vpack.c.bf16 %v1707_v1, %v1703_v3  ;;  %v1734_v3 = vld [vmem:[#allocation9 + $0x1800] sm:$0xff] }
 0x320   :  { %3842 = vmatpush1.bf16.msra.mxu0 %v3841_v58  ;;  %v1708_v58 = vld [vmem:[#allocation9 + $0x1730] sm:$0xff]  ;;  %v1738_v1 = vld [vmem:[#allocation9 + $0x1820] sm:$0xff] }
 0x321   :  { %4354 = vmatpush1.bf16.msra.mxu1 %v4353_v12  ;;  %3844 = vmatprep.subr.bf16.mxu0 %v3843_v29  ;;  %v1711_v12 = vld [vmem:[#allocation9 + $0x1748] sm:$0xff]  ;;  %v3877_v8 = vpack.c.bf16 %v1738_v1, %v1734_v3 }
 0x322   :  { %4356 = vmatprep.subr.bf16.mxu1 %v4355_v17  ;;  %v1715_v29 = vld [vmem:[#allocation9 + $0x1768] sm:$0xff]  ;;  %v4373_v17 = vpack.c.bf16 %v1708_v58, %v1704_v10  ;;  %v1749_v10 = vld [vmem:[#allocation9 + $0x1878] sm:$0xff]  ;;  %v1742_v58 = vld [vmem:[#allocation9 + $0x1840] sm:$0xff] }
 0x323   :  { %v3863_v19 = vpack.c.bf16 %v1715_v29, %v1711_v12  ;;  %v1746_v12 = vld [vmem:[#allocation9 + $0x1860] sm:$0xff]  ;;  %v1744_v29 = vld [vmem:[#allocation9 + $0x1850] sm:$0xff] }
 0x324   :  { %3846 = vmatpush1.bf16.msra.mxu0 %v3845_v25  ;;  %v1716_v25 = vld [vmem:[#allocation9 + $0x1770] sm:$0xff] }
 0x325   :  { %4358 = vmatpush1.bf16.msra.mxu1 %v4357_v26  ;;  %3848 = vmatprep.subr.bf16.mxu0 %v3847_v30  ;;  %v1719_v26 = vld [vmem:[#allocation9 + $0x1788] sm:$0xff] }
 0x326   :  { %4360 = vmatprep.subr.bf16.mxu1 %v4359_v24  ;;  %v1723_v30 = vld [vmem:[#allocation9 + $0x17a8] sm:$0xff]  ;;  %v4377_v24 = vpack.c.bf16 %v1716_v25, %v1712_v22  ;;  %v3881_v22 = vpack.c.bf16 %v1746_v12, %v1742_v58  ;;  %v1789_v58 = vld [vmem:[#allocation9 + $0x19b8] sm:$0xff] }
 0x327   :  { %v3867_v18 = vpack.c.bf16 %v1723_v30, %v1719_v26  ;;  %v1750_v26 = vld [vmem:[#allocation9 + $0x1880] sm:$0xff] }
 0x328   :  { %3850 = vmatpush1.bf16.msra.mxu0 %v3849_v28  ;;  %v1724_v28 = vld [vmem:[#allocation9 + $0x17b0] sm:$0xff]  ;;  %v1754_v30 = vld [vmem:[#allocation9 + $0x18a0] sm:$0xff] }
 0x329   :  { %4362 = vmatpush1.bf16.msra.mxu1 %v4361_v34  ;;  %3852 = vmatprep.subr.bf16.mxu0 %v3851_v35  ;;  %v1727_v34 = vld [vmem:[#allocation9 + $0x17c8] sm:$0xff]  ;;  %v3885_v62 = vpack.c.bf16 %v1754_v30, %v1750_v26 }
 0x32a   :  { %4364 = vmatprep.subr.bf16.mxu1 %v4363_v51  ;;  %v1731_v35 = vld [vmem:[#allocation9 + $0x17e8] sm:$0xff]  ;;  %v4381_v51 = vpack.c.bf16 %v1724_v28, %v1720_v0  ;;  %v1758_v28 = vld [vmem:[#allocation9 + $0x18c0] sm:$0xff] }
 0x32b   :  { %v3871_v39 = vpack.c.bf16 %v1731_v35, %v1727_v34  ;;  %v1762_v34 = vld [vmem:[#allocation9 + $0x18e0] sm:$0xff]  ;;  %v1760_v35 = vld [vmem:[#allocation9 + $0x18d0] sm:$0xff] }
 0x32c   :  { %3854 = vmatpush1.bf16.msra.mxu0 %v3853_v45  ;;  %v1732_v45 = vld [vmem:[#allocation9 + $0x17f0] sm:$0xff]  ;;  %v3889_v42 = vpack.c.bf16 %v1762_v34, %v1758_v28 }
 0x32d   :  { %4366 = vmatpush1.bf16.msra.mxu1 %v4365_v46  ;;  %3856 = vmatprep.subr.bf16.mxu0 %v3855_v4  ;;  %v1735_v46 = vld [vmem:[#allocation9 + $0x1808] sm:$0xff] }
 0x32e   :  { %4368 = vmatprep.subr.bf16.mxu1 %v4367_v60  ;;  %v1739_v4 = vld [vmem:[#allocation9 + $0x1828] sm:$0xff]  ;;  %v4385_v60 = vpack.c.bf16 %v1732_v45, %v1728_v44  ;;  %v1770_v45 = vld [vmem:[#allocation9 + $0x1920] sm:$0xff] }
 0x32f   :  { %v3875_v63 = vpack.c.bf16 %v1739_v4, %v1735_v46  ;;  %v1768_v46 = vld [vmem:[#allocation9 + $0x1910] sm:$0xff] }
 0x330   :  { %3858 = vmatpush1.bf16.msra.mxu0 %v3857_v6  ;;  %v1740_v6 = vld [vmem:[#allocation9 + $0x1830] sm:$0xff]  ;;  %v4405_v1 = vpack.c.bf16 %v1772_v47, %v1768_v46  ;;  %v1810_v47 = vld [vmem:[#allocation9 + $0x1a60] sm:$0xff] }
 0x331   :  { %4370 = vmatpush1.bf16.msra.mxu1 %v4369_v15  ;;  %3860 = vmatprep.subr.bf16.mxu0 %v3859_v7  ;;  %v1743_v15 = vld [vmem:[#allocation9 + $0x1848] sm:$0xff] }
 0x332   :  { %4372 = vmatprep.subr.bf16.mxu1 %v4371_v11  ;;  %v1747_v7 = vld [vmem:[#allocation9 + $0x1868] sm:$0xff]  ;;  %v4389_v11 = vpack.c.bf16 %v1740_v6, %v1736_v5  ;;  %v1774_v5 = vld [vmem:[#allocation9 + $0x1940] sm:$0xff] }
 0x333   :  { %v3879_v13 = vpack.c.bf16 %v1747_v7, %v1743_v15  ;;  %v1778_v6 = vld [vmem:[#allocation9 + $0x1960] sm:$0xff]  ;;  %v1776_v15 = vld [vmem:[#allocation9 + $0x1950] sm:$0xff] }
 0x334   :  { %3862 = vmatpush1.bf16.msra.mxu0 %v3861_v59  ;;  %v1751_v59 = vld [vmem:[#allocation9 + $0x1888] sm:$0xff]  ;;  %v3897_v12 = vpack.c.bf16 %v1778_v6, %v1774_v5 }
 0x335   :  { %4374 = vmatpush1.bf16.msra.mxu1 %v4373_v17  ;;  %3864 = vmatprep.subr.bf16.mxu0 %v3863_v19  ;;  %v1755_v17 = vld [vmem:[#allocation9 + $0x18a8] sm:$0xff]  ;;  %v4391_v19 = vpack.c.bf16 %v1749_v10, %v1745_v9 }
 0x336   :  { %4376 = vmatprep.subr.bf16.mxu1 %v4375_v23  ;;  %v4393_v23 = vpack.c.bf16 %v1748_v14, %v1744_v29  ;;  %v3883_v25 = vpack.c.bf16 %v1755_v17, %v1751_v59  ;;  %v1783_v9 = vld [vmem:[#allocation9 + $0x1988] sm:$0xff]  ;;  %v1782_v14 = vld [vmem:[#allocation9 + $0x1980] sm:$0xff]  ;;  %v1784_v17 = vld [vmem:[#allocation9 + $0x1990] sm:$0xff] }
 0x337   :  { %v1787_v10 = vld [vmem:[#allocation9 + $0x19a8] sm:$0xff]  ;;  %v1786_v59 = vld [vmem:[#allocation9 + $0x19a0] sm:$0xff]  ;;  %v4413_v30 = vpack.c.bf16 %v1788_v20, %v1784_v17 }
 0x338   :  { %3866 = vmatpush1.bf16.msra.mxu0 %v3865_v61  ;;  %v1756_v61 = vld [vmem:[#allocation9 + $0x18b0] sm:$0xff]  ;;  %v3901_v26 = vpack.c.bf16 %v1786_v59, %v1782_v14  ;;  %v1826_v20 = vld [vmem:[#allocation9 + $0x1ae0] sm:$0xff] }
 0x339   :  { %4378 = vmatpush1.bf16.msra.mxu1 %v4377_v24  ;;  %3868 = vmatprep.subr.bf16.mxu0 %v3867_v18  ;;  %v1759_v24 = vld [vmem:[#allocation9 + $0x18c8] sm:$0xff]  ;;  %v4397_v0 = vpack.c.bf16 %v1756_v61, %v1752_v31  ;;  %v1794_v61 = vld [vmem:[#allocation9 + $0x19e0] sm:$0xff] }
 0x33a   :  { %4380 = vmatprep.subr.bf16.mxu1 %v4379_v33  ;;  %v1763_v18 = vld [vmem:[#allocation9 + $0x18e8] sm:$0xff] }
 0x33b   :  { %v3887_v33 = vpack.c.bf16 %v1763_v18, %v1759_v24  ;;  %v1792_v24 = vld [vmem:[#allocation9 + $0x19d0] sm:$0xff] }
 0x33c   :  { %3870 = vmatpush1.bf16.msra.mxu0 %v3869_v38  ;;  %v1771_v38 = vld [vmem:[#allocation9 + $0x1928] sm:$0xff] }
 0x33d   :  { %4382 = vmatpush1.bf16.msra.mxu1 %v4381_v51  ;;  %3872 = vmatprep.subr.bf16.mxu0 %v3871_v39  ;;  %v1769_v51 = vld [vmem:[#allocation9 + $0x1918] sm:$0xff]  ;;  %v3891_v44 = vpack.c.bf16 %v1771_v38, %v1767_v37  ;;  %v1800_v37 = vld [vmem:[#allocation9 + $0x1a10] sm:$0xff] }
 0x33e   :  { %4384 = vmatprep.subr.bf16.mxu1 %v4383_v27  ;;  %v1773_v39 = vld [vmem:[#allocation9 + $0x1938] sm:$0xff]  ;;  %v1766_v27 = vld [vmem:[#allocation9 + $0x1900] sm:$0xff] }
 0x33f   :  { %v4403_v4 = vpack.c.bf16 %v1773_v39, %v1769_v51  ;;  %v3893_v3 = vpack.c.bf16 %v1770_v45, %v1766_v27  ;;  %v1804_v51 = vld [vmem:[#allocation9 + $0x1a30] sm:$0xff]  ;;  %v1807_v39 = vld [vmem:[#allocation9 + $0x1a48] sm:$0xff] }
 0x340   :  { %3874 = vmatpush1.bf16.msra.mxu0 %v3873_v55  ;;  %v1779_v55 = vld [vmem:[#allocation9 + $0x1968] sm:$0xff]  ;;  %v4421_v45 = vpack.c.bf16 %v1804_v51, %v1800_v37  ;;  %v1842_v51 = vld [vmem:[#allocation9 + $0x1b60] sm:$0xff] }
 0x341   :  { %4386 = vmatpush1.bf16.msra.mxu1 %v4385_v60  ;;  %3876 = vmatprep.subr.bf16.mxu0 %v3875_v63  ;;  %v1777_v60 = vld [vmem:[#allocation9 + $0x1958] sm:$0xff] }
 0x342   :  { %4388 = vmatprep.subr.bf16.mxu1 %v4387_v2  ;;  %v1781_v63 = vld [vmem:[#allocation9 + $0x1978] sm:$0xff]  ;;  %v3895_v2 = vpack.c.bf16 %v1779_v55, %v1775_v48  ;;  %v1808_v48 = vld [vmem:[#allocation9 + $0x1a50] sm:$0xff] }
 0x343   :  { %2432 = vmatmul.mubr.f32.vlgmr.msra.gmra.mrb[8].mxu0 %v5152_v16  ;;  %v4407_v7 = vpack.c.bf16 %v1781_v63, %v1777_v60  ;;  %v1812_v60 = vld [vmem:[#allocation9 + $0x1a70] sm:$0xff]  ;;  %v1815_v63 = vld [vmem:[#allocation9 + $0x1a88] sm:$0xff] }
 0x344   :  { %3000 = vmatmul.mubr.f32.vlgmr.msra.gmra.mrb[8].mxu1 %v5152_v16  ;;  %3878 = vmatpush1.bf16.msra.mxu0 %v3877_v8  ;;  %v1765_v16 = vld [vmem:[#allocation9 + $0x18f8] sm:$0xff]  ;;  %v1780_v8 = vld [vmem:[#allocation9 + $0x1970] sm:$0xff]  ;;  %v4425_v6 = vpack.c.bf16 %v1812_v60, %v1808_v48  ;;  %v1850_v60 = vld [vmem:[#allocation9 + $0x1ba0] sm:$0xff] }
 0x345   :  { %2502 = vmatprep.mubr.f32.mxu0 %v5176_v49  ;;  %4390 = vmatpush1.bf16.msra.mxu1 %v4389_v11  ;;  %v4399_v36 = vpack.c.bf16 %v1765_v16, %v1761_v32  ;;  %v1785_v11 = vld [vmem:[#allocation9 + $0x1998] sm:$0xff]  ;;  %v4409_v29 = vpack.c.bf16 %v1780_v8, %v1776_v15  ;;  %v1796_v32 = vld [vmem:[#allocation9 + $0x19f0] sm:$0xff]  ;;  %v1799_v16 = vld [vmem:[#allocation9 + $0x1a08] sm:$0xff] }
 0x346   :  { %3070 = vmatprep.mubr.f32.mxu1 %v5176_v49  ;;  %3880 = vmatprep.subr.bf16.mxu0 %v3879_v13  ;;  %v1764_v49 = vld [vmem:[#allocation9 + $0x18f0] sm:$0xff]  ;;  %v3899_v13 = vpack.c.bf16 %v1787_v10, %v1783_v9  ;;  %v4417_v34 = vpack.c.bf16 %v1796_v32, %v1792_v24  ;;  %v1818_v8 = vld [vmem:[#allocation9 + $0x1aa0] sm:$0xff] }
 0x347   :  { %4392 = vmatprep.subr.bf16.mxu1 %v4391_v19  ;;  %v4401_v43 = vpack.c.bf16 %v1764_v49, %v1760_v35  ;;  %v4411_v19 = vpack.c.bf16 %v1789_v58, %v1785_v11  ;;  %v1802_v49 = vld [vmem:[#allocation9 + $0x1a20] sm:$0xff]  ;;  %v1816_v9 = vld [vmem:[#allocation9 + $0x1a90] sm:$0xff]  ;;  %v1823_v58 = vld [vmem:[#allocation9 + $0x1ac8] sm:$0xff] }
 0x348   :  { %3882 = vmatpush1.bf16.msra.mxu0 %v3881_v22  ;;  %v1795_v22 = vld [vmem:[#allocation9 + $0x19e8] sm:$0xff]  ;;  %v1820_v11 = vld [vmem:[#allocation9 + $0x1ab0] sm:$0xff]  ;;  %v1834_v32 = vld [vmem:[#allocation9 + $0x1b20] sm:$0xff] }
 0x349   :  { %4394 = vmatpush1.bf16.msra.mxu1 %v4393_v23  ;;  %3884 = vmatprep.subr.bf16.mxu0 %v3883_v25  ;;  %v1793_v23 = vld [vmem:[#allocation9 + $0x19d8] sm:$0xff]  ;;  %v3903_v31 = vpack.c.bf16 %v1795_v22, %v1791_v21  ;;  %v4429_v59 = vpack.c.bf16 %v1820_v11, %v1816_v9  ;;  %v1824_v21 = vld [vmem:[#allocation9 + $0x1ad0] sm:$0xff]  ;;  %v1858_v11 = vld [vmem:[#allocation9 + $0x1be0] sm:$0xff] }
 0x34a   :  { %4396 = vmatprep.subr.bf16.mxu1 %v4395_v52  ;;  %v1797_v25 = vld [vmem:[#allocation9 + $0x19f8] sm:$0xff]  ;;  %v1790_v52 = vld [vmem:[#allocation9 + $0x19c0] sm:$0xff] }
 0x34b   :  { %v4415_v18 = vpack.c.bf16 %v1797_v25, %v1793_v23  ;;  %v3905_v28 = vpack.c.bf16 %v1794_v61, %v1790_v52  ;;  %v1828_v23 = vld [vmem:[#allocation9 + $0x1af0] sm:$0xff]  ;;  %v1831_v25 = vld [vmem:[#allocation9 + $0x1b08] sm:$0xff] }
 0x34c   :  { %3886 = vmatpush1.bf16.msra.mxu0 %v3885_v62  ;;  %v1803_v62 = vld [vmem:[#allocation9 + $0x1a28] sm:$0xff]  ;;  %v4433_v61 = vpack.c.bf16 %v1828_v23, %v1824_v21  ;;  %v1866_v23 = vld [vmem:[#allocation9 + $0x1c20] sm:$0xff] }
 0x34d   :  { %4398 = vmatpush1.bf16.msra.mxu1 %v4397_v0  ;;  %3888 = vmatprep.subr.bf16.mxu0 %v3887_v33  ;;  %v1801_v0 = vld [vmem:[#allocation9 + $0x1a18] sm:$0xff]  ;;  %v3907_v35 = vpack.c.bf16 %v1803_v62, %v1799_v16  ;;  %v1832_v16 = vld [vmem:[#allocation9 + $0x1b10] sm:$0xff] }
 0x34e   :  { %4400 = vmatprep.subr.bf16.mxu1 %v4399_v36  ;;  %v1805_v33 = vld [vmem:[#allocation9 + $0x1a38] sm:$0xff]  ;;  %v1798_v36 = vld [vmem:[#allocation9 + $0x1a00] sm:$0xff] }
 0x34f   :  { %v4419_v38 = vpack.c.bf16 %v1805_v33, %v1801_v0  ;;  %v3909_v27 = vpack.c.bf16 %v1802_v49, %v1798_v36  ;;  %v1836_v0 = vld [vmem:[#allocation9 + $0x1b30] sm:$0xff]  ;;  %v1839_v33 = vld [vmem:[#allocation9 + $0x1b48] sm:$0xff] }
 0x350   :  { %3890 = vmatpush1.bf16.msra.mxu0 %v3889_v42  ;;  %v1811_v42 = vld [vmem:[#allocation9 + $0x1a68] sm:$0xff]  ;;  %v4437_v49 = vpack.c.bf16 %v1836_v0, %v1832_v16  ;;  %v1870_v16 = vld [vmem:[#allocation9 + $0x1c40] sm:$0xff]  ;;  %v1872_v0 = vld [vmem:[#allocation9 + $0x1c50] sm:$0xff] }
 0x351   :  { %4402 = vmatpush1.bf16.msra.mxu1 %v4401_v43  ;;  %3892 = vmatprep.subr.bf16.mxu0 %v3891_v44  ;;  %v1809_v43 = vld [vmem:[#allocation9 + $0x1a58] sm:$0xff]  ;;  %v3911_v46 = vpack.c.bf16 %v1811_v42, %v1807_v39  ;;  %v1840_v39 = vld [vmem:[#allocation9 + $0x1b50] sm:$0xff] }
 0x352   :  { %4404 = vmatprep.subr.bf16.mxu1 %v4403_v4  ;;  %v1813_v44 = vld [vmem:[#allocation9 + $0x1a78] sm:$0xff]  ;;  %v1806_v4 = vld [vmem:[#allocation9 + $0x1a40] sm:$0xff] }
 0x353   :  { %v4423_v55 = vpack.c.bf16 %v1813_v44, %v1809_v43  ;;  %v3913_v5 = vpack.c.bf16 %v1810_v47, %v1806_v4  ;;  %v1844_v43 = vld [vmem:[#allocation9 + $0x1b70] sm:$0xff]  ;;  %v1847_v44 = vld [vmem:[#allocation9 + $0x1b88] sm:$0xff] }
 0x354   :  { %3894 = vmatpush1.bf16.msra.mxu0 %v3893_v3  ;;  %v1819_v3 = vld [vmem:[#allocation9 + $0x1aa8] sm:$0xff]  ;;  %v4441_v47 = vpack.c.bf16 %v1844_v43, %v1840_v39  ;;  %v1882_v43 = vld [vmem:[#allocation9 + $0x1ca0] sm:$0xff] }
 0x355   :  { %4406 = vmatpush1.bf16.msra.mxu1 %v4405_v1  ;;  %3896 = vmatprep.subr.bf16.mxu0 %v3895_v2  ;;  %v1817_v1 = vld [vmem:[#allocation9 + $0x1a98] sm:$0xff]  ;;  %v3915_v15 = vpack.c.bf16 %v1819_v3, %v1815_v63  ;;  %v1848_v63 = vld [vmem:[#allocation9 + $0x1b90] sm:$0xff] }
 0x356   :  { %4408 = vmatprep.subr.bf16.mxu1 %v4407_v7  ;;  %v1821_v2 = vld [vmem:[#allocation9 + $0x1ab8] sm:$0xff]  ;;  %v1814_v7 = vld [vmem:[#allocation9 + $0x1a80] sm:$0xff] }
 0x357   :  { %v4427_v10 = vpack.c.bf16 %v1821_v2, %v1817_v1  ;;  %v3917_v14 = vpack.c.bf16 %v1818_v8, %v1814_v7  ;;  %v1852_v1 = vld [vmem:[#allocation9 + $0x1bb0] sm:$0xff]  ;;  %v1855_v2 = vld [vmem:[#allocation9 + $0x1bc8] sm:$0xff] }
 0x358   :  { %3898 = vmatpush1.bf16.msra.mxu0 %v3897_v12  ;;  %v1827_v12 = vld [vmem:[#allocation9 + $0x1ae8] sm:$0xff]  ;;  %v4445_v8 = vpack.c.bf16 %v1852_v1, %v1848_v63  ;;  %v1886_v63 = vld [vmem:[#allocation9 + $0x1cc0] sm:$0xff]  ;;  %v1888_v1 = vld [vmem:[#allocation9 + $0x1cd0] sm:$0xff] }
 0x359   :  { %4410 = vmatpush1.bf16.msra.mxu1 %v4409_v29  ;;  %3900 = vmatprep.subr.bf16.mxu0 %v3899_v13  ;;  %v1825_v29 = vld [vmem:[#allocation9 + $0x1ad8] sm:$0xff]  ;;  %v3919_v17 = vpack.c.bf16 %v1827_v12, %v1823_v58  ;;  %v1856_v58 = vld [vmem:[#allocation9 + $0x1bd0] sm:$0xff] }
 0x35a   :  { %4412 = vmatprep.subr.bf16.mxu1 %v4411_v19  ;;  %v1829_v13 = vld [vmem:[#allocation9 + $0x1af8] sm:$0xff]  ;;  %v1822_v19 = vld [vmem:[#allocation9 + $0x1ac0] sm:$0xff] }
 0x35b   :  { %v4431_v22 = vpack.c.bf16 %v1829_v13, %v1825_v29  ;;  %v3921_v52 = vpack.c.bf16 %v1826_v20, %v1822_v19  ;;  %v1860_v29 = vld [vmem:[#allocation9 + $0x1bf0] sm:$0xff]  ;;  %v1863_v13 = vld [vmem:[#allocation9 + $0x1c08] sm:$0xff] }
 0x35c   :  { %3902 = vmatpush1.bf16.msra.mxu0 %v3901_v26  ;;  %v1835_v26 = vld [vmem:[#allocation9 + $0x1b28] sm:$0xff]  ;;  %v4449_v20 = vpack.c.bf16 %v1860_v29, %v1856_v58  ;;  %v1898_v58 = vld [vmem:[#allocation9 + $0x1d20] sm:$0xff] }
 0x35d   :  { %4414 = vmatpush1.bf16.msra.mxu1 %v4413_v30  ;;  %3904 = vmatprep.subr.bf16.mxu0 %v3903_v31  ;;  %v1833_v30 = vld [vmem:[#allocation9 + $0x1b18] sm:$0xff]  ;;  %v3923_v24 = vpack.c.bf16 %v1835_v26, %v1831_v25  ;;  %v1864_v26 = vld [vmem:[#allocation9 + $0x1c10] sm:$0xff] }
 0x35e   :  { %4416 = vmatprep.subr.bf16.mxu1 %v4415_v18  ;;  %v1837_v31 = vld [vmem:[#allocation9 + $0x1b38] sm:$0xff]  ;;  %v1830_v18 = vld [vmem:[#allocation9 + $0x1b00] sm:$0xff] }
 0x35f   :  { %v4435_v62 = vpack.c.bf16 %v1837_v31, %v1833_v30  ;;  %v3925_v36 = vpack.c.bf16 %v1834_v32, %v1830_v18  ;;  %v1868_v30 = vld [vmem:[#allocation9 + $0x1c30] sm:$0xff]  ;;  %v1871_v31 = vld [vmem:[#allocation9 + $0x1c48] sm:$0xff]  ;;  %v1877_v18 = vld [vmem:[#allocation9 + $0x1c78] sm:$0xff] }
 0x360   :  { %3906 = vmatpush1.bf16.msra.mxu0 %v3905_v28  ;;  %v1843_v28 = vld [vmem:[#allocation9 + $0x1b68] sm:$0xff]  ;;  %v4453_v32 = vpack.c.bf16 %v1868_v30, %v1864_v26  ;;  %v1904_v26 = vld [vmem:[#allocation9 + $0x1d50] sm:$0xff] }
 0x361   :  { %4418 = vmatpush1.bf16.msra.mxu1 %v4417_v34  ;;  %3908 = vmatprep.subr.bf16.mxu0 %v3907_v35  ;;  %v1841_v34 = vld [vmem:[#allocation9 + $0x1b58] sm:$0xff]  ;;  %v3927_v37 = vpack.c.bf16 %v1843_v28, %v1839_v33  ;;  %v1876_v28 = vld [vmem:[#allocation9 + $0x1c70] sm:$0xff] }
 0x362   :  { %4420 = vmatprep.subr.bf16.mxu1 %v4419_v38  ;;  %v1845_v35 = vld [vmem:[#allocation9 + $0x1b78] sm:$0xff]  ;;  %v1838_v38 = vld [vmem:[#allocation9 + $0x1b40] sm:$0xff] }
 0x363   :  { %v4439_v42 = vpack.c.bf16 %v1845_v35, %v1841_v34  ;;  %v3929_v4 = vpack.c.bf16 %v1842_v51, %v1838_v38  ;;  %v1879_v34 = vld [vmem:[#allocation9 + $0x1c88] sm:$0xff]  ;;  %v4457_v51 = vpack.c.bf16 %v1876_v28, %v1872_v0  ;;  %v1910_v0 = vld [vmem:[#allocation9 + $0x1d80] sm:$0xff]  ;;  %v1912_v28 = vld [vmem:[#allocation9 + $0x1d90] sm:$0xff] }
 0x364   :  { %3910 = vmatpush1.bf16.msra.mxu0 %v3909_v27  ;;  %v1851_v27 = vld [vmem:[#allocation9 + $0x1ba8] sm:$0xff] }
 0x365   :  { %4422 = vmatpush1.bf16.msra.mxu1 %v4421_v45  ;;  %3912 = vmatprep.subr.bf16.mxu0 %v3911_v46  ;;  %v1849_v45 = vld [vmem:[#allocation9 + $0x1b98] sm:$0xff]  ;;  %v3931_v48 = vpack.c.bf16 %v1851_v27, %v1847_v44  ;;  %v1883_v35 = vld [vmem:[#allocation9 + $0x1ca8] sm:$0xff]  ;;  %v1880_v44 = vld [vmem:[#allocation9 + $0x1c90] sm:$0xff] }
 0x366   :  { %4424 = vmatprep.subr.bf16.mxu1 %v4423_v55  ;;  %v1853_v46 = vld [vmem:[#allocation9 + $0x1bb8] sm:$0xff]  ;;  %v1846_v55 = vld [vmem:[#allocation9 + $0x1b80] sm:$0xff]  ;;  %v3947_v39 = vpack.c.bf16 %v1883_v35, %v1879_v34  ;;  %v1916_v35 = vld [vmem:[#allocation9 + $0x1db0] sm:$0xff] }
 0x367   :  { %v4443_v3 = vpack.c.bf16 %v1853_v46, %v1849_v45  ;;  %v3933_v7 = vpack.c.bf16 %v1850_v60, %v1846_v55  ;;  %v1884_v45 = vld [vmem:[#allocation9 + $0x1cb0] sm:$0xff]  ;;  %v1887_v46 = vld [vmem:[#allocation9 + $0x1cc8] sm:$0xff] }
 0x368   :  { %3914 = vmatpush1.bf16.msra.mxu0 %v3913_v5  ;;  %v1859_v5 = vld [vmem:[#allocation9 + $0x1be8] sm:$0xff]  ;;  %v4461_v55 = vpack.c.bf16 %v1884_v45, %v1880_v44  ;;  %v1922_v44 = vld [vmem:[#allocation9 + $0x1de0] sm:$0xff] }
 0x369   :  { %4426 = vmatpush1.bf16.msra.mxu1 %v4425_v6  ;;  %3916 = vmatprep.subr.bf16.mxu0 %v3915_v15  ;;  %v1857_v6 = vld [vmem:[#allocation9 + $0x1bd8] sm:$0xff]  ;;  %v3935_v9 = vpack.c.bf16 %v1859_v5, %v1855_v2  ;;  %v1895_v5 = vld [vmem:[#allocation9 + $0x1d08] sm:$0xff] }
 0x36a   :  { %4428 = vmatprep.subr.bf16.mxu1 %v4427_v10  ;;  %v1861_v15 = vld [vmem:[#allocation9 + $0x1bf8] sm:$0xff]  ;;  %v1854_v10 = vld [vmem:[#allocation9 + $0x1bc0] sm:$0xff] }
 0x36b   :  { %v4447_v12 = vpack.c.bf16 %v1861_v15, %v1857_v6  ;;  %v3937_v19 = vpack.c.bf16 %v1858_v11, %v1854_v10  ;;  %v1899_v6 = vld [vmem:[#allocation9 + $0x1d28] sm:$0xff]  ;;  %v1897_v15 = vld [vmem:[#allocation9 + $0x1d18] sm:$0xff]  ;;  %v1894_v11 = vld [vmem:[#allocation9 + $0x1d00] sm:$0xff] }
 0x36c   :  { %3918 = vmatpush1.bf16.msra.mxu0 %v3917_v14  ;;  %v1867_v14 = vld [vmem:[#allocation9 + $0x1c28] sm:$0xff]  ;;  %v3955_v10 = vpack.c.bf16 %v1899_v6, %v1895_v5  ;;  %v1932_v5 = vld [vmem:[#allocation9 + $0x1e30] sm:$0xff] }
 0x36d   :  { %4430 = vmatpush1.bf16.msra.mxu1 %v4429_v59  ;;  %3920 = vmatprep.subr.bf16.mxu0 %v3919_v17  ;;  %v1865_v59 = vld [vmem:[#allocation9 + $0x1c18] sm:$0xff]  ;;  %v3939_v21 = vpack.c.bf16 %v1867_v14, %v1863_v13  ;;  %v1900_v13 = vld [vmem:[#allocation9 + $0x1d30] sm:$0xff]  ;;  %v1903_v14 = vld [vmem:[#allocation9 + $0x1d48] sm:$0xff] }
 0x36e   :  { %4432 = vmatprep.subr.bf16.mxu1 %v4431_v22  ;;  %v1869_v17 = vld [vmem:[#allocation9 + $0x1c38] sm:$0xff]  ;;  %v1862_v22 = vld [vmem:[#allocation9 + $0x1c00] sm:$0xff]  ;;  %v1935_v6 = vld [vmem:[#allocation9 + $0x1e48] sm:$0xff] }
 0x36f   :  { %v4451_v25 = vpack.c.bf16 %v1869_v17, %v1865_v59  ;;  %v1907_v59 = vld [vmem:[#allocation9 + $0x1d68] sm:$0xff]  ;;  %v1905_v17 = vld [vmem:[#allocation9 + $0x1d58] sm:$0xff] }
 0x370   :  { %3922 = vmatpush1.bf16.msra.mxu0 %v3921_v52  ;;  %v1875_v52 = vld [vmem:[#allocation9 + $0x1c68] sm:$0xff] }
 0x371   :  { %4434 = vmatpush1.bf16.msra.mxu1 %v4433_v61  ;;  %3924 = vmatprep.subr.bf16.mxu0 %v3923_v24  ;;  %v3941_v61 = vpack.c.bf16 %v1866_v23, %v1862_v22  ;;  %v1873_v24 = vld [vmem:[#allocation9 + $0x1c58] sm:$0xff]  ;;  %v3943_v33 = vpack.c.bf16 %v1875_v52, %v1871_v31  ;;  %v3959_v22 = vpack.c.bf16 %v1907_v59, %v1903_v14  ;;  %v1902_v23 = vld [vmem:[#allocation9 + $0x1d40] sm:$0xff]  ;;  %v1908_v31 = vld [vmem:[#allocation9 + $0x1d70] sm:$0xff] }
 0x372   :  { %4436 = vmatprep.subr.bf16.mxu1 %v4435_v62  ;;  %v1874_v62 = vld [vmem:[#allocation9 + $0x1c60] sm:$0xff]  ;;  %v1911_v52 = vld [vmem:[#allocation9 + $0x1d88] sm:$0xff]  ;;  %v1940_v14 = vld [vmem:[#allocation9 + $0x1e70] sm:$0xff] }
 0x373   :  { %v3945_v38 = vpack.c.bf16 %v1874_v62, %v1870_v16  ;;  %v4473_v16 = vpack.c.bf16 %v1908_v31, %v1904_v26  ;;  %v1943_v59 = vld [vmem:[#allocation9 + $0x1e88] sm:$0xff]  ;;  %v1946_v26 = vld [vmem:[#allocation9 + $0x1ea0] sm:$0xff] }
 0x374   :  { %3926 = vmatpush1.bf16.msra.mxu0 %v3925_v36  ;;  %v4455_v36 = vpack.c.bf16 %v1877_v18, %v1873_v24  ;;  %v1913_v24 = vld [vmem:[#allocation9 + $0x1d98] sm:$0xff] }
 0x375   :  { %4438 = vmatpush1.bf16.msra.mxu1 %v4437_v49  ;;  %3928 = vmatprep.subr.bf16.mxu0 %v3927_v37  ;;  %v1881_v49 = vld [vmem:[#allocation9 + $0x1c98] sm:$0xff] }
 0x376   :  { %4440 = vmatprep.subr.bf16.mxu1 %v4439_v42  ;;  %v1885_v37 = vld [vmem:[#allocation9 + $0x1cb8] sm:$0xff]  ;;  %v1878_v42 = vld [vmem:[#allocation9 + $0x1c80] sm:$0xff] }
 0x377   :  { %v4459_v27 = vpack.c.bf16 %v1885_v37, %v1881_v49  ;;  %v1917_v18 = vld [vmem:[#allocation9 + $0x1db8] sm:$0xff]  ;;  %v1923_v49 = vld [vmem:[#allocation9 + $0x1de8] sm:$0xff] }
 0x378   :  { %3930 = vmatpush1.bf16.msra.mxu0 %v3929_v4  ;;  %v1891_v4 = vld [vmem:[#allocation9 + $0x1ce8] sm:$0xff]  ;;  %v4475_v34 = vpack.c.bf16 %v1917_v18, %v1913_v24  ;;  %v1921_v37 = vld [vmem:[#allocation9 + $0x1dd8] sm:$0xff] }
 0x379   :  { %4442 = vmatpush1.bf16.msra.mxu1 %v4441_v47  ;;  %3932 = vmatprep.subr.bf16.mxu0 %v3931_v48  ;;  %v1889_v47 = vld [vmem:[#allocation9 + $0x1cd8] sm:$0xff]  ;;  %v3949_v48 = vpack.c.bf16 %v1882_v43, %v1878_v42  ;;  %v3951_v60 = vpack.c.bf16 %v1891_v4, %v1887_v46  ;;  %v1918_v43 = vld [vmem:[#allocation9 + $0x1dc0] sm:$0xff]  ;;  %v1924_v46 = vld [vmem:[#allocation9 + $0x1df0] sm:$0xff] }
 0x37a   :  { %4444 = vmatprep.subr.bf16.mxu1 %v4443_v3  ;;  %v1890_v3 = vld [vmem:[#allocation9 + $0x1ce0] sm:$0xff]  ;;  %v1927_v4 = vld [vmem:[#allocation9 + $0x1e08] sm:$0xff]  ;;  %v1953_v18 = vld [vmem:[#allocation9 + $0x1ed8] sm:$0xff] }
 0x37b   :  { %v1955_v24 = vld [vmem:[#allocation9 + $0x1ee8] sm:$0xff] }
 0x37c   :  { %3934 = vmatpush1.bf16.msra.mxu0 %v3933_v7  ;;  %v1901_v7 = vld [vmem:[#allocation9 + $0x1d38] sm:$0xff] }
 0x37d   :  { %4446 = vmatpush1.bf16.msra.mxu1 %v4445_v8  ;;  %3936 = vmatprep.subr.bf16.mxu0 %v3935_v9  ;;  %v3953_v8 = vpack.c.bf16 %v1890_v3, %v1886_v63  ;;  %v4467_v29 = vpack.c.bf16 %v1901_v7, %v1897_v15  ;;  %v1926_v3 = vld [vmem:[#allocation9 + $0x1e00] sm:$0xff]  ;;  %v1939_v15 = vld [vmem:[#allocation9 + $0x1e68] sm:$0xff]  ;;  %v1937_v7 = vld [vmem:[#allocation9 + $0x1e58] sm:$0xff] }
 0x37e   :  { %4448 = vmatprep.subr.bf16.mxu1 %v4447_v12  ;;  %v1896_v12 = vld [vmem:[#allocation9 + $0x1d10] sm:$0xff] }
 0x380   :  { %3938 = vmatpush1.bf16.msra.mxu0 %v3937_v19  ;;  %v1909_v19 = vld [vmem:[#allocation9 + $0x1d78] sm:$0xff] }
 0x381   :  { %4450 = vmatpush1.bf16.msra.mxu1 %v4449_v20  ;;  %3940 = vmatprep.subr.bf16.mxu0 %v3939_v21  ;;  %v3957_v20 = vpack.c.bf16 %v1898_v58, %v1894_v11  ;;  %v4469_v21 = vpack.c.bf16 %v1900_v13, %v1896_v12  ;;  %v4471_v30 = vpack.c.bf16 %v1909_v19, %v1905_v17  ;;  %v1934_v58 = vld [vmem:[#allocation9 + $0x1e40] sm:$0xff]  ;;  %v1947_v17 = vld [vmem:[#allocation9 + $0x1ea8] sm:$0xff]  ;;  %v1945_v19 = vld [vmem:[#allocation9 + $0x1e98] sm:$0xff] }
 0x382   :  { %4452 = vmatprep.subr.bf16.mxu1 %v4451_v25  ;;  %v1906_v25 = vld [vmem:[#allocation9 + $0x1d60] sm:$0xff]  ;;  %v3975_v11 = vpack.c.bf16 %v1939_v15, %v1935_v6  ;;  %v1972_v6 = vld [vmem:[#allocation9 + $0x1f70] sm:$0xff]  ;;  %v1975_v15 = vld [vmem:[#allocation9 + $0x1f88] sm:$0xff] }
 0x383   :  { %2503 = vmatmul.mubr.f32.vlgmr.msra.gmra.mrb[8].mxu0 %v5170_v40  ;;  %v1938_v12 = vld [vmem:[#allocation9 + $0x1e60] sm:$0xff] }
 0x384   :  { %3071 = vmatmul.mubr.f32.vlgmr.msra.gmra.mrb[8].mxu1 %v5170_v40  ;;  %3942 = vmatpush1.bf16.msra.mxu0 %v3941_v61  ;;  %v1893_v40 = vld [vmem:[#allocation9 + $0x1cf8] sm:$0xff]  ;;  %v1915_v61 = vld [vmem:[#allocation9 + $0x1da8] sm:$0xff] }
 0x385   :  { %2573 = vmatprep.mubr.f32.mxu0 %v5178_v50  ;;  %4454 = vmatpush1.bf16.msra.mxu1 %v4453_v32  ;;  %v4463_v2 = vpack.c.bf16 %v1893_v40, %v1889_v47  ;;  %v3961_v32 = vpack.c.bf16 %v1906_v25, %v1902_v23  ;;  %v3963_v62 = vpack.c.bf16 %v1915_v61, %v1911_v52  ;;  %v1931_v47 = vld [vmem:[#allocation9 + $0x1e28] sm:$0xff]  ;;  %v1929_v40 = vld [vmem:[#allocation9 + $0x1e18] sm:$0xff]  ;;  %v1942_v25 = vld [vmem:[#allocation9 + $0x1e80] sm:$0xff] }
 0x386   :  { %3141 = vmatprep.mubr.f32.mxu1 %v5178_v50  ;;  %3944 = vmatprep.subr.bf16.mxu0 %v3943_v33  ;;  %v1892_v50 = vld [vmem:[#allocation9 + $0x1cf0] sm:$0xff]  ;;  %v1914_v33 = vld [vmem:[#allocation9 + $0x1da0] sm:$0xff]  ;;  %v3971_v63 = vpack.c.bf16 %v1931_v47, %v1927_v4  ;;  %v3979_v23 = vpack.c.bf16 %v1947_v17, %v1943_v59  ;;  %v1951_v61 = vld [vmem:[#allocation9 + $0x1ec8] sm:$0xff] }
 0x387   :  { %4456 = vmatprep.subr.bf16.mxu1 %v4455_v36  ;;  %v4465_v9 = vpack.c.bf16 %v1892_v50, %v1888_v1  ;;  %v1919_v36 = vld [vmem:[#allocation9 + $0x1dc8] sm:$0xff]  ;;  %v1930_v1 = vld [vmem:[#allocation9 + $0x1e20] sm:$0xff]  ;;  %v1948_v52 = vld [vmem:[#allocation9 + $0x1eb0] sm:$0xff] }
 0x388   :  { %3946 = vmatpush1.bf16.msra.mxu0 %v3945_v38  ;;  %v1925_v38 = vld [vmem:[#allocation9 + $0x1df8] sm:$0xff]  ;;  %v3967_v42 = vpack.c.bf16 %v1923_v49, %v1919_v36  ;;  %v1956_v36 = vld [vmem:[#allocation9 + $0x1ef0] sm:$0xff]  ;;  %v1959_v49 = vld [vmem:[#allocation9 + $0x1f08] sm:$0xff] }
 0x389   :  { %4458 = vmatpush1.bf16.msra.mxu1 %v4457_v51  ;;  %3948 = vmatprep.subr.bf16.mxu0 %v3947_v39  ;;  %v3965_v51 = vpack.c.bf16 %v1914_v33, %v1910_v0  ;;  %v4477_v39 = vpack.c.bf16 %v1916_v35, %v1912_v28  ;;  %v4479_v45 = vpack.c.bf16 %v1925_v38, %v1921_v37  ;;  %v1950_v33 = vld [vmem:[#allocation9 + $0x1ec0] sm:$0xff]  ;;  %v1963_v37 = vld [vmem:[#allocation9 + $0x1f28] sm:$0xff]  ;;  %v1961_v38 = vld [vmem:[#allocation9 + $0x1f18] sm:$0xff] }
 0x38a   :  { %4460 = vmatprep.subr.bf16.mxu1 %v4459_v27  ;;  %v1920_v27 = vld [vmem:[#allocation9 + $0x1dd0] sm:$0xff]  ;;  %v3983_v0 = vpack.c.bf16 %v1955_v24, %v1951_v61  ;;  %v1954_v28 = vld [vmem:[#allocation9 + $0x1ee0] sm:$0xff]  ;;  %v1967_v47 = vld [vmem:[#allocation9 + $0x1f48] sm:$0xff] }
 0x38b   :  { %v1964_v4 = vld [vmem:[#allocation9 + $0x1f30] sm:$0xff]  ;;  %v1983_v17 = vld [vmem:[#allocation9 + $0x1fc8] sm:$0xff] }
 0x38c   :  { %3950 = vmatpush1.bf16.msra.mxu0 %v3949_v48  ;;  %v1933_v48 = vld [vmem:[#allocation9 + $0x1e38] sm:$0xff]  ;;  %v1980_v59 = vld [vmem:[#allocation9 + $0x1fb0] sm:$0xff]  ;;  %v3168_v24 = vld [vmem:[#allocation12 + $0x80] sm:$0xff] }
 0x38d   :  { %4462 = vmatpush1.bf16.msra.mxu1 %v4461_v55  ;;  %3952 = vmatprep.subr.bf16.mxu0 %v3951_v60  ;;  %v3969_v55 = vpack.c.bf16 %v1922_v44, %v1918_v43  ;;  %v4481_v60 = vpack.c.bf16 %v1924_v46, %v1920_v27  ;;  %v4483_v50 = vpack.c.bf16 %v1933_v48, %v1929_v40  ;;  %v1958_v44 = vld [vmem:[#allocation9 + $0x1f00] sm:$0xff]  ;;  %v1971_v40 = vld [vmem:[#allocation9 + $0x1f68] sm:$0xff]  ;;  %v1969_v48 = vld [vmem:[#allocation9 + $0x1f58] sm:$0xff] }
 0x38e   :  { %4464 = vmatprep.subr.bf16.mxu1 %v4463_v2  ;;  %v1928_v2 = vld [vmem:[#allocation9 + $0x1e10] sm:$0xff]  ;;  %v3987_v43 = vpack.c.bf16 %v1963_v37, %v1959_v49  ;;  %v1962_v27 = vld [vmem:[#allocation9 + $0x1f20] sm:$0xff] }
 0x38f   :  { %v1988_v61 = vld [vmem:[#allocation9 + $0x1ff0] sm:$0xff] }
 0x390   :  { %3954 = vmatpush1.bf16.msra.mxu0 %v3953_v8  ;;  %v1941_v8 = vld [vmem:[#allocation9 + $0x1e78] sm:$0xff]  ;;  %v3185_v49 = vld [vmem:[#allocation12 + $0x108] sm:$0xff] }
 0x391   :  { %4466 = vmatpush1.bf16.msra.mxu1 %v4465_v9  ;;  %3956 = vmatprep.subr.bf16.mxu0 %v3955_v10  ;;  %v3973_v9 = vpack.c.bf16 %v1930_v1, %v1926_v3  ;;  %v4485_v10 = vpack.c.bf16 %v1932_v5, %v1928_v2  ;;  %v4487_v13 = vpack.c.bf16 %v1941_v8, %v1937_v7  ;;  %v1966_v1 = vld [vmem:[#allocation9 + $0x1f40] sm:$0xff]  ;;  %v1979_v7 = vld [vmem:[#allocation9 + $0x1fa8] sm:$0xff]  ;;  %v1977_v8 = vld [vmem:[#allocation9 + $0x1f98] sm:$0xff] }
 0x392   :  { %4468 = vmatprep.subr.bf16.mxu1 %v4467_v29  ;;  %v1936_v29 = vld [vmem:[#allocation9 + $0x1e50] sm:$0xff]  ;;  %v3991_v3 = vpack.c.bf16 %v1971_v40, %v1967_v47  ;;  %v1970_v2 = vld [vmem:[#allocation9 + $0x1f60] sm:$0xff] }
 0x393   :  { %v3170_v37 = vld [vmem:[#allocation12 + $0x90] sm:$0xff]  ;;  %v3187_v47 = vld [vmem:[#allocation12 + $0x118] sm:$0xff]  ;;  %v3172_v40 = vld [vmem:[#allocation12 + $0xa0] sm:$0xff] }
 0x394   :  { %3958 = vmatpush1.bf16.msra.mxu0 %v3957_v20  ;;  %v1949_v20 = vld [vmem:[#allocation9 + $0x1eb8] sm:$0xff] }
 0x395   :  { %4470 = vmatpush1.bf16.msra.mxu1 %v4469_v21  ;;  %3960 = vmatprep.subr.bf16.mxu0 %v3959_v22  ;;  %v3977_v21 = vpack.c.bf16 %v1938_v12, %v1934_v58  ;;  %v4489_v22 = vpack.c.bf16 %v1940_v14, %v1936_v29  ;;  %v4491_v31 = vpack.c.bf16 %v1949_v20, %v1945_v19  ;;  %v1974_v12 = vld [vmem:[#allocation9 + $0x1f80] sm:$0xff]  ;;  %v1987_v19 = vld [vmem:[#allocation9 + $0x1fe8] sm:$0xff]  ;;  %v1985_v20 = vld [vmem:[#allocation9 + $0x1fd8] sm:$0xff] }
 0x396   :  { %4472 = vmatprep.subr.bf16.mxu1 %v4471_v30  ;;  %v1944_v30 = vld [vmem:[#allocation9 + $0x1e90] sm:$0xff]  ;;  %v3995_v58 = vpack.c.bf16 %v1979_v7, %v1975_v15  ;;  %v1978_v29 = vld [vmem:[#allocation9 + $0x1fa0] sm:$0xff] }
 0x397   :  { %v3189_v15 = vld [vmem:[#allocation12 + $0x128] sm:$0xff]  ;;  %v3174_v7 = vld [vmem:[#allocation12 + $0xb0] sm:$0xff] }
 0x398   :  { %3962 = vmatpush1.bf16.msra.mxu0 %v3961_v32  ;;  %v1957_v32 = vld [vmem:[#allocation9 + $0x1ef8] sm:$0xff] }
 0x399   :  { %4474 = vmatpush1.bf16.msra.mxu1 %v4473_v16  ;;  %3964 = vmatprep.subr.bf16.mxu0 %v3963_v62  ;;  %v3981_v16 = vpack.c.bf16 %v1946_v26, %v1942_v25  ;;  %v4493_v62 = vpack.c.bf16 %v1948_v52, %v1944_v30  ;;  %v4495_v35 = vpack.c.bf16 %v1957_v32, %v1953_v18  ;;  %v1982_v26 = vld [vmem:[#allocation9 + $0x1fc0] sm:$0xff]  ;;  %v3169_v18 = vld [vmem:[#allocation12 + $0x88] sm:$0xff] }
 0x39a   :  { %4476 = vmatprep.subr.bf16.mxu1 %v4475_v34  ;;  %v1952_v34 = vld [vmem:[#allocation9 + $0x1ed0] sm:$0xff]  ;;  %v3999_v25 = vpack.c.bf16 %v1987_v19, %v1983_v17  ;;  %v1986_v30 = vld [vmem:[#allocation9 + $0x1fe0] sm:$0xff] }
 0x39b   :  { %v3200_v32 = vld [vmem:[#allocation12 + $0x180] sm:$0xff]  ;;  %v3177_v19 = vld [vmem:[#allocation12 + $0xc8] sm:$0xff] }
 0x39c   :  { %3966 = vmatpush1.bf16.msra.mxu0 %v3965_v51  ;;  %v1965_v51 = vld [vmem:[#allocation9 + $0x1f38] sm:$0xff]  ;;  %v3176_v17 = vld [vmem:[#allocation12 + $0xc0] sm:$0xff] }
 0x39d   :  { %4478 = vmatpush1.bf16.msra.mxu1 %v4477_v39  ;;  %3968 = vmatprep.subr.bf16.mxu0 %v3967_v42  ;;  %v3985_v39 = vpack.c.bf16 %v1954_v28, %v1950_v33  ;;  %v4497_v42 = vpack.c.bf16 %v1956_v36, %v1952_v34  ;;  %v4499_v46 = vpack.c.bf16 %v1965_v51, %v1961_v38  ;;  %v3152_v28 = vld [vmem:[#allocation12] sm:$0xff]  ;;  %v3153_v34 = vld [vmem:[#allocation12 + $0x8] sm:$0xff]  ;;  %v3171_v38 = vld [vmem:[#allocation12 + $0x98] sm:$0xff] }
 0x39e   :  { %4480 = vmatprep.subr.bf16.mxu1 %v4479_v45  ;;  %v1960_v45 = vld [vmem:[#allocation9 + $0x1f10] sm:$0xff]  ;;  %v4515_v33 = vpack.c.bf16 %v3169_v18, %v3168_v24  ;;  %v3179_v18 = vld [vmem:[#allocation12 + $0xd8] sm:$0xff] }
 0x39f   :  { %v3202_v51 = vld [vmem:[#allocation12 + $0x190] sm:$0xff] }
 0x3a0   :  { %3970 = vmatpush1.bf16.msra.mxu0 %v3969_v55  ;;  %v1973_v55 = vld [vmem:[#allocation9 + $0x1f78] sm:$0xff] }
 0x3a1   :  { %4482 = vmatpush1.bf16.msra.mxu1 %v4481_v60  ;;  %3972 = vmatprep.subr.bf16.mxu0 %v3971_v63  ;;  %v3989_v60 = vpack.c.bf16 %v1962_v27, %v1958_v44  ;;  %v4501_v63 = vpack.c.bf16 %v1964_v4, %v1960_v45  ;;  %v4503_v5 = vpack.c.bf16 %v1973_v55, %v1969_v48  ;;  %v3154_v27 = vld [vmem:[#allocation12 + $0x10] sm:$0xff]  ;;  %v3155_v45 = vld [vmem:[#allocation12 + $0x18] sm:$0xff]  ;;  %v3173_v48 = vld [vmem:[#allocation12 + $0xa8] sm:$0xff] }
 0x3a2   :  { %4484 = vmatprep.subr.bf16.mxu1 %v4483_v50  ;;  %v1968_v50 = vld [vmem:[#allocation9 + $0x1f50] sm:$0xff]  ;;  %v4519_v44 = vpack.c.bf16 %v3171_v38, %v3170_v37  ;;  %v3204_v55 = vld [vmem:[#allocation12 + $0x1a0] sm:$0xff] }
 0x3a3   :  { %v3178_v24 = vld [vmem:[#allocation12 + $0xd0] sm:$0xff]  ;;  %v3180_v37 = vld [vmem:[#allocation12 + $0xe0] sm:$0xff]  ;;  %v3181_v38 = vld [vmem:[#allocation12 + $0xe8] sm:$0xff] }
 0x3a4   :  { %3974 = vmatpush1.bf16.msra.mxu0 %v3973_v9  ;;  %v1981_v9 = vld [vmem:[#allocation9 + $0x1fb8] sm:$0xff] }
 0x3a5   :  { %4486 = vmatpush1.bf16.msra.mxu1 %v4485_v10  ;;  %3976 = vmatprep.subr.bf16.mxu0 %v3975_v11  ;;  %v3993_v10 = vpack.c.bf16 %v1970_v2, %v1966_v1  ;;  %v4505_v11 = vpack.c.bf16 %v1972_v6, %v1968_v50  ;;  %v4507_v14 = vpack.c.bf16 %v1981_v9, %v1977_v8  ;;  %v3156_v2 = vld [vmem:[#allocation12 + $0x20] sm:$0xff]  ;;  %v3157_v50 = vld [vmem:[#allocation12 + $0x28] sm:$0xff]  ;;  %v3175_v8 = vld [vmem:[#allocation12 + $0xb8] sm:$0xff] }
 0x3a6   :  { %4488 = vmatprep.subr.bf16.mxu1 %v4487_v13  ;;  %v1976_v13 = vld [vmem:[#allocation9 + $0x1f90] sm:$0xff]  ;;  %v4523_v1 = vpack.c.bf16 %v3173_v48, %v3172_v40 }
 0x3a7   :  { %v3206_v9 = vld [vmem:[#allocation12 + $0x1b0] sm:$0xff]  ;;  %v3197_v40 = vld [vmem:[#allocation12 + $0x168] sm:$0xff] }
 0x3a8   :  { %3978 = vmatpush1.bf16.msra.mxu0 %v3977_v21  ;;  %v1989_v21 = vld [vmem:[#allocation9 + $0x1ff8] sm:$0xff] }
 0x3a9   :  { %4490 = vmatpush1.bf16.msra.mxu1 %v4489_v22  ;;  %3980 = vmatprep.subr.bf16.mxu0 %v3979_v23  ;;  %v3997_v22 = vpack.c.bf16 %v1978_v29, %v1974_v12  ;;  %v4509_v23 = vpack.c.bf16 %v1980_v59, %v1976_v13  ;;  %v4511_v52 = vpack.c.bf16 %v1989_v21, %v1985_v20  ;;  %v3158_v12 = vld [vmem:[#allocation12 + $0x30] sm:$0xff]  ;;  %v3159_v29 = vld [vmem:[#allocation12 + $0x38] sm:$0xff]  ;;  %v3208_v20 = vld [vmem:[#allocation12 + $0x1c0] sm:$0xff] }
 0x3aa   :  { %4492 = vmatprep.subr.bf16.mxu1 %v4491_v31  ;;  %v1984_v31 = vld [vmem:[#allocation9 + $0x1fd0] sm:$0xff]  ;;  %v3191_v59 = vld [vmem:[#allocation12 + $0x138] sm:$0xff] }
 0x3ab   :  { %v3190_v13 = vld [vmem:[#allocation12 + $0x130] sm:$0xff]  ;;  %v3209_v21 = vld [vmem:[#allocation12 + $0x1c8] sm:$0xff] }
 0x3ac   :  { %3982 = vmatpush1.bf16.msra.mxu0 %v3981_v16  ;;  %v3201_v16 = vld [vmem:[#allocation12 + $0x188] sm:$0xff] }
 0x3ad   :  { %4494 = vmatpush1.bf16.msra.mxu1 %v4493_v62  ;;  %3984 = vmatprep.subr.bf16.mxu0 %v3983_v0  ;;  %v4001_v62 = vpack.c.bf16 %v1986_v30, %v1982_v26  ;;  %v4513_v0 = vpack.c.bf16 %v1988_v61, %v1984_v31  ;;  %v4547_v36 = vpack.c.bf16 %v3201_v16, %v3200_v32  ;;  %v3160_v26 = vld [vmem:[#allocation12 + $0x40] sm:$0xff]  ;;  %v3161_v30 = vld [vmem:[#allocation12 + $0x48] sm:$0xff]  ;;  %v3210_v32 = vld [vmem:[#allocation12 + $0x1d0] sm:$0xff] }
 0x3ae   :  { %4496 = vmatprep.subr.bf16.mxu1 %v4495_v35  ;;  %v3184_v35 = vld [vmem:[#allocation12 + $0x100] sm:$0xff]  ;;  %v3193_v61 = vld [vmem:[#allocation12 + $0x148] sm:$0xff]  ;;  %v3211_v16 = vld [vmem:[#allocation12 + $0x1d8] sm:$0xff] }
 0x3af   :  { %v3192_v31 = vld [vmem:[#allocation12 + $0x140] sm:$0xff] }
 0x3b0   :  { %3986 = vmatpush1.bf16.msra.mxu0 %v3985_v39  ;;  %v3203_v39 = vld [vmem:[#allocation12 + $0x198] sm:$0xff] }
 0x3b1   :  { %4498 = vmatpush1.bf16.msra.mxu1 %v4497_v42  ;;  %3988 = vmatprep.subr.bf16.mxu0 %v3987_v43  ;;  %v4517_v42 = vpack.c.bf16 %v3153_v34, %v3152_v28  ;;  %v4549_v43 = vpack.c.bf16 %v3185_v49, %v3184_v35  ;;  %v4551_v4 = vpack.c.bf16 %v3203_v39, %v3202_v51  ;;  %v3162_v28 = vld [vmem:[#allocation12 + $0x50] sm:$0xff]  ;;  %v3163_v34 = vld [vmem:[#allocation12 + $0x58] sm:$0xff]  ;;  %v3212_v51 = vld [vmem:[#allocation12 + $0x1e0] sm:$0xff] }
 0x3b2   :  { %4500 = vmatprep.subr.bf16.mxu1 %v4499_v46  ;;  %v3186_v46 = vld [vmem:[#allocation12 + $0x110] sm:$0xff]  ;;  %v3195_v49 = vld [vmem:[#allocation12 + $0x158] sm:$0xff]  ;;  %v3213_v39 = vld [vmem:[#allocation12 + $0x1e8] sm:$0xff] }
 0x3b3   :  { %v3194_v35 = vld [vmem:[#allocation12 + $0x150] sm:$0xff] }
 0x3b4   :  { %3990 = vmatpush1.bf16.msra.mxu0 %v3989_v60  ;;  %v3205_v60 = vld [vmem:[#allocation12 + $0x1a8] sm:$0xff] }
 0x3b5   :  { %4502 = vmatpush1.bf16.msra.mxu1 %v4501_v63  ;;  %3992 = vmatprep.subr.bf16.mxu0 %v3991_v3  ;;  %v4521_v63 = vpack.c.bf16 %v3155_v45, %v3154_v27  ;;  %v4553_v3 = vpack.c.bf16 %v3187_v47, %v3186_v46  ;;  %v4555_v6 = vpack.c.bf16 %v3205_v60, %v3204_v55  ;;  %v3164_v45 = vld [vmem:[#allocation12 + $0x60] sm:$0xff]  ;;  %v3165_v46 = vld [vmem:[#allocation12 + $0x68] sm:$0xff]  ;;  %v3182_v55 = vld [vmem:[#allocation12 + $0xf0] sm:$0xff] }
 0x3b6   :  { %4504 = vmatprep.subr.bf16.mxu1 %v4503_v5  ;;  %v3188_v5 = vld [vmem:[#allocation12 + $0x120] sm:$0xff]  ;;  %v4571_v27 = vpack.c.bf16 %v3213_v39, %v3212_v51  ;;  %v4541_v47 = vpack.c.bf16 %v3165_v46, %v3164_v45  ;;  %v3183_v60 = vld [vmem:[#allocation12 + $0xf8] sm:$0xff] }
 0x3b8   :  { %3994 = vmatpush1.bf16.msra.mxu0 %v3993_v10  ;;  %v3207_v10 = vld [vmem:[#allocation12 + $0x1b8] sm:$0xff] }
 0x3b9   :  { %4506 = vmatpush1.bf16.msra.mxu1 %v4505_v11  ;;  %3996 = vmatprep.subr.bf16.mxu0 %v3995_v58  ;;  %v4525_v11 = vpack.c.bf16 %v3157_v50, %v3156_v2  ;;  %v4527_v58 = vpack.c.bf16 %v3175_v8, %v3174_v7  ;;  %v3166_v2 = vld [vmem:[#allocation12 + $0x70] sm:$0xff]  ;;  %v3167_v50 = vld [vmem:[#allocation12 + $0x78] sm:$0xff] }
 0x3ba   :  { %4508 = vmatprep.subr.bf16.mxu1 %v4507_v14  ;;  %v4559_v14 = vpack.c.bf16 %v3207_v10, %v3206_v9  ;;  %v3199_v7 = vld [vmem:[#allocation12 + $0x178] sm:$0xff] }
 0x3bb   :  { %v1990_v9 = vld [vmem:[#allocation11] sm:$0xf] }
 0x3bc   :  { %3998 = vmatpush1.bf16.msra.mxu0 %v3997_v22  ;;  %v4529_v22 = vpack.c.bf16 %v3159_v29, %v3158_v12  ;;  %v1995_v10 = vrot.slane %v1990_v9, %v5042_v53 }
 0x3bd   :  { %4510 = vmatpush1.bf16.msra.mxu1 %v4509_v23  ;;  %4000 = vmatprep.subr.bf16.mxu0 %v3999_v25  ;;  %v4561_v23 = vpack.c.bf16 %v3191_v59, %v3190_v13  ;;  %v4531_v25 = vpack.c.bf16 %v3177_v19, %v3176_v17 }
 0x3be   :  { %4512 = vmatprep.subr.bf16.mxu1 %v4511_v52  ;;  %v4563_v52 = vpack.c.bf16 %v3209_v21, %v3208_v20 }
 0x3c0   :  { %4002 = vmatpush1.bf16.msra.mxu0 %v4001_v62  ;;  %v4533_v62 = vpack.c.bf16 %v3161_v30, %v3160_v26 }
 0x3c1   :  { %4514 = vmatpush1.bf16.msra.mxu1 %v4513_v0  ;;  %4516 = vmatprep.subr.bf16.mxu0 %v4515_v33  ;;  %v4565_v0 = vpack.c.bf16 %v3193_v61, %v3192_v31  ;;  %v4535_v33 = vpack.c.bf16 %v3179_v18, %v3178_v24 }
 0x3c2   :  { %4548 = vmatprep.subr.bf16.mxu1 %v4547_v36  ;;  %v4567_v36 = vpack.c.bf16 %v3211_v16, %v3210_v32 }
 0x3c3   :  { %2574 = vmatmul.mubr.f32.vlgmr.msra.gmra.mrb[8].mxu0 %v5172_v41 }
 0x3c4   :  { %3142 = vmatmul.mubr.f32.vlgmr.msra.gmra.mrb[8].mxu1 %v5172_v41  ;;  %4518 = vmatpush3.bf16.msra.mxu0 %v4517_v42  ;;  %v4557_v41 = vpack.c.bf16 %v3189_v15, %v3188_v5  ;;  %v4537_v42 = vpack.c.bf16 %v3163_v34, %v3162_v28  ;;  %v3198_v15 = vld [vmem:[#allocation12 + $0x170] sm:$0xff] }
 0x3c5   :  { %4550 = vmatpush3.bf16.msra.mxu1 %v4549_v43  ;;  %4520 = vmatprep.subr.bf16.mxu0 %v4519_v44  ;;  %v4569_v43 = vpack.c.bf16 %v3195_v49, %v3194_v35  ;;  %v4539_v44 = vpack.c.bf16 %v3181_v38, %v3180_v37  ;;  %v4577_v8 = vpack.c.bf16 %v3199_v7, %v3198_v15 }
 0x3c6   :  { %4552 = vmatprep.subr.bf16.mxu1 %v4551_v4  ;;  %v3196_v4 = vld [vmem:[#allocation12 + $0x160] sm:$0xff] }
 0x3c7   :  { %v4573_v48 = vpack.c.bf16 %v3197_v40, %v3196_v4 }
 0x3c8   :  { %4522 = vmatpush3.bf16.msra.mxu0 %v4521_v63  ;;  %v3214_v63 = vld [vmem:[#allocation12 + $0x1f0] sm:$0xff] }
 0x3c9   :  { %4554 = vmatpush3.bf16.msra.mxu1 %v4553_v3  ;;  %4524 = vmatprep.subr.bf16.mxu0 %v4523_v1  ;;  %v4543_v3 = vpack.c.bf16 %v3183_v60, %v3182_v55  ;;  %v3215_v1 = vld [vmem:[#allocation12 + $0x1f8] sm:$0xff] }
 0x3ca   :  { %4556 = vmatprep.subr.bf16.mxu1 %v4555_v6  ;;  %v4575_v5 = vpack.c.bf16 %v3215_v1, %v3214_v63  ;;  %v4545_v6 = vpack.c.bf16 %v3167_v50, %v3166_v2 }
 0x3cc   :  { %4526 = vmatpush3.bf16.msra.mxu0 %v4525_v11  ;;  %v2003_v11 = vrot.slane %v1990_v9, %v5045_v54 }
 0x3cd   :  { %4558 = vmatpush3.bf16.msra.mxu1 %v4557_v41  ;;  %4528 = vmatprep.subr.bf16.mxu0 %v4527_v58  ;;  %v1999_v41 = vrot.slane %v1990_v9, %v5048_v56  ;;  %v2007_v58 = vrot.slane %v1990_v9, %v5051_v57 }
 0x3ce   :  { %4560 = vmatprep.subr.bf16.mxu1 %v4559_v14 }
 0x3d0   :  { %4530 = vmatpush3.bf16.msra.mxu0 %v4529_v22 }
 0x3d1   :  { %4562 = vmatpush3.bf16.msra.mxu1 %v4561_v23  ;;  %4532 = vmatprep.subr.bf16.mxu0 %v4531_v25 }
 0x3d2   :  { %4564 = vmatprep.subr.bf16.mxu1 %v4563_v52 }
 0x3d4   :  { %4534 = vmatpush3.bf16.msra.mxu0 %v4533_v62 }
 0x3d5   :  { %4566 = vmatpush3.bf16.msra.mxu1 %v4565_v0  ;;  %4536 = vmatprep.subr.bf16.mxu0 %v4535_v33 }
 0x3d6   :  { %4568 = vmatprep.subr.bf16.mxu1 %v4567_v36 }
 0x3d8   :  { %4538 = vmatpush3.bf16.msra.mxu0 %v4537_v42 }
 0x3d9   :  { %4570 = vmatpush3.bf16.msra.mxu1 %v4569_v43  ;;  %4540 = vmatprep.subr.bf16.mxu0 %v4539_v44 }
 0x3da   :  { %4572 = vmatprep.subr.bf16.mxu1 %v4571_v27 }
 0x3dc   :  { %4542 = vmatpush3.bf16.msra.mxu0 %v4541_v47 }
 0x3dd   :  { %4574 = vmatpush3.bf16.msra.mxu1 %v4573_v48  ;;  %4544 = vmatprep.subr.bf16.mxu0 %v4543_v3 }
 0x3de   :  { %4576 = vmatprep.subr.bf16.mxu1 %v4575_v5 }
 0x3e0   :  { %4546 = vmatpush3.bf16.msra.mxu0 %v4545_v6 }
 0x3e1   :  { %4578 = vmatpush3.bf16.msra.mxu1 %v4577_v8 }
 0x496   :  { %v2575_v12 = vpop.f32.mrb[8].mxu0 }
 0x497   :  { %v4579_v29 = vadd.f32 %v2575_v12, %v1995_v10  ;;  %v3143_v13 = vpop.f32.mrb[8].mxu1  ;;  %v2577_v14 = vpop.f32.mrb[9].mxu0 }
 0x498   :  { %v4581_v59 = vadd.f32 %v3143_v13, %v2003_v11  ;;  %v4580_v17 = vadd.f32 %v2577_v14, %v1999_v41  ;;  %v3145_v19 = vpop.f32.mrb[9].mxu1 }
 0x499   :  { %v4582_v20 = vadd.f32 %v3145_v19, %v2007_v58  ;;  %v3148_v22 = vmax.f32 %v4579_v29, 0.0 }
 0x49a   :  { %v3149_v21 = vmax.f32 %v4580_v17, 0.0  ;;  %v3150_v25 = vmax.f32 %v4581_v59, 0.0 }
 0x49b   :  { %v3151_v23 = vmax.f32 %v4582_v20, 0.0 }
 0x49c   :  { %3287 = vmatprep.mubr.f32.mxu0 %v3149_v21 }
 0x49d   :  { %3357 = vmatprep.mubr.f32.mxu1 %v3151_v23  ;;  %3288 = vmatmul.mubr.f32.vlgmr.msra.gmra.mrb[10].mxu0 %v3148_v22 }
 0x49e   :  { %3358 = vmatmul.mubr.f32.vlgmr.msra.gmra.mrb[10].mxu1 %v3150_v25 }
 0x49f   :  { %4799 = shalt.err (!%p4796_p4)
}
 0x4a0   :  { %s4800_s30 = scalar_lea.hbm %s5247_s7, 512 }
 0x4a1   :  { %p4801_p5 = scmp.ne.s32.totalorder %s5247_s7, %s4800_s30  ;;  %p4804_p6 = scmp.lt.u32.totalorder %s4800_s30, %s5247_s7 }
 0x4a3   :  { %p4806_p7 = pnand %p4804_p6, %p4801_p5 }
 0x4a5   :  { %4809 = shalt.err (!%p4806_p7)
}
 0x4a6   :  { %3373 = dma.vmem_to_hbm [thread:$0]  %s3371_s3, 512, %s5247_s7, [#allocation5]   ;;  %v3420_v56 = vld [vmem:[#allocation14] ss:$0 sm:$0xff] }
 0x4a7   :  { %s4858_s1 = smov [#allocation16]  }
 0x4a8   :  { %s3380_s27 = sshll.u32 %s4858_s1, 4  ;;  %s3381_s27 = int_to_ptr.vmem [resolvable:$true] %s3380_s27 }
 0x4a9   :  { %s4810_s2 = scalar_lea.vmem %s3381_s27, 32  ;;  %p4815_p9 = scmp.lt.s32.totalorder %s3381_s27, %s3381_s27 }
 0x4aa   :  { %p4811_p8 = scmp.ne.s32.totalorder %s3381_s27, %s4810_s2  ;;  %p4816_p10 = scmp.lt.s32.totalorder %s4810_s2, %s4810_s2 }
 0x4ac   :  { %p4817_p11 = por %p4816_p10, %p4815_p9 }
 0x4ae   :  { %p4818_p12 = pnand %p4817_p11, %p4811_p8 }
 0x570   :  { %v3453_v53 = vpop.f32.mrb[10].mxu0 }
 0x571   :  { %v3488_v54 = vpop.f32.mrb[10].mxu1  ;;  %v3454_v57 = vpop.f32.mrb[11].mxu0 }
 0x572   :  { %v3455_v26 = vadd.f32 %v3454_v57, %v3453_v53  ;;  %v3489_v30 = vpop.f32.mrb[11].mxu1 }
 0x573   :  { %v3490_v31 = vadd.f32 %v3489_v30, %v3488_v54 }
 0x574   :  { %v3290_v52 = vadd.f32 %v3455_v26, %v3420_v56 }
 0x576   :  { %v3360_v61 = vadd.f32 %v3490_v31, %v3290_v52 }
 0x578   :  { %3363 = vst [vmem:[#allocation16] sm:$0x3] %v3360_v61 }
 0x579   :  { %4821 = shalt.err (!%p4818_p12)
}
 0x57a   :  { %s4822_s29 = scalar_lea.hbm %s5248_s8, 32 }
 0x57b   :  { %p4823_p13 = scmp.ne.s32.totalorder %s5248_s8, %s4822_s29  ;;  %p4826_p0 = scmp.lt.u32.totalorder %s4822_s29, %s5248_s8 }
 0x57d   :  { %p4828_p1 = pnand %p4826_p0, %p4823_p13 }
 0x57f   :  { %4831 = shalt.err (!%p4828_p1)
}
 0x580   :  { %3383 = dma.vmem_to_hbm [thread:$0]  %s3381_s27, 32, %s5248_s8, [#allocation17]  }
 0x581   :  { %4840 = dma.done.wait [#allocation5], 512  }
 0x582   :  { %4841 = vsyncadd [#allocation5], 4294966784 }
 0x583   :  { %4842 = dma.done.wait [#allocation17], 32  }
 0x584   :  { %4843 = vsyncadd [#allocation17], 4294967264 }
 0x585   :  { %3390 = vsyncpa [#allocation4], 1 }
 0x586   :  { %3391 = vsyncpa [#allocation7], 1 }
 0x587   :  { %3392 = vsyncpa [#allocation10], 1 }
 0x588   :  { %3393 = vsyncpa [#allocation13], 1 }
 0x589   :  { %3394 = vsyncpa [#allocation5], 1 }
 0x58a   :  { %3395 = vsyncpa [#allocation17], 1 }

// kernel: tpu_custom_call.1
= control target key start
LH: loop header
LB: loop body
LE: loop exit
PB: predicated region body
PF: predicated region fallthrough
CT: control target
= control target key end

     0   :  { %14 = vsyncpa [#allocation4], 0  ;;  %s5240_s0 = inlined_call_operand.hbm [shape: f32[2,4,256], index: 0, kind: input, shape index: {}]   ;;  %s5241_s1 = inlined_call_operand.hbm [shape: f32[4,2048], index: 1, kind: input, shape index: {}]   ;;  %s5242_s2 = inlined_call_operand.hbm [shape: f32[1,2048], index: 2, kind: input, shape index: {}]   ;;  %s5243_s3 = inlined_call_operand.hbm [shape: f32[2048,512], index: 3, kind: input, shape index: {}]   ;;  %s5244_s4 = inlined_call_operand.hbm [shape: f32[1,512], index: 4, kind: input, shape index: {}]   ;;  %s5245_s5 = inlined_call_operand.hbm [shape: f32[512,128], index: 5, kind: input, shape index: {}]   ;;  %s5246_s6 = inlined_call_operand.hbm [shape: f32[1,128], index: 6, kind: input, shape index: {}]   ;;  %s5247_s7 = inlined_call_operand.hbm [shape: f32[2,2048], index: 7, kind: output, shape index: {0}]   ;;  %s5248_s8 = inlined_call_operand.hbm [shape: f32[2,128], index: 8, kind: output, shape index: {1}]  }
   0x1   :  { %15 = vsyncpa [#allocation7], 0 }
   0x2   :  { %16 = vsyncpa [#allocation10], 0 }
   0x3   :  { %17 = vsyncpa [#allocation13], 0 }
   0x4   :  { %18 = vsyncpa [#allocation5], 0 }
   0x5   :  { %19 = vsyncpa [#allocation17], 0  ;;  %s4844_s27 = smov [#allocation6]   ;;  %s4845_s29 = smov [#allocation9]  }
   0x6   :  { %s38_s28 = sshll.u32 %s4844_s27, 4  ;;  %s57_s30 = sshll.u32 %s4845_s29, 4  ;;  %s39_s28 = int_to_ptr.vmem [resolvable:$true] %s38_s28  ;;  %s4904_s30 = int_to_ptr.vmem [resolvable:$true] %s57_s30 }
   0x7   :  { %s4634_s11 = scalar_lea.hbm %s5241_s1, 1024 }
   0x8   :  { %p4635_p0 = scmp.ne.s32.totalorder %s5241_s1, %s4634_s11  ;;  %p4638_p1 = scmp.lt.u32.totalorder %s4634_s11, %s5241_s1 }
   0xa   :  { %p4640_p2 = pnand %p4638_p1, %p4635_p0 }
   0xc   :  { %4643 = shalt.err (!%p4640_p2)
}
   0xd   :  { %s4644_s16 = scalar_lea.vmem %s39_s28, 1024  ;;  %p4649_p4 = scmp.lt.s32.totalorder %s39_s28, %s39_s28 }
   0xe   :  { %p4645_p3 = scmp.ne.s32.totalorder %s39_s28, %s4644_s16  ;;  %p4650_p5 = scmp.lt.s32.totalorder %s4644_s16, %s4644_s16 }
  0x10   :  { %p4651_p6 = por %p4650_p5, %p4649_p4 }
  0x12   :  { %p4652_p7 = pnand %p4651_p6, %p4645_p3 }
  0x14   :  { %4655 = shalt.err (!%p4652_p7)
}
  0x15   :  { %41 = dma.hbm_to_vmem [thread:$0]  %s5241_s1, 1024, %s39_s28, [#allocation7]  }
  0x16   :  { %s4656_s21 = scalar_lea.hbm %s5243_s3, 131072 }
  0x17   :  { %p4657_p8 = scmp.ne.s32.totalorder %s5243_s3, %s4656_s21  ;;  %p4660_p9 = scmp.lt.u32.totalorder %s4656_s21, %s5243_s3 }
  0x19   :  { %p4662_p10 = pnand %p4660_p9, %p4657_p8 }
  0x1b   :  { %4665 = shalt.err (!%p4662_p10)
}
  0x1c   :  { %s4666_s26 = scalar_lea.vmem %s4904_s30, 131072  ;;  %p4671_p12 = scmp.lt.s32.totalorder %s4904_s30, %s4904_s30 }
  0x1d   :  { %p4667_p11 = scmp.ne.s32.totalorder %s4904_s30, %s4666_s26  ;;  %p4672_p13 = scmp.lt.s32.totalorder %s4666_s26, %s4666_s26 }
  0x1f   :  { %p4673_p0 = por %p4672_p13, %p4671_p12 }
  0x21   :  { %p4674_p1 = pnand %p4673_p0, %p4667_p11 }
  0x23   :  { %4677 = shalt.err (!%p4674_p1)
}
  0x24   :  { %s4846_s1 = smov 512   ;;  %s4847_s27 = smov 32  }
  0x25   :  { %63 = dma.hbm_to_vmem [thread:$0]  %s5243_s3, 131072, %s4904_s30, [#allocation10], %s4846_s1, %s4846_s1, %s4847_s27  }
  0x26   :  { %s4848_s9 = smov [#allocation12]   ;;  %s4849_s11 = smov [#allocation3]  }
  0x27   :  { %s79_s10 = sshll.u32 %s4848_s9, 4  ;;  %s25_s12 = sshll.u32 %s4849_s11, 4  ;;  %s80_s10 = int_to_ptr.vmem [resolvable:$true] %s79_s10  ;;  %s4935_s12 = int_to_ptr.vmem [resolvable:$true] %s25_s12 }
  0x28   :  { %s4678_s15 = scalar_lea.hbm %s5245_s5, 8192 }
  0x29   :  { %p4679_p2 = scmp.ne.s32.totalorder %s5245_s5, %s4678_s15  ;;  %p4682_p3 = scmp.lt.u32.totalorder %s4678_s15, %s5245_s5 }
  0x2b   :  { %p4684_p4 = pnand %p4682_p3, %p4679_p2 }
  0x2d   :  { %4687 = shalt.err (!%p4684_p4)
}
  0x2e   :  { %s4688_s3 = scalar_lea.vmem %s80_s10, 8192  ;;  %p4693_p6 = scmp.lt.s32.totalorder %s80_s10, %s80_s10 }
  0x2f   :  { %p4689_p5 = scmp.ne.s32.totalorder %s80_s10, %s4688_s3  ;;  %p4694_p7 = scmp.lt.s32.totalorder %s4688_s3, %s4688_s3 }
  0x31   :  { %p4695_p8 = por %p4694_p7, %p4693_p6 }
  0x33   :  { %p4696_p9 = pnand %p4695_p8, %p4689_p5 }
  0x35   :  { %4699 = shalt.err (!%p4696_p9)
}
  0x36   :  { %s4850_s30 = smov 128   ;;  %s4851_s20 = smov 8  }
  0x37   :  { %85 = dma.hbm_to_vmem [thread:$0]  %s5245_s5, 8192, %s80_s10, [#allocation13], %s4850_s30, %s4850_s30, %s4851_s20  }
  0x38   :  { %s4700_s25 = scalar_lea.hbm %s5240_s0, 256 }
  0x39   :  { %p4701_p10 = scmp.ne.s32.totalorder %s5240_s0, %s4700_s25  ;;  %p4704_p11 = scmp.lt.u32.totalorder %s4700_s25, %s5240_s0 }
  0x3b   :  { %p4706_p12 = pnand %p4704_p11, %p4701_p10 }
  0x3d   :  { %4709 = shalt.err (!%p4706_p12)
}
  0x3e   :  { %s4710_s29 = scalar_lea.vmem %s4935_s12, 256  ;;  %p4715_p0 = scmp.lt.s32.totalorder %s4935_s12, %s4935_s12 }
  0x3f   :  { %p4711_p13 = scmp.ne.s32.totalorder %s4935_s12, %s4710_s29  ;;  %p4716_p1 = scmp.lt.s32.totalorder %s4710_s29, %s4710_s29 }
  0x41   :  { %p4717_p2 = por %p4716_p1, %p4715_p0 }
  0x43   :  { %p4718_p3 = pnand %p4717_p2, %p4711_p13 }
  0x45   :  { %4721 = shalt.err (!%p4718_p3)
}
  0x46   :  { %31 = dma.hbm_to_vmem [thread:$0]  %s5240_s0, 256, %s4935_s12, [#allocation4], %s4850_s30, %s4850_s30, %s4851_s20  }
  0x47   :  { %s4852_s10 = smov [#allocation8]   ;;  %s4853_s13 = smov [#allocation11]  }
  0x48   :  { %s48_s11 = sshll.u32 %s4852_s10, 4  ;;  %s70_s14 = sshll.u32 %s4853_s13, 4  ;;  %s49_s11 = int_to_ptr.vmem [resolvable:$true] %s48_s11  ;;  %s71_s14 = int_to_ptr.vmem [resolvable:$true] %s70_s14 }
  0x49   :  { %s4722_s17 = scalar_lea.hbm %s5242_s2, 256 }
  0x4a   :  { %p4723_p4 = scmp.ne.s32.totalorder %s5242_s2, %s4722_s17  ;;  %p4726_p5 = scmp.lt.u32.totalorder %s4722_s17, %s5242_s2 }
  0x4c   :  { %p4728_p6 = pnand %p4726_p5, %p4723_p4 }
  0x4e   :  { %4731 = shalt.err (!%p4728_p6)
}
  0x4f   :  { %s4732_s0 = scalar_lea.vmem %s49_s11, 256  ;;  %p4737_p8 = scmp.lt.s32.totalorder %s49_s11, %s49_s11 }
  0x50   :  { %p4733_p7 = scmp.ne.s32.totalorder %s49_s11, %s4732_s0  ;;  %p4738_p9 = scmp.lt.s32.totalorder %s4732_s0, %s4732_s0 }
  0x52   :  { %p4739_p10 = por %p4738_p9, %p4737_p8 }
  0x54   :  { %p4740_p11 = pnand %p4739_p10, %p4733_p7 }
  0x56   :  { %4743 = shalt.err (!%p4740_p11)
}
  0x57   :  { %51 = dma.hbm_to_vmem [thread:$0]  %s5242_s2, 256, %s49_s11, [#allocation7]  }
  0x58   :  { %s4744_s23 = scalar_lea.hbm %s5244_s4, 64 }
  0x59   :  { %p4745_p12 = scmp.ne.s32.totalorder %s5244_s4, %s4744_s23  ;;  %p4748_p13 = scmp.lt.u32.totalorder %s4744_s23, %s5244_s4 }
  0x5b   :  { %p4750_p0 = pnand %p4748_p13, %p4745_p12 }
  0x5d   :  { %4753 = shalt.err (!%p4750_p0)
}
  0x5e   :  { %s4754_s27 = scalar_lea.vmem %s71_s14, 64  ;;  %p4759_p2 = scmp.lt.s32.totalorder %s71_s14, %s71_s14 }
  0x5f   :  { %p4755_p1 = scmp.ne.s32.totalorder %s71_s14, %s4754_s27  ;;  %p4760_p3 = scmp.lt.s32.totalorder %s4754_s27, %s4754_s27 }
  0x61   :  { %p4761_p4 = por %p4760_p3, %p4759_p2 }
  0x63   :  { %p4762_p5 = pnand %p4761_p4, %p4755_p1 }
  0x65   :  { %4765 = shalt.err (!%p4762_p5)
}
  0x66   :  { %73 = dma.hbm_to_vmem [thread:$0]  %s5244_s4, 64, %s71_s14, [#allocation10]  }
  0x67   :  { %s4854_s29 = smov [#allocation14]   ;;  %s4766_s11 = scalar_lea.hbm %s5246_s6, 16 }
  0x68   :  { %s92_s5 = sshll.u32 %s4854_s29, 4  ;;  %p4767_p6 = scmp.ne.s32.totalorder %s5246_s6, %s4766_s11  ;;  %s93_s5 = int_to_ptr.vmem [resolvable:$true] %s92_s5 }
  0x69   :  { %p4770_p7 = scmp.lt.u32.totalorder %s4766_s11, %s5246_s6 }
  0x6b   :  { %p4772_p8 = pnand %p4770_p7, %p4767_p6 }
  0x6d   :  { %4775 = shalt.err (!%p4772_p8)
}
  0x6e   :  { %s4776_s18 = scalar_lea.vmem %s93_s5, 16  ;;  %s4780_s4 = scalar_lea.vmem %s93_s5, 32 }
  0x6f   :  { %p4777_p9 = scmp.ne.s32.totalorder %s93_s5, %s4776_s18  ;;  %p4781_p10 = scmp.lt.s32.totalorder %s93_s5, %s93_s5 }
  0x70   :  { %p4782_p11 = scmp.lt.s32.totalorder %s4780_s4, %s4776_s18 }
  0x72   :  { %p4783_p12 = por %p4782_p11, %p4781_p10 }
  0x74   :  { %p4784_p13 = pnand %p4783_p12, %p4777_p9 }
  0x76   :  { %4787 = shalt.err (!%p4784_p13)
}
  0x77   :  { %95 = dma.hbm_to_vmem [thread:$0]  %s5246_s6, 16, %s93_s5, [#allocation13]  }
  0x78   :  { %4832 = dma.done.wait [#allocation4], 256  }
  0x79   :  { %4833 = vsyncadd [#allocation4], 4294967040 }
  0x7a   :  { %4834 = dma.done.wait [#allocation7], 1280  }
  0x7b   :  { %4835 = vsyncadd [#allocation7], 4294966016 }
  0x7c   :  { %4836 = dma.done.wait [#allocation10], 131136  }
  0x7d   :  { %4837 = vsyncadd [#allocation10], 4294836160 }
  0x7e   :  { %4838 = dma.done.wait [#allocation13], 8208  }
  0x7f   :  { %4839 = vsyncadd [#allocation13], 4294959088  ;;  %v4855_v0 = vmov 0.0   ;;  %v123_v1 = vld [vmem:[#allocation3] sm:$0xf]  ;;  %vm140_vm0 = vcmask 1043456   ;;  %v161_v23 = vlaneseq }
  0x80   :  { %121 = vst [vmem:[#allocation2] sm:$0xf] %v4855_v0  ;;  %122 = vst [vmem:[#allocation2 + $0x4] sm:$0xf] %v4855_v0  ;;  %370 = vmatprep.mubr.f32.mxu0 %v4855_v0  ;;  %441 = vmatprep.mubr.f32.mxu1 %v4855_v0  ;;  %v125_v2 = vld [vmem:[#allocation3 + $0x4] sm:$0xf] }
  0x81   :  { %v124_v3 = vld [vmem:[#allocation3 + $0x8] sm:$0xf]  ;;  %v127_v4 = vadd.f32 %v125_v2, %v123_v1  ;;  %v126_v6 = vld [vmem:[#allocation3 + $0xc] sm:$0xf]  ;;  %v149_v15 = vld [vmem:[#allocation6] sm:$0xff]  ;;  %v5014_v24 = vshrl.u32 %v161_v23, 7 }
  0x82   :  { %v128_v8 = vadd.f32 %v126_v6, %v124_v3  ;;  %v150_v16 = vld [vmem:[#allocation6 + $0x8] sm:$0xff]  ;;  %v263_v17 = vcombine.high %v149_v15, %v149_v15  ;;  %v151_v19 = vld [vmem:[#allocation6 + $0x10] sm:$0xff]  ;;  %v152_v20 = vld [vmem:[#allocation6 + $0x18] sm:$0xff]  ;;  %v244_v25 = vand.u32 127, %v161_v23  ;;  %vm253_vm1 = vcmask 1041409   ;;  %s4857_s6 = smov [#allocation15]  }
  0x83   :  { %v264_v18 = vcombine.high %v150_v16, %v150_v16  ;;  %v265_v21 = vcombine.high %v151_v19, %v151_v19  ;;  %v266_v22 = vcombine.high %v152_v20, %v152_v20  ;;  %v153_v31 = vld [vmem:[#allocation6 + $0x20] sm:$0xff]  ;;  %v154_v32 = vld [vmem:[#allocation6 + $0x28] sm:$0xff]  ;;  %vm271_vm2 = vcmask 31744   ;;  %v155_v38 = vld [vmem:[#allocation6 + $0x30] sm:$0xff]  ;;  %s3370_s3 = sshll.u32 %s4857_s6, 4  ;;  %s3371_s3 = int_to_ptr.vmem [resolvable:$true] %s3370_s3 }
  0x84   :  { %3396 = vmatprep.subr.msk.mxu0 %vm140_vm0, %v263_v17  ;;  %v247_v27 = vsub.s32 %v244_v25, %v5014_v24  ;;  %v267_v36 = vcombine.high %v153_v31, %v153_v31  ;;  %v268_v37 = vcombine.high %v154_v32, %v154_v32  ;;  %v156_v39 = vld [vmem:[#allocation6 + $0x38] sm:$0xff]  ;;  %v269_v40 = vcombine.high %v155_v38, %v155_v38  ;;  %v969_v44 = vld [vmem:[#allocation9 + $0x18] sm:$0xff]  ;;  %v966_v46 = vld [vmem:[#allocation9] sm:$0xff]  ;;  %s4788_s21 = scalar_lea.vmem %s3371_s3, 512  ;;  %p4793_p1 = scmp.lt.s32.totalorder %s3371_s3, %s3371_s3 }
  0x85   :  { %3399 = vmatprep.subr.msk.mxu1 %vm140_vm0, %v264_v18  ;;  %3397 = vmatpush1.msk.msra.mxu0 %vm140_vm0, %v149_v15  ;;  %v270_v41 = vcombine.high %v156_v39, %v156_v39  ;;  %v967_v42 = vld [vmem:[#allocation9 + $0x8] sm:$0xff]  ;;  %v973_v45 = vld [vmem:[#allocation9 + $0x38] sm:$0xff]  ;;  %v970_v47 = vld [vmem:[#allocation9 + $0x20] sm:$0xff]  ;;  %p4789_p0 = scmp.ne.s32.totalorder %s3371_s3, %s4788_s21  ;;  %p4794_p2 = scmp.lt.s32.totalorder %s4788_s21, %s4788_s21 }
  0x86   :  { %3400 = vmatpush1.msk.msra.mxu1 %vm140_vm0, %v150_v16  ;;  %3402 = vmatprep.subr.msk.mxu0 %vm140_vm0, %v265_v21  ;;  %v971_v43 = vld [vmem:[#allocation9 + $0x28] sm:$0xff]  ;;  %v968_v48 = vld [vmem:[#allocation9 + $0x10] sm:$0xff]  ;;  %v4003_v52 = vpack.c.bf16 %v973_v45, %v969_v44  ;;  %v977_v54 = vld [vmem:[#allocation9 + $0x58] sm:$0xff]  ;;  %v3493_v56 = vpack.c.bf16 %v970_v47, %v966_v46 }
  0x87   :  { %v129_v5 = vld [vmem:[#allocation2] sm:$0xf]  ;;  %v130_v7 = vld [vmem:[#allocation2 + $0x4] sm:$0xf]  ;;  %3405 = vmatprep.subr.msk.mxu1 %vm140_vm0, %v266_v22  ;;  %v972_v49 = vld [vmem:[#allocation9 + $0x30] sm:$0xff]  ;;  %v3491_v51 = vpack.c.bf16 %v971_v43, %v967_v42  ;;  %p4795_p3 = por %p4794_p2, %p4793_p1 }
  0x88   :  { %v131_v9 = vadd.f32 %v129_v5, %v127_v4  ;;  %v132_v10 = vadd.f32 %v130_v7, %v128_v8  ;;  %v975_v50 = vld [vmem:[#allocation9 + $0x48] sm:$0xff]  ;;  %v981_v55 = vld [vmem:[#allocation9 + $0x78] sm:$0xff]  ;;  %v4005_v57 = vpack.c.bf16 %v972_v49, %v968_v48  ;;  %v974_v58 = vld [vmem:[#allocation9 + $0x40] sm:$0xff] }
  0x89   :  { %v979_v53 = vld [vmem:[#allocation9 + $0x68] sm:$0xff]  ;;  %v978_v59 = vld [vmem:[#allocation9 + $0x60] sm:$0xff]  ;;  %v4007_v61 = vpack.c.bf16 %v981_v55, %v977_v54  ;;  %v976_v62 = vld [vmem:[#allocation9 + $0x50] sm:$0xff]  ;;  %p4796_p4 = pnand %p4795_p3, %p4789_p0 }
  0x8a   :  { %133 = vst [vmem:[#allocation2] sm:$0xf] %v131_v9  ;;  %134 = vst [vmem:[#allocation2 + $0x4] sm:$0xf] %v132_v10  ;;  %v3495_v60 = vpack.c.bf16 %v979_v53, %v975_v50  ;;  %v980_v63 = vld [vmem:[#allocation9 + $0x70] sm:$0xff]  ;;  %v983_v1 = vld [vmem:[#allocation9 + $0x88] sm:$0xff]  ;;  %v3497_v5 = vpack.c.bf16 %v978_v59, %v974_v58 }
  0x8b   :  { %v987_v2 = vld [vmem:[#allocation9 + $0xa8] sm:$0xff]  ;;  %v985_v3 = vld [vmem:[#allocation9 + $0x98] sm:$0xff]  ;;  %v4009_v6 = vpack.c.bf16 %v980_v63, %v976_v62  ;;  %v982_v7 = vld [vmem:[#allocation9 + $0x80] sm:$0xff] }
  0x8c   :  { %v989_v4 = vld [vmem:[#allocation9 + $0xb8] sm:$0xff]  ;;  %v3499_v8 = vpack.c.bf16 %v987_v2, %v983_v1  ;;  %v984_v10 = vld [vmem:[#allocation9 + $0x90] sm:$0xff]  ;;  %v990_v18 = vld [vmem:[#allocation9 + $0xc0] sm:$0xff] }
  0x8d   :  { %v4011_v9 = vpack.c.bf16 %v989_v4, %v985_v3  ;;  %v997_v15 = vld [vmem:[#allocation9 + $0xf8] sm:$0xff]  ;;  %v992_v22 = vld [vmem:[#allocation9 + $0xd0] sm:$0xff]  ;;  %v999_v25 = vld [vmem:[#allocation9 + $0x108] sm:$0xff] }
  0x8e   :  { %v996_v23 = vld [vmem:[#allocation9 + $0xf0] sm:$0xff]  ;;  %v1006_v43 = vld [vmem:[#allocation9 + $0x140] sm:$0xff]  ;;  %v1015_v49 = vld [vmem:[#allocation9 + $0x188] sm:$0xff] }
  0x8f   :  { %v1010_v44 = vld [vmem:[#allocation9 + $0x160] sm:$0xff]  ;;  %v1008_v47 = vld [vmem:[#allocation9 + $0x150] sm:$0xff]  ;;  %v1019_v50 = vld [vmem:[#allocation9 + $0x1a8] sm:$0xff] }
  0x90   :  { %v1012_v48 = vld [vmem:[#allocation9 + $0x170] sm:$0xff]  ;;  %v3513_v53 = vpack.c.bf16 %v1010_v44, %v1006_v43  ;;  %v1014_v55 = vld [vmem:[#allocation9 + $0x180] sm:$0xff]  ;;  %v1027_v62 = vld [vmem:[#allocation9 + $0x1e8] sm:$0xff] }
  0x91   :  { %v138_v11 = vld [vmem:[#allocation2] sm:$0xf]  ;;  %v139_v13 = vld [vmem:[#allocation2 + $0x4] sm:$0xf]  ;;  %v4025_v54 = vpack.c.bf16 %v1012_v48, %v1008_v47  ;;  %v1016_v59 = vld [vmem:[#allocation9 + $0x190] sm:$0xff] }
  0x92   :  { %v141_v12 = vsel %vm140_vm0, %v138_v11, 0.0  ;;  %v144_v14 = vsel %vm140_vm0, %v139_v13, 0.0  ;;  %v988_v11 = vld [vmem:[#allocation9 + $0xb0] sm:$0xff]  ;;  %v995_v13 = vld [vmem:[#allocation9 + $0xe8] sm:$0xff]  ;;  %v1025_v63 = vld [vmem:[#allocation9 + $0x1d8] sm:$0xff] }
  0x93   :  { %142 = vadd.xlane.f32.xlu0 %v141_v12  ;;  %v991_v12 = vld [vmem:[#allocation9 + $0xc8] sm:$0xff]  ;;  %v4013_v17 = vpack.c.bf16 %v988_v11, %v984_v10  ;;  %v1029_v1 = vld [vmem:[#allocation9 + $0x1f8] sm:$0xff]  ;;  %v1022_v4 = vld [vmem:[#allocation9 + $0x1c0] sm:$0xff] }
  0x94   :  { %v1035_v10 = vld [vmem:[#allocation9 + $0x228] sm:$0xff]  ;;  %v1033_v11 = vld [vmem:[#allocation9 + $0x218] sm:$0xff]  ;;  %v1048_v44 = vld [vmem:[#allocation9 + $0x290] sm:$0xff] }
  0x95   :  { %v1059_v47 = vld [vmem:[#allocation9 + $0x2e8] sm:$0xff]  ;;  %v1057_v48 = vld [vmem:[#allocation9 + $0x2d8] sm:$0xff] }
  0x97   :  { %145 = vadd.xlane.f32.xlu0 %v144_v14  ;;  %v993_v14 = vld [vmem:[#allocation9 + $0xd8] sm:$0xff] }
  0x98   :  { %v4015_v21 = vpack.c.bf16 %v997_v15, %v993_v14  ;;  %v1030_v15 = vld [vmem:[#allocation9 + $0x200] sm:$0xff] }
 0x120   :  { %v143_v26 = vpop.xlane.xlu0 %142 }
 0x121   :  { %v147_v28 = vmul.f32 0.00390625, %v143_v26  ;;  %v1003_v26 = vld [vmem:[#allocation9 + $0x128] sm:$0xff] }
 0x123   :  { %v248_v33 = vrot.slane %v147_v28, %v247_v27  ;;  %v1005_v28 = vld [vmem:[#allocation9 + $0x138] sm:$0xff] }
 0x124   :  { %v146_v29 = vpop.xlane.xlu0 %145 }
 0x125   :  { %v148_v30 = vmul.f32 0.00390625, %v146_v29 }
 0x127   :  { %v252_v34 = vrot.slane %v148_v30, %v247_v27  ;;  %v1001_v27 = vld [vmem:[#allocation9 + $0x118] sm:$0xff]  ;;  %v4017_v30 = vpack.c.bf16 %v996_v23, %v992_v22  ;;  %v1043_v22 = vld [vmem:[#allocation9 + $0x268] sm:$0xff] }
 0x128   :  { %v1041_v23 = vld [vmem:[#allocation9 + $0x258] sm:$0xff] }
 0x129   :  { %v254_v35 = vsel %vm253_vm1, %v252_v34, %v248_v33  ;;  %v3507_v33 = vpack.c.bf16 %v1003_v26, %v999_v25  ;;  %v4019_v34 = vpack.c.bf16 %v1005_v28, %v1001_v27  ;;  %v1045_v25 = vld [vmem:[#allocation9 + $0x278] sm:$0xff]  ;;  %v1038_v28 = vld [vmem:[#allocation9 + $0x240] sm:$0xff] }
 0x12a   :  { %3398 = vmatmul.mubr.msk.f32.vlgmr.msra.gmra.mrb[0].mxu0 %vm271_vm2, %v254_v35  ;;  %3401 = vmatmul.mubr.msk.f32.vlgmr.msra.gmra.mrb[0].mxu1 %vm271_vm2, %v254_v35 }
 0x12b   :  { %3403 = vmatpush1.msk.msra.mxu0 %vm140_vm0, %v151_v19  ;;  %512 = vmatprep.mubr.f32.mxu0 %v4855_v0  ;;  %v994_v19 = vld [vmem:[#allocation9 + $0xe0] sm:$0xff] }
 0x12c   :  { %3406 = vmatpush1.msk.msra.mxu1 %vm140_vm0, %v152_v20  ;;  %583 = vmatprep.mubr.f32.mxu1 %v4855_v0  ;;  %v3503_v20 = vpack.c.bf16 %v995_v13, %v991_v12  ;;  %v3505_v29 = vpack.c.bf16 %v994_v19, %v990_v18  ;;  %v1037_v12 = vld [vmem:[#allocation9 + $0x238] sm:$0xff]  ;;  %v1032_v19 = vld [vmem:[#allocation9 + $0x210] sm:$0xff] }
 0x12d   :  { %3408 = vmatprep.subr.msk.mxu0 %vm140_vm0, %v267_v36  ;;  %3411 = vmatprep.subr.msk.mxu1 %vm140_vm0, %v268_v37  ;;  %v1004_v36 = vld [vmem:[#allocation9 + $0x130] sm:$0xff]  ;;  %v1007_v37 = vld [vmem:[#allocation9 + $0x148] sm:$0xff]  ;;  %v4035_v18 = vpack.c.bf16 %v1037_v12, %v1033_v11  ;;  %v1070_v12 = vld [vmem:[#allocation9 + $0x340] sm:$0xff] }
 0x12e   :  { %3404 = vmatmul.mubr.msk.f32.vlgmr.msra.gmra.mrb[2].mxu0 %vm271_vm2, %v254_v35  ;;  %3407 = vmatmul.mubr.msk.f32.vlgmr.msra.gmra.mrb[2].mxu1 %vm271_vm2, %v254_v35 }
 0x12f   :  { %3409 = vmatpush1.msk.msra.mxu0 %vm140_vm0, %v153_v31  ;;  %654 = vmatprep.mubr.f32.mxu0 %v4855_v0  ;;  %v998_v31 = vld [vmem:[#allocation9 + $0x100] sm:$0xff] }
 0x130   :  { %3412 = vmatpush1.msk.msra.mxu1 %vm140_vm0, %v154_v32  ;;  %725 = vmatprep.mubr.f32.mxu1 %v4855_v0  ;;  %v1002_v32 = vld [vmem:[#allocation9 + $0x120] sm:$0xff] }
 0x131   :  { %3414 = vmatprep.subr.msk.mxu0 %vm140_vm0, %v269_v40  ;;  %3417 = vmatprep.subr.msk.mxu1 %vm140_vm0, %v270_v41  ;;  %v1013_v40 = vld [vmem:[#allocation9 + $0x178] sm:$0xff]  ;;  %v3509_v41 = vpack.c.bf16 %v1002_v32, %v998_v31  ;;  %v4039_v31 = vpack.c.bf16 %v1045_v25, %v1041_v23  ;;  %v1040_v32 = vld [vmem:[#allocation9 + $0x250] sm:$0xff]  ;;  %v1078_v25 = vld [vmem:[#allocation9 + $0x380] sm:$0xff] }
 0x132   :  { %3410 = vmatmul.mubr.msk.f32.vlgmr.msra.gmra.mrb[4].mxu0 %vm271_vm2, %v254_v35  ;;  %3413 = vmatmul.mubr.msk.f32.vlgmr.msra.gmra.mrb[4].mxu1 %vm271_vm2, %v254_v35 }
 0x133   :  { %3415 = vmatpush1.msk.msra.mxu0 %vm140_vm0, %v155_v38  ;;  %796 = vmatprep.mubr.f32.mxu0 %v4855_v0  ;;  %v1011_v38 = vld [vmem:[#allocation9 + $0x168] sm:$0xff] }
 0x134   :  { %3418 = vmatpush1.msk.msra.mxu1 %vm140_vm0, %v156_v39  ;;  %867 = vmatprep.mubr.f32.mxu1 %v4855_v0  ;;  %v986_v0 = vld [vmem:[#allocation9 + $0xa0] sm:$0xff]  ;;  %v1009_v39 = vld [vmem:[#allocation9 + $0x158] sm:$0xff]  ;;  %v3511_v45 = vpack.c.bf16 %v1011_v38, %v1007_v37 }
 0x135   :  { %3492 = vmatprep.subr.bf16.mxu0 %v3491_v51  ;;  %4004 = vmatprep.subr.bf16.mxu1 %v4003_v52  ;;  %v3501_v16 = vpack.c.bf16 %v986_v0, %v982_v7  ;;  %v4023_v46 = vpack.c.bf16 %v1013_v40, %v1009_v39  ;;  %v1017_v51 = vld [vmem:[#allocation9 + $0x198] sm:$0xff]  ;;  %v4031_v7 = vpack.c.bf16 %v1029_v1, %v1025_v63  ;;  %v1024_v0 = vld [vmem:[#allocation9 + $0x1d0] sm:$0xff]  ;;  %v1046_v40 = vld [vmem:[#allocation9 + $0x280] sm:$0xff] }
 0x136   :  { %3416 = vmatmul.mubr.msk.f32.vlgmr.msra.gmra.mrb[6].mxu0 %vm271_vm2, %v254_v35  ;;  %3419 = vmatmul.mubr.msk.f32.vlgmr.msra.gmra.mrb[6].mxu1 %vm271_vm2, %v254_v35  ;;  %v1000_v35 = vld [vmem:[#allocation9 + $0x110] sm:$0xff]  ;;  %v1021_v52 = vld [vmem:[#allocation9 + $0x1b8] sm:$0xff]  ;;  %v1062_v1 = vld [vmem:[#allocation9 + $0x300] sm:$0xff] }
 0x137   :  { %3494 = vmatpush1.bf16.msra.mxu0 %v3493_v56  ;;  %4006 = vmatpush1.bf16.msra.mxu1 %v4005_v57  ;;  %v4021_v42 = vpack.c.bf16 %v1004_v36, %v1000_v35  ;;  %v1018_v56 = vld [vmem:[#allocation9 + $0x1a0] sm:$0xff]  ;;  %v3515_v57 = vpack.c.bf16 %v1019_v50, %v1015_v49  ;;  %v4027_v58 = vpack.c.bf16 %v1021_v52, %v1017_v51  ;;  %v1051_v35 = vld [vmem:[#allocation9 + $0x2a8] sm:$0xff]  ;;  %v1049_v36 = vld [vmem:[#allocation9 + $0x298] sm:$0xff] }
 0x138   :  { %3496 = vmatprep.subr.bf16.mxu0 %v3495_v60  ;;  %4008 = vmatprep.subr.bf16.mxu1 %v4007_v61  ;;  %v1020_v60 = vld [vmem:[#allocation9 + $0x1b0] sm:$0xff]  ;;  %v1023_v61 = vld [vmem:[#allocation9 + $0x1c8] sm:$0xff]  ;;  %v3517_v2 = vpack.c.bf16 %v1018_v56, %v1014_v55  ;;  %v1053_v37 = vld [vmem:[#allocation9 + $0x2b8] sm:$0xff] }
 0x139   :  { %v4029_v3 = vpack.c.bf16 %v1020_v60, %v1016_v59  ;;  %v4043_v43 = vpack.c.bf16 %v1053_v37, %v1049_v36  ;;  %v1061_v49 = vld [vmem:[#allocation9 + $0x2f8] sm:$0xff]  ;;  %v1054_v52 = vld [vmem:[#allocation9 + $0x2c0] sm:$0xff]  ;;  %v1056_v56 = vld [vmem:[#allocation9 + $0x2d0] sm:$0xff] }
 0x13a   :  { %v4047_v55 = vpack.c.bf16 %v1061_v49, %v1057_v48  ;;  %v1067_v59 = vld [vmem:[#allocation9 + $0x328] sm:$0xff]  ;;  %v1065_v60 = vld [vmem:[#allocation9 + $0x318] sm:$0xff] }
 0x13b   :  { %3498 = vmatpush1.bf16.msra.mxu0 %v3497_v5  ;;  %4010 = vmatpush1.bf16.msra.mxu1 %v4009_v6  ;;  %v1026_v5 = vld [vmem:[#allocation9 + $0x1e0] sm:$0xff]  ;;  %v3519_v6 = vpack.c.bf16 %v1027_v62, %v1023_v61  ;;  %v1069_v61 = vld [vmem:[#allocation9 + $0x338] sm:$0xff] }
 0x13c   :  { %3500 = vmatprep.subr.bf16.mxu0 %v3499_v8  ;;  %4012 = vmatprep.subr.bf16.mxu1 %v4011_v9  ;;  %v1028_v8 = vld [vmem:[#allocation9 + $0x1f0] sm:$0xff]  ;;  %v1031_v9 = vld [vmem:[#allocation9 + $0x208] sm:$0xff]  ;;  %v3521_v13 = vpack.c.bf16 %v1026_v5, %v1022_v4  ;;  %v4051_v4 = vpack.c.bf16 %v1069_v61, %v1065_v60  ;;  %v1093_v37 = vld [vmem:[#allocation9 + $0x3f8] sm:$0xff]  ;;  %v183_v61 = vsub.s32 5, %v5014_v24 }
 0x13d   :  { %v4033_v14 = vpack.c.bf16 %v1028_v8, %v1024_v0  ;;  %v1064_v5 = vld [vmem:[#allocation9 + $0x310] sm:$0xff]  ;;  %v1075_v0 = vld [vmem:[#allocation9 + $0x368] sm:$0xff]  ;;  %v1073_v8 = vld [vmem:[#allocation9 + $0x358] sm:$0xff] }
 0x13e   :  { %v1101_v49 = vld [vmem:[#allocation9 + $0x438] sm:$0xff] }
 0x13f   :  { %3502 = vmatpush1.bf16.msra.mxu0 %v3501_v16  ;;  %4014 = vmatpush1.bf16.msra.mxu1 %v4013_v17  ;;  %v1034_v16 = vld [vmem:[#allocation9 + $0x220] sm:$0xff]  ;;  %v3523_v17 = vpack.c.bf16 %v1035_v10, %v1031_v9  ;;  %v1077_v9 = vld [vmem:[#allocation9 + $0x378] sm:$0xff] }
 0x140   :  { %3504 = vmatprep.subr.bf16.mxu0 %v3503_v20  ;;  %4016 = vmatprep.subr.bf16.mxu1 %v4015_v21  ;;  %v1036_v20 = vld [vmem:[#allocation9 + $0x230] sm:$0xff]  ;;  %v1039_v21 = vld [vmem:[#allocation9 + $0x248] sm:$0xff]  ;;  %v3525_v26 = vpack.c.bf16 %v1034_v16, %v1030_v15  ;;  %v4055_v15 = vpack.c.bf16 %v1077_v9, %v1073_v8 }
 0x141   :  { %v4037_v27 = vpack.c.bf16 %v1036_v20, %v1032_v19  ;;  %v1072_v16 = vld [vmem:[#allocation9 + $0x350] sm:$0xff]  ;;  %v1083_v19 = vld [vmem:[#allocation9 + $0x3a8] sm:$0xff]  ;;  %v1081_v20 = vld [vmem:[#allocation9 + $0x398] sm:$0xff] }
 0x142   :  { %v5067_v8 = vld [vmem:[#allocation9 + $0x448] sm:$0xff] }
 0x143   :  { %3506 = vmatpush1.bf16.msra.mxu0 %v3505_v29  ;;  %4018 = vmatpush1.bf16.msra.mxu1 %v4017_v30  ;;  %v1042_v29 = vld [vmem:[#allocation9 + $0x260] sm:$0xff]  ;;  %v3527_v30 = vpack.c.bf16 %v1043_v22, %v1039_v21  ;;  %v1085_v21 = vld [vmem:[#allocation9 + $0x3b8] sm:$0xff]  ;;  %v5069_v9 = vld [vmem:[#allocation9 + $0x468] sm:$0xff] }
 0x144   :  { %3508 = vmatprep.subr.bf16.mxu0 %v3507_v33  ;;  %4020 = vmatprep.subr.bf16.mxu1 %v4019_v34  ;;  %v1044_v33 = vld [vmem:[#allocation9 + $0x270] sm:$0xff]  ;;  %v1047_v34 = vld [vmem:[#allocation9 + $0x288] sm:$0xff]  ;;  %v3529_v38 = vpack.c.bf16 %v1042_v29, %v1038_v28  ;;  %v1082_v28 = vld [vmem:[#allocation9 + $0x3a0] sm:$0xff] }
 0x145   :  { %v4041_v39 = vpack.c.bf16 %v1044_v33, %v1040_v32  ;;  %v1080_v29 = vld [vmem:[#allocation9 + $0x390] sm:$0xff]  ;;  %v1087_v33 = vld [vmem:[#allocation9 + $0x3c8] sm:$0xff] }
 0x147   :  { %3510 = vmatpush1.bf16.msra.mxu0 %v3509_v41  ;;  %4022 = vmatpush1.bf16.msra.mxu1 %v4021_v42  ;;  %v1050_v41 = vld [vmem:[#allocation9 + $0x2a0] sm:$0xff]  ;;  %v3531_v42 = vpack.c.bf16 %v1051_v35, %v1047_v34  ;;  %v1091_v34 = vld [vmem:[#allocation9 + $0x3e8] sm:$0xff]  ;;  %v1089_v35 = vld [vmem:[#allocation9 + $0x3d8] sm:$0xff] }
 0x148   :  { %3512 = vmatprep.subr.bf16.mxu0 %v3511_v45  ;;  %4024 = vmatprep.subr.bf16.mxu1 %v4023_v46  ;;  %v1052_v45 = vld [vmem:[#allocation9 + $0x2b0] sm:$0xff]  ;;  %v1055_v46 = vld [vmem:[#allocation9 + $0x2c8] sm:$0xff]  ;;  %v3533_v50 = vpack.c.bf16 %v1050_v41, %v1046_v40  ;;  %v3551_v36 = vpack.c.bf16 %v1091_v34, %v1087_v33  ;;  %v4063_v40 = vpack.c.bf16 %v1093_v37, %v1089_v35 }
 0x149   :  { %v4045_v51 = vpack.c.bf16 %v1052_v45, %v1048_v44  ;;  %v1095_v45 = vld [vmem:[#allocation9 + $0x408] sm:$0xff] }
 0x14a   :  { %v5104_v33 = vld [vmem:[#allocation9 + $0x4a8] sm:$0xff] }
 0x14b   :  { %3514 = vmatpush1.bf16.msra.mxu0 %v3513_v53  ;;  %4026 = vmatpush1.bf16.msra.mxu1 %v4025_v54  ;;  %v1058_v53 = vld [vmem:[#allocation9 + $0x2e0] sm:$0xff]  ;;  %v3535_v54 = vpack.c.bf16 %v1059_v47, %v1055_v46  ;;  %v1099_v46 = vld [vmem:[#allocation9 + $0x428] sm:$0xff]  ;;  %v1097_v47 = vld [vmem:[#allocation9 + $0x418] sm:$0xff] }
 0x14c   :  { %3516 = vmatprep.subr.bf16.mxu0 %v3515_v57  ;;  %4028 = vmatprep.subr.bf16.mxu1 %v4027_v58  ;;  %v1060_v57 = vld [vmem:[#allocation9 + $0x2f0] sm:$0xff]  ;;  %v1063_v58 = vld [vmem:[#allocation9 + $0x308] sm:$0xff]  ;;  %v3537_v62 = vpack.c.bf16 %v1058_v53, %v1054_v52  ;;  %v3555_v48 = vpack.c.bf16 %v1099_v46, %v1095_v45  ;;  %v5042_v53 = vsub.s32 0, %v5014_v24 }
 0x14d   :  { %v4049_v63 = vpack.c.bf16 %v1060_v57, %v1056_v56  ;;  %v5048_v56 = vsub.s32 1, %v5014_v24  ;;  %v5051_v57 = vsub.s32 3, %v5014_v24 }
 0x14f   :  { %3518 = vmatpush1.bf16.msra.mxu0 %v3517_v2  ;;  %4030 = vmatpush1.bf16.msra.mxu1 %v4029_v3  ;;  %v1066_v2 = vld [vmem:[#allocation9 + $0x320] sm:$0xff]  ;;  %v3539_v3 = vpack.c.bf16 %v1067_v59, %v1063_v58  ;;  %v179_v58 = vsub.s32 4, %v5014_v24  ;;  %v187_v59 = vsub.s32 6, %v5014_v24 }
 0x150   :  { %3520 = vmatprep.subr.bf16.mxu0 %v3519_v6  ;;  %4032 = vmatprep.subr.bf16.mxu1 %v4031_v7  ;;  %v1068_v6 = vld [vmem:[#allocation9 + $0x330] sm:$0xff]  ;;  %v1071_v7 = vld [vmem:[#allocation9 + $0x348] sm:$0xff]  ;;  %v3541_v10 = vpack.c.bf16 %v1066_v2, %v1062_v1  ;;  %v5059_v1 = vld [vmem:[#allocation9 + $0x420] sm:$0xff] }
 0x151   :  { %v4053_v11 = vpack.c.bf16 %v1068_v6, %v1064_v5  ;;  %v1100_v5 = vld [vmem:[#allocation9 + $0x430] sm:$0xff] }
 0x153   :  { %3522 = vmatpush1.bf16.msra.mxu0 %v3521_v13  ;;  %4034 = vmatpush1.bf16.msra.mxu1 %v4033_v14  ;;  %v1074_v13 = vld [vmem:[#allocation9 + $0x360] sm:$0xff]  ;;  %v3543_v14 = vpack.c.bf16 %v1075_v0, %v1071_v7  ;;  %v5065_v0 = vld [vmem:[#allocation8 + $0x8] sm:$0xff] }
 0x154   :  { %3524 = vmatprep.subr.bf16.mxu0 %v3523_v17  ;;  %4036 = vmatprep.subr.bf16.mxu1 %v4035_v18  ;;  %v1076_v17 = vld [vmem:[#allocation9 + $0x370] sm:$0xff]  ;;  %v1079_v18 = vld [vmem:[#allocation9 + $0x388] sm:$0xff]  ;;  %v3545_v22 = vpack.c.bf16 %v1074_v13, %v1070_v12  ;;  %v5077_v13 = vld [vmem:[#allocation9 + $0x458] sm:$0xff] }
 0x155   :  { %v4057_v23 = vpack.c.bf16 %v1076_v17, %v1072_v16 }
 0x157   :  { %3526 = vmatpush1.bf16.msra.mxu0 %v3525_v26  ;;  %4038 = vmatpush1.bf16.msra.mxu1 %v4037_v27  ;;  %v3547_v26 = vpack.c.bf16 %v1083_v19, %v1079_v18  ;;  %v4059_v27 = vpack.c.bf16 %v1085_v21, %v1081_v20 }
 0x158   :  { %3528 = vmatprep.subr.bf16.mxu0 %v3527_v30  ;;  %4040 = vmatprep.subr.bf16.mxu1 %v4039_v31  ;;  %v1084_v30 = vld [vmem:[#allocation9 + $0x3b0] sm:$0xff]  ;;  %v3549_v31 = vpack.c.bf16 %v1082_v28, %v1078_v25 }
 0x159   :  { %v4061_v32 = vpack.c.bf16 %v1084_v30, %v1080_v29  ;;  %v5094_v25 = vld [vmem:[#allocation9 + $0x470] sm:$0xff]  ;;  %v196_v30 = vrot.slane %v5065_v0, %v5042_v53 }
 0x15b   :  { %3530 = vmatpush1.bf16.msra.mxu0 %v3529_v38  ;;  %4042 = vmatpush1.bf16.msra.mxu1 %v4041_v39  ;;  %v1086_v38 = vld [vmem:[#allocation9 + $0x3c0] sm:$0xff] }
 0x15c   :  { %3532 = vmatprep.subr.bf16.mxu0 %v3531_v42  ;;  %4044 = vmatprep.subr.bf16.mxu1 %v4043_v43  ;;  %v1090_v39 = vld [vmem:[#allocation9 + $0x3e0] sm:$0xff]  ;;  %v1088_v42 = vld [vmem:[#allocation9 + $0x3d0] sm:$0xff] }
 0x15d   :  { %v3553_v41 = vpack.c.bf16 %v1090_v39, %v1086_v38  ;;  %v1092_v43 = vld [vmem:[#allocation9 + $0x3f0] sm:$0xff]  ;;  %v200_v38 = vrot.slane %v5065_v0, %v5048_v56  ;;  %v208_v39 = vrot.slane %v5065_v0, %v5051_v57 }
 0x15e   :  { %v4065_v44 = vpack.c.bf16 %v1092_v43, %v1088_v42  ;;  %v5118_v42 = vld [vmem:[#allocation9 + $0x498] sm:$0xff] }
 0x15f   :  { %3534 = vmatpush1.bf16.msra.mxu0 %v3533_v50  ;;  %4046 = vmatpush1.bf16.msra.mxu1 %v4045_v51  ;;  %v4067_v50 = vpack.c.bf16 %v1101_v49, %v1097_v47  ;;  %v4856_v51 = vmov 1983009808   ;;  %v5123_v49 = vld [vmem:[#allocation9 + $0x480] sm:$0xff] }
 0x160   :  { %3536 = vmatprep.subr.bf16.mxu0 %v3535_v54  ;;  %4048 = vmatprep.subr.bf16.mxu1 %v4047_v55  ;;  %v893_v52 = vunpack.c.l.s4 %v4856_v51  ;;  %v5045_v54 = vsub.s32 2, %v5014_v24  ;;  %v157_v55 = vld [vmem:[#allocation8] sm:$0xff] }
 0x161   :  { %v164_v2 = vrot.slane %v157_v55, %v5042_v53  ;;  %v168_v6 = vrot.slane %v157_v55, %v5048_v56  ;;  %v176_v7 = vrot.slane %v157_v55, %v5051_v57  ;;  %v184_v19 = vrot.slane %v157_v55, %v183_v61 }
 0x162   :  { %v894_v60 = vunpack.c.0.s8 %v893_v52 }
 0x163   :  { %3538 = vmatpush1.bf16.msra.mxu0 %v3537_v62  ;;  %4050 = vmatpush1.bf16.msra.mxu1 %v4049_v63  ;;  %v191_v62 = vsub.s32 7, %v5014_v24  ;;  %v5057_v63 = vld [vmem:[#allocation9 + $0x400] sm:$0xff] }
 0x164   :  { %3540 = vmatprep.subr.bf16.mxu0 %v3539_v3  ;;  %4052 = vmatprep.subr.bf16.mxu1 %v4051_v4  ;;  %v172_v3 = vrot.slane %v157_v55, %v5045_v54  ;;  %v1096_v4 = vld [vmem:[#allocation9 + $0x410] sm:$0xff]  ;;  %v3557_v12 = vpack.c.bf16 %v5059_v1, %v5057_v63  ;;  %v5084_v18 = vsub.s32 %v894_v60, %v5014_v24 }
 0x165   :  { %v192_v20 = vrot.slane %v157_v55, %v191_v62  ;;  %v4069_v21 = vpack.c.bf16 %v1100_v5, %v1096_v4  ;;  %v212_v63 = vrot.slane %v5065_v0, %v179_v58  ;;  %v220_v5 = vrot.slane %v5065_v0, %v187_v59 }
 0x167   :  { %3542 = vmatpush1.bf16.msra.mxu0 %v3541_v10  ;;  %4054 = vmatpush1.bf16.msra.mxu1 %v4053_v11  ;;  %v180_v10 = vrot.slane %v157_v55, %v179_v58  ;;  %v188_v11 = vrot.slane %v157_v55, %v187_v59  ;;  %v1123_v59 = vld [vmem:[#allocation9 + $0x4e8] sm:$0xff] }
 0x168   :  { %3544 = vmatprep.subr.bf16.mxu0 %v3543_v14  ;;  %4056 = vmatprep.subr.bf16.mxu1 %v4055_v15  ;;  %v5079_v14 = vld [vmem:[#allocation9 + $0x478] sm:$0xff]  ;;  %v5081_v15 = vld [vmem:[#allocation9 + $0x440] sm:$0xff] }
 0x169   :  { %v4071_v37 = vpack.c.bf16 %v5079_v14, %v5077_v13  ;;  %v1116_v13 = vld [vmem:[#allocation9 + $0x4b0] sm:$0xff]  ;;  %v1119_v14 = vld [vmem:[#allocation9 + $0x4c8] sm:$0xff] }
 0x16a   :  { %v3567_v24 = vpack.c.bf16 %v1123_v59, %v1119_v14 }
 0x16b   :  { %3546 = vmatpush1.bf16.msra.mxu0 %v3545_v22  ;;  %4058 = vmatpush1.bf16.msra.mxu1 %v4057_v23  ;;  %v5090_v22 = vld [vmem:[#allocation9 + $0x460] sm:$0xff]  ;;  %v5092_v23 = vld [vmem:[#allocation9 + $0x450] sm:$0xff] }
 0x16c   :  { %3548 = vmatprep.subr.bf16.mxu0 %v3547_v26  ;;  %4060 = vmatprep.subr.bf16.mxu1 %v4059_v27 }
 0x16f   :  { %3550 = vmatpush1.bf16.msra.mxu0 %v3549_v31  ;;  %4062 = vmatpush1.bf16.msra.mxu1 %v4061_v32  ;;  %v3559_v31 = vpack.c.bf16 %v5069_v9, %v5067_v8  ;;  %v5102_v32 = vld [vmem:[#allocation9 + $0x488] sm:$0xff] }
 0x170   :  { %3552 = vmatprep.subr.bf16.mxu0 %v3551_v36  ;;  %4064 = vmatprep.subr.bf16.mxu1 %v4063_v40  ;;  %v204_v36 = vrot.slane %v5065_v0, %v5045_v54  ;;  %v3561_v40 = vpack.c.bf16 %v5090_v22, %v5081_v15  ;;  %v3563_v47 = vpack.c.bf16 %v5104_v33, %v5102_v32  ;;  %v1121_v22 = vld [vmem:[#allocation9 + $0x4d8] sm:$0xff]  ;;  %v1120_v32 = vld [vmem:[#allocation9 + $0x4d0] sm:$0xff] }
 0x173   :  { %3554 = vmatpush1.bf16.msra.mxu0 %v3553_v41  ;;  %4066 = vmatpush1.bf16.msra.mxu1 %v4065_v44  ;;  %v4073_v41 = vpack.c.bf16 %v5094_v25, %v5092_v23  ;;  %v1125_v23 = vld [vmem:[#allocation9 + $0x4f8] sm:$0xff] }
 0x174   :  { %3556 = vmatprep.subr.bf16.mxu0 %v3555_v48  ;;  %4068 = vmatprep.subr.bf16.mxu1 %v4067_v50  ;;  %v1117_v48 = vld [vmem:[#allocation9 + $0x4b8] sm:$0xff]  ;;  %v5125_v50 = vld [vmem:[#allocation9 + $0x4a0] sm:$0xff] }
 0x175   :  { %v3565_v58 = vpack.c.bf16 %v5125_v50, %v5123_v49 }
 0x1fd   :  { %v372_v16 = vpop.f32.mrb[0].mxu0  ;;  %v443_v17 = vpop.f32.mrb[0].mxu1 }
 0x1fe   :  { %v373_v26 = vadd.f32 %v372_v16, %v164_v2  ;;  %v5096_v27 = vadd.f32 %v443_v17, %v172_v3  ;;  %v374_v28 = vpop.f32.mrb[1].mxu0  ;;  %v445_v29 = vpop.f32.mrb[1].mxu1 }
 0x1ff   :  { %v375_v34 = vadd.f32 %v374_v28, %v168_v6  ;;  %v446_v35 = vadd.f32 %v445_v29, %v176_v7  ;;  %v4075_v6 = vpack.c.bf16 %v1117_v48, %v5118_v42  ;;  %v1112_v7 = vld [vmem:[#allocation9 + $0x490] sm:$0xff] }
 0x201   :  { %v890_v43 = vcombine.low %v373_v26, %v375_v34  ;;  %v891_v44 = vcombine.low %v5096_v27, %v446_v35  ;;  %v514_v45 = vpop.f32.mrb[2].mxu0  ;;  %v585_v46 = vpop.f32.mrb[2].mxu1  ;;  %2076 = vmatprep.mubr.f32.mxu0 %v375_v34  ;;  %2644 = vmatprep.mubr.f32.mxu1 %v375_v34 }
 0x202   :  { %v5127_v51 = vadd.f32 %v514_v45, %v180_v10  ;;  %v5129_v52 = vadd.f32 %v585_v46, %v188_v11  ;;  %v516_v55 = vpop.f32.mrb[3].mxu0  ;;  %v587_v60 = vpop.f32.mrb[3].mxu1  ;;  %2077 = vmatmul.mubr.f32.vlgmr.msra.gmra.mrb[8].mxu0 %v373_v26  ;;  %2645 = vmatmul.mubr.f32.vlgmr.msra.gmra.mrb[8].mxu1 %v373_v26  ;;  %v1129_v45 = vld [vmem:[#allocation9 + $0x518] sm:$0xff] }
 0x203   :  { %v898_v1 = vrot.slane %v890_v43, %v5084_v18  ;;  %v905_v2 = vrot.slane %v891_v44, %v5084_v18  ;;  %v5136_v3 = vadd.f32 %v516_v55, %v184_v19  ;;  %v5138_v4 = vadd.f32 %v587_v60, %v192_v20  ;;  %3558 = vmatpush1.bf16.msra.mxu0 %v3557_v12  ;;  %v1133_v46 = vld [vmem:[#allocation9 + $0x538] sm:$0xff] }
 0x204   :  { %4070 = vmatpush1.bf16.msra.mxu1 %v4069_v21  ;;  %2147 = vmatprep.mubr.f32.mxu0 %v446_v35  ;;  %v216_v20 = vrot.slane %v5065_v0, %v183_v61  ;;  %v224_v21 = vrot.slane %v5065_v0, %v191_v62  ;;  %v4077_v61 = vpack.c.bf16 %v1116_v13, %v1112_v7 }
 0x205   :  { %v906_v8 = vcombine.low %v898_v1, %v905_v2  ;;  %v907_v9 = vcombine.low %v5127_v51, %v5136_v3  ;;  %v908_v10 = vcombine.low %v5129_v52, %v5138_v4  ;;  %2715 = vmatprep.mubr.f32.mxu1 %v446_v35  ;;  %v656_v11 = vpop.f32.mrb[4].mxu0  ;;  %v727_v12 = vpop.f32.mrb[4].mxu1  ;;  %3560 = vmatprep.subr.bf16.mxu0 %v3559_v31  ;;  %v1122_v31 = vld [vmem:[#allocation9 + $0x4e0] sm:$0xff]  ;;  %v1128_v2 = vld [vmem:[#allocation9 + $0x510] sm:$0xff] }
 0x206   :  { %v5150_v15 = vadd.f32 %v656_v11, %v196_v30  ;;  %v5152_v16 = vadd.f32 %v727_v12, %v204_v36  ;;  %4072 = vmatprep.subr.bf16.mxu1 %v4071_v37  ;;  %v658_v17 = vpop.f32.mrb[5].mxu0  ;;  %v729_v19 = vpop.f32.mrb[5].mxu1  ;;  %v1118_v30 = vld [vmem:[#allocation9 + $0x4c0] sm:$0xff]  ;;  %v4079_v36 = vpack.c.bf16 %v1125_v23, %v1121_v22  ;;  %v1124_v37 = vld [vmem:[#allocation9 + $0x4f0] sm:$0xff]  ;;  %v1139_v11 = vld [vmem:[#allocation9 + $0x568] sm:$0xff] }
 0x207   :  { %962 = vst [vmem:[#allocation15] sm:$0xff] %v906_v8  ;;  %v915_v25 = vrot.slane %v907_v9, %v5084_v18  ;;  %v922_v26 = vrot.slane %v908_v10, %v5084_v18  ;;  %v5162_v28 = vadd.f32 %v658_v17, %v200_v38  ;;  %v5164_v29 = vadd.f32 %v729_v19, %v208_v39  ;;  %v1127_v38 = vld [vmem:[#allocation9 + $0x508] sm:$0xff]  ;;  %v1130_v1 = vld [vmem:[#allocation9 + $0x520] sm:$0xff]  ;;  %v1132_v9 = vld [vmem:[#allocation9 + $0x530] sm:$0xff] }
 0x208   :  { %3562 = vmatpush1.bf16.msra.mxu0 %v3561_v40  ;;  %4074 = vmatpush1.bf16.msra.mxu1 %v4073_v41  ;;  %v1131_v39 = vld [vmem:[#allocation9 + $0x528] sm:$0xff]  ;;  %v3569_v44 = vpack.c.bf16 %v1122_v31, %v1118_v30  ;;  %v4081_v55 = vpack.c.bf16 %v1124_v37, %v1120_v32  ;;  %v4083_v8 = vpack.c.bf16 %v1133_v46, %v1129_v45  ;;  %v1141_v12 = vld [vmem:[#allocation9 + $0x578] sm:$0xff]  ;;  %v1136_v22 = vld [vmem:[#allocation9 + $0x550] sm:$0xff] }
 0x209   :  { %3564 = vmatprep.subr.bf16.mxu0 %v3563_v47  ;;  %v923_v62 = vcombine.low %v915_v25, %v922_v26  ;;  %v924_v0 = vcombine.low %v5150_v15, %v5162_v28  ;;  %v925_v33 = vcombine.low %v5152_v16, %v5164_v29  ;;  %v798_v34 = vpop.f32.mrb[6].mxu0  ;;  %v869_v35 = vpop.f32.mrb[6].mxu1  ;;  %4076 = vmatprep.subr.bf16.mxu1 %v4075_v6  ;;  %v1135_v10 = vld [vmem:[#allocation9 + $0x548] sm:$0xff]  ;;  %v1140_v26 = vld [vmem:[#allocation9 + $0x570] sm:$0xff]  ;;  %v1150_v46 = vld [vmem:[#allocation9 + $0x5c0] sm:$0xff] }
 0x20a   :  { %v5170_v40 = vadd.f32 %v798_v34, %v212_v63  ;;  %v5172_v41 = vadd.f32 %v869_v35, %v220_v5  ;;  %v800_v42 = vpop.f32.mrb[7].mxu0  ;;  %v871_v43 = vpop.f32.mrb[7].mxu1  ;;  %v3571_v60 = vpack.c.bf16 %v1131_v39, %v1127_v38  ;;  %v1126_v63 = vld [vmem:[#allocation9 + $0x500] sm:$0xff]  ;;  %v4085_v17 = vpack.c.bf16 %v1132_v9, %v1128_v2  ;;  %v1143_v30 = vld [vmem:[#allocation9 + $0x588] sm:$0xff]  ;;  %v1144_v34 = vld [vmem:[#allocation9 + $0x590] sm:$0xff] }
 0x20b   :  { %963 = vst [vmem:[#allocation15 + $0x8] sm:$0xff] %v923_v62  ;;  %v932_v47 = vrot.slane %v924_v0, %v5084_v18  ;;  %v939_v48 = vrot.slane %v925_v33, %v5084_v18  ;;  %v5176_v49 = vadd.f32 %v800_v42, %v216_v20  ;;  %v5178_v50 = vadd.f32 %v871_v43, %v224_v21  ;;  %v1134_v20 = vld [vmem:[#allocation9 + $0x540] sm:$0xff]  ;;  %v1147_v31 = vld [vmem:[#allocation9 + $0x5a8] sm:$0xff]  ;;  %v1153_v39 = vld [vmem:[#allocation9 + $0x5d8] sm:$0xff] }
 0x20c   :  { %3566 = vmatpush1.bf16.msra.mxu0 %v3565_v58  ;;  %4078 = vmatpush1.bf16.msra.mxu1 %v4077_v61  ;;  %v1137_v58 = vld [vmem:[#allocation9 + $0x558] sm:$0xff]  ;;  %v3573_v59 = vpack.c.bf16 %v1130_v1, %v1126_v63  ;;  %v3575_v19 = vpack.c.bf16 %v1139_v11, %v1135_v10  ;;  %v1138_v21 = vld [vmem:[#allocation9 + $0x560] sm:$0xff]  ;;  %v4089_v32 = vpack.c.bf16 %v1140_v26, %v1136_v22  ;;  %v1151_v37 = vld [vmem:[#allocation9 + $0x5c8] sm:$0xff] }
 0x20d   :  { %3568 = vmatprep.subr.bf16.mxu0 %v3567_v24  ;;  %v940_v5 = vcombine.low %v932_v47, %v939_v48  ;;  %v941_v6 = vcombine.low %v5170_v40, %v5176_v49  ;;  %v942_v7 = vcombine.low %v5172_v41, %v5178_v50  ;;  %4080 = vmatprep.subr.bf16.mxu1 %v4079_v36  ;;  %v1145_v61 = vld [vmem:[#allocation9 + $0x598] sm:$0xff]  ;;  %v1142_v0 = vld [vmem:[#allocation9 + $0x580] sm:$0xff]  ;;  %v1148_v36 = vld [vmem:[#allocation9 + $0x5b0] sm:$0xff] }
 0x20e   :  { %v4087_v25 = vpack.c.bf16 %v1141_v12, %v1137_v58  ;;  %v1149_v24 = vld [vmem:[#allocation9 + $0x5b8] sm:$0xff]  ;;  %v3579_v62 = vpack.c.bf16 %v1147_v31, %v1143_v30  ;;  %v1146_v33 = vld [vmem:[#allocation9 + $0x5a0] sm:$0xff]  ;;  %v1155_v38 = vld [vmem:[#allocation9 + $0x5e8] sm:$0xff] }
 0x20f   :  { %964 = vst [vmem:[#allocation15 + $0x10] sm:$0xff] %v940_v5  ;;  %v949_v13 = vrot.slane %v941_v6, %v5084_v18  ;;  %v956_v14 = vrot.slane %v942_v7, %v5084_v18  ;;  %v3577_v18 = vpack.c.bf16 %v1138_v21, %v1134_v20  ;;  %v4091_v35 = vpack.c.bf16 %v1149_v24, %v1145_v61  ;;  %v1157_v42 = vld [vmem:[#allocation9 + $0x5f8] sm:$0xff]  ;;  %v1154_v47 = vld [vmem:[#allocation9 + $0x5e0] sm:$0xff]  ;;  %v1152_v48 = vld [vmem:[#allocation9 + $0x5d0] sm:$0xff] }
 0x210   :  { %3570 = vmatpush1.bf16.msra.mxu0 %v3569_v44  ;;  %4082 = vmatpush1.bf16.msra.mxu1 %v4081_v55  ;;  %v3581_v43 = vpack.c.bf16 %v1146_v33, %v1142_v0  ;;  %v4093_v44 = vpack.c.bf16 %v1148_v36, %v1144_v34  ;;  %v3583_v45 = vpack.c.bf16 %v1155_v38, %v1151_v37  ;;  %v1159_v63 = vld [vmem:[#allocation9 + $0x608] sm:$0xff]  ;;  %v1161_v2 = vld [vmem:[#allocation9 + $0x618] sm:$0xff]  ;;  %v1158_v9 = vld [vmem:[#allocation9 + $0x600] sm:$0xff] }
 0x211   :  { %3572 = vmatprep.subr.bf16.mxu0 %v3571_v60  ;;  %v957_v23 = vcombine.low %v949_v13, %v956_v14  ;;  %4084 = vmatprep.subr.bf16.mxu1 %v4083_v8  ;;  %v4095_v55 = vpack.c.bf16 %v1157_v42, %v1153_v39  ;;  %v1156_v60 = vld [vmem:[#allocation9 + $0x5f0] sm:$0xff]  ;;  %v1163_v1 = vld [vmem:[#allocation9 + $0x628] sm:$0xff]  ;;  %v1165_v5 = vld [vmem:[#allocation9 + $0x638] sm:$0xff]  ;;  %v3585_v6 = vpack.c.bf16 %v1154_v47, %v1150_v46 }
 0x212   :  { %v4097_v7 = vpack.c.bf16 %v1156_v60, %v1152_v48  ;;  %v3587_v8 = vpack.c.bf16 %v1163_v1, %v1159_v63  ;;  %v1162_v10 = vld [vmem:[#allocation9 + $0x620] sm:$0xff]  ;;  %v1160_v11 = vld [vmem:[#allocation9 + $0x610] sm:$0xff]  ;;  %v4099_v58 = vpack.c.bf16 %v1165_v5, %v1161_v2  ;;  %v1167_v13 = vld [vmem:[#allocation9 + $0x648] sm:$0xff] }
 0x213   :  { %965 = vst [vmem:[#allocation15 + $0x18] sm:$0xff] %v957_v23  ;;  %v1164_v12 = vld [vmem:[#allocation9 + $0x630] sm:$0xff]  ;;  %v1171_v14 = vld [vmem:[#allocation9 + $0x668] sm:$0xff]  ;;  %v1166_v22 = vld [vmem:[#allocation9 + $0x640] sm:$0xff] }
 0x214   :  { %3574 = vmatpush1.bf16.msra.mxu0 %v3573_v59  ;;  %4086 = vmatpush1.bf16.msra.mxu1 %v4085_v17  ;;  %v1169_v59 = vld [vmem:[#allocation9 + $0x658] sm:$0xff]  ;;  %v4101_v20 = vpack.c.bf16 %v1164_v12, %v1160_v11  ;;  %v3591_v21 = vpack.c.bf16 %v1171_v14, %v1167_v13  ;;  %v1170_v23 = vld [vmem:[#allocation9 + $0x660] sm:$0xff]  ;;  %v1172_v30 = vld [vmem:[#allocation9 + $0x670] sm:$0xff] }
 0x215   :  { %3576 = vmatprep.subr.bf16.mxu0 %v3575_v19  ;;  %4088 = vmatprep.subr.bf16.mxu1 %v4087_v25  ;;  %v1173_v17 = vld [vmem:[#allocation9 + $0x678] sm:$0xff]  ;;  %v3589_v19 = vpack.c.bf16 %v1162_v10, %v1158_v9  ;;  %v1168_v25 = vld [vmem:[#allocation9 + $0x650] sm:$0xff]  ;;  %v1175_v31 = vld [vmem:[#allocation9 + $0x688] sm:$0xff] }
 0x216   :  { %v4103_v26 = vpack.c.bf16 %v1173_v17, %v1169_v59  ;;  %v1179_v61 = vld [vmem:[#allocation9 + $0x6a8] sm:$0xff]  ;;  %v1177_v24 = vld [vmem:[#allocation9 + $0x698] sm:$0xff]  ;;  %v1174_v33 = vld [vmem:[#allocation9 + $0x680] sm:$0xff] }
 0x217   :  { %v3595_v0 = vpack.c.bf16 %v1179_v61, %v1175_v31  ;;  %v1178_v34 = vld [vmem:[#allocation9 + $0x6a0] sm:$0xff]  ;;  %v1180_v37 = vld [vmem:[#allocation9 + $0x6b0] sm:$0xff]  ;;  %v1183_v38 = vld [vmem:[#allocation9 + $0x6c8] sm:$0xff] }
 0x218   :  { %3578 = vmatpush1.bf16.msra.mxu0 %v3577_v18  ;;  %4090 = vmatpush1.bf16.msra.mxu1 %v4089_v32  ;;  %v1181_v18 = vld [vmem:[#allocation9 + $0x6b8] sm:$0xff]  ;;  %v3593_v32 = vpack.c.bf16 %v1170_v23, %v1166_v22  ;;  %v1187_v39 = vld [vmem:[#allocation9 + $0x6e8] sm:$0xff]  ;;  %v1182_v47 = vld [vmem:[#allocation9 + $0x6c0] sm:$0xff] }
 0x219   :  { %3580 = vmatprep.subr.bf16.mxu0 %v3579_v62  ;;  %4092 = vmatprep.subr.bf16.mxu1 %v4091_v35  ;;  %v4105_v62 = vpack.c.bf16 %v1172_v30, %v1168_v25  ;;  %v1176_v35 = vld [vmem:[#allocation9 + $0x690] sm:$0xff]  ;;  %v4107_v36 = vpack.c.bf16 %v1181_v18, %v1177_v24  ;;  %v1185_v42 = vld [vmem:[#allocation9 + $0x6d8] sm:$0xff]  ;;  %v3599_v46 = vpack.c.bf16 %v1187_v39, %v1183_v38  ;;  %v1186_v48 = vld [vmem:[#allocation9 + $0x6e0] sm:$0xff] }
 0x21a   :  { %v1188_v63 = vld [vmem:[#allocation9 + $0x6f0] sm:$0xff]  ;;  %v1191_v1 = vld [vmem:[#allocation9 + $0x708] sm:$0xff]  ;;  %v1193_v5 = vld [vmem:[#allocation9 + $0x718] sm:$0xff] }
 0x21b   :  { %v1195_v2 = vld [vmem:[#allocation9 + $0x728] sm:$0xff]  ;;  %v1190_v10 = vld [vmem:[#allocation9 + $0x700] sm:$0xff]  ;;  %v1196_v13 = vld [vmem:[#allocation9 + $0x730] sm:$0xff] }
 0x21c   :  { %3582 = vmatpush1.bf16.msra.mxu0 %v3581_v43  ;;  %4094 = vmatpush1.bf16.msra.mxu1 %v4093_v44  ;;  %v1189_v43 = vld [vmem:[#allocation9 + $0x6f8] sm:$0xff]  ;;  %v3597_v44 = vpack.c.bf16 %v1178_v34, %v1174_v33  ;;  %v3603_v9 = vpack.c.bf16 %v1195_v2, %v1191_v1  ;;  %v1194_v11 = vld [vmem:[#allocation9 + $0x720] sm:$0xff]  ;;  %v1199_v14 = vld [vmem:[#allocation9 + $0x748] sm:$0xff] }
 0x21d   :  { %3584 = vmatprep.subr.bf16.mxu0 %v3583_v45  ;;  %4096 = vmatprep.subr.bf16.mxu1 %v4095_v55  ;;  %v4109_v45 = vpack.c.bf16 %v1180_v37, %v1176_v35  ;;  %v1184_v55 = vld [vmem:[#allocation9 + $0x6d0] sm:$0xff]  ;;  %v4111_v60 = vpack.c.bf16 %v1189_v43, %v1185_v42  ;;  %v1203_v59 = vld [vmem:[#allocation9 + $0x768] sm:$0xff]  ;;  %v1201_v17 = vld [vmem:[#allocation9 + $0x758] sm:$0xff] }
 0x21e   :  { %v3607_v22 = vpack.c.bf16 %v1203_v59, %v1199_v14  ;;  %v1198_v23 = vld [vmem:[#allocation9 + $0x740] sm:$0xff]  ;;  %v1204_v31 = vld [vmem:[#allocation9 + $0x770] sm:$0xff]  ;;  %v1207_v61 = vld [vmem:[#allocation9 + $0x788] sm:$0xff] }
 0x21f   :  { %v1202_v25 = vld [vmem:[#allocation9 + $0x760] sm:$0xff]  ;;  %v1211_v24 = vld [vmem:[#allocation9 + $0x7a8] sm:$0xff]  ;;  %v1209_v18 = vld [vmem:[#allocation9 + $0x798] sm:$0xff] }
 0x220   :  { %3586 = vmatpush1.bf16.msra.mxu0 %v3585_v6  ;;  %4098 = vmatpush1.bf16.msra.mxu1 %v4097_v7  ;;  %v1197_v6 = vld [vmem:[#allocation9 + $0x738] sm:$0xff]  ;;  %v3601_v7 = vpack.c.bf16 %v1186_v48, %v1182_v47  ;;  %v3611_v33 = vpack.c.bf16 %v1211_v24, %v1207_v61  ;;  %v1206_v34 = vld [vmem:[#allocation9 + $0x780] sm:$0xff]  ;;  %v1212_v38 = vld [vmem:[#allocation9 + $0x7b0] sm:$0xff] }
 0x221   :  { %3588 = vmatprep.subr.bf16.mxu0 %v3587_v8  ;;  %4100 = vmatprep.subr.bf16.mxu1 %v4099_v58  ;;  %v4113_v8 = vpack.c.bf16 %v1188_v63, %v1184_v55  ;;  %v1192_v58 = vld [vmem:[#allocation9 + $0x710] sm:$0xff]  ;;  %v4115_v12 = vpack.c.bf16 %v1197_v6, %v1193_v5  ;;  %v1210_v35 = vld [vmem:[#allocation9 + $0x7a0] sm:$0xff]  ;;  %v1215_v39 = vld [vmem:[#allocation9 + $0x7c8] sm:$0xff] }
 0x222   :  { %v1219_v42 = vld [vmem:[#allocation9 + $0x7e8] sm:$0xff]  ;;  %v1217_v43 = vld [vmem:[#allocation9 + $0x7d8] sm:$0xff]  ;;  %v1214_v48 = vld [vmem:[#allocation9 + $0x7c0] sm:$0xff] }
 0x223   :  { %v3615_v47 = vpack.c.bf16 %v1219_v42, %v1215_v39  ;;  %v1218_v55 = vld [vmem:[#allocation9 + $0x7e0] sm:$0xff]  ;;  %v1220_v1 = vld [vmem:[#allocation9 + $0x7f0] sm:$0xff]  ;;  %v1223_v2 = vld [vmem:[#allocation9 + $0x808] sm:$0xff] }
 0x224   :  { %3590 = vmatpush1.bf16.msra.mxu0 %v3589_v19  ;;  %4102 = vmatpush1.bf16.msra.mxu1 %v4101_v20  ;;  %v1205_v19 = vld [vmem:[#allocation9 + $0x778] sm:$0xff]  ;;  %v3605_v20 = vpack.c.bf16 %v1194_v11, %v1190_v10  ;;  %v1227_v5 = vld [vmem:[#allocation9 + $0x828] sm:$0xff]  ;;  %v1222_v11 = vld [vmem:[#allocation9 + $0x800] sm:$0xff] }
 0x225   :  { %3592 = vmatprep.subr.bf16.mxu0 %v3591_v21  ;;  %4104 = vmatprep.subr.bf16.mxu1 %v4103_v26  ;;  %v4117_v21 = vpack.c.bf16 %v1196_v13, %v1192_v58  ;;  %v1200_v26 = vld [vmem:[#allocation9 + $0x750] sm:$0xff]  ;;  %v4119_v30 = vpack.c.bf16 %v1205_v19, %v1201_v17  ;;  %v1225_v6 = vld [vmem:[#allocation9 + $0x818] sm:$0xff]  ;;  %v3619_v10 = vpack.c.bf16 %v1227_v5, %v1223_v2  ;;  %v1226_v58 = vld [vmem:[#allocation9 + $0x820] sm:$0xff] }
 0x226   :  { %v1224_v13 = vld [vmem:[#allocation9 + $0x810] sm:$0xff]  ;;  %v1231_v59 = vld [vmem:[#allocation9 + $0x848] sm:$0xff]  ;;  %v3621_v19 = vpack.c.bf16 %v1226_v58, %v1222_v11  ;;  %v1257_v5 = vld [vmem:[#allocation9 + $0x918] sm:$0xff] }
 0x227   :  { %v1228_v14 = vld [vmem:[#allocation9 + $0x830] sm:$0xff]  ;;  %v1235_v17 = vld [vmem:[#allocation9 + $0x868] sm:$0xff]  ;;  %v1258_v11 = vld [vmem:[#allocation9 + $0x920] sm:$0xff] }
 0x228   :  { %3594 = vmatpush1.bf16.msra.mxu0 %v3593_v32  ;;  %4106 = vmatpush1.bf16.msra.mxu1 %v4105_v62  ;;  %v1213_v32 = vld [vmem:[#allocation9 + $0x7b8] sm:$0xff]  ;;  %v3609_v62 = vpack.c.bf16 %v1202_v25, %v1198_v23  ;;  %v1230_v23 = vld [vmem:[#allocation9 + $0x840] sm:$0xff]  ;;  %v1239_v61 = vld [vmem:[#allocation9 + $0x888] sm:$0xff] }
 0x229   :  { %3596 = vmatprep.subr.bf16.mxu0 %v3595_v0  ;;  %4108 = vmatprep.subr.bf16.mxu1 %v4107_v36  ;;  %v4121_v0 = vpack.c.bf16 %v1204_v31, %v1200_v26  ;;  %v1208_v36 = vld [vmem:[#allocation9 + $0x790] sm:$0xff]  ;;  %v4123_v37 = vpack.c.bf16 %v1213_v32, %v1209_v18  ;;  %v1234_v25 = vld [vmem:[#allocation9 + $0x860] sm:$0xff]  ;;  %v1243_v24 = vld [vmem:[#allocation9 + $0x8a8] sm:$0xff] }
 0x22a   :  { %v1232_v26 = vld [vmem:[#allocation9 + $0x850] sm:$0xff]  ;;  %v1241_v32 = vld [vmem:[#allocation9 + $0x898] sm:$0xff]  ;;  %v1247_v42 = vld [vmem:[#allocation9 + $0x8c8] sm:$0xff] }
 0x22b   :  { %v1236_v31 = vld [vmem:[#allocation9 + $0x870] sm:$0xff]  ;;  %v1259_v2 = vld [vmem:[#allocation9 + $0x928] sm:$0xff] }
 0x22c   :  { %3598 = vmatpush1.bf16.msra.mxu0 %v3597_v44  ;;  %4110 = vmatpush1.bf16.msra.mxu1 %v4109_v45  ;;  %v1221_v44 = vld [vmem:[#allocation9 + $0x7f8] sm:$0xff]  ;;  %v3613_v45 = vpack.c.bf16 %v1210_v35, %v1206_v34  ;;  %v3627_v34 = vpack.c.bf16 %v1243_v24, %v1239_v61  ;;  %v1238_v35 = vld [vmem:[#allocation9 + $0x880] sm:$0xff]  ;;  %v1244_v39 = vld [vmem:[#allocation9 + $0x8b0] sm:$0xff] }
 0x22d   :  { %3600 = vmatprep.subr.bf16.mxu0 %v3599_v46  ;;  %4112 = vmatprep.subr.bf16.mxu1 %v4111_v60  ;;  %v4125_v46 = vpack.c.bf16 %v1212_v38, %v1208_v36  ;;  %v1216_v60 = vld [vmem:[#allocation9 + $0x7d0] sm:$0xff]  ;;  %v4127_v63 = vpack.c.bf16 %v1221_v44, %v1217_v43  ;;  %v1242_v36 = vld [vmem:[#allocation9 + $0x8a0] sm:$0xff]  ;;  %v1251_v43 = vld [vmem:[#allocation9 + $0x8e8] sm:$0xff] }
 0x22e   :  { %v1249_v44 = vld [vmem:[#allocation9 + $0x8d8] sm:$0xff]  ;;  %v1256_v58 = vld [vmem:[#allocation9 + $0x910] sm:$0xff]  ;;  %v1271_v61 = vld [vmem:[#allocation9 + $0x988] sm:$0xff] }
 0x22f   :  { %v1275_v24 = vld [vmem:[#allocation9 + $0x9a8] sm:$0xff] }
 0x230   :  { %3602 = vmatpush1.bf16.msra.mxu0 %v3601_v7  ;;  %4114 = vmatpush1.bf16.msra.mxu1 %v4113_v8  ;;  %v1229_v7 = vld [vmem:[#allocation9 + $0x838] sm:$0xff]  ;;  %v3617_v8 = vpack.c.bf16 %v1218_v55, %v1214_v48  ;;  %v1246_v48 = vld [vmem:[#allocation9 + $0x8c0] sm:$0xff] }
 0x231   :  { %3604 = vmatprep.subr.bf16.mxu0 %v3603_v9  ;;  %4116 = vmatprep.subr.bf16.mxu1 %v4115_v12  ;;  %v4129_v9 = vpack.c.bf16 %v1220_v1, %v1216_v60  ;;  %v4131_v12 = vpack.c.bf16 %v1229_v7, %v1225_v6  ;;  %v1250_v55 = vld [vmem:[#allocation9 + $0x8e0] sm:$0xff]  ;;  %v1248_v60 = vld [vmem:[#allocation9 + $0x8d0] sm:$0xff]  ;;  %v1255_v1 = vld [vmem:[#allocation9 + $0x908] sm:$0xff] }
 0x232   :  { %v1261_v6 = vld [vmem:[#allocation9 + $0x938] sm:$0xff]  ;;  %v3633_v7 = vpack.c.bf16 %v1250_v55, %v1246_v48  ;;  %v1282_v48 = vld [vmem:[#allocation9 + $0x9e0] sm:$0xff]  ;;  %v1280_v55 = vld [vmem:[#allocation9 + $0x9d0] sm:$0xff] }
 0x234   :  { %3606 = vmatpush1.bf16.msra.mxu0 %v3605_v20  ;;  %4118 = vmatpush1.bf16.msra.mxu1 %v4117_v21  ;;  %v1233_v20 = vld [vmem:[#allocation9 + $0x858] sm:$0xff] }
 0x235   :  { %3608 = vmatprep.subr.bf16.mxu0 %v3607_v22  ;;  %4120 = vmatprep.subr.bf16.mxu1 %v4119_v30  ;;  %v1237_v21 = vld [vmem:[#allocation9 + $0x878] sm:$0xff]  ;;  %v4133_v22 = vpack.c.bf16 %v1228_v14, %v1224_v13  ;;  %v3623_v30 = vpack.c.bf16 %v1235_v17, %v1231_v59  ;;  %v1260_v13 = vld [vmem:[#allocation9 + $0x930] sm:$0xff]  ;;  %v1263_v14 = vld [vmem:[#allocation9 + $0x948] sm:$0xff] }
 0x236   :  { %v4135_v18 = vpack.c.bf16 %v1237_v21, %v1233_v20  ;;  %v1267_v59 = vld [vmem:[#allocation9 + $0x968] sm:$0xff]  ;;  %v1265_v17 = vld [vmem:[#allocation9 + $0x958] sm:$0xff]  ;;  %v4149_v21 = vpack.c.bf16 %v1260_v13, %v1256_v58 }
 0x237   :  { %v1295_v13 = vld [vmem:[#allocation9 + $0xa48] sm:$0xff] }
 0x238   :  { %3610 = vmatpush1.bf16.msra.mxu0 %v3609_v62  ;;  %4122 = vmatpush1.bf16.msra.mxu1 %v4121_v0  ;;  %v1245_v62 = vld [vmem:[#allocation9 + $0x8b8] sm:$0xff]  ;;  %v3625_v0 = vpack.c.bf16 %v1234_v25, %v1230_v23  ;;  %v1262_v23 = vld [vmem:[#allocation9 + $0x940] sm:$0xff] }
 0x239   :  { %3612 = vmatprep.subr.bf16.mxu0 %v3611_v33  ;;  %4124 = vmatprep.subr.bf16.mxu1 %v4123_v37  ;;  %v4137_v33 = vpack.c.bf16 %v1236_v31, %v1232_v26  ;;  %v1240_v37 = vld [vmem:[#allocation9 + $0x890] sm:$0xff]  ;;  %v4139_v38 = vpack.c.bf16 %v1245_v62, %v1241_v32  ;;  %v1266_v25 = vld [vmem:[#allocation9 + $0x960] sm:$0xff]  ;;  %v1277_v32 = vld [vmem:[#allocation9 + $0x9b8] sm:$0xff] }
 0x23a   :  { %v1264_v26 = vld [vmem:[#allocation9 + $0x950] sm:$0xff]  ;;  %v3641_v62 = vpack.c.bf16 %v1266_v25, %v1262_v23  ;;  %v1298_v23 = vld [vmem:[#allocation9 + $0xa60] sm:$0xff] }
 0x23b   :  { %v1268_v31 = vld [vmem:[#allocation9 + $0x970] sm:$0xff] }
 0x23c   :  { %3614 = vmatpush1.bf16.msra.mxu0 %v3613_v45  ;;  %4126 = vmatpush1.bf16.msra.mxu1 %v4125_v46  ;;  %v3629_v45 = vpack.c.bf16 %v1242_v36, %v1238_v35  ;;  %v4141_v46 = vpack.c.bf16 %v1244_v39, %v1240_v37  ;;  %v1274_v35 = vld [vmem:[#allocation9 + $0x9a0] sm:$0xff]  ;;  %v1272_v36 = vld [vmem:[#allocation9 + $0x990] sm:$0xff]  ;;  %v1279_v39 = vld [vmem:[#allocation9 + $0x9c8] sm:$0xff] }
 0x23d   :  { %3616 = vmatprep.subr.bf16.mxu0 %v3615_v47  ;;  %4128 = vmatprep.subr.bf16.mxu1 %v4127_v63  ;;  %v3631_v47 = vpack.c.bf16 %v1251_v43, %v1247_v42  ;;  %v1283_v42 = vld [vmem:[#allocation9 + $0x9e8] sm:$0xff]  ;;  %v1281_v43 = vld [vmem:[#allocation9 + $0x9d8] sm:$0xff]  ;;  %v1296_v25 = vld [vmem:[#allocation9 + $0xa50] sm:$0xff] }
 0x240   :  { %3618 = vmatpush1.bf16.msra.mxu0 %v3617_v8  ;;  %4130 = vmatpush1.bf16.msra.mxu1 %v4129_v9  ;;  %v3635_v9 = vpack.c.bf16 %v1259_v2, %v1255_v1  ;;  %v1291_v1 = vld [vmem:[#allocation9 + $0xa28] sm:$0xff]  ;;  %v1289_v2 = vld [vmem:[#allocation9 + $0xa18] sm:$0xff] }
 0x241   :  { %3620 = vmatprep.subr.bf16.mxu0 %v3619_v10  ;;  %4132 = vmatprep.subr.bf16.mxu1 %v4131_v12  ;;  %v1254_v10 = vld [vmem:[#allocation9 + $0x900] sm:$0xff]  ;;  %v4147_v12 = vpack.c.bf16 %v1261_v6, %v1257_v5  ;;  %v1293_v5 = vld [vmem:[#allocation9 + $0xa38] sm:$0xff] }
 0x242   :  { %v3637_v20 = vpack.c.bf16 %v1258_v11, %v1254_v10  ;;  %v1290_v10 = vld [vmem:[#allocation9 + $0xa20] sm:$0xff]  ;;  %v1288_v11 = vld [vmem:[#allocation9 + $0xa10] sm:$0xff]  ;;  %v4163_v58 = vpack.c.bf16 %v1293_v5, %v1289_v2  ;;  %v1325_v2 = vld [vmem:[#allocation9 + $0xb38] sm:$0xff] }
 0x243   :  { %2148 = vmatmul.mubr.f32.vlgmr.msra.gmra.mrb[8].mxu0 %v5096_v27  ;;  %2716 = vmatmul.mubr.f32.vlgmr.msra.gmra.mrb[8].mxu1 %v5096_v27  ;;  %v1253_v27 = vld [vmem:[#allocation9 + $0x8f8] sm:$0xff] }
 0x244   :  { %3622 = vmatpush1.bf16.msra.mxu0 %v3621_v19  ;;  %2218 = vmatprep.mubr.f32.mxu0 %v5136_v3  ;;  %v4143_v63 = vpack.c.bf16 %v1253_v27, %v1249_v44  ;;  %v1269_v19 = vld [vmem:[#allocation9 + $0x978] sm:$0xff] }
 0x245   :  { %4134 = vmatpush1.bf16.msra.mxu1 %v4133_v22  ;;  %2786 = vmatprep.mubr.f32.mxu1 %v5136_v3  ;;  %v1252_v3 = vld [vmem:[#allocation9 + $0x8f0] sm:$0xff]  ;;  %v3639_v22 = vpack.c.bf16 %v1267_v59, %v1263_v14  ;;  %v1285_v44 = vld [vmem:[#allocation9 + $0x9f8] sm:$0xff]  ;;  %v1299_v14 = vld [vmem:[#allocation9 + $0xa68] sm:$0xff] }
 0x246   :  { %3624 = vmatprep.subr.bf16.mxu0 %v3623_v30  ;;  %4136 = vmatprep.subr.bf16.mxu1 %v4135_v18  ;;  %v4145_v8 = vpack.c.bf16 %v1252_v3, %v1248_v60  ;;  %v4151_v30 = vpack.c.bf16 %v1269_v19, %v1265_v17  ;;  %v1273_v18 = vld [vmem:[#allocation9 + $0x998] sm:$0xff]  ;;  %v4159_v60 = vpack.c.bf16 %v1285_v44, %v1281_v43  ;;  %v1287_v3 = vld [vmem:[#allocation9 + $0xa08] sm:$0xff] }
 0x247   :  { %v4155_v37 = vpack.c.bf16 %v1277_v32, %v1273_v18  ;;  %v1297_v59 = vld [vmem:[#allocation9 + $0xa58] sm:$0xff] }
 0x248   :  { %3626 = vmatpush1.bf16.msra.mxu0 %v3625_v0  ;;  %v4153_v0 = vpack.c.bf16 %v1268_v31, %v1264_v26  ;;  %v1301_v17 = vld [vmem:[#allocation9 + $0xa78] sm:$0xff]  ;;  %v1303_v31 = vld [vmem:[#allocation9 + $0xa88] sm:$0xff] }
 0x249   :  { %4138 = vmatpush1.bf16.msra.mxu1 %v4137_v33  ;;  %3628 = vmatprep.subr.bf16.mxu0 %v3627_v34  ;;  %v3643_v33 = vpack.c.bf16 %v1275_v24, %v1271_v61  ;;  %v1270_v34 = vld [vmem:[#allocation9 + $0x980] sm:$0xff]  ;;  %v4167_v26 = vpack.c.bf16 %v1301_v17, %v1297_v59  ;;  %v1307_v61 = vld [vmem:[#allocation9 + $0xaa8] sm:$0xff]  ;;  %v1305_v24 = vld [vmem:[#allocation9 + $0xa98] sm:$0xff] }
 0x24a   :  { %4140 = vmatprep.subr.bf16.mxu1 %v4139_v38  ;;  %v1276_v38 = vld [vmem:[#allocation9 + $0x9b0] sm:$0xff]  ;;  %v3645_v27 = vpack.c.bf16 %v1274_v35, %v1270_v34  ;;  %v1309_v18 = vld [vmem:[#allocation9 + $0xab8] sm:$0xff]  ;;  %v1306_v34 = vld [vmem:[#allocation9 + $0xaa0] sm:$0xff] }
 0x24b   :  { %v1304_v35 = vld [vmem:[#allocation9 + $0xa90] sm:$0xff]  ;;  %v1317_v43 = vld [vmem:[#allocation9 + $0xaf8] sm:$0xff] }
 0x24c   :  { %3630 = vmatpush1.bf16.msra.mxu0 %v3629_v45  ;;  %v4157_v45 = vpack.c.bf16 %v1276_v38, %v1272_v36  ;;  %v4171_v36 = vpack.c.bf16 %v1309_v18, %v1305_v24  ;;  %v1311_v38 = vld [vmem:[#allocation9 + $0xac8] sm:$0xff]  ;;  %v1333_v59 = vld [vmem:[#allocation9 + $0xb78] sm:$0xff] }
 0x24d   :  { %4142 = vmatpush1.bf16.msra.mxu1 %v4141_v46  ;;  %3632 = vmatprep.subr.bf16.mxu0 %v3631_v47  ;;  %v3647_v46 = vpack.c.bf16 %v1283_v42, %v1279_v39  ;;  %v1278_v47 = vld [vmem:[#allocation9 + $0x9c0] sm:$0xff]  ;;  %v1315_v39 = vld [vmem:[#allocation9 + $0xae8] sm:$0xff]  ;;  %v1313_v42 = vld [vmem:[#allocation9 + $0xad8] sm:$0xff] }
 0x24e   :  { %4144 = vmatprep.subr.bf16.mxu1 %v4143_v63  ;;  %v1284_v63 = vld [vmem:[#allocation9 + $0x9f0] sm:$0xff]  ;;  %v3649_v6 = vpack.c.bf16 %v1282_v48, %v1278_v47  ;;  %v1314_v47 = vld [vmem:[#allocation9 + $0xae0] sm:$0xff]  ;;  %v1341_v24 = vld [vmem:[#allocation9 + $0xbb8] sm:$0xff] }
 0x24f   :  { %v1312_v48 = vld [vmem:[#allocation9 + $0xad0] sm:$0xff] }
 0x250   :  { %3634 = vmatpush1.bf16.msra.mxu0 %v3633_v7  ;;  %v4161_v7 = vpack.c.bf16 %v1284_v63, %v1280_v55  ;;  %v4175_v55 = vpack.c.bf16 %v1317_v43, %v1313_v42  ;;  %v1319_v63 = vld [vmem:[#allocation9 + $0xb08] sm:$0xff]  ;;  %v1349_v42 = vld [vmem:[#allocation9 + $0xbf8] sm:$0xff] }
 0x251   :  { %4146 = vmatpush1.bf16.msra.mxu1 %v4145_v8  ;;  %3636 = vmatprep.subr.bf16.mxu0 %v3635_v9  ;;  %v3651_v8 = vpack.c.bf16 %v1291_v1, %v1287_v3  ;;  %v1286_v9 = vld [vmem:[#allocation9 + $0xa00] sm:$0xff]  ;;  %v1323_v3 = vld [vmem:[#allocation9 + $0xb28] sm:$0xff]  ;;  %v1321_v1 = vld [vmem:[#allocation9 + $0xb18] sm:$0xff] }
 0x252   :  { %4148 = vmatprep.subr.bf16.mxu1 %v4147_v12  ;;  %v1292_v12 = vld [vmem:[#allocation9 + $0xa30] sm:$0xff]  ;;  %v3653_v19 = vpack.c.bf16 %v1290_v10, %v1286_v9  ;;  %v1322_v9 = vld [vmem:[#allocation9 + $0xb20] sm:$0xff] }
 0x253   :  { %v1320_v10 = vld [vmem:[#allocation9 + $0xb10] sm:$0xff] }
 0x254   :  { %3638 = vmatpush1.bf16.msra.mxu0 %v3637_v20  ;;  %v4165_v20 = vpack.c.bf16 %v1292_v12, %v1288_v11  ;;  %v4179_v11 = vpack.c.bf16 %v1325_v2, %v1321_v1  ;;  %v1327_v12 = vld [vmem:[#allocation9 + $0xb48] sm:$0xff]  ;;  %v1357_v1 = vld [vmem:[#allocation9 + $0xc38] sm:$0xff] }
 0x255   :  { %4150 = vmatpush1.bf16.msra.mxu1 %v4149_v21  ;;  %3640 = vmatprep.subr.bf16.mxu0 %v3639_v22  ;;  %v3655_v21 = vpack.c.bf16 %v1299_v14, %v1295_v13  ;;  %v1294_v22 = vld [vmem:[#allocation9 + $0xa40] sm:$0xff]  ;;  %v1331_v13 = vld [vmem:[#allocation9 + $0xb68] sm:$0xff]  ;;  %v1329_v14 = vld [vmem:[#allocation9 + $0xb58] sm:$0xff] }
 0x256   :  { %4152 = vmatprep.subr.bf16.mxu1 %v4151_v30  ;;  %v1300_v30 = vld [vmem:[#allocation9 + $0xa70] sm:$0xff]  ;;  %v3657_v32 = vpack.c.bf16 %v1298_v23, %v1294_v22  ;;  %v1330_v22 = vld [vmem:[#allocation9 + $0xb60] sm:$0xff] }
 0x257   :  { %v1328_v23 = vld [vmem:[#allocation9 + $0xb50] sm:$0xff] }
 0x258   :  { %3642 = vmatpush1.bf16.msra.mxu0 %v3641_v62  ;;  %v4169_v62 = vpack.c.bf16 %v1300_v30, %v1296_v25  ;;  %v4183_v25 = vpack.c.bf16 %v1333_v59, %v1329_v14  ;;  %v1335_v30 = vld [vmem:[#allocation9 + $0xb88] sm:$0xff]  ;;  %v1361_v14 = vld [vmem:[#allocation9 + $0xc58] sm:$0xff] }
 0x259   :  { %4154 = vmatpush1.bf16.msra.mxu1 %v4153_v0  ;;  %3644 = vmatprep.subr.bf16.mxu0 %v3643_v33  ;;  %v3659_v0 = vpack.c.bf16 %v1307_v61, %v1303_v31  ;;  %v1302_v33 = vld [vmem:[#allocation9 + $0xa80] sm:$0xff]  ;;  %v1339_v31 = vld [vmem:[#allocation9 + $0xba8] sm:$0xff]  ;;  %v1337_v61 = vld [vmem:[#allocation9 + $0xb98] sm:$0xff] }
 0x25a   :  { %4156 = vmatprep.subr.bf16.mxu1 %v4155_v37  ;;  %v1308_v37 = vld [vmem:[#allocation9 + $0xab0] sm:$0xff]  ;;  %v3661_v44 = vpack.c.bf16 %v1306_v34, %v1302_v33  ;;  %v1338_v33 = vld [vmem:[#allocation9 + $0xba0] sm:$0xff]  ;;  %v1365_v59 = vld [vmem:[#allocation9 + $0xc78] sm:$0xff] }
 0x25b   :  { %v1336_v34 = vld [vmem:[#allocation9 + $0xb90] sm:$0xff] }
 0x25c   :  { %3646 = vmatpush1.bf16.msra.mxu0 %v3645_v27  ;;  %v4173_v27 = vpack.c.bf16 %v1308_v37, %v1304_v35  ;;  %v4187_v35 = vpack.c.bf16 %v1341_v24, %v1337_v61  ;;  %v1343_v37 = vld [vmem:[#allocation9 + $0xbc8] sm:$0xff]  ;;  %v1373_v61 = vld [vmem:[#allocation9 + $0xcb8] sm:$0xff] }
 0x25d   :  { %4158 = vmatpush1.bf16.msra.mxu1 %v4157_v45  ;;  %3648 = vmatprep.subr.bf16.mxu0 %v3647_v46  ;;  %v3663_v45 = vpack.c.bf16 %v1315_v39, %v1311_v38  ;;  %v1310_v46 = vld [vmem:[#allocation9 + $0xac0] sm:$0xff]  ;;  %v1347_v38 = vld [vmem:[#allocation9 + $0xbe8] sm:$0xff]  ;;  %v1345_v39 = vld [vmem:[#allocation9 + $0xbd8] sm:$0xff] }
 0x25e   :  { %4160 = vmatprep.subr.bf16.mxu1 %v4159_v60  ;;  %v1316_v60 = vld [vmem:[#allocation9 + $0xaf0] sm:$0xff]  ;;  %v3665_v5 = vpack.c.bf16 %v1314_v47, %v1310_v46  ;;  %v1346_v46 = vld [vmem:[#allocation9 + $0xbe0] sm:$0xff] }
 0x25f   :  { %v1344_v47 = vld [vmem:[#allocation9 + $0xbd0] sm:$0xff] }
 0x260   :  { %3650 = vmatpush1.bf16.msra.mxu0 %v3649_v6  ;;  %v4177_v6 = vpack.c.bf16 %v1316_v60, %v1312_v48  ;;  %v4191_v48 = vpack.c.bf16 %v1349_v42, %v1345_v39  ;;  %v1351_v60 = vld [vmem:[#allocation9 + $0xc08] sm:$0xff] }
 0x261   :  { %4162 = vmatpush1.bf16.msra.mxu1 %v4161_v7  ;;  %3652 = vmatprep.subr.bf16.mxu0 %v3651_v8  ;;  %v3667_v7 = vpack.c.bf16 %v1323_v3, %v1319_v63  ;;  %v1318_v8 = vld [vmem:[#allocation9 + $0xb00] sm:$0xff]  ;;  %v1355_v63 = vld [vmem:[#allocation9 + $0xc28] sm:$0xff]  ;;  %v1353_v3 = vld [vmem:[#allocation9 + $0xc18] sm:$0xff] }
 0x262   :  { %4164 = vmatprep.subr.bf16.mxu1 %v4163_v58  ;;  %v1324_v58 = vld [vmem:[#allocation9 + $0xb30] sm:$0xff]  ;;  %v3669_v17 = vpack.c.bf16 %v1322_v9, %v1318_v8  ;;  %v1354_v8 = vld [vmem:[#allocation9 + $0xc20] sm:$0xff]  ;;  %v4195_v9 = vpack.c.bf16 %v1357_v1, %v1353_v3 }
 0x264   :  { %3654 = vmatpush1.bf16.msra.mxu0 %v3653_v19  ;;  %v4181_v19 = vpack.c.bf16 %v1324_v58, %v1320_v10  ;;  %v1352_v10 = vld [vmem:[#allocation9 + $0xc10] sm:$0xff]  ;;  %v1359_v58 = vld [vmem:[#allocation9 + $0xc48] sm:$0xff] }
 0x265   :  { %4166 = vmatpush1.bf16.msra.mxu1 %v4165_v20  ;;  %3656 = vmatprep.subr.bf16.mxu0 %v3655_v21  ;;  %v3671_v20 = vpack.c.bf16 %v1331_v13, %v1327_v12  ;;  %v1326_v21 = vld [vmem:[#allocation9 + $0xb40] sm:$0xff]  ;;  %v1363_v12 = vld [vmem:[#allocation9 + $0xc68] sm:$0xff] }
 0x266   :  { %4168 = vmatprep.subr.bf16.mxu1 %v4167_v26  ;;  %v1332_v26 = vld [vmem:[#allocation9 + $0xb70] sm:$0xff]  ;;  %v3673_v18 = vpack.c.bf16 %v1330_v22, %v1326_v21  ;;  %v3687_v22 = vpack.c.bf16 %v1363_v12, %v1359_v58  ;;  %v1397_v58 = vld [vmem:[#allocation9 + $0xd78] sm:$0xff] }
 0x267   :  { %v1360_v21 = vld [vmem:[#allocation9 + $0xc50] sm:$0xff] }
 0x268   :  { %3658 = vmatpush1.bf16.msra.mxu0 %v3657_v32  ;;  %v4185_v32 = vpack.c.bf16 %v1332_v26, %v1328_v23  ;;  %v1364_v23 = vld [vmem:[#allocation9 + $0xc70] sm:$0xff]  ;;  %v1371_v26 = vld [vmem:[#allocation9 + $0xca8] sm:$0xff] }
 0x269   :  { %4170 = vmatpush1.bf16.msra.mxu1 %v4169_v62  ;;  %3660 = vmatprep.subr.bf16.mxu0 %v3659_v0  ;;  %v3675_v62 = vpack.c.bf16 %v1339_v31, %v1335_v30  ;;  %v1334_v0 = vld [vmem:[#allocation9 + $0xb80] sm:$0xff]  ;;  %v4199_v30 = vpack.c.bf16 %v1365_v59, %v1361_v14  ;;  %v1369_v31 = vld [vmem:[#allocation9 + $0xc98] sm:$0xff] }
 0x26a   :  { %4172 = vmatprep.subr.bf16.mxu1 %v4171_v36  ;;  %v1340_v36 = vld [vmem:[#allocation9 + $0xbb0] sm:$0xff]  ;;  %v3677_v43 = vpack.c.bf16 %v1338_v33, %v1334_v0  ;;  %v1370_v0 = vld [vmem:[#allocation9 + $0xca0] sm:$0xff] }
 0x26b   :  { %v1368_v33 = vld [vmem:[#allocation9 + $0xc90] sm:$0xff]  ;;  %v1390_v59 = vld [vmem:[#allocation9 + $0xd40] sm:$0xff] }
 0x26c   :  { %3662 = vmatpush1.bf16.msra.mxu0 %v3661_v44  ;;  %v4189_v44 = vpack.c.bf16 %v1340_v36, %v1336_v34  ;;  %v4203_v34 = vpack.c.bf16 %v1373_v61, %v1369_v31  ;;  %v1375_v36 = vld [vmem:[#allocation9 + $0xcc8] sm:$0xff] }
 0x26d   :  { %4174 = vmatpush1.bf16.msra.mxu1 %v4173_v27  ;;  %3664 = vmatprep.subr.bf16.mxu0 %v3663_v45  ;;  %v3679_v27 = vpack.c.bf16 %v1347_v38, %v1343_v37  ;;  %v1342_v45 = vld [vmem:[#allocation9 + $0xbc0] sm:$0xff]  ;;  %v1379_v37 = vld [vmem:[#allocation9 + $0xce8] sm:$0xff]  ;;  %v1377_v38 = vld [vmem:[#allocation9 + $0xcd8] sm:$0xff] }
 0x26e   :  { %4176 = vmatprep.subr.bf16.mxu1 %v4175_v55  ;;  %v1348_v55 = vld [vmem:[#allocation9 + $0xbf0] sm:$0xff]  ;;  %v3681_v2 = vpack.c.bf16 %v1346_v46, %v1342_v45 }
 0x26f   :  { %v1376_v45 = vld [vmem:[#allocation9 + $0xcd0] sm:$0xff] }
 0x270   :  { %3666 = vmatpush1.bf16.msra.mxu0 %v3665_v5  ;;  %v4193_v5 = vpack.c.bf16 %v1348_v55, %v1344_v47  ;;  %v1383_v47 = vld [vmem:[#allocation9 + $0xd08] sm:$0xff]  ;;  %v1385_v55 = vld [vmem:[#allocation9 + $0xd18] sm:$0xff] }
 0x271   :  { %4178 = vmatpush1.bf16.msra.mxu1 %v4177_v6  ;;  %3668 = vmatprep.subr.bf16.mxu0 %v3667_v7  ;;  %v3683_v6 = vpack.c.bf16 %v1355_v63, %v1351_v60  ;;  %v1350_v7 = vld [vmem:[#allocation9 + $0xc00] sm:$0xff]  ;;  %v1389_v60 = vld [vmem:[#allocation9 + $0xd38] sm:$0xff] }
 0x272   :  { %4180 = vmatprep.subr.bf16.mxu1 %v4179_v11  ;;  %v1356_v11 = vld [vmem:[#allocation9 + $0xc30] sm:$0xff]  ;;  %v3685_v13 = vpack.c.bf16 %v1354_v8, %v1350_v7  ;;  %v4211_v7 = vpack.c.bf16 %v1389_v60, %v1385_v55 }
 0x273   :  { %v1388_v8 = vld [vmem:[#allocation9 + $0xd30] sm:$0xff] }
 0x274   :  { %3670 = vmatpush1.bf16.msra.mxu0 %v3669_v17  ;;  %v4197_v17 = vpack.c.bf16 %v1356_v11, %v1352_v10  ;;  %v1395_v10 = vld [vmem:[#allocation9 + $0xd68] sm:$0xff]  ;;  %v1393_v11 = vld [vmem:[#allocation9 + $0xd58] sm:$0xff] }
 0x275   :  { %4182 = vmatpush1.bf16.msra.mxu1 %v4181_v19  ;;  %3672 = vmatprep.subr.bf16.mxu0 %v3671_v20  ;;  %v1358_v19 = vld [vmem:[#allocation9 + $0xc40] sm:$0xff] }
 0x276   :  { %4184 = vmatprep.subr.bf16.mxu1 %v4183_v25  ;;  %v1362_v20 = vld [vmem:[#allocation9 + $0xc60] sm:$0xff]  ;;  %v1367_v25 = vld [vmem:[#allocation9 + $0xc88] sm:$0xff] }
 0x277   :  { %v3689_v24 = vpack.c.bf16 %v1362_v20, %v1358_v19  ;;  %v1392_v19 = vld [vmem:[#allocation9 + $0xd50] sm:$0xff]  ;;  %v4215_v20 = vpack.c.bf16 %v1397_v58, %v1393_v11 }
 0x278   :  { %3674 = vmatpush1.bf16.msra.mxu0 %v3673_v18  ;;  %v4201_v18 = vpack.c.bf16 %v1364_v23, %v1360_v21  ;;  %v1396_v21 = vld [vmem:[#allocation9 + $0xd70] sm:$0xff]  ;;  %v1403_v23 = vld [vmem:[#allocation9 + $0xda8] sm:$0xff] }
 0x279   :  { %4186 = vmatpush1.bf16.msra.mxu1 %v4185_v32  ;;  %3676 = vmatprep.subr.bf16.mxu0 %v3675_v62  ;;  %v3691_v32 = vpack.c.bf16 %v1371_v26, %v1367_v25  ;;  %v1366_v62 = vld [vmem:[#allocation9 + $0xc80] sm:$0xff]  ;;  %v1401_v25 = vld [vmem:[#allocation9 + $0xd98] sm:$0xff]  ;;  %v4217_v31 = vpack.c.bf16 %v1396_v21, %v1392_v19  ;;  %v1431_v19 = vld [vmem:[#allocation9 + $0xe88] sm:$0xff] }
 0x27a   :  { %4188 = vmatprep.subr.bf16.mxu1 %v4187_v35  ;;  %v1372_v35 = vld [vmem:[#allocation9 + $0xcb0] sm:$0xff]  ;;  %v3693_v39 = vpack.c.bf16 %v1370_v0, %v1366_v62  ;;  %v1405_v26 = vld [vmem:[#allocation9 + $0xdb8] sm:$0xff] }
 0x27b   :  { %v4205_v42 = vpack.c.bf16 %v1372_v35, %v1368_v33  ;;  %v4219_v62 = vpack.c.bf16 %v1405_v26, %v1401_v25  ;;  %v1404_v0 = vld [vmem:[#allocation9 + $0xdb0] sm:$0xff]  ;;  %v1407_v33 = vld [vmem:[#allocation9 + $0xdc8] sm:$0xff]  ;;  %v1409_v35 = vld [vmem:[#allocation9 + $0xdd8] sm:$0xff] }
 0x27c   :  { %3678 = vmatpush1.bf16.msra.mxu0 %v3677_v43  ;;  %v3695_v43 = vpack.c.bf16 %v1379_v37, %v1375_v36  ;;  %v1413_v36 = vld [vmem:[#allocation9 + $0xdf8] sm:$0xff] }
 0x27d   :  { %4190 = vmatpush1.bf16.msra.mxu1 %v4189_v44  ;;  %3680 = vmatprep.subr.bf16.mxu0 %v3679_v27  ;;  %v1374_v44 = vld [vmem:[#allocation9 + $0xcc0] sm:$0xff]  ;;  %v1433_v21 = vld [vmem:[#allocation9 + $0xe98] sm:$0xff] }
 0x27e   :  { %4192 = vmatprep.subr.bf16.mxu1 %v4191_v48  ;;  %v1378_v27 = vld [vmem:[#allocation9 + $0xce0] sm:$0xff]  ;;  %v1387_v48 = vld [vmem:[#allocation9 + $0xd28] sm:$0xff] }
 0x27f   :  { %v3697_v63 = vpack.c.bf16 %v1378_v27, %v1374_v44  ;;  %v3699_v1 = vpack.c.bf16 %v1387_v48, %v1383_v47  ;;  %v4223_v44 = vpack.c.bf16 %v1413_v36, %v1409_v35  ;;  %v1412_v27 = vld [vmem:[#allocation9 + $0xdf0] sm:$0xff]  ;;  %v1421_v47 = vld [vmem:[#allocation9 + $0xe38] sm:$0xff] }
 0x280   :  { %3682 = vmatpush1.bf16.msra.mxu0 %v3681_v2  ;;  %v1382_v2 = vld [vmem:[#allocation9 + $0xd00] sm:$0xff] }
 0x281   :  { %4194 = vmatpush1.bf16.msra.mxu1 %v4193_v5  ;;  %3684 = vmatprep.subr.bf16.mxu0 %v3683_v6  ;;  %v1386_v5 = vld [vmem:[#allocation9 + $0xd20] sm:$0xff]  ;;  %v1384_v6 = vld [vmem:[#allocation9 + $0xd10] sm:$0xff] }
 0x282   :  { %4196 = vmatprep.subr.bf16.mxu1 %v4195_v9  ;;  %v1391_v9 = vld [vmem:[#allocation9 + $0xd48] sm:$0xff]  ;;  %v3701_v12 = vpack.c.bf16 %v1386_v5, %v1382_v2  ;;  %v1420_v5 = vld [vmem:[#allocation9 + $0xe30] sm:$0xff] }
 0x283   :  { %2219 = vmatmul.mubr.f32.vlgmr.msra.gmra.mrb[8].mxu0 %v5127_v51  ;;  %v3703_v14 = vpack.c.bf16 %v1395_v10, %v1391_v9  ;;  %v1429_v9 = vld [vmem:[#allocation9 + $0xe78] sm:$0xff] }
 0x284   :  { %2787 = vmatmul.mubr.f32.vlgmr.msra.gmra.mrb[8].mxu1 %v5127_v51  ;;  %3686 = vmatpush1.bf16.msra.mxu0 %v3685_v13  ;;  %v1381_v51 = vld [vmem:[#allocation9 + $0xcf8] sm:$0xff]  ;;  %v4213_v13 = vpack.c.bf16 %v1388_v8, %v1384_v6  ;;  %v1423_v6 = vld [vmem:[#allocation9 + $0xe48] sm:$0xff] }
 0x285   :  { %2289 = vmatprep.mubr.f32.mxu0 %v5138_v4  ;;  %4198 = vmatpush1.bf16.msra.mxu1 %v4197_v17  ;;  %v4207_v46 = vpack.c.bf16 %v1381_v51, %v1377_v38  ;;  %v1394_v17 = vld [vmem:[#allocation9 + $0xd60] sm:$0xff]  ;;  %v1425_v8 = vld [vmem:[#allocation9 + $0xe58] sm:$0xff] }
 0x286   :  { %2857 = vmatprep.mubr.f32.mxu1 %v5138_v4  ;;  %3688 = vmatprep.subr.bf16.mxu0 %v3687_v22  ;;  %v1380_v4 = vld [vmem:[#allocation9 + $0xcf0] sm:$0xff]  ;;  %v1399_v22 = vld [vmem:[#allocation9 + $0xd88] sm:$0xff] }
 0x287   :  { %4200 = vmatprep.subr.bf16.mxu1 %v4199_v30  ;;  %v4209_v3 = vpack.c.bf16 %v1380_v4, %v1376_v45  ;;  %v3705_v30 = vpack.c.bf16 %v1394_v17, %v1390_v59  ;;  %v3707_v61 = vpack.c.bf16 %v1403_v23, %v1399_v22  ;;  %v1415_v45 = vld [vmem:[#allocation9 + $0xe08] sm:$0xff]  ;;  %v1417_v4 = vld [vmem:[#allocation9 + $0xe18] sm:$0xff]  ;;  %v4231_v59 = vpack.c.bf16 %v1429_v9, %v1425_v8  ;;  %v1428_v17 = vld [vmem:[#allocation9 + $0xe70] sm:$0xff] }
 0x288   :  { %3690 = vmatpush1.bf16.msra.mxu0 %v3689_v24  ;;  %v1398_v24 = vld [vmem:[#allocation9 + $0xd80] sm:$0xff]  ;;  %v4227_v2 = vpack.c.bf16 %v1421_v47, %v1417_v4  ;;  %v1437_v22 = vld [vmem:[#allocation9 + $0xeb8] sm:$0xff] }
 0x289   :  { %4202 = vmatpush1.bf16.msra.mxu1 %v4201_v18  ;;  %3692 = vmatprep.subr.bf16.mxu0 %v3691_v32  ;;  %v1402_v18 = vld [vmem:[#allocation9 + $0xda0] sm:$0xff]  ;;  %v1400_v32 = vld [vmem:[#allocation9 + $0xd90] sm:$0xff] }
 0x28a   :  { %4204 = vmatprep.subr.bf16.mxu1 %v4203_v34  ;;  %v1411_v34 = vld [vmem:[#allocation9 + $0xde8] sm:$0xff]  ;;  %v3709_v37 = vpack.c.bf16 %v1402_v18, %v1398_v24  ;;  %v4221_v38 = vpack.c.bf16 %v1404_v0, %v1400_v32  ;;  %v4235_v24 = vpack.c.bf16 %v1437_v22, %v1433_v21  ;;  %v1436_v18 = vld [vmem:[#allocation9 + $0xeb0] sm:$0xff]  ;;  %v1441_v0 = vld [vmem:[#allocation9 + $0xed8] sm:$0xff] }
 0x28b   :  { %v3711_v51 = vpack.c.bf16 %v1411_v34, %v1407_v33  ;;  %v1439_v32 = vld [vmem:[#allocation9 + $0xec8] sm:$0xff]  ;;  %v1445_v33 = vld [vmem:[#allocation9 + $0xef8] sm:$0xff] }
 0x28c   :  { %3694 = vmatpush1.bf16.msra.mxu0 %v3693_v39  ;;  %v1406_v39 = vld [vmem:[#allocation9 + $0xdc0] sm:$0xff] }
 0x28d   :  { %4206 = vmatpush1.bf16.msra.mxu1 %v4205_v42  ;;  %3696 = vmatprep.subr.bf16.mxu0 %v3695_v43  ;;  %v1410_v42 = vld [vmem:[#allocation9 + $0xde0] sm:$0xff]  ;;  %v1408_v43 = vld [vmem:[#allocation9 + $0xdd0] sm:$0xff] }
 0x28e   :  { %4208 = vmatprep.subr.bf16.mxu1 %v4207_v46  ;;  %v1419_v46 = vld [vmem:[#allocation9 + $0xe28] sm:$0xff]  ;;  %v3713_v48 = vpack.c.bf16 %v1410_v42, %v1406_v39  ;;  %v4225_v55 = vpack.c.bf16 %v1412_v27, %v1408_v43  ;;  %v4239_v39 = vpack.c.bf16 %v1445_v33, %v1441_v0  ;;  %v1444_v42 = vld [vmem:[#allocation9 + $0xef0] sm:$0xff]  ;;  %v1449_v27 = vld [vmem:[#allocation9 + $0xf18] sm:$0xff] }
 0x28f   :  { %v3715_v60 = vpack.c.bf16 %v1419_v46, %v1415_v45  ;;  %v1447_v43 = vld [vmem:[#allocation9 + $0xf08] sm:$0xff]  ;;  %v1453_v45 = vld [vmem:[#allocation9 + $0xf38] sm:$0xff] }
 0x290   :  { %3698 = vmatpush1.bf16.msra.mxu0 %v3697_v63  ;;  %v1414_v63 = vld [vmem:[#allocation9 + $0xe00] sm:$0xff] }
 0x291   :  { %4210 = vmatpush1.bf16.msra.mxu1 %v4209_v3  ;;  %3700 = vmatprep.subr.bf16.mxu0 %v3699_v1  ;;  %v1418_v3 = vld [vmem:[#allocation9 + $0xe20] sm:$0xff]  ;;  %v1416_v1 = vld [vmem:[#allocation9 + $0xe10] sm:$0xff] }
 0x292   :  { %4212 = vmatprep.subr.bf16.mxu1 %v4211_v7  ;;  %v1427_v7 = vld [vmem:[#allocation9 + $0xe68] sm:$0xff]  ;;  %v3717_v10 = vpack.c.bf16 %v1418_v3, %v1414_v63  ;;  %v4229_v11 = vpack.c.bf16 %v1420_v5, %v1416_v1  ;;  %v4243_v63 = vpack.c.bf16 %v1453_v45, %v1449_v27  ;;  %v1452_v3 = vld [vmem:[#allocation9 + $0xf30] sm:$0xff]  ;;  %v1457_v5 = vld [vmem:[#allocation9 + $0xf58] sm:$0xff] }
 0x293   :  { %v3719_v58 = vpack.c.bf16 %v1427_v7, %v1423_v6  ;;  %v1455_v1 = vld [vmem:[#allocation9 + $0xf48] sm:$0xff]  ;;  %v1461_v6 = vld [vmem:[#allocation9 + $0xf78] sm:$0xff] }
 0x294   :  { %3702 = vmatpush1.bf16.msra.mxu0 %v3701_v12  ;;  %v1422_v12 = vld [vmem:[#allocation9 + $0xe40] sm:$0xff] }
 0x295   :  { %4214 = vmatpush1.bf16.msra.mxu1 %v4213_v13  ;;  %3704 = vmatprep.subr.bf16.mxu0 %v3703_v14  ;;  %v1426_v13 = vld [vmem:[#allocation9 + $0xe60] sm:$0xff]  ;;  %v1424_v14 = vld [vmem:[#allocation9 + $0xe50] sm:$0xff] }
 0x296   :  { %4216 = vmatprep.subr.bf16.mxu1 %v4215_v20  ;;  %v1435_v20 = vld [vmem:[#allocation9 + $0xea8] sm:$0xff]  ;;  %v3721_v23 = vpack.c.bf16 %v1426_v13, %v1422_v12  ;;  %v4233_v25 = vpack.c.bf16 %v1428_v17, %v1424_v14  ;;  %v4247_v12 = vpack.c.bf16 %v1461_v6, %v1457_v5  ;;  %v1460_v13 = vld [vmem:[#allocation9 + $0xf70] sm:$0xff]  ;;  %v1465_v17 = vld [vmem:[#allocation9 + $0xf98] sm:$0xff] }
 0x297   :  { %v3723_v26 = vpack.c.bf16 %v1435_v20, %v1431_v19  ;;  %v1463_v14 = vld [vmem:[#allocation9 + $0xf88] sm:$0xff]  ;;  %v1469_v19 = vld [vmem:[#allocation9 + $0xfb8] sm:$0xff]  ;;  %v1486_v6 = vld [vmem:[#allocation9 + $0x1040] sm:$0xff] }
 0x298   :  { %3706 = vmatpush1.bf16.msra.mxu0 %v3705_v30  ;;  %v1430_v30 = vld [vmem:[#allocation9 + $0xe80] sm:$0xff] }
 0x299   :  { %4218 = vmatpush1.bf16.msra.mxu1 %v4217_v31  ;;  %3708 = vmatprep.subr.bf16.mxu0 %v3707_v61  ;;  %v1434_v31 = vld [vmem:[#allocation9 + $0xea0] sm:$0xff]  ;;  %v1432_v61 = vld [vmem:[#allocation9 + $0xe90] sm:$0xff] }
 0x29a   :  { %4220 = vmatprep.subr.bf16.mxu1 %v4219_v62  ;;  %v1443_v62 = vld [vmem:[#allocation9 + $0xee8] sm:$0xff]  ;;  %v3725_v34 = vpack.c.bf16 %v1434_v31, %v1430_v30  ;;  %v4237_v35 = vpack.c.bf16 %v1436_v18, %v1432_v61  ;;  %v4251_v30 = vpack.c.bf16 %v1469_v19, %v1465_v17  ;;  %v1468_v31 = vld [vmem:[#allocation9 + $0xfb0] sm:$0xff]  ;;  %v1473_v18 = vld [vmem:[#allocation9 + $0xfd8] sm:$0xff] }
 0x29b   :  { %v3727_v36 = vpack.c.bf16 %v1443_v62, %v1439_v32  ;;  %v1471_v61 = vld [vmem:[#allocation9 + $0xfc8] sm:$0xff]  ;;  %v1477_v32 = vld [vmem:[#allocation9 + $0xff8] sm:$0xff] }
 0x29c   :  { %3710 = vmatpush1.bf16.msra.mxu0 %v3709_v37  ;;  %v1438_v37 = vld [vmem:[#allocation9 + $0xec0] sm:$0xff] }
 0x29d   :  { %4222 = vmatpush1.bf16.msra.mxu1 %v4221_v38  ;;  %3712 = vmatprep.subr.bf16.mxu0 %v3711_v51  ;;  %v1442_v38 = vld [vmem:[#allocation9 + $0xee0] sm:$0xff]  ;;  %v1440_v51 = vld [vmem:[#allocation9 + $0xed0] sm:$0xff] }
 0x29e   :  { %4224 = vmatprep.subr.bf16.mxu1 %v4223_v44  ;;  %v1451_v44 = vld [vmem:[#allocation9 + $0xf28] sm:$0xff]  ;;  %v3729_v46 = vpack.c.bf16 %v1442_v38, %v1438_v37  ;;  %v4241_v4 = vpack.c.bf16 %v1444_v42, %v1440_v51  ;;  %v4255_v37 = vpack.c.bf16 %v1477_v32, %v1473_v18  ;;  %v1476_v38 = vld [vmem:[#allocation9 + $0xff0] sm:$0xff]  ;;  %v1481_v42 = vld [vmem:[#allocation9 + $0x1018] sm:$0xff] }
 0x29f   :  { %v3731_v47 = vpack.c.bf16 %v1451_v44, %v1447_v43  ;;  %v1479_v51 = vld [vmem:[#allocation9 + $0x1008] sm:$0xff]  ;;  %v1485_v43 = vld [vmem:[#allocation9 + $0x1038] sm:$0xff]  ;;  %v1502_v32 = vld [vmem:[#allocation9 + $0x10c0] sm:$0xff] }
 0x2a0   :  { %3714 = vmatpush1.bf16.msra.mxu0 %v3713_v48  ;;  %v1446_v48 = vld [vmem:[#allocation9 + $0xf00] sm:$0xff] }
 0x2a1   :  { %4226 = vmatpush1.bf16.msra.mxu1 %v4225_v55  ;;  %3716 = vmatprep.subr.bf16.mxu0 %v3715_v60  ;;  %v1450_v55 = vld [vmem:[#allocation9 + $0xf20] sm:$0xff]  ;;  %v1448_v60 = vld [vmem:[#allocation9 + $0xf10] sm:$0xff] }
 0x2a2   :  { %4228 = vmatprep.subr.bf16.mxu1 %v4227_v2  ;;  %v1459_v2 = vld [vmem:[#allocation9 + $0xf68] sm:$0xff]  ;;  %v3733_v7 = vpack.c.bf16 %v1450_v55, %v1446_v48  ;;  %v4245_v8 = vpack.c.bf16 %v1452_v3, %v1448_v60  ;;  %v1480_v48 = vld [vmem:[#allocation9 + $0x1010] sm:$0xff] }
 0x2a3   :  { %v3735_v9 = vpack.c.bf16 %v1459_v2, %v1455_v1  ;;  %v1484_v55 = vld [vmem:[#allocation9 + $0x1030] sm:$0xff]  ;;  %v1487_v60 = vld [vmem:[#allocation9 + $0x1048] sm:$0xff]  ;;  %v1489_v1 = vld [vmem:[#allocation9 + $0x1058] sm:$0xff] }
 0x2a4   :  { %3718 = vmatpush1.bf16.msra.mxu0 %v3717_v10  ;;  %v1454_v10 = vld [vmem:[#allocation9 + $0xf40] sm:$0xff]  ;;  %v1493_v2 = vld [vmem:[#allocation9 + $0x1078] sm:$0xff]  ;;  %v4261_v5 = vpack.c.bf16 %v1484_v55, %v1480_v48 }
 0x2a5   :  { %4230 = vmatpush1.bf16.msra.mxu1 %v4229_v11  ;;  %3720 = vmatprep.subr.bf16.mxu0 %v3719_v58  ;;  %v1458_v11 = vld [vmem:[#allocation9 + $0xf60] sm:$0xff]  ;;  %v1456_v58 = vld [vmem:[#allocation9 + $0xf50] sm:$0xff]  ;;  %v1525_v48 = vld [vmem:[#allocation9 + $0x1178] sm:$0xff] }
 0x2a6   :  { %4232 = vmatprep.subr.bf16.mxu1 %v4231_v59  ;;  %v1467_v59 = vld [vmem:[#allocation9 + $0xfa8] sm:$0xff]  ;;  %v3737_v20 = vpack.c.bf16 %v1458_v11, %v1454_v10  ;;  %v4249_v21 = vpack.c.bf16 %v1460_v13, %v1456_v58  ;;  %v1492_v10 = vld [vmem:[#allocation9 + $0x1070] sm:$0xff]  ;;  %v1497_v13 = vld [vmem:[#allocation9 + $0x1098] sm:$0xff] }
 0x2a7   :  { %v3739_v22 = vpack.c.bf16 %v1467_v59, %v1463_v14  ;;  %v1495_v11 = vld [vmem:[#allocation9 + $0x1088] sm:$0xff]  ;;  %v1501_v14 = vld [vmem:[#allocation9 + $0x10b8] sm:$0xff] }
 0x2a8   :  { %3722 = vmatpush1.bf16.msra.mxu0 %v3721_v23  ;;  %v1462_v23 = vld [vmem:[#allocation9 + $0xf80] sm:$0xff]  ;;  %v1499_v58 = vld [vmem:[#allocation9 + $0x10a8] sm:$0xff] }
 0x2a9   :  { %4234 = vmatpush1.bf16.msra.mxu1 %v4233_v25  ;;  %3724 = vmatprep.subr.bf16.mxu0 %v3723_v26  ;;  %v1466_v25 = vld [vmem:[#allocation9 + $0xfa0] sm:$0xff]  ;;  %v1464_v26 = vld [vmem:[#allocation9 + $0xf90] sm:$0xff]  ;;  %v3755_v19 = vpack.c.bf16 %v1499_v58, %v1495_v11 }
 0x2aa   :  { %4236 = vmatprep.subr.bf16.mxu1 %v4235_v24  ;;  %v1475_v24 = vld [vmem:[#allocation9 + $0xfe8] sm:$0xff]  ;;  %v3741_v62 = vpack.c.bf16 %v1466_v25, %v1462_v23  ;;  %v4253_v0 = vpack.c.bf16 %v1468_v31, %v1464_v26  ;;  %v4267_v23 = vpack.c.bf16 %v1501_v14, %v1497_v13  ;;  %v1500_v25 = vld [vmem:[#allocation9 + $0x10b0] sm:$0xff]  ;;  %v1505_v31 = vld [vmem:[#allocation9 + $0x10d8] sm:$0xff] }
 0x2ab   :  { %v3743_v33 = vpack.c.bf16 %v1475_v24, %v1471_v61  ;;  %v1503_v26 = vld [vmem:[#allocation9 + $0x10c8] sm:$0xff]  ;;  %v1526_v13 = vld [vmem:[#allocation9 + $0x1180] sm:$0xff] }
 0x2ac   :  { %3726 = vmatpush1.bf16.msra.mxu0 %v3725_v34  ;;  %v1470_v34 = vld [vmem:[#allocation9 + $0xfc0] sm:$0xff] }
 0x2ad   :  { %4238 = vmatpush1.bf16.msra.mxu1 %v4237_v35  ;;  %3728 = vmatprep.subr.bf16.mxu0 %v3727_v36  ;;  %v1474_v35 = vld [vmem:[#allocation9 + $0xfe0] sm:$0xff]  ;;  %v1472_v36 = vld [vmem:[#allocation9 + $0xfd0] sm:$0xff] }
 0x2ae   :  { %4240 = vmatprep.subr.bf16.mxu1 %v4239_v39  ;;  %v1483_v39 = vld [vmem:[#allocation9 + $0x1028] sm:$0xff]  ;;  %v3745_v44 = vpack.c.bf16 %v1474_v35, %v1470_v34  ;;  %v4257_v27 = vpack.c.bf16 %v1476_v38, %v1472_v36  ;;  %v1513_v36 = vld [vmem:[#allocation9 + $0x1118] sm:$0xff]  ;;  %v1530_v14 = vld [vmem:[#allocation9 + $0x11a0] sm:$0xff] }
 0x2af   :  { %v3747_v45 = vpack.c.bf16 %v1483_v39, %v1479_v51  ;;  %v1511_v34 = vld [vmem:[#allocation9 + $0x1108] sm:$0xff] }
 0x2b0   :  { %3730 = vmatpush1.bf16.msra.mxu0 %v3729_v46  ;;  %v1478_v46 = vld [vmem:[#allocation9 + $0x1000] sm:$0xff]  ;;  %v1515_v35 = vld [vmem:[#allocation9 + $0x1128] sm:$0xff] }
 0x2b1   :  { %4242 = vmatpush1.bf16.msra.mxu1 %v4241_v4  ;;  %3732 = vmatprep.subr.bf16.mxu0 %v3731_v47  ;;  %v1482_v4 = vld [vmem:[#allocation9 + $0x1020] sm:$0xff]  ;;  %v4259_v47 = vpack.c.bf16 %v1485_v43, %v1481_v42  ;;  %v3763_v39 = vpack.c.bf16 %v1515_v35, %v1511_v34 }
 0x2b2   :  { %4244 = vmatprep.subr.bf16.mxu1 %v4243_v63  ;;  %v1491_v63 = vld [vmem:[#allocation9 + $0x1068] sm:$0xff]  ;;  %v3749_v3 = vpack.c.bf16 %v1482_v4, %v1478_v46  ;;  %v1510_v42 = vld [vmem:[#allocation9 + $0x1100] sm:$0xff] }
 0x2b3   :  { %v1514_v43 = vld [vmem:[#allocation9 + $0x1120] sm:$0xff]  ;;  %v1519_v46 = vld [vmem:[#allocation9 + $0x1148] sm:$0xff] }
 0x2b4   :  { %3734 = vmatpush1.bf16.msra.mxu0 %v3733_v7  ;;  %v1490_v7 = vld [vmem:[#allocation9 + $0x1060] sm:$0xff]  ;;  %v1523_v4 = vld [vmem:[#allocation9 + $0x1168] sm:$0xff]  ;;  %v3765_v55 = vpack.c.bf16 %v1514_v43, %v1510_v42 }
 0x2b5   :  { %4246 = vmatpush1.bf16.msra.mxu1 %v4245_v8  ;;  %3736 = vmatprep.subr.bf16.mxu0 %v3735_v9  ;;  %v1488_v8 = vld [vmem:[#allocation9 + $0x1050] sm:$0xff]  ;;  %v3751_v9 = vpack.c.bf16 %v1491_v63, %v1487_v60  ;;  %v3753_v59 = vpack.c.bf16 %v1490_v7, %v1486_v6  ;;  %v3767_v63 = vpack.c.bf16 %v1523_v4, %v1519_v46  ;;  %v1527_v7 = vld [vmem:[#allocation9 + $0x1188] sm:$0xff] }
 0x2b6   :  { %4248 = vmatprep.subr.bf16.mxu1 %v4247_v12  ;;  %v4263_v12 = vpack.c.bf16 %v1493_v2, %v1489_v1  ;;  %v4265_v17 = vpack.c.bf16 %v1492_v10, %v1488_v8  ;;  %v1522_v1 = vld [vmem:[#allocation9 + $0x1160] sm:$0xff]  ;;  %v1520_v2 = vld [vmem:[#allocation9 + $0x1150] sm:$0xff]  ;;  %v1531_v8 = vld [vmem:[#allocation9 + $0x11a8] sm:$0xff] }
 0x2b7   :  { %v1524_v6 = vld [vmem:[#allocation9 + $0x1170] sm:$0xff]  ;;  %v1533_v10 = vld [vmem:[#allocation9 + $0x11b8] sm:$0xff]  ;;  %v1551_v42 = vld [vmem:[#allocation9 + $0x1248] sm:$0xff] }
 0x2b8   :  { %3738 = vmatpush1.bf16.msra.mxu0 %v3737_v20  ;;  %v1494_v20 = vld [vmem:[#allocation9 + $0x1080] sm:$0xff]  ;;  %v4281_v58 = vpack.c.bf16 %v1524_v6, %v1520_v2  ;;  %v1555_v43 = vld [vmem:[#allocation9 + $0x1268] sm:$0xff]  ;;  %v1561_v2 = vld [vmem:[#allocation9 + $0x1298] sm:$0xff] }
 0x2b9   :  { %4250 = vmatpush1.bf16.msra.mxu1 %v4249_v21  ;;  %3740 = vmatprep.subr.bf16.mxu0 %v3739_v22  ;;  %v1498_v21 = vld [vmem:[#allocation9 + $0x10a0] sm:$0xff]  ;;  %v1496_v22 = vld [vmem:[#allocation9 + $0x1090] sm:$0xff]  ;;  %v3783_v4 = vpack.c.bf16 %v1555_v43, %v1551_v42 }
 0x2ba   :  { %4252 = vmatprep.subr.bf16.mxu1 %v4251_v30  ;;  %v1507_v30 = vld [vmem:[#allocation9 + $0x10e8] sm:$0xff]  ;;  %v3757_v61 = vpack.c.bf16 %v1498_v21, %v1494_v20  ;;  %v4269_v24 = vpack.c.bf16 %v1500_v25, %v1496_v22  ;;  %v1537_v22 = vld [vmem:[#allocation9 + $0x11d8] sm:$0xff]  ;;  %v3773_v25 = vpack.c.bf16 %v1530_v14, %v1526_v13 }
 0x2bb   :  { %v3759_v18 = vpack.c.bf16 %v1507_v30, %v1503_v26  ;;  %v1535_v20 = vld [vmem:[#allocation9 + $0x11c8] sm:$0xff] }
 0x2bc   :  { %3742 = vmatpush1.bf16.msra.mxu0 %v3741_v62  ;;  %v1506_v62 = vld [vmem:[#allocation9 + $0x10e0] sm:$0xff]  ;;  %v1539_v21 = vld [vmem:[#allocation9 + $0x11e8] sm:$0xff] }
 0x2bd   :  { %4254 = vmatpush1.bf16.msra.mxu1 %v4253_v0  ;;  %3744 = vmatprep.subr.bf16.mxu0 %v3743_v33  ;;  %v1504_v0 = vld [vmem:[#allocation9 + $0x10d0] sm:$0xff]  ;;  %v3761_v38 = vpack.c.bf16 %v1506_v62, %v1502_v32  ;;  %v3775_v30 = vpack.c.bf16 %v1539_v21, %v1535_v20  ;;  %v1543_v32 = vld [vmem:[#allocation9 + $0x1208] sm:$0xff] }
 0x2be   :  { %4256 = vmatprep.subr.bf16.mxu1 %v4255_v37  ;;  %v1517_v37 = vld [vmem:[#allocation9 + $0x1138] sm:$0xff]  ;;  %v1547_v62 = vld [vmem:[#allocation9 + $0x1228] sm:$0xff] }
 0x2bf   :  { %v3779_v35 = vpack.c.bf16 %v1547_v62, %v1543_v32  ;;  %v1567_v13 = vld [vmem:[#allocation9 + $0x12c8] sm:$0xff] }
 0x2c0   :  { %3746 = vmatpush1.bf16.msra.mxu0 %v3745_v44  ;;  %v1512_v44 = vld [vmem:[#allocation9 + $0x1110] sm:$0xff]  ;;  %v1571_v14 = vld [vmem:[#allocation9 + $0x12e8] sm:$0xff] }
 0x2c1   :  { %4258 = vmatpush1.bf16.msra.mxu1 %v4257_v27  ;;  %3748 = vmatprep.subr.bf16.mxu0 %v3747_v45  ;;  %v4275_v27 = vpack.c.bf16 %v1517_v37, %v1513_v36  ;;  %v1516_v45 = vld [vmem:[#allocation9 + $0x1130] sm:$0xff]  ;;  %v1542_v36 = vld [vmem:[#allocation9 + $0x1200] sm:$0xff]  ;;  %v3791_v21 = vpack.c.bf16 %v1571_v14, %v1567_v13 }
 0x2c2   :  { %4260 = vmatprep.subr.bf16.mxu1 %v4259_v47  ;;  %v1521_v47 = vld [vmem:[#allocation9 + $0x1158] sm:$0xff]  ;;  %v4277_v60 = vpack.c.bf16 %v1516_v45, %v1512_v44  ;;  %v1546_v37 = vld [vmem:[#allocation9 + $0x1220] sm:$0xff] }
 0x2c3   :  { %2290 = vmatmul.mubr.f32.vlgmr.msra.gmra.mrb[8].mxu0 %v5129_v52  ;;  %v1553_v44 = vld [vmem:[#allocation9 + $0x1258] sm:$0xff]  ;;  %v3781_v45 = vpack.c.bf16 %v1546_v37, %v1542_v36  ;;  %v1583_v36 = vld [vmem:[#allocation9 + $0x1348] sm:$0xff] }
 0x2c4   :  { %2858 = vmatmul.mubr.f32.vlgmr.msra.gmra.mrb[8].mxu1 %v5129_v52  ;;  %3750 = vmatpush1.bf16.msra.mxu0 %v3749_v3  ;;  %v1509_v52 = vld [vmem:[#allocation9 + $0x10f8] sm:$0xff]  ;;  %v1518_v3 = vld [vmem:[#allocation9 + $0x1140] sm:$0xff]  ;;  %v1587_v37 = vld [vmem:[#allocation9 + $0x1368] sm:$0xff] }
 0x2c5   :  { %2360 = vmatprep.mubr.f32.mxu0 %v5162_v28  ;;  %4262 = vmatpush1.bf16.msra.mxu1 %v4261_v5  ;;  %v4271_v33 = vpack.c.bf16 %v1509_v52, %v1505_v31  ;;  %v4279_v5 = vpack.c.bf16 %v1525_v48, %v1521_v47  ;;  %v3769_v11 = vpack.c.bf16 %v1522_v1, %v1518_v3  ;;  %v1534_v31 = vld [vmem:[#allocation9 + $0x11c0] sm:$0xff]  ;;  %v1559_v3 = vld [vmem:[#allocation9 + $0x1288] sm:$0xff] }
 0x2c6   :  { %2928 = vmatprep.mubr.f32.mxu1 %v5162_v28  ;;  %3752 = vmatprep.subr.bf16.mxu0 %v3751_v9  ;;  %v1508_v28 = vld [vmem:[#allocation9 + $0x10f0] sm:$0xff]  ;;  %v1529_v9 = vld [vmem:[#allocation9 + $0x1198] sm:$0xff]  ;;  %v1538_v52 = vld [vmem:[#allocation9 + $0x11e0] sm:$0xff]  ;;  %v3799_v43 = vpack.c.bf16 %v1587_v37, %v1583_v36 }
 0x2c7   :  { %4264 = vmatprep.subr.bf16.mxu1 %v4263_v12  ;;  %v4273_v51 = vpack.c.bf16 %v1508_v28, %v1504_v0  ;;  %v3771_v12 = vpack.c.bf16 %v1531_v8, %v1527_v7  ;;  %v1545_v0 = vld [vmem:[#allocation9 + $0x1218] sm:$0xff]  ;;  %v3777_v28 = vpack.c.bf16 %v1538_v52, %v1534_v31  ;;  %v1550_v47 = vld [vmem:[#allocation9 + $0x1240] sm:$0xff]  ;;  %v1563_v1 = vld [vmem:[#allocation9 + $0x12a8] sm:$0xff] }
 0x2c8   :  { %3754 = vmatpush1.bf16.msra.mxu0 %v3753_v59  ;;  %v1528_v59 = vld [vmem:[#allocation9 + $0x1190] sm:$0xff]  ;;  %v1554_v48 = vld [vmem:[#allocation9 + $0x1260] sm:$0xff]  ;;  %v3787_v8 = vpack.c.bf16 %v1563_v1, %v1559_v3  ;;  %v1575_v31 = vld [vmem:[#allocation9 + $0x1308] sm:$0xff] }
 0x2c9   :  { %4266 = vmatpush1.bf16.msra.mxu1 %v4265_v17  ;;  %3756 = vmatprep.subr.bf16.mxu0 %v3755_v19  ;;  %v4283_v17 = vpack.c.bf16 %v1533_v10, %v1529_v9  ;;  %v1532_v19 = vld [vmem:[#allocation9 + $0x11b0] sm:$0xff]  ;;  %v3785_v6 = vpack.c.bf16 %v1554_v48, %v1550_v47  ;;  %v1558_v9 = vld [vmem:[#allocation9 + $0x1280] sm:$0xff]  ;;  %v1579_v52 = vld [vmem:[#allocation9 + $0x1328] sm:$0xff] }
 0x2ca   :  { %4268 = vmatprep.subr.bf16.mxu1 %v4267_v23  ;;  %v1541_v23 = vld [vmem:[#allocation9 + $0x11f8] sm:$0xff]  ;;  %v4285_v26 = vpack.c.bf16 %v1532_v19, %v1528_v59  ;;  %v1562_v10 = vld [vmem:[#allocation9 + $0x12a0] sm:$0xff]  ;;  %v3795_v62 = vpack.c.bf16 %v1579_v52, %v1575_v31  ;;  %v1591_v47 = vld [vmem:[#allocation9 + $0x1388] sm:$0xff] }
 0x2cb   :  { %v1569_v59 = vld [vmem:[#allocation9 + $0x12d8] sm:$0xff]  ;;  %v3789_v19 = vpack.c.bf16 %v1562_v10, %v1558_v9  ;;  %v1595_v48 = vld [vmem:[#allocation9 + $0x13a8] sm:$0xff]  ;;  %v1614_v37 = vld [vmem:[#allocation9 + $0x1440] sm:$0xff] }
 0x2cc   :  { %3758 = vmatpush1.bf16.msra.mxu0 %v3757_v61  ;;  %v1536_v61 = vld [vmem:[#allocation9 + $0x11d0] sm:$0xff]  ;;  %v3803_v1 = vpack.c.bf16 %v1595_v48, %v1591_v47  ;;  %v1599_v9 = vld [vmem:[#allocation9 + $0x13c8] sm:$0xff] }
 0x2cd   :  { %4270 = vmatpush1.bf16.msra.mxu1 %v4269_v24  ;;  %3760 = vmatprep.subr.bf16.mxu0 %v3759_v18  ;;  %v4287_v24 = vpack.c.bf16 %v1541_v23, %v1537_v22  ;;  %v1540_v18 = vld [vmem:[#allocation9 + $0x11f0] sm:$0xff]  ;;  %v1566_v22 = vld [vmem:[#allocation9 + $0x12c0] sm:$0xff]  ;;  %v1603_v10 = vld [vmem:[#allocation9 + $0x13e8] sm:$0xff] }
 0x2ce   :  { %4272 = vmatprep.subr.bf16.mxu1 %v4271_v33  ;;  %v1549_v33 = vld [vmem:[#allocation9 + $0x1238] sm:$0xff]  ;;  %v4289_v34 = vpack.c.bf16 %v1540_v18, %v1536_v61  ;;  %v1570_v23 = vld [vmem:[#allocation9 + $0x12e0] sm:$0xff]  ;;  %v3807_v14 = vpack.c.bf16 %v1603_v10, %v1599_v9 }
 0x2cf   :  { %v1577_v61 = vld [vmem:[#allocation9 + $0x1318] sm:$0xff]  ;;  %v3793_v18 = vpack.c.bf16 %v1570_v23, %v1566_v22  ;;  %v1607_v22 = vld [vmem:[#allocation9 + $0x1408] sm:$0xff]  ;;  %v1630_v10 = vld [vmem:[#allocation9 + $0x14c0] sm:$0xff] }
 0x2d0   :  { %3762 = vmatpush1.bf16.msra.mxu0 %v3761_v38  ;;  %v1544_v38 = vld [vmem:[#allocation9 + $0x1210] sm:$0xff]  ;;  %v1611_v23 = vld [vmem:[#allocation9 + $0x1428] sm:$0xff] }
 0x2d1   :  { %4274 = vmatpush1.bf16.msra.mxu1 %v4273_v51  ;;  %3764 = vmatprep.subr.bf16.mxu0 %v3763_v39  ;;  %v4291_v51 = vpack.c.bf16 %v1549_v33, %v1545_v0  ;;  %v1548_v39 = vld [vmem:[#allocation9 + $0x1230] sm:$0xff]  ;;  %v1574_v0 = vld [vmem:[#allocation9 + $0x1300] sm:$0xff]  ;;  %v3811_v52 = vpack.c.bf16 %v1611_v23, %v1607_v22 }
 0x2d2   :  { %4276 = vmatprep.subr.bf16.mxu1 %v4275_v27  ;;  %v1557_v27 = vld [vmem:[#allocation9 + $0x1278] sm:$0xff]  ;;  %v4293_v46 = vpack.c.bf16 %v1548_v39, %v1544_v38  ;;  %v1578_v33 = vld [vmem:[#allocation9 + $0x1320] sm:$0xff] }
 0x2d3   :  { %v1585_v38 = vld [vmem:[#allocation9 + $0x1358] sm:$0xff]  ;;  %v3797_v39 = vpack.c.bf16 %v1578_v33, %v1574_v0  ;;  %v1615_v0 = vld [vmem:[#allocation9 + $0x1448] sm:$0xff]  ;;  %v1638_v22 = vld [vmem:[#allocation9 + $0x1500] sm:$0xff] }
 0x2d4   :  { %3766 = vmatpush1.bf16.msra.mxu0 %v3765_v55  ;;  %v1552_v55 = vld [vmem:[#allocation9 + $0x1250] sm:$0xff]  ;;  %v1619_v33 = vld [vmem:[#allocation9 + $0x1468] sm:$0xff]  ;;  %v1642_v23 = vld [vmem:[#allocation9 + $0x1520] sm:$0xff] }
 0x2d5   :  { %4278 = vmatpush1.bf16.msra.mxu1 %v4277_v60  ;;  %3768 = vmatprep.subr.bf16.mxu0 %v3767_v63  ;;  %v4295_v60 = vpack.c.bf16 %v1557_v27, %v1553_v44  ;;  %v1556_v63 = vld [vmem:[#allocation9 + $0x1270] sm:$0xff]  ;;  %v1582_v44 = vld [vmem:[#allocation9 + $0x1340] sm:$0xff] }
 0x2d6   :  { %4280 = vmatprep.subr.bf16.mxu1 %v4279_v5  ;;  %v1565_v5 = vld [vmem:[#allocation9 + $0x12b8] sm:$0xff]  ;;  %v4297_v7 = vpack.c.bf16 %v1556_v63, %v1552_v55  ;;  %v1586_v27 = vld [vmem:[#allocation9 + $0x1360] sm:$0xff] }
 0x2d7   :  { %v1593_v55 = vld [vmem:[#allocation9 + $0x1398] sm:$0xff]  ;;  %v3801_v63 = vpack.c.bf16 %v1586_v27, %v1582_v44  ;;  %v1627_v44 = vld [vmem:[#allocation9 + $0x14a8] sm:$0xff] }
 0x2d8   :  { %3770 = vmatpush1.bf16.msra.mxu0 %v3769_v11  ;;  %v1560_v11 = vld [vmem:[#allocation9 + $0x1290] sm:$0xff] }
 0x2d9   :  { %4282 = vmatpush1.bf16.msra.mxu1 %v4281_v58  ;;  %3772 = vmatprep.subr.bf16.mxu0 %v3771_v12  ;;  %v4299_v58 = vpack.c.bf16 %v1565_v5, %v1561_v2  ;;  %v1564_v12 = vld [vmem:[#allocation9 + $0x12b0] sm:$0xff]  ;;  %v1590_v2 = vld [vmem:[#allocation9 + $0x1380] sm:$0xff] }
 0x2da   :  { %4284 = vmatprep.subr.bf16.mxu1 %v4283_v17  ;;  %v1573_v17 = vld [vmem:[#allocation9 + $0x12f8] sm:$0xff]  ;;  %v4301_v20 = vpack.c.bf16 %v1564_v12, %v1560_v11  ;;  %v1594_v5 = vld [vmem:[#allocation9 + $0x13a0] sm:$0xff] }
 0x2db   :  { %v1601_v11 = vld [vmem:[#allocation9 + $0x13d8] sm:$0xff]  ;;  %v3805_v12 = vpack.c.bf16 %v1594_v5, %v1590_v2  ;;  %v1631_v2 = vld [vmem:[#allocation9 + $0x14c8] sm:$0xff] }
 0x2dc   :  { %3774 = vmatpush1.bf16.msra.mxu0 %v3773_v25  ;;  %v1568_v25 = vld [vmem:[#allocation9 + $0x12d0] sm:$0xff]  ;;  %v1635_v5 = vld [vmem:[#allocation9 + $0x14e8] sm:$0xff] }
 0x2dd   :  { %4286 = vmatpush1.bf16.msra.mxu1 %v4285_v26  ;;  %3776 = vmatprep.subr.bf16.mxu0 %v3775_v30  ;;  %v4303_v26 = vpack.c.bf16 %v1573_v17, %v1569_v59  ;;  %v1572_v30 = vld [vmem:[#allocation9 + $0x12f0] sm:$0xff]  ;;  %v1598_v59 = vld [vmem:[#allocation9 + $0x13c0] sm:$0xff]  ;;  %v3823_v9 = vpack.c.bf16 %v1635_v5, %v1631_v2 }
 0x2de   :  { %4288 = vmatprep.subr.bf16.mxu1 %v4287_v24  ;;  %v1581_v24 = vld [vmem:[#allocation9 + $0x1338] sm:$0xff]  ;;  %v4305_v32 = vpack.c.bf16 %v1572_v30, %v1568_v25  ;;  %v1602_v17 = vld [vmem:[#allocation9 + $0x13e0] sm:$0xff] }
 0x2df   :  { %v1609_v25 = vld [vmem:[#allocation9 + $0x1418] sm:$0xff]  ;;  %v3809_v30 = vpack.c.bf16 %v1602_v17, %v1598_v59  ;;  %v1662_v2 = vld [vmem:[#allocation9 + $0x15c0] sm:$0xff] }
 0x2e0   :  { %3778 = vmatpush1.bf16.msra.mxu0 %v3777_v28  ;;  %v1576_v28 = vld [vmem:[#allocation9 + $0x1310] sm:$0xff]  ;;  %v1641_v59 = vld [vmem:[#allocation9 + $0x1518] sm:$0xff]  ;;  %v1666_v5 = vld [vmem:[#allocation9 + $0x15e0] sm:$0xff] }
 0x2e1   :  { %4290 = vmatpush1.bf16.msra.mxu1 %v4289_v34  ;;  %3780 = vmatprep.subr.bf16.mxu0 %v3779_v35  ;;  %v4307_v34 = vpack.c.bf16 %v1581_v24, %v1577_v61  ;;  %v1580_v35 = vld [vmem:[#allocation9 + $0x1330] sm:$0xff]  ;;  %v1606_v61 = vld [vmem:[#allocation9 + $0x1400] sm:$0xff]  ;;  %v1645_v17 = vld [vmem:[#allocation9 + $0x1538] sm:$0xff] }
 0x2e2   :  { %4292 = vmatprep.subr.bf16.mxu1 %v4291_v51  ;;  %v1589_v51 = vld [vmem:[#allocation9 + $0x1378] sm:$0xff]  ;;  %v4309_v42 = vpack.c.bf16 %v1580_v35, %v1576_v28  ;;  %v1610_v24 = vld [vmem:[#allocation9 + $0x1420] sm:$0xff] }
 0x2e3   :  { %v3813_v28 = vpack.c.bf16 %v1610_v24, %v1606_v61  ;;  %v1621_v35 = vld [vmem:[#allocation9 + $0x1478] sm:$0xff] }
 0x2e4   :  { %3782 = vmatpush1.bf16.msra.mxu0 %v3781_v45  ;;  %v1584_v45 = vld [vmem:[#allocation9 + $0x1350] sm:$0xff]  ;;  %v1649_v61 = vld [vmem:[#allocation9 + $0x1558] sm:$0xff] }
 0x2e5   :  { %4294 = vmatpush1.bf16.msra.mxu1 %v4293_v46  ;;  %3784 = vmatprep.subr.bf16.mxu0 %v3783_v4  ;;  %v4311_v46 = vpack.c.bf16 %v1589_v51, %v1585_v38  ;;  %v1588_v4 = vld [vmem:[#allocation9 + $0x1370] sm:$0xff]  ;;  %v1618_v38 = vld [vmem:[#allocation9 + $0x1460] sm:$0xff]  ;;  %v1653_v24 = vld [vmem:[#allocation9 + $0x1578] sm:$0xff] }
 0x2e6   :  { %4296 = vmatprep.subr.bf16.mxu1 %v4295_v60  ;;  %v1597_v60 = vld [vmem:[#allocation9 + $0x13b8] sm:$0xff]  ;;  %v4313_v3 = vpack.c.bf16 %v1588_v4, %v1584_v45  ;;  %v1616_v51 = vld [vmem:[#allocation9 + $0x1450] sm:$0xff]  ;;  %v3817_v4 = vpack.c.bf16 %v1618_v38, %v1614_v37  ;;  %v1659_v37 = vld [vmem:[#allocation9 + $0x15a8] sm:$0xff] }
 0x2e7   :  { %v1625_v45 = vld [vmem:[#allocation9 + $0x1498] sm:$0xff] }
 0x2e8   :  { %3786 = vmatpush1.bf16.msra.mxu0 %v3785_v6  ;;  %v1592_v6 = vld [vmem:[#allocation9 + $0x1390] sm:$0xff]  ;;  %v1657_v38 = vld [vmem:[#allocation9 + $0x1598] sm:$0xff] }
 0x2e9   :  { %4298 = vmatpush1.bf16.msra.mxu1 %v4297_v7  ;;  %3788 = vmatprep.subr.bf16.mxu0 %v3787_v8  ;;  %v4315_v7 = vpack.c.bf16 %v1597_v60, %v1593_v55  ;;  %v1596_v8 = vld [vmem:[#allocation9 + $0x13b0] sm:$0xff]  ;;  %v1622_v55 = vld [vmem:[#allocation9 + $0x1480] sm:$0xff] }
 0x2ea   :  { %4300 = vmatprep.subr.bf16.mxu1 %v4299_v58  ;;  %v1605_v58 = vld [vmem:[#allocation9 + $0x13f8] sm:$0xff]  ;;  %v4317_v13 = vpack.c.bf16 %v1596_v8, %v1592_v6  ;;  %v1626_v60 = vld [vmem:[#allocation9 + $0x14a0] sm:$0xff] }
 0x2eb   :  { %v1633_v6 = vld [vmem:[#allocation9 + $0x14d8] sm:$0xff] }
 0x2ec   :  { %3790 = vmatpush1.bf16.msra.mxu0 %v3789_v19  ;;  %v1600_v19 = vld [vmem:[#allocation9 + $0x13d0] sm:$0xff] }
 0x2ed   :  { %4302 = vmatpush1.bf16.msra.mxu1 %v4301_v20  ;;  %3792 = vmatprep.subr.bf16.mxu0 %v3791_v21  ;;  %v4319_v20 = vpack.c.bf16 %v1605_v58, %v1601_v11  ;;  %v1604_v21 = vld [vmem:[#allocation9 + $0x13f0] sm:$0xff]  ;;  %v1634_v11 = vld [vmem:[#allocation9 + $0x14e0] sm:$0xff] }
 0x2ee   :  { %4304 = vmatprep.subr.bf16.mxu1 %v4303_v26  ;;  %v1613_v26 = vld [vmem:[#allocation9 + $0x1438] sm:$0xff]  ;;  %v4321_v31 = vpack.c.bf16 %v1604_v21, %v1600_v19  ;;  %v1632_v58 = vld [vmem:[#allocation9 + $0x14d0] sm:$0xff]  ;;  %v3825_v19 = vpack.c.bf16 %v1634_v11, %v1630_v10 }
 0x2ef   :  { %v1673_v10 = vld [vmem:[#allocation9 + $0x1618] sm:$0xff] }
 0x2f0   :  { %3794 = vmatpush1.bf16.msra.mxu0 %v3793_v18  ;;  %v4323_v18 = vpack.c.bf16 %v1613_v26, %v1609_v25  ;;  %v1640_v25 = vld [vmem:[#allocation9 + $0x1510] sm:$0xff]  ;;  %v4339_v26 = vpack.c.bf16 %v1645_v17, %v1641_v59  ;;  %v1677_v11 = vld [vmem:[#allocation9 + $0x1638] sm:$0xff] }
 0x2f1   :  { %4306 = vmatpush1.bf16.msra.mxu1 %v4305_v32  ;;  %3796 = vmatprep.subr.bf16.mxu0 %v3795_v62  ;;  %v1608_v32 = vld [vmem:[#allocation9 + $0x1410] sm:$0xff]  ;;  %v4355_v17 = vpack.c.bf16 %v1677_v11, %v1673_v10 }
 0x2f2   :  { %4308 = vmatprep.subr.bf16.mxu1 %v4307_v34  ;;  %v1612_v62 = vld [vmem:[#allocation9 + $0x1430] sm:$0xff]  ;;  %v1617_v34 = vld [vmem:[#allocation9 + $0x1458] sm:$0xff] }
 0x2f3   :  { %v4325_v36 = vpack.c.bf16 %v1612_v62, %v1608_v32  ;;  %v4327_v27 = vpack.c.bf16 %v1621_v35, %v1617_v34  ;;  %v4343_v34 = vpack.c.bf16 %v1653_v24, %v1649_v61  ;;  %v1652_v35 = vld [vmem:[#allocation9 + $0x1570] sm:$0xff] }
 0x2f4   :  { %3798 = vmatpush1.bf16.msra.mxu0 %v3797_v39  ;;  %v3815_v39 = vpack.c.bf16 %v1619_v33, %v1615_v0  ;;  %v1646_v0 = vld [vmem:[#allocation9 + $0x1540] sm:$0xff]  ;;  %v1672_v59 = vld [vmem:[#allocation9 + $0x1610] sm:$0xff] }
 0x2f5   :  { %4310 = vmatpush1.bf16.msra.mxu1 %v4309_v42  ;;  %3800 = vmatprep.subr.bf16.mxu0 %v3799_v43  ;;  %v1620_v42 = vld [vmem:[#allocation9 + $0x1470] sm:$0xff]  ;;  %v1623_v43 = vld [vmem:[#allocation9 + $0x1488] sm:$0xff]  ;;  %v1650_v33 = vld [vmem:[#allocation9 + $0x1560] sm:$0xff] }
 0x2f6   :  { %4312 = vmatprep.subr.bf16.mxu1 %v4311_v46  ;;  %v1629_v46 = vld [vmem:[#allocation9 + $0x14b8] sm:$0xff]  ;;  %v4329_v47 = vpack.c.bf16 %v1620_v42, %v1616_v51  ;;  %v3819_v48 = vpack.c.bf16 %v1627_v44, %v1623_v43  ;;  %v1654_v44 = vld [vmem:[#allocation9 + $0x1580] sm:$0xff]  ;;  %v1680_v61 = vld [vmem:[#allocation9 + $0x1650] sm:$0xff] }
 0x2f7   :  { %v1661_v51 = vld [vmem:[#allocation9 + $0x15b8] sm:$0xff]  ;;  %v1704_v10 = vld [vmem:[#allocation9 + $0x1710] sm:$0xff] }
 0x2f8   :  { %3802 = vmatpush1.bf16.msra.mxu0 %v3801_v63  ;;  %v1624_v63 = vld [vmem:[#allocation9 + $0x1490] sm:$0xff] }
 0x2f9   :  { %4314 = vmatpush1.bf16.msra.mxu1 %v4313_v3  ;;  %3804 = vmatprep.subr.bf16.mxu0 %v3803_v1  ;;  %v4331_v3 = vpack.c.bf16 %v1629_v46, %v1625_v45  ;;  %v1628_v1 = vld [vmem:[#allocation9 + $0x14b0] sm:$0xff]  ;;  %v4347_v46 = vpack.c.bf16 %v1661_v51, %v1657_v38 }
 0x2fa   :  { %4316 = vmatprep.subr.bf16.mxu1 %v4315_v7  ;;  %v3821_v7 = vpack.c.bf16 %v1626_v60, %v1622_v55  ;;  %v4333_v8 = vpack.c.bf16 %v1628_v1, %v1624_v63  ;;  %v1656_v45 = vld [vmem:[#allocation9 + $0x1590] sm:$0xff]  ;;  %v1665_v55 = vld [vmem:[#allocation9 + $0x15d8] sm:$0xff] }
 0x2fb   :  { %v1669_v60 = vld [vmem:[#allocation9 + $0x15f8] sm:$0xff]  ;;  %v1688_v38 = vld [vmem:[#allocation9 + $0x1690] sm:$0xff] }
 0x2fc   :  { %3806 = vmatpush1.bf16.msra.mxu0 %v3805_v12 }
 0x2fd   :  { %4318 = vmatpush1.bf16.msra.mxu1 %v4317_v13  ;;  %3808 = vmatprep.subr.bf16.mxu0 %v3807_v14  ;;  %v1639_v13 = vld [vmem:[#allocation9 + $0x1508] sm:$0xff] }
 0x2fe   :  { %4320 = vmatprep.subr.bf16.mxu1 %v4319_v20  ;;  %v1643_v14 = vld [vmem:[#allocation9 + $0x1528] sm:$0xff] }
 0x2ff   :  { %v3827_v21 = vpack.c.bf16 %v1643_v14, %v1639_v13  ;;  %v1670_v13 = vld [vmem:[#allocation9 + $0x1600] sm:$0xff] }
 0x300   :  { %3810 = vmatpush1.bf16.msra.mxu0 %v3809_v30  ;;  %v1644_v30 = vld [vmem:[#allocation9 + $0x1530] sm:$0xff]  ;;  %v1674_v14 = vld [vmem:[#allocation9 + $0x1620] sm:$0xff] }
 0x301   :  { %4322 = vmatpush1.bf16.msra.mxu1 %v4321_v31  ;;  %3812 = vmatprep.subr.bf16.mxu0 %v3811_v52  ;;  %v1647_v31 = vld [vmem:[#allocation9 + $0x1548] sm:$0xff]  ;;  %v4341_v32 = vpack.c.bf16 %v1644_v30, %v1640_v25  ;;  %v3845_v25 = vpack.c.bf16 %v1674_v14, %v1670_v13  ;;  %v1713_v13 = vld [vmem:[#allocation9 + $0x1758] sm:$0xff] }
 0x302   :  { %4324 = vmatprep.subr.bf16.mxu1 %v4323_v18  ;;  %v1651_v52 = vld [vmem:[#allocation9 + $0x1568] sm:$0xff]  ;;  %v3829_v18 = vpack.c.bf16 %v1642_v23, %v1638_v22  ;;  %v1681_v22 = vld [vmem:[#allocation9 + $0x1658] sm:$0xff] }
 0x303   :  { %2361 = vmatmul.mubr.f32.vlgmr.msra.gmra.mrb[8].mxu0 %v5150_v15  ;;  %v3831_v62 = vpack.c.bf16 %v1651_v52, %v1647_v31  ;;  %v1685_v23 = vld [vmem:[#allocation9 + $0x1678] sm:$0xff]  ;;  %v1678_v31 = vld [vmem:[#allocation9 + $0x1640] sm:$0xff] }
 0x304   :  { %2929 = vmatmul.mubr.f32.vlgmr.msra.gmra.mrb[8].mxu1 %v5150_v15  ;;  %3814 = vmatpush1.bf16.msra.mxu0 %v3813_v28  ;;  %v1637_v15 = vld [vmem:[#allocation9 + $0x14f8] sm:$0xff]  ;;  %v1648_v28 = vld [vmem:[#allocation9 + $0x1550] sm:$0xff]  ;;  %v1682_v52 = vld [vmem:[#allocation9 + $0x1660] sm:$0xff]  ;;  %v4359_v24 = vpack.c.bf16 %v1685_v23, %v1681_v22 }
 0x305   :  { %2431 = vmatprep.mubr.f32.mxu0 %v5164_v29  ;;  %4326 = vmatpush1.bf16.msra.mxu1 %v4325_v36  ;;  %v4335_v12 = vpack.c.bf16 %v1637_v15, %v1633_v6  ;;  %v1655_v36 = vld [vmem:[#allocation9 + $0x1588] sm:$0xff]  ;;  %v4345_v42 = vpack.c.bf16 %v1652_v35, %v1648_v28  ;;  %v1664_v6 = vld [vmem:[#allocation9 + $0x15d0] sm:$0xff]  ;;  %v4351_v15 = vpack.c.bf16 %v1669_v60, %v1665_v55  ;;  %v1717_v14 = vld [vmem:[#allocation9 + $0x1778] sm:$0xff] }
 0x306   :  { %2999 = vmatprep.mubr.f32.mxu1 %v5164_v29  ;;  %3816 = vmatprep.subr.bf16.mxu0 %v3815_v39  ;;  %v1636_v29 = vld [vmem:[#allocation9 + $0x14f0] sm:$0xff]  ;;  %v3833_v39 = vpack.c.bf16 %v1650_v33, %v1646_v0  ;;  %v3835_v43 = vpack.c.bf16 %v1659_v37, %v1655_v36  ;;  %v1689_v0 = vld [vmem:[#allocation9 + $0x1698] sm:$0xff]  ;;  %v3849_v28 = vpack.c.bf16 %v1682_v52, %v1678_v31  ;;  %v1686_v36 = vld [vmem:[#allocation9 + $0x1680] sm:$0xff] }
 0x307   :  { %4328 = vmatprep.subr.bf16.mxu1 %v4327_v27  ;;  %v4337_v20 = vpack.c.bf16 %v1636_v29, %v1632_v58  ;;  %v1658_v27 = vld [vmem:[#allocation9 + $0x15a0] sm:$0xff]  ;;  %v3841_v58 = vpack.c.bf16 %v1666_v5, %v1662_v2  ;;  %v1693_v33 = vld [vmem:[#allocation9 + $0x16b8] sm:$0xff]  ;;  %v1696_v55 = vld [vmem:[#allocation9 + $0x16d0] sm:$0xff]  ;;  %v4375_v23 = vpack.c.bf16 %v1717_v14, %v1713_v13 }
 0x308   :  { %3818 = vmatpush1.bf16.msra.mxu0 %v3817_v4  ;;  %v1660_v4 = vld [vmem:[#allocation9 + $0x15b0] sm:$0xff]  ;;  %v3837_v63 = vpack.c.bf16 %v1658_v27, %v1654_v44  ;;  %v1690_v37 = vld [vmem:[#allocation9 + $0x16a0] sm:$0xff]  ;;  %v4363_v51 = vpack.c.bf16 %v1693_v33, %v1689_v0  ;;  %v1697_v44 = vld [vmem:[#allocation9 + $0x16d8] sm:$0xff] }
 0x309   :  { %4330 = vmatpush1.bf16.msra.mxu1 %v4329_v47  ;;  %3820 = vmatprep.subr.bf16.mxu0 %v3819_v48  ;;  %v1663_v47 = vld [vmem:[#allocation9 + $0x15c8] sm:$0xff]  ;;  %v1701_v27 = vld [vmem:[#allocation9 + $0x16f8] sm:$0xff]  ;;  %v1712_v22 = vld [vmem:[#allocation9 + $0x1750] sm:$0xff] }
 0x30a   :  { %4332 = vmatprep.subr.bf16.mxu1 %v4331_v3  ;;  %v1667_v48 = vld [vmem:[#allocation9 + $0x15e8] sm:$0xff]  ;;  %v4349_v3 = vpack.c.bf16 %v1660_v4, %v1656_v45  ;;  %v3853_v45 = vpack.c.bf16 %v1690_v37, %v1686_v36  ;;  %v4367_v60 = vpack.c.bf16 %v1701_v27, %v1697_v44  ;;  %v1705_v2 = vld [vmem:[#allocation9 + $0x1718] sm:$0xff]  ;;  %v1720_v0 = vld [vmem:[#allocation9 + $0x1790] sm:$0xff] }
 0x30b   :  { %v3839_v1 = vpack.c.bf16 %v1667_v48, %v1663_v47  ;;  %v1694_v47 = vld [vmem:[#allocation9 + $0x16c0] sm:$0xff]  ;;  %v1709_v5 = vld [vmem:[#allocation9 + $0x1738] sm:$0xff]  ;;  %v1728_v44 = vld [vmem:[#allocation9 + $0x17d0] sm:$0xff] }
 0x30c   :  { %3822 = vmatpush1.bf16.msra.mxu0 %v3821_v7  ;;  %v1668_v7 = vld [vmem:[#allocation9 + $0x15f0] sm:$0xff]  ;;  %v1698_v48 = vld [vmem:[#allocation9 + $0x16e0] sm:$0xff]  ;;  %v4371_v11 = vpack.c.bf16 %v1709_v5, %v1705_v2  ;;  %v1721_v31 = vld [vmem:[#allocation9 + $0x1798] sm:$0xff] }
 0x30d   :  { %4334 = vmatpush1.bf16.msra.mxu1 %v4333_v8  ;;  %3824 = vmatprep.subr.bf16.mxu0 %v3823_v9  ;;  %v1671_v8 = vld [vmem:[#allocation9 + $0x1608] sm:$0xff]  ;;  %v1725_v52 = vld [vmem:[#allocation9 + $0x17b8] sm:$0xff]  ;;  %v1736_v5 = vld [vmem:[#allocation9 + $0x1810] sm:$0xff] }
 0x30e   :  { %4336 = vmatprep.subr.bf16.mxu1 %v4335_v12  ;;  %v1675_v9 = vld [vmem:[#allocation9 + $0x1628] sm:$0xff]  ;;  %v4353_v12 = vpack.c.bf16 %v1668_v7, %v1664_v6  ;;  %v3857_v6 = vpack.c.bf16 %v1698_v48, %v1694_v47  ;;  %v4379_v33 = vpack.c.bf16 %v1725_v52, %v1721_v31  ;;  %v1729_v36 = vld [vmem:[#allocation9 + $0x17d8] sm:$0xff]  ;;  %v1748_v14 = vld [vmem:[#allocation9 + $0x1870] sm:$0xff] }
 0x30f   :  { %v3843_v29 = vpack.c.bf16 %v1675_v9, %v1671_v8  ;;  %v1702_v8 = vld [vmem:[#allocation9 + $0x1700] sm:$0xff]  ;;  %v1733_v37 = vld [vmem:[#allocation9 + $0x17f8] sm:$0xff]  ;;  %v1752_v31 = vld [vmem:[#allocation9 + $0x1890] sm:$0xff] }
 0x310   :  { %3826 = vmatpush1.bf16.msra.mxu0 %v3825_v19  ;;  %v1676_v19 = vld [vmem:[#allocation9 + $0x1630] sm:$0xff]  ;;  %v1706_v9 = vld [vmem:[#allocation9 + $0x1720] sm:$0xff]  ;;  %v4383_v27 = vpack.c.bf16 %v1733_v37, %v1729_v36  ;;  %v1737_v47 = vld [vmem:[#allocation9 + $0x1818] sm:$0xff] }
 0x311   :  { %4338 = vmatpush1.bf16.msra.mxu1 %v4337_v20  ;;  %3828 = vmatprep.subr.bf16.mxu0 %v3827_v21  ;;  %v1679_v20 = vld [vmem:[#allocation9 + $0x1648] sm:$0xff]  ;;  %v1741_v48 = vld [vmem:[#allocation9 + $0x1838] sm:$0xff] }
 0x312   :  { %4340 = vmatprep.subr.bf16.mxu1 %v4339_v26  ;;  %v1683_v21 = vld [vmem:[#allocation9 + $0x1668] sm:$0xff]  ;;  %v4357_v26 = vpack.c.bf16 %v1676_v19, %v1672_v59  ;;  %v3861_v59 = vpack.c.bf16 %v1706_v9, %v1702_v8  ;;  %v4387_v2 = vpack.c.bf16 %v1741_v48, %v1737_v47  ;;  %v1745_v9 = vld [vmem:[#allocation9 + $0x1858] sm:$0xff]  ;;  %v1772_v47 = vld [vmem:[#allocation9 + $0x1930] sm:$0xff] }
 0x313   :  { %v3847_v30 = vpack.c.bf16 %v1683_v21, %v1679_v20  ;;  %v1710_v20 = vld [vmem:[#allocation9 + $0x1740] sm:$0xff]  ;;  %v1767_v37 = vld [vmem:[#allocation9 + $0x1908] sm:$0xff] }
 0x314   :  { %3830 = vmatpush1.bf16.msra.mxu0 %v3829_v18  ;;  %v1684_v18 = vld [vmem:[#allocation9 + $0x1670] sm:$0xff]  ;;  %v1714_v21 = vld [vmem:[#allocation9 + $0x1760] sm:$0xff]  ;;  %v1775_v48 = vld [vmem:[#allocation9 + $0x1948] sm:$0xff] }
 0x315   :  { %4342 = vmatpush1.bf16.msra.mxu1 %v4341_v32  ;;  %3832 = vmatprep.subr.bf16.mxu0 %v3831_v62  ;;  %v1687_v32 = vld [vmem:[#allocation9 + $0x1688] sm:$0xff] }
 0x316   :  { %4344 = vmatprep.subr.bf16.mxu1 %v4343_v34  ;;  %v1691_v62 = vld [vmem:[#allocation9 + $0x16a8] sm:$0xff]  ;;  %v4361_v34 = vpack.c.bf16 %v1684_v18, %v1680_v61  ;;  %v3865_v61 = vpack.c.bf16 %v1714_v21, %v1710_v20  ;;  %v1753_v20 = vld [vmem:[#allocation9 + $0x1898] sm:$0xff] }
 0x317   :  { %v3851_v35 = vpack.c.bf16 %v1691_v62, %v1687_v32  ;;  %v1718_v32 = vld [vmem:[#allocation9 + $0x1780] sm:$0xff]  ;;  %v1757_v21 = vld [vmem:[#allocation9 + $0x18b8] sm:$0xff] }
 0x318   :  { %3834 = vmatpush1.bf16.msra.mxu0 %v3833_v39  ;;  %v1692_v39 = vld [vmem:[#allocation9 + $0x16b0] sm:$0xff]  ;;  %v1722_v62 = vld [vmem:[#allocation9 + $0x17a0] sm:$0xff]  ;;  %v4395_v52 = vpack.c.bf16 %v1757_v21, %v1753_v20  ;;  %v1791_v21 = vld [vmem:[#allocation9 + $0x19c8] sm:$0xff] }
 0x319   :  { %4346 = vmatpush1.bf16.msra.mxu1 %v4345_v42  ;;  %3836 = vmatprep.subr.bf16.mxu0 %v3835_v43  ;;  %v1695_v42 = vld [vmem:[#allocation9 + $0x16c8] sm:$0xff]  ;;  %v1788_v20 = vld [vmem:[#allocation9 + $0x19b0] sm:$0xff] }
 0x31a   :  { %4348 = vmatprep.subr.bf16.mxu1 %v4347_v46  ;;  %v1699_v43 = vld [vmem:[#allocation9 + $0x16e8] sm:$0xff]  ;;  %v4365_v46 = vpack.c.bf16 %v1692_v39, %v1688_v38  ;;  %v3869_v38 = vpack.c.bf16 %v1722_v62, %v1718_v32  ;;  %v1761_v32 = vld [vmem:[#allocation9 + $0x18d8] sm:$0xff] }
 0x31b   :  { %v3855_v4 = vpack.c.bf16 %v1699_v43, %v1695_v42  ;;  %v1726_v42 = vld [vmem:[#allocation9 + $0x17c0] sm:$0xff] }
 0x31c   :  { %3838 = vmatpush1.bf16.msra.mxu0 %v3837_v63  ;;  %v1700_v63 = vld [vmem:[#allocation9 + $0x16f0] sm:$0xff]  ;;  %v1730_v43 = vld [vmem:[#allocation9 + $0x17e0] sm:$0xff] }
 0x31d   :  { %4350 = vmatpush1.bf16.msra.mxu1 %v4349_v3  ;;  %3840 = vmatprep.subr.bf16.mxu0 %v3839_v1  ;;  %v1703_v3 = vld [vmem:[#allocation9 + $0x1708] sm:$0xff] }
 0x31e   :  { %4352 = vmatprep.subr.bf16.mxu1 %v4351_v15  ;;  %v1707_v1 = vld [vmem:[#allocation9 + $0x1728] sm:$0xff]  ;;  %v4369_v15 = vpack.c.bf16 %v1700_v63, %v1696_v55  ;;  %v3873_v55 = vpack.c.bf16 %v1730_v43, %v1726_v42 }
 0x31f   :  { %v3859_v7 = vpack.c.bf16 %v1707_v1, %v1703_v3  ;;  %v1734_v3 = vld [vmem:[#allocation9 + $0x1800] sm:$0xff] }
 0x320   :  { %3842 = vmatpush1.bf16.msra.mxu0 %v3841_v58  ;;  %v1708_v58 = vld [vmem:[#allocation9 + $0x1730] sm:$0xff]  ;;  %v1738_v1 = vld [vmem:[#allocation9 + $0x1820] sm:$0xff] }
 0x321   :  { %4354 = vmatpush1.bf16.msra.mxu1 %v4353_v12  ;;  %3844 = vmatprep.subr.bf16.mxu0 %v3843_v29  ;;  %v1711_v12 = vld [vmem:[#allocation9 + $0x1748] sm:$0xff]  ;;  %v3877_v8 = vpack.c.bf16 %v1738_v1, %v1734_v3 }
 0x322   :  { %4356 = vmatprep.subr.bf16.mxu1 %v4355_v17  ;;  %v1715_v29 = vld [vmem:[#allocation9 + $0x1768] sm:$0xff]  ;;  %v4373_v17 = vpack.c.bf16 %v1708_v58, %v1704_v10  ;;  %v1749_v10 = vld [vmem:[#allocation9 + $0x1878] sm:$0xff]  ;;  %v1742_v58 = vld [vmem:[#allocation9 + $0x1840] sm:$0xff] }
 0x323   :  { %v3863_v19 = vpack.c.bf16 %v1715_v29, %v1711_v12  ;;  %v1746_v12 = vld [vmem:[#allocation9 + $0x1860] sm:$0xff]  ;;  %v1744_v29 = vld [vmem:[#allocation9 + $0x1850] sm:$0xff] }
 0x324   :  { %3846 = vmatpush1.bf16.msra.mxu0 %v3845_v25  ;;  %v1716_v25 = vld [vmem:[#allocation9 + $0x1770] sm:$0xff] }
 0x325   :  { %4358 = vmatpush1.bf16.msra.mxu1 %v4357_v26  ;;  %3848 = vmatprep.subr.bf16.mxu0 %v3847_v30  ;;  %v1719_v26 = vld [vmem:[#allocation9 + $0x1788] sm:$0xff] }
 0x326   :  { %4360 = vmatprep.subr.bf16.mxu1 %v4359_v24  ;;  %v1723_v30 = vld [vmem:[#allocation9 + $0x17a8] sm:$0xff]  ;;  %v4377_v24 = vpack.c.bf16 %v1716_v25, %v1712_v22  ;;  %v3881_v22 = vpack.c.bf16 %v1746_v12, %v1742_v58  ;;  %v1789_v58 = vld [vmem:[#allocation9 + $0x19b8] sm:$0xff] }
 0x327   :  { %v3867_v18 = vpack.c.bf16 %v1723_v30, %v1719_v26  ;;  %v1750_v26 = vld [vmem:[#allocation9 + $0x1880] sm:$0xff] }
 0x328   :  { %3850 = vmatpush1.bf16.msra.mxu0 %v3849_v28  ;;  %v1724_v28 = vld [vmem:[#allocation9 + $0x17b0] sm:$0xff]  ;;  %v1754_v30 = vld [vmem:[#allocation9 + $0x18a0] sm:$0xff] }
 0x329   :  { %4362 = vmatpush1.bf16.msra.mxu1 %v4361_v34  ;;  %3852 = vmatprep.subr.bf16.mxu0 %v3851_v35  ;;  %v1727_v34 = vld [vmem:[#allocation9 + $0x17c8] sm:$0xff]  ;;  %v3885_v62 = vpack.c.bf16 %v1754_v30, %v1750_v26 }
 0x32a   :  { %4364 = vmatprep.subr.bf16.mxu1 %v4363_v51  ;;  %v1731_v35 = vld [vmem:[#allocation9 + $0x17e8] sm:$0xff]  ;;  %v4381_v51 = vpack.c.bf16 %v1724_v28, %v1720_v0  ;;  %v1758_v28 = vld [vmem:[#allocation9 + $0x18c0] sm:$0xff] }
 0x32b   :  { %v3871_v39 = vpack.c.bf16 %v1731_v35, %v1727_v34  ;;  %v1762_v34 = vld [vmem:[#allocation9 + $0x18e0] sm:$0xff]  ;;  %v1760_v35 = vld [vmem:[#allocation9 + $0x18d0] sm:$0xff] }
 0x32c   :  { %3854 = vmatpush1.bf16.msra.mxu0 %v3853_v45  ;;  %v1732_v45 = vld [vmem:[#allocation9 + $0x17f0] sm:$0xff]  ;;  %v3889_v42 = vpack.c.bf16 %v1762_v34, %v1758_v28 }
 0x32d   :  { %4366 = vmatpush1.bf16.msra.mxu1 %v4365_v46  ;;  %3856 = vmatprep.subr.bf16.mxu0 %v3855_v4  ;;  %v1735_v46 = vld [vmem:[#allocation9 + $0x1808] sm:$0xff] }
 0x32e   :  { %4368 = vmatprep.subr.bf16.mxu1 %v4367_v60  ;;  %v1739_v4 = vld [vmem:[#allocation9 + $0x1828] sm:$0xff]  ;;  %v4385_v60 = vpack.c.bf16 %v1732_v45, %v1728_v44  ;;  %v1770_v45 = vld [vmem:[#allocation9 + $0x1920] sm:$0xff] }
 0x32f   :  { %v3875_v63 = vpack.c.bf16 %v1739_v4, %v1735_v46  ;;  %v1768_v46 = vld [vmem:[#allocation9 + $0x1910] sm:$0xff] }
 0x330   :  { %3858 = vmatpush1.bf16.msra.mxu0 %v3857_v6  ;;  %v1740_v6 = vld [vmem:[#allocation9 + $0x1830] sm:$0xff]  ;;  %v4405_v1 = vpack.c.bf16 %v1772_v47, %v1768_v46  ;;  %v1810_v47 = vld [vmem:[#allocation9 + $0x1a60] sm:$0xff] }
 0x331   :  { %4370 = vmatpush1.bf16.msra.mxu1 %v4369_v15  ;;  %3860 = vmatprep.subr.bf16.mxu0 %v3859_v7  ;;  %v1743_v15 = vld [vmem:[#allocation9 + $0x1848] sm:$0xff] }
 0x332   :  { %4372 = vmatprep.subr.bf16.mxu1 %v4371_v11  ;;  %v1747_v7 = vld [vmem:[#allocation9 + $0x1868] sm:$0xff]  ;;  %v4389_v11 = vpack.c.bf16 %v1740_v6, %v1736_v5  ;;  %v1774_v5 = vld [vmem:[#allocation9 + $0x1940] sm:$0xff] }
 0x333   :  { %v3879_v13 = vpack.c.bf16 %v1747_v7, %v1743_v15  ;;  %v1778_v6 = vld [vmem:[#allocation9 + $0x1960] sm:$0xff]  ;;  %v1776_v15 = vld [vmem:[#allocation9 + $0x1950] sm:$0xff] }
 0x334   :  { %3862 = vmatpush1.bf16.msra.mxu0 %v3861_v59  ;;  %v1751_v59 = vld [vmem:[#allocation9 + $0x1888] sm:$0xff]  ;;  %v3897_v12 = vpack.c.bf16 %v1778_v6, %v1774_v5 }
 0x335   :  { %4374 = vmatpush1.bf16.msra.mxu1 %v4373_v17  ;;  %3864 = vmatprep.subr.bf16.mxu0 %v3863_v19  ;;  %v1755_v17 = vld [vmem:[#allocation9 + $0x18a8] sm:$0xff]  ;;  %v4391_v19 = vpack.c.bf16 %v1749_v10, %v1745_v9 }
 0x336   :  { %4376 = vmatprep.subr.bf16.mxu1 %v4375_v23  ;;  %v4393_v23 = vpack.c.bf16 %v1748_v14, %v1744_v29  ;;  %v3883_v25 = vpack.c.bf16 %v1755_v17, %v1751_v59  ;;  %v1783_v9 = vld [vmem:[#allocation9 + $0x1988] sm:$0xff]  ;;  %v1782_v14 = vld [vmem:[#allocation9 + $0x1980] sm:$0xff]  ;;  %v1784_v17 = vld [vmem:[#allocation9 + $0x1990] sm:$0xff] }
 0x337   :  { %v1787_v10 = vld [vmem:[#allocation9 + $0x19a8] sm:$0xff]  ;;  %v1786_v59 = vld [vmem:[#allocation9 + $0x19a0] sm:$0xff]  ;;  %v4413_v30 = vpack.c.bf16 %v1788_v20, %v1784_v17 }
 0x338   :  { %3866 = vmatpush1.bf16.msra.mxu0 %v3865_v61  ;;  %v1756_v61 = vld [vmem:[#allocation9 + $0x18b0] sm:$0xff]  ;;  %v3901_v26 = vpack.c.bf16 %v1786_v59, %v1782_v14  ;;  %v1826_v20 = vld [vmem:[#allocation9 + $0x1ae0] sm:$0xff] }
 0x339   :  { %4378 = vmatpush1.bf16.msra.mxu1 %v4377_v24  ;;  %3868 = vmatprep.subr.bf16.mxu0 %v3867_v18  ;;  %v1759_v24 = vld [vmem:[#allocation9 + $0x18c8] sm:$0xff]  ;;  %v4397_v0 = vpack.c.bf16 %v1756_v61, %v1752_v31  ;;  %v1794_v61 = vld [vmem:[#allocation9 + $0x19e0] sm:$0xff] }
 0x33a   :  { %4380 = vmatprep.subr.bf16.mxu1 %v4379_v33  ;;  %v1763_v18 = vld [vmem:[#allocation9 + $0x18e8] sm:$0xff] }
 0x33b   :  { %v3887_v33 = vpack.c.bf16 %v1763_v18, %v1759_v24  ;;  %v1792_v24 = vld [vmem:[#allocation9 + $0x19d0] sm:$0xff] }
 0x33c   :  { %3870 = vmatpush1.bf16.msra.mxu0 %v3869_v38  ;;  %v1771_v38 = vld [vmem:[#allocation9 + $0x1928] sm:$0xff] }
 0x33d   :  { %4382 = vmatpush1.bf16.msra.mxu1 %v4381_v51  ;;  %3872 = vmatprep.subr.bf16.mxu0 %v3871_v39  ;;  %v1769_v51 = vld [vmem:[#allocation9 + $0x1918] sm:$0xff]  ;;  %v3891_v44 = vpack.c.bf16 %v1771_v38, %v1767_v37  ;;  %v1800_v37 = vld [vmem:[#allocation9 + $0x1a10] sm:$0xff] }
 0x33e   :  { %4384 = vmatprep.subr.bf16.mxu1 %v4383_v27  ;;  %v1773_v39 = vld [vmem:[#allocation9 + $0x1938] sm:$0xff]  ;;  %v1766_v27 = vld [vmem:[#allocation9 + $0x1900] sm:$0xff] }
 0x33f   :  { %v4403_v4 = vpack.c.bf16 %v1773_v39, %v1769_v51  ;;  %v3893_v3 = vpack.c.bf16 %v1770_v45, %v1766_v27  ;;  %v1804_v51 = vld [vmem:[#allocation9 + $0x1a30] sm:$0xff]  ;;  %v1807_v39 = vld [vmem:[#allocation9 + $0x1a48] sm:$0xff] }
 0x340   :  { %3874 = vmatpush1.bf16.msra.mxu0 %v3873_v55  ;;  %v1779_v55 = vld [vmem:[#allocation9 + $0x1968] sm:$0xff]  ;;  %v4421_v45 = vpack.c.bf16 %v1804_v51, %v1800_v37  ;;  %v1842_v51 = vld [vmem:[#allocation9 + $0x1b60] sm:$0xff] }
 0x341   :  { %4386 = vmatpush1.bf16.msra.mxu1 %v4385_v60  ;;  %3876 = vmatprep.subr.bf16.mxu0 %v3875_v63  ;;  %v1777_v60 = vld [vmem:[#allocation9 + $0x1958] sm:$0xff] }
 0x342   :  { %4388 = vmatprep.subr.bf16.mxu1 %v4387_v2  ;;  %v1781_v63 = vld [vmem:[#allocation9 + $0x1978] sm:$0xff]  ;;  %v3895_v2 = vpack.c.bf16 %v1779_v55, %v1775_v48  ;;  %v1808_v48 = vld [vmem:[#allocation9 + $0x1a50] sm:$0xff] }
 0x343   :  { %2432 = vmatmul.mubr.f32.vlgmr.msra.gmra.mrb[8].mxu0 %v5152_v16  ;;  %v4407_v7 = vpack.c.bf16 %v1781_v63, %v1777_v60  ;;  %v1812_v60 = vld [vmem:[#allocation9 + $0x1a70] sm:$0xff]  ;;  %v1815_v63 = vld [vmem:[#allocation9 + $0x1a88] sm:$0xff] }
 0x344   :  { %3000 = vmatmul.mubr.f32.vlgmr.msra.gmra.mrb[8].mxu1 %v5152_v16  ;;  %3878 = vmatpush1.bf16.msra.mxu0 %v3877_v8  ;;  %v1765_v16 = vld [vmem:[#allocation9 + $0x18f8] sm:$0xff]  ;;  %v1780_v8 = vld [vmem:[#allocation9 + $0x1970] sm:$0xff]  ;;  %v4425_v6 = vpack.c.bf16 %v1812_v60, %v1808_v48  ;;  %v1850_v60 = vld [vmem:[#allocation9 + $0x1ba0] sm:$0xff] }
 0x345   :  { %2502 = vmatprep.mubr.f32.mxu0 %v5176_v49  ;;  %4390 = vmatpush1.bf16.msra.mxu1 %v4389_v11  ;;  %v4399_v36 = vpack.c.bf16 %v1765_v16, %v1761_v32  ;;  %v1785_v11 = vld [vmem:[#allocation9 + $0x1998] sm:$0xff]  ;;  %v4409_v29 = vpack.c.bf16 %v1780_v8, %v1776_v15  ;;  %v1796_v32 = vld [vmem:[#allocation9 + $0x19f0] sm:$0xff]  ;;  %v1799_v16 = vld [vmem:[#allocation9 + $0x1a08] sm:$0xff] }
 0x346   :  { %3070 = vmatprep.mubr.f32.mxu1 %v5176_v49  ;;  %3880 = vmatprep.subr.bf16.mxu0 %v3879_v13  ;;  %v1764_v49 = vld [vmem:[#allocation9 + $0x18f0] sm:$0xff]  ;;  %v3899_v13 = vpack.c.bf16 %v1787_v10, %v1783_v9  ;;  %v4417_v34 = vpack.c.bf16 %v1796_v32, %v1792_v24  ;;  %v1818_v8 = vld [vmem:[#allocation9 + $0x1aa0] sm:$0xff] }
 0x347   :  { %4392 = vmatprep.subr.bf16.mxu1 %v4391_v19  ;;  %v4401_v43 = vpack.c.bf16 %v1764_v49, %v1760_v35  ;;  %v4411_v19 = vpack.c.bf16 %v1789_v58, %v1785_v11  ;;  %v1802_v49 = vld [vmem:[#allocation9 + $0x1a20] sm:$0xff]  ;;  %v1816_v9 = vld [vmem:[#allocation9 + $0x1a90] sm:$0xff]  ;;  %v1823_v58 = vld [vmem:[#allocation9 + $0x1ac8] sm:$0xff] }
 0x348   :  { %3882 = vmatpush1.bf16.msra.mxu0 %v3881_v22  ;;  %v1795_v22 = vld [vmem:[#allocation9 + $0x19e8] sm:$0xff]  ;;  %v1820_v11 = vld [vmem:[#allocation9 + $0x1ab0] sm:$0xff]  ;;  %v1834_v32 = vld [vmem:[#allocation9 + $0x1b20] sm:$0xff] }
 0x349   :  { %4394 = vmatpush1.bf16.msra.mxu1 %v4393_v23  ;;  %3884 = vmatprep.subr.bf16.mxu0 %v3883_v25  ;;  %v1793_v23 = vld [vmem:[#allocation9 + $0x19d8] sm:$0xff]  ;;  %v3903_v31 = vpack.c.bf16 %v1795_v22, %v1791_v21  ;;  %v4429_v59 = vpack.c.bf16 %v1820_v11, %v1816_v9  ;;  %v1824_v21 = vld [vmem:[#allocation9 + $0x1ad0] sm:$0xff]  ;;  %v1858_v11 = vld [vmem:[#allocation9 + $0x1be0] sm:$0xff] }
 0x34a   :  { %4396 = vmatprep.subr.bf16.mxu1 %v4395_v52  ;;  %v1797_v25 = vld [vmem:[#allocation9 + $0x19f8] sm:$0xff]  ;;  %v1790_v52 = vld [vmem:[#allocation9 + $0x19c0] sm:$0xff] }
 0x34b   :  { %v4415_v18 = vpack.c.bf16 %v1797_v25, %v1793_v23  ;;  %v3905_v28 = vpack.c.bf16 %v1794_v61, %v1790_v52  ;;  %v1828_v23 = vld [vmem:[#allocation9 + $0x1af0] sm:$0xff]  ;;  %v1831_v25 = vld [vmem:[#allocation9 + $0x1b08] sm:$0xff] }
 0x34c   :  { %3886 = vmatpush1.bf16.msra.mxu0 %v3885_v62  ;;  %v1803_v62 = vld [vmem:[#allocation9 + $0x1a28] sm:$0xff]  ;;  %v4433_v61 = vpack.c.bf16 %v1828_v23, %v1824_v21  ;;  %v1866_v23 = vld [vmem:[#allocation9 + $0x1c20] sm:$0xff] }
 0x34d   :  { %4398 = vmatpush1.bf16.msra.mxu1 %v4397_v0  ;;  %3888 = vmatprep.subr.bf16.mxu0 %v3887_v33  ;;  %v1801_v0 = vld [vmem:[#allocation9 + $0x1a18] sm:$0xff]  ;;  %v3907_v35 = vpack.c.bf16 %v1803_v62, %v1799_v16  ;;  %v1832_v16 = vld [vmem:[#allocation9 + $0x1b10] sm:$0xff] }
 0x34e   :  { %4400 = vmatprep.subr.bf16.mxu1 %v4399_v36  ;;  %v1805_v33 = vld [vmem:[#allocation9 + $0x1a38] sm:$0xff]  ;;  %v1798_v36 = vld [vmem:[#allocation9 + $0x1a00] sm:$0xff] }
 0x34f   :  { %v4419_v38 = vpack.c.bf16 %v1805_v33, %v1801_v0  ;;  %v3909_v27 = vpack.c.bf16 %v1802_v49, %v1798_v36  ;;  %v1836_v0 = vld [vmem:[#allocation9 + $0x1b30] sm:$0xff]  ;;  %v1839_v33 = vld [vmem:[#allocation9 + $0x1b48] sm:$0xff] }
 0x350   :  { %3890 = vmatpush1.bf16.msra.mxu0 %v3889_v42  ;;  %v1811_v42 = vld [vmem:[#allocation9 + $0x1a68] sm:$0xff]  ;;  %v4437_v49 = vpack.c.bf16 %v1836_v0, %v1832_v16  ;;  %v1870_v16 = vld [vmem:[#allocation9 + $0x1c40] sm:$0xff]  ;;  %v1872_v0 = vld [vmem:[#allocation9 + $0x1c50] sm:$0xff] }
 0x351   :  { %4402 = vmatpush1.bf16.msra.mxu1 %v4401_v43  ;;  %3892 = vmatprep.subr.bf16.mxu0 %v3891_v44  ;;  %v1809_v43 = vld [vmem:[#allocation9 + $0x1a58] sm:$0xff]  ;;  %v3911_v46 = vpack.c.bf16 %v1811_v42, %v1807_v39  ;;  %v1840_v39 = vld [vmem:[#allocation9 + $0x1b50] sm:$0xff] }
 0x352   :  { %4404 = vmatprep.subr.bf16.mxu1 %v4403_v4  ;;  %v1813_v44 = vld [vmem:[#allocation9 + $0x1a78] sm:$0xff]  ;;  %v1806_v4 = vld [vmem:[#allocation9 + $0x1a40] sm:$0xff] }
 0x353   :  { %v4423_v55 = vpack.c.bf16 %v1813_v44, %v1809_v43  ;;  %v3913_v5 = vpack.c.bf16 %v1810_v47, %v1806_v4  ;;  %v1844_v43 = vld [vmem:[#allocation9 + $0x1b70] sm:$0xff]  ;;  %v1847_v44 = vld [vmem:[#allocation9 + $0x1b88] sm:$0xff] }
 0x354   :  { %3894 = vmatpush1.bf16.msra.mxu0 %v3893_v3  ;;  %v1819_v3 = vld [vmem:[#allocation9 + $0x1aa8] sm:$0xff]  ;;  %v4441_v47 = vpack.c.bf16 %v1844_v43, %v1840_v39  ;;  %v1882_v43 = vld [vmem:[#allocation9 + $0x1ca0] sm:$0xff] }
 0x355   :  { %4406 = vmatpush1.bf16.msra.mxu1 %v4405_v1  ;;  %3896 = vmatprep.subr.bf16.mxu0 %v3895_v2  ;;  %v1817_v1 = vld [vmem:[#allocation9 + $0x1a98] sm:$0xff]  ;;  %v3915_v15 = vpack.c.bf16 %v1819_v3, %v1815_v63  ;;  %v1848_v63 = vld [vmem:[#allocation9 + $0x1b90] sm:$0xff] }
 0x356   :  { %4408 = vmatprep.subr.bf16.mxu1 %v4407_v7  ;;  %v1821_v2 = vld [vmem:[#allocation9 + $0x1ab8] sm:$0xff]  ;;  %v1814_v7 = vld [vmem:[#allocation9 + $0x1a80] sm:$0xff] }
 0x357   :  { %v4427_v10 = vpack.c.bf16 %v1821_v2, %v1817_v1  ;;  %v3917_v14 = vpack.c.bf16 %v1818_v8, %v1814_v7  ;;  %v1852_v1 = vld [vmem:[#allocation9 + $0x1bb0] sm:$0xff]  ;;  %v1855_v2 = vld [vmem:[#allocation9 + $0x1bc8] sm:$0xff] }
 0x358   :  { %3898 = vmatpush1.bf16.msra.mxu0 %v3897_v12  ;;  %v1827_v12 = vld [vmem:[#allocation9 + $0x1ae8] sm:$0xff]  ;;  %v4445_v8 = vpack.c.bf16 %v1852_v1, %v1848_v63  ;;  %v1886_v63 = vld [vmem:[#allocation9 + $0x1cc0] sm:$0xff]  ;;  %v1888_v1 = vld [vmem:[#allocation9 + $0x1cd0] sm:$0xff] }
 0x359   :  { %4410 = vmatpush1.bf16.msra.mxu1 %v4409_v29  ;;  %3900 = vmatprep.subr.bf16.mxu0 %v3899_v13  ;;  %v1825_v29 = vld [vmem:[#allocation9 + $0x1ad8] sm:$0xff]  ;;  %v3919_v17 = vpack.c.bf16 %v1827_v12, %v1823_v58  ;;  %v1856_v58 = vld [vmem:[#allocation9 + $0x1bd0] sm:$0xff] }
 0x35a   :  { %4412 = vmatprep.subr.bf16.mxu1 %v4411_v19  ;;  %v1829_v13 = vld [vmem:[#allocation9 + $0x1af8] sm:$0xff]  ;;  %v1822_v19 = vld [vmem:[#allocation9 + $0x1ac0] sm:$0xff] }
 0x35b   :  { %v4431_v22 = vpack.c.bf16 %v1829_v13, %v1825_v29  ;;  %v3921_v52 = vpack.c.bf16 %v1826_v20, %v1822_v19  ;;  %v1860_v29 = vld [vmem:[#allocation9 + $0x1bf0] sm:$0xff]  ;;  %v1863_v13 = vld [vmem:[#allocation9 + $0x1c08] sm:$0xff] }
 0x35c   :  { %3902 = vmatpush1.bf16.msra.mxu0 %v3901_v26  ;;  %v1835_v26 = vld [vmem:[#allocation9 + $0x1b28] sm:$0xff]  ;;  %v4449_v20 = vpack.c.bf16 %v1860_v29, %v1856_v58  ;;  %v1898_v58 = vld [vmem:[#allocation9 + $0x1d20] sm:$0xff] }
 0x35d   :  { %4414 = vmatpush1.bf16.msra.mxu1 %v4413_v30  ;;  %3904 = vmatprep.subr.bf16.mxu0 %v3903_v31  ;;  %v1833_v30 = vld [vmem:[#allocation9 + $0x1b18] sm:$0xff]  ;;  %v3923_v24 = vpack.c.bf16 %v1835_v26, %v1831_v25  ;;  %v1864_v26 = vld [vmem:[#allocation9 + $0x1c10] sm:$0xff] }
 0x35e   :  { %4416 = vmatprep.subr.bf16.mxu1 %v4415_v18  ;;  %v1837_v31 = vld [vmem:[#allocation9 + $0x1b38] sm:$0xff]  ;;  %v1830_v18 = vld [vmem:[#allocation9 + $0x1b00] sm:$0xff] }
 0x35f   :  { %v4435_v62 = vpack.c.bf16 %v1837_v31, %v1833_v30  ;;  %v3925_v36 = vpack.c.bf16 %v1834_v32, %v1830_v18  ;;  %v1868_v30 = vld [vmem:[#allocation9 + $0x1c30] sm:$0xff]  ;;  %v1871_v31 = vld [vmem:[#allocation9 + $0x1c48] sm:$0xff]  ;;  %v1877_v18 = vld [vmem:[#allocation9 + $0x1c78] sm:$0xff] }
 0x360   :  { %3906 = vmatpush1.bf16.msra.mxu0 %v3905_v28  ;;  %v1843_v28 = vld [vmem:[#allocation9 + $0x1b68] sm:$0xff]  ;;  %v4453_v32 = vpack.c.bf16 %v1868_v30, %v1864_v26  ;;  %v1904_v26 = vld [vmem:[#allocation9 + $0x1d50] sm:$0xff] }
 0x361   :  { %4418 = vmatpush1.bf16.msra.mxu1 %v4417_v34  ;;  %3908 = vmatprep.subr.bf16.mxu0 %v3907_v35  ;;  %v1841_v34 = vld [vmem:[#allocation9 + $0x1b58] sm:$0xff]  ;;  %v3927_v37 = vpack.c.bf16 %v1843_v28, %v1839_v33  ;;  %v1876_v28 = vld [vmem:[#allocation9 + $0x1c70] sm:$0xff] }
 0x362   :  { %4420 = vmatprep.subr.bf16.mxu1 %v4419_v38  ;;  %v1845_v35 = vld [vmem:[#allocation9 + $0x1b78] sm:$0xff]  ;;  %v1838_v38 = vld [vmem:[#allocation9 + $0x1b40] sm:$0xff] }
 0x363   :  { %v4439_v42 = vpack.c.bf16 %v1845_v35, %v1841_v34  ;;  %v3929_v4 = vpack.c.bf16 %v1842_v51, %v1838_v38  ;;  %v1879_v34 = vld [vmem:[#allocation9 + $0x1c88] sm:$0xff]  ;;  %v4457_v51 = vpack.c.bf16 %v1876_v28, %v1872_v0  ;;  %v1910_v0 = vld [vmem:[#allocation9 + $0x1d80] sm:$0xff]  ;;  %v1912_v28 = vld [vmem:[#allocation9 + $0x1d90] sm:$0xff] }
 0x364   :  { %3910 = vmatpush1.bf16.msra.mxu0 %v3909_v27  ;;  %v1851_v27 = vld [vmem:[#allocation9 + $0x1ba8] sm:$0xff] }
 0x365   :  { %4422 = vmatpush1.bf16.msra.mxu1 %v4421_v45  ;;  %3912 = vmatprep.subr.bf16.mxu0 %v3911_v46  ;;  %v1849_v45 = vld [vmem:[#allocation9 + $0x1b98] sm:$0xff]  ;;  %v3931_v48 = vpack.c.bf16 %v1851_v27, %v1847_v44  ;;  %v1883_v35 = vld [vmem:[#allocation9 + $0x1ca8] sm:$0xff]  ;;  %v1880_v44 = vld [vmem:[#allocation9 + $0x1c90] sm:$0xff] }
 0x366   :  { %4424 = vmatprep.subr.bf16.mxu1 %v4423_v55  ;;  %v1853_v46 = vld [vmem:[#allocation9 + $0x1bb8] sm:$0xff]  ;;  %v1846_v55 = vld [vmem:[#allocation9 + $0x1b80] sm:$0xff]  ;;  %v3947_v39 = vpack.c.bf16 %v1883_v35, %v1879_v34  ;;  %v1916_v35 = vld [vmem:[#allocation9 + $0x1db0] sm:$0xff] }
 0x367   :  { %v4443_v3 = vpack.c.bf16 %v1853_v46, %v1849_v45  ;;  %v3933_v7 = vpack.c.bf16 %v1850_v60, %v1846_v55  ;;  %v1884_v45 = vld [vmem:[#allocation9 + $0x1cb0] sm:$0xff]  ;;  %v1887_v46 = vld [vmem:[#allocation9 + $0x1cc8] sm:$0xff] }
 0x368   :  { %3914 = vmatpush1.bf16.msra.mxu0 %v3913_v5  ;;  %v1859_v5 = vld [vmem:[#allocation9 + $0x1be8] sm:$0xff]  ;;  %v4461_v55 = vpack.c.bf16 %v1884_v45, %v1880_v44  ;;  %v1922_v44 = vld [vmem:[#allocation9 + $0x1de0] sm:$0xff] }
 0x369   :  { %4426 = vmatpush1.bf16.msra.mxu1 %v4425_v6  ;;  %3916 = vmatprep.subr.bf16.mxu0 %v3915_v15  ;;  %v1857_v6 = vld [vmem:[#allocation9 + $0x1bd8] sm:$0xff]  ;;  %v3935_v9 = vpack.c.bf16 %v1859_v5, %v1855_v2  ;;  %v1895_v5 = vld [vmem:[#allocation9 + $0x1d08] sm:$0xff] }
 0x36a   :  { %4428 = vmatprep.subr.bf16.mxu1 %v4427_v10  ;;  %v1861_v15 = vld [vmem:[#allocation9 + $0x1bf8] sm:$0xff]  ;;  %v1854_v10 = vld [vmem:[#allocation9 + $0x1bc0] sm:$0xff] }
 0x36b   :  { %v4447_v12 = vpack.c.bf16 %v1861_v15, %v1857_v6  ;;  %v3937_v19 = vpack.c.bf16 %v1858_v11, %v1854_v10  ;;  %v1899_v6 = vld [vmem:[#allocation9 + $0x1d28] sm:$0xff]  ;;  %v1897_v15 = vld [vmem:[#allocation9 + $0x1d18] sm:$0xff]  ;;  %v1894_v11 = vld [vmem:[#allocation9 + $0x1d00] sm:$0xff] }
 0x36c   :  { %3918 = vmatpush1.bf16.msra.mxu0 %v3917_v14  ;;  %v1867_v14 = vld [vmem:[#allocation9 + $0x1c28] sm:$0xff]  ;;  %v3955_v10 = vpack.c.bf16 %v1899_v6, %v1895_v5  ;;  %v1932_v5 = vld [vmem:[#allocation9 + $0x1e30] sm:$0xff] }
 0x36d   :  { %4430 = vmatpush1.bf16.msra.mxu1 %v4429_v59  ;;  %3920 = vmatprep.subr.bf16.mxu0 %v3919_v17  ;;  %v1865_v59 = vld [vmem:[#allocation9 + $0x1c18] sm:$0xff]  ;;  %v3939_v21 = vpack.c.bf16 %v1867_v14, %v1863_v13  ;;  %v1900_v13 = vld [vmem:[#allocation9 + $0x1d30] sm:$0xff]  ;;  %v1903_v14 = vld [vmem:[#allocation9 + $0x1d48] sm:$0xff] }
 0x36e   :  { %4432 = vmatprep.subr.bf16.mxu1 %v4431_v22  ;;  %v1869_v17 = vld [vmem:[#allocation9 + $0x1c38] sm:$0xff]  ;;  %v1862_v22 = vld [vmem:[#allocation9 + $0x1c00] sm:$0xff]  ;;  %v1935_v6 = vld [vmem:[#allocation9 + $0x1e48] sm:$0xff] }
 0x36f   :  { %v4451_v25 = vpack.c.bf16 %v1869_v17, %v1865_v59  ;;  %v1907_v59 = vld [vmem:[#allocation9 + $0x1d68] sm:$0xff]  ;;  %v1905_v17 = vld [vmem:[#allocation9 + $0x1d58] sm:$0xff] }
 0x370   :  { %3922 = vmatpush1.bf16.msra.mxu0 %v3921_v52  ;;  %v1875_v52 = vld [vmem:[#allocation9 + $0x1c68] sm:$0xff] }
 0x371   :  { %4434 = vmatpush1.bf16.msra.mxu1 %v4433_v61  ;;  %3924 = vmatprep.subr.bf16.mxu0 %v3923_v24  ;;  %v3941_v61 = vpack.c.bf16 %v1866_v23, %v1862_v22  ;;  %v1873_v24 = vld [vmem:[#allocation9 + $0x1c58] sm:$0xff]  ;;  %v3943_v33 = vpack.c.bf16 %v1875_v52, %v1871_v31  ;;  %v3959_v22 = vpack.c.bf16 %v1907_v59, %v1903_v14  ;;  %v1902_v23 = vld [vmem:[#allocation9 + $0x1d40] sm:$0xff]  ;;  %v1908_v31 = vld [vmem:[#allocation9 + $0x1d70] sm:$0xff] }
 0x372   :  { %4436 = vmatprep.subr.bf16.mxu1 %v4435_v62  ;;  %v1874_v62 = vld [vmem:[#allocation9 + $0x1c60] sm:$0xff]  ;;  %v1911_v52 = vld [vmem:[#allocation9 + $0x1d88] sm:$0xff]  ;;  %v1940_v14 = vld [vmem:[#allocation9 + $0x1e70] sm:$0xff] }
 0x373   :  { %v3945_v38 = vpack.c.bf16 %v1874_v62, %v1870_v16  ;;  %v4473_v16 = vpack.c.bf16 %v1908_v31, %v1904_v26  ;;  %v1943_v59 = vld [vmem:[#allocation9 + $0x1e88] sm:$0xff]  ;;  %v1946_v26 = vld [vmem:[#allocation9 + $0x1ea0] sm:$0xff] }
 0x374   :  { %3926 = vmatpush1.bf16.msra.mxu0 %v3925_v36  ;;  %v4455_v36 = vpack.c.bf16 %v1877_v18, %v1873_v24  ;;  %v1913_v24 = vld [vmem:[#allocation9 + $0x1d98] sm:$0xff] }
 0x375   :  { %4438 = vmatpush1.bf16.msra.mxu1 %v4437_v49  ;;  %3928 = vmatprep.subr.bf16.mxu0 %v3927_v37  ;;  %v1881_v49 = vld [vmem:[#allocation9 + $0x1c98] sm:$0xff] }
 0x376   :  { %4440 = vmatprep.subr.bf16.mxu1 %v4439_v42  ;;  %v1885_v37 = vld [vmem:[#allocation9 + $0x1cb8] sm:$0xff]  ;;  %v1878_v42 = vld [vmem:[#allocation9 + $0x1c80] sm:$0xff] }
 0x377   :  { %v4459_v27 = vpack.c.bf16 %v1885_v37, %v1881_v49  ;;  %v1917_v18 = vld [vmem:[#allocation9 + $0x1db8] sm:$0xff]  ;;  %v1923_v49 = vld [vmem:[#allocation9 + $0x1de8] sm:$0xff] }
 0x378   :  { %3930 = vmatpush1.bf16.msra.mxu0 %v3929_v4  ;;  %v1891_v4 = vld [vmem:[#allocation9 + $0x1ce8] sm:$0xff]  ;;  %v4475_v34 = vpack.c.bf16 %v1917_v18, %v1913_v24  ;;  %v1921_v37 = vld [vmem:[#allocation9 + $0x1dd8] sm:$0xff] }
 0x379   :  { %4442 = vmatpush1.bf16.msra.mxu1 %v4441_v47  ;;  %3932 = vmatprep.subr.bf16.mxu0 %v3931_v48  ;;  %v1889_v47 = vld [vmem:[#allocation9 + $0x1cd8] sm:$0xff]  ;;  %v3949_v48 = vpack.c.bf16 %v1882_v43, %v1878_v42  ;;  %v3951_v60 = vpack.c.bf16 %v1891_v4, %v1887_v46  ;;  %v1918_v43 = vld [vmem:[#allocation9 + $0x1dc0] sm:$0xff]  ;;  %v1924_v46 = vld [vmem:[#allocation9 + $0x1df0] sm:$0xff] }
 0x37a   :  { %4444 = vmatprep.subr.bf16.mxu1 %v4443_v3  ;;  %v1890_v3 = vld [vmem:[#allocation9 + $0x1ce0] sm:$0xff]  ;;  %v1927_v4 = vld [vmem:[#allocation9 + $0x1e08] sm:$0xff]  ;;  %v1953_v18 = vld [vmem:[#allocation9 + $0x1ed8] sm:$0xff] }
 0x37b   :  { %v1955_v24 = vld [vmem:[#allocation9 + $0x1ee8] sm:$0xff] }
 0x37c   :  { %3934 = vmatpush1.bf16.msra.mxu0 %v3933_v7  ;;  %v1901_v7 = vld [vmem:[#allocation9 + $0x1d38] sm:$0xff] }
 0x37d   :  { %4446 = vmatpush1.bf16.msra.mxu1 %v4445_v8  ;;  %3936 = vmatprep.subr.bf16.mxu0 %v3935_v9  ;;  %v3953_v8 = vpack.c.bf16 %v1890_v3, %v1886_v63  ;;  %v4467_v29 = vpack.c.bf16 %v1901_v7, %v1897_v15  ;;  %v1926_v3 = vld [vmem:[#allocation9 + $0x1e00] sm:$0xff]  ;;  %v1939_v15 = vld [vmem:[#allocation9 + $0x1e68] sm:$0xff]  ;;  %v1937_v7 = vld [vmem:[#allocation9 + $0x1e58] sm:$0xff] }
 0x37e   :  { %4448 = vmatprep.subr.bf16.mxu1 %v4447_v12  ;;  %v1896_v12 = vld [vmem:[#allocation9 + $0x1d10] sm:$0xff] }
 0x380   :  { %3938 = vmatpush1.bf16.msra.mxu0 %v3937_v19  ;;  %v1909_v19 = vld [vmem:[#allocation9 + $0x1d78] sm:$0xff] }
 0x381   :  { %4450 = vmatpush1.bf16.msra.mxu1 %v4449_v20  ;;  %3940 = vmatprep.subr.bf16.mxu0 %v3939_v21  ;;  %v3957_v20 = vpack.c.bf16 %v1898_v58, %v1894_v11  ;;  %v4469_v21 = vpack.c.bf16 %v1900_v13, %v1896_v12  ;;  %v4471_v30 = vpack.c.bf16 %v1909_v19, %v1905_v17  ;;  %v1934_v58 = vld [vmem:[#allocation9 + $0x1e40] sm:$0xff]  ;;  %v1947_v17 = vld [vmem:[#allocation9 + $0x1ea8] sm:$0xff]  ;;  %v1945_v19 = vld [vmem:[#allocation9 + $0x1e98] sm:$0xff] }
 0x382   :  { %4452 = vmatprep.subr.bf16.mxu1 %v4451_v25  ;;  %v1906_v25 = vld [vmem:[#allocation9 + $0x1d60] sm:$0xff]  ;;  %v3975_v11 = vpack.c.bf16 %v1939_v15, %v1935_v6  ;;  %v1972_v6 = vld [vmem:[#allocation9 + $0x1f70] sm:$0xff]  ;;  %v1975_v15 = vld [vmem:[#allocation9 + $0x1f88] sm:$0xff] }
 0x383   :  { %2503 = vmatmul.mubr.f32.vlgmr.msra.gmra.mrb[8].mxu0 %v5170_v40  ;;  %v1938_v12 = vld [vmem:[#allocation9 + $0x1e60] sm:$0xff] }
 0x384   :  { %3071 = vmatmul.mubr.f32.vlgmr.msra.gmra.mrb[8].mxu1 %v5170_v40  ;;  %3942 = vmatpush1.bf16.msra.mxu0 %v3941_v61  ;;  %v1893_v40 = vld [vmem:[#allocation9 + $0x1cf8] sm:$0xff]  ;;  %v1915_v61 = vld [vmem:[#allocation9 + $0x1da8] sm:$0xff] }
 0x385   :  { %2573 = vmatprep.mubr.f32.mxu0 %v5178_v50  ;;  %4454 = vmatpush1.bf16.msra.mxu1 %v4453_v32  ;;  %v4463_v2 = vpack.c.bf16 %v1893_v40, %v1889_v47  ;;  %v3961_v32 = vpack.c.bf16 %v1906_v25, %v1902_v23  ;;  %v3963_v62 = vpack.c.bf16 %v1915_v61, %v1911_v52  ;;  %v1931_v47 = vld [vmem:[#allocation9 + $0x1e28] sm:$0xff]  ;;  %v1929_v40 = vld [vmem:[#allocation9 + $0x1e18] sm:$0xff]  ;;  %v1942_v25 = vld [vmem:[#allocation9 + $0x1e80] sm:$0xff] }
 0x386   :  { %3141 = vmatprep.mubr.f32.mxu1 %v5178_v50  ;;  %3944 = vmatprep.subr.bf16.mxu0 %v3943_v33  ;;  %v1892_v50 = vld [vmem:[#allocation9 + $0x1cf0] sm:$0xff]  ;;  %v1914_v33 = vld [vmem:[#allocation9 + $0x1da0] sm:$0xff]  ;;  %v3971_v63 = vpack.c.bf16 %v1931_v47, %v1927_v4  ;;  %v3979_v23 = vpack.c.bf16 %v1947_v17, %v1943_v59  ;;  %v1951_v61 = vld [vmem:[#allocation9 + $0x1ec8] sm:$0xff] }
 0x387   :  { %4456 = vmatprep.subr.bf16.mxu1 %v4455_v36  ;;  %v4465_v9 = vpack.c.bf16 %v1892_v50, %v1888_v1  ;;  %v1919_v36 = vld [vmem:[#allocation9 + $0x1dc8] sm:$0xff]  ;;  %v1930_v1 = vld [vmem:[#allocation9 + $0x1e20] sm:$0xff]  ;;  %v1948_v52 = vld [vmem:[#allocation9 + $0x1eb0] sm:$0xff] }
 0x388   :  { %3946 = vmatpush1.bf16.msra.mxu0 %v3945_v38  ;;  %v1925_v38 = vld [vmem:[#allocation9 + $0x1df8] sm:$0xff]  ;;  %v3967_v42 = vpack.c.bf16 %v1923_v49, %v1919_v36  ;;  %v1956_v36 = vld [vmem:[#allocation9 + $0x1ef0] sm:$0xff]  ;;  %v1959_v49 = vld [vmem:[#allocation9 + $0x1f08] sm:$0xff] }
 0x389   :  { %4458 = vmatpush1.bf16.msra.mxu1 %v4457_v51  ;;  %3948 = vmatprep.subr.bf16.mxu0 %v3947_v39  ;;  %v3965_v51 = vpack.c.bf16 %v1914_v33, %v1910_v0  ;;  %v4477_v39 = vpack.c.bf16 %v1916_v35, %v1912_v28  ;;  %v4479_v45 = vpack.c.bf16 %v1925_v38, %v1921_v37  ;;  %v1950_v33 = vld [vmem:[#allocation9 + $0x1ec0] sm:$0xff]  ;;  %v1963_v37 = vld [vmem:[#allocation9 + $0x1f28] sm:$0xff]  ;;  %v1961_v38 = vld [vmem:[#allocation9 + $0x1f18] sm:$0xff] }
 0x38a   :  { %4460 = vmatprep.subr.bf16.mxu1 %v4459_v27  ;;  %v1920_v27 = vld [vmem:[#allocation9 + $0x1dd0] sm:$0xff]  ;;  %v3983_v0 = vpack.c.bf16 %v1955_v24, %v1951_v61  ;;  %v1954_v28 = vld [vmem:[#allocation9 + $0x1ee0] sm:$0xff]  ;;  %v1967_v47 = vld [vmem:[#allocation9 + $0x1f48] sm:$0xff] }
 0x38b   :  { %v1964_v4 = vld [vmem:[#allocation9 + $0x1f30] sm:$0xff]  ;;  %v1983_v17 = vld [vmem:[#allocation9 + $0x1fc8] sm:$0xff] }
 0x38c   :  { %3950 = vmatpush1.bf16.msra.mxu0 %v3949_v48  ;;  %v1933_v48 = vld [vmem:[#allocation9 + $0x1e38] sm:$0xff]  ;;  %v1980_v59 = vld [vmem:[#allocation9 + $0x1fb0] sm:$0xff]  ;;  %v3168_v24 = vld [vmem:[#allocation12 + $0x80] sm:$0xff] }
 0x38d   :  { %4462 = vmatpush1.bf16.msra.mxu1 %v4461_v55  ;;  %3952 = vmatprep.subr.bf16.mxu0 %v3951_v60  ;;  %v3969_v55 = vpack.c.bf16 %v1922_v44, %v1918_v43  ;;  %v4481_v60 = vpack.c.bf16 %v1924_v46, %v1920_v27  ;;  %v4483_v50 = vpack.c.bf16 %v1933_v48, %v1929_v40  ;;  %v1958_v44 = vld [vmem:[#allocation9 + $0x1f00] sm:$0xff]  ;;  %v1971_v40 = vld [vmem:[#allocation9 + $0x1f68] sm:$0xff]  ;;  %v1969_v48 = vld [vmem:[#allocation9 + $0x1f58] sm:$0xff] }
 0x38e   :  { %4464 = vmatprep.subr.bf16.mxu1 %v4463_v2  ;;  %v1928_v2 = vld [vmem:[#allocation9 + $0x1e10] sm:$0xff]  ;;  %v3987_v43 = vpack.c.bf16 %v1963_v37, %v1959_v49  ;;  %v1962_v27 = vld [vmem:[#allocation9 + $0x1f20] sm:$0xff] }
 0x38f   :  { %v1988_v61 = vld [vmem:[#allocation9 + $0x1ff0] sm:$0xff] }
 0x390   :  { %3954 = vmatpush1.bf16.msra.mxu0 %v3953_v8  ;;  %v1941_v8 = vld [vmem:[#allocation9 + $0x1e78] sm:$0xff]  ;;  %v3185_v49 = vld [vmem:[#allocation12 + $0x108] sm:$0xff] }
 0x391   :  { %4466 = vmatpush1.bf16.msra.mxu1 %v4465_v9  ;;  %3956 = vmatprep.subr.bf16.mxu0 %v3955_v10  ;;  %v3973_v9 = vpack.c.bf16 %v1930_v1, %v1926_v3  ;;  %v4485_v10 = vpack.c.bf16 %v1932_v5, %v1928_v2  ;;  %v4487_v13 = vpack.c.bf16 %v1941_v8, %v1937_v7  ;;  %v1966_v1 = vld [vmem:[#allocation9 + $0x1f40] sm:$0xff]  ;;  %v1979_v7 = vld [vmem:[#allocation9 + $0x1fa8] sm:$0xff]  ;;  %v1977_v8 = vld [vmem:[#allocation9 + $0x1f98] sm:$0xff] }
 0x392   :  { %4468 = vmatprep.subr.bf16.mxu1 %v4467_v29  ;;  %v1936_v29 = vld [vmem:[#allocation9 + $0x1e50] sm:$0xff]  ;;  %v3991_v3 = vpack.c.bf16 %v1971_v40, %v1967_v47  ;;  %v1970_v2 = vld [vmem:[#allocation9 + $0x1f60] sm:$0xff] }
 0x393   :  { %v3170_v37 = vld [vmem:[#allocation12 + $0x90] sm:$0xff]  ;;  %v3187_v47 = vld [vmem:[#allocation12 + $0x118] sm:$0xff]  ;;  %v3172_v40 = vld [vmem:[#allocation12 + $0xa0] sm:$0xff] }
 0x394   :  { %3958 = vmatpush1.bf16.msra.mxu0 %v3957_v20  ;;  %v1949_v20 = vld [vmem:[#allocation9 + $0x1eb8] sm:$0xff] }
 0x395   :  { %4470 = vmatpush1.bf16.msra.mxu1 %v4469_v21  ;;  %3960 = vmatprep.subr.bf16.mxu0 %v3959_v22  ;;  %v3977_v21 = vpack.c.bf16 %v1938_v12, %v1934_v58  ;;  %v4489_v22 = vpack.c.bf16 %v1940_v14, %v1936_v29  ;;  %v4491_v31 = vpack.c.bf16 %v1949_v20, %v1945_v19  ;;  %v1974_v12 = vld [vmem:[#allocation9 + $0x1f80] sm:$0xff]  ;;  %v1987_v19 = vld [vmem:[#allocation9 + $0x1fe8] sm:$0xff]  ;;  %v1985_v20 = vld [vmem:[#allocation9 + $0x1fd8] sm:$0xff] }
 0x396   :  { %4472 = vmatprep.subr.bf16.mxu1 %v4471_v30  ;;  %v1944_v30 = vld [vmem:[#allocation9 + $0x1e90] sm:$0xff]  ;;  %v3995_v58 = vpack.c.bf16 %v1979_v7, %v1975_v15  ;;  %v1978_v29 = vld [vmem:[#allocation9 + $0x1fa0] sm:$0xff] }
 0x397   :  { %v3189_v15 = vld [vmem:[#allocation12 + $0x128] sm:$0xff]  ;;  %v3174_v7 = vld [vmem:[#allocation12 + $0xb0] sm:$0xff] }
 0x398   :  { %3962 = vmatpush1.bf16.msra.mxu0 %v3961_v32  ;;  %v1957_v32 = vld [vmem:[#allocation9 + $0x1ef8] sm:$0xff] }
 0x399   :  { %4474 = vmatpush1.bf16.msra.mxu1 %v4473_v16  ;;  %3964 = vmatprep.subr.bf16.mxu0 %v3963_v62  ;;  %v3981_v16 = vpack.c.bf16 %v1946_v26, %v1942_v25  ;;  %v4493_v62 = vpack.c.bf16 %v1948_v52, %v1944_v30  ;;  %v4495_v35 = vpack.c.bf16 %v1957_v32, %v1953_v18  ;;  %v1982_v26 = vld [vmem:[#allocation9 + $0x1fc0] sm:$0xff]  ;;  %v3169_v18 = vld [vmem:[#allocation12 + $0x88] sm:$0xff] }
 0x39a   :  { %4476 = vmatprep.subr.bf16.mxu1 %v4475_v34  ;;  %v1952_v34 = vld [vmem:[#allocation9 + $0x1ed0] sm:$0xff]  ;;  %v3999_v25 = vpack.c.bf16 %v1987_v19, %v1983_v17  ;;  %v1986_v30 = vld [vmem:[#allocation9 + $0x1fe0] sm:$0xff] }
 0x39b   :  { %v3200_v32 = vld [vmem:[#allocation12 + $0x180] sm:$0xff]  ;;  %v3177_v19 = vld [vmem:[#allocation12 + $0xc8] sm:$0xff] }
 0x39c   :  { %3966 = vmatpush1.bf16.msra.mxu0 %v3965_v51  ;;  %v1965_v51 = vld [vmem:[#allocation9 + $0x1f38] sm:$0xff]  ;;  %v3176_v17 = vld [vmem:[#allocation12 + $0xc0] sm:$0xff] }
 0x39d   :  { %4478 = vmatpush1.bf16.msra.mxu1 %v4477_v39  ;;  %3968 = vmatprep.subr.bf16.mxu0 %v3967_v42  ;;  %v3985_v39 = vpack.c.bf16 %v1954_v28, %v1950_v33  ;;  %v4497_v42 = vpack.c.bf16 %v1956_v36, %v1952_v34  ;;  %v4499_v46 = vpack.c.bf16 %v1965_v51, %v1961_v38  ;;  %v3152_v28 = vld [vmem:[#allocation12] sm:$0xff]  ;;  %v3153_v34 = vld [vmem:[#allocation12 + $0x8] sm:$0xff]  ;;  %v3171_v38 = vld [vmem:[#allocation12 + $0x98] sm:$0xff] }
 0x39e   :  { %4480 = vmatprep.subr.bf16.mxu1 %v4479_v45  ;;  %v1960_v45 = vld [vmem:[#allocation9 + $0x1f10] sm:$0xff]  ;;  %v4515_v33 = vpack.c.bf16 %v3169_v18, %v3168_v24  ;;  %v3179_v18 = vld [vmem:[#allocation12 + $0xd8] sm:$0xff] }
 0x39f   :  { %v3202_v51 = vld [vmem:[#allocation12 + $0x190] sm:$0xff] }
 0x3a0   :  { %3970 = vmatpush1.bf16.msra.mxu0 %v3969_v55  ;;  %v1973_v55 = vld [vmem:[#allocation9 + $0x1f78] sm:$0xff] }
 0x3a1   :  { %4482 = vmatpush1.bf16.msra.mxu1 %v4481_v60  ;;  %3972 = vmatprep.subr.bf16.mxu0 %v3971_v63  ;;  %v3989_v60 = vpack.c.bf16 %v1962_v27, %v1958_v44  ;;  %v4501_v63 = vpack.c.bf16 %v1964_v4, %v1960_v45  ;;  %v4503_v5 = vpack.c.bf16 %v1973_v55, %v1969_v48  ;;  %v3154_v27 = vld [vmem:[#allocation12 + $0x10] sm:$0xff]  ;;  %v3155_v45 = vld [vmem:[#allocation12 + $0x18] sm:$0xff]  ;;  %v3173_v48 = vld [vmem:[#allocation12 + $0xa8] sm:$0xff] }
 0x3a2   :  { %4484 = vmatprep.subr.bf16.mxu1 %v4483_v50  ;;  %v1968_v50 = vld [vmem:[#allocation9 + $0x1f50] sm:$0xff]  ;;  %v4519_v44 = vpack.c.bf16 %v3171_v38, %v3170_v37  ;;  %v3204_v55 = vld [vmem:[#allocation12 + $0x1a0] sm:$0xff] }
 0x3a3   :  { %v3178_v24 = vld [vmem:[#allocation12 + $0xd0] sm:$0xff]  ;;  %v3180_v37 = vld [vmem:[#allocation12 + $0xe0] sm:$0xff]  ;;  %v3181_v38 = vld [vmem:[#allocation12 + $0xe8] sm:$0xff] }
 0x3a4   :  { %3974 = vmatpush1.bf16.msra.mxu0 %v3973_v9  ;;  %v1981_v9 = vld [vmem:[#allocation9 + $0x1fb8] sm:$0xff] }
 0x3a5   :  { %4486 = vmatpush1.bf16.msra.mxu1 %v4485_v10  ;;  %3976 = vmatprep.subr.bf16.mxu0 %v3975_v11  ;;  %v3993_v10 = vpack.c.bf16 %v1970_v2, %v1966_v1  ;;  %v4505_v11 = vpack.c.bf16 %v1972_v6, %v1968_v50  ;;  %v4507_v14 = vpack.c.bf16 %v1981_v9, %v1977_v8  ;;  %v3156_v2 = vld [vmem:[#allocation12 + $0x20] sm:$0xff]  ;;  %v3157_v50 = vld [vmem:[#allocation12 + $0x28] sm:$0xff]  ;;  %v3175_v8 = vld [vmem:[#allocation12 + $0xb8] sm:$0xff] }
 0x3a6   :  { %4488 = vmatprep.subr.bf16.mxu1 %v4487_v13  ;;  %v1976_v13 = vld [vmem:[#allocation9 + $0x1f90] sm:$0xff]  ;;  %v4523_v1 = vpack.c.bf16 %v3173_v48, %v3172_v40 }
 0x3a7   :  { %v3206_v9 = vld [vmem:[#allocation12 + $0x1b0] sm:$0xff]  ;;  %v3197_v40 = vld [vmem:[#allocation12 + $0x168] sm:$0xff] }
 0x3a8   :  { %3978 = vmatpush1.bf16.msra.mxu0 %v3977_v21  ;;  %v1989_v21 = vld [vmem:[#allocation9 + $0x1ff8] sm:$0xff] }
 0x3a9   :  { %4490 = vmatpush1.bf16.msra.mxu1 %v4489_v22  ;;  %3980 = vmatprep.subr.bf16.mxu0 %v3979_v23  ;;  %v3997_v22 = vpack.c.bf16 %v1978_v29, %v1974_v12  ;;  %v4509_v23 = vpack.c.bf16 %v1980_v59, %v1976_v13  ;;  %v4511_v52 = vpack.c.bf16 %v1989_v21, %v1985_v20  ;;  %v3158_v12 = vld [vmem:[#allocation12 + $0x30] sm:$0xff]  ;;  %v3159_v29 = vld [vmem:[#allocation12 + $0x38] sm:$0xff]  ;;  %v3208_v20 = vld [vmem:[#allocation12 + $0x1c0] sm:$0xff] }
 0x3aa   :  { %4492 = vmatprep.subr.bf16.mxu1 %v4491_v31  ;;  %v1984_v31 = vld [vmem:[#allocation9 + $0x1fd0] sm:$0xff]  ;;  %v3191_v59 = vld [vmem:[#allocation12 + $0x138] sm:$0xff] }
 0x3ab   :  { %v3190_v13 = vld [vmem:[#allocation12 + $0x130] sm:$0xff]  ;;  %v3209_v21 = vld [vmem:[#allocation12 + $0x1c8] sm:$0xff] }
 0x3ac   :  { %3982 = vmatpush1.bf16.msra.mxu0 %v3981_v16  ;;  %v3201_v16 = vld [vmem:[#allocation12 + $0x188] sm:$0xff] }
 0x3ad   :  { %4494 = vmatpush1.bf16.msra.mxu1 %v4493_v62  ;;  %3984 = vmatprep.subr.bf16.mxu0 %v3983_v0  ;;  %v4001_v62 = vpack.c.bf16 %v1986_v30, %v1982_v26  ;;  %v4513_v0 = vpack.c.bf16 %v1988_v61, %v1984_v31  ;;  %v4547_v36 = vpack.c.bf16 %v3201_v16, %v3200_v32  ;;  %v3160_v26 = vld [vmem:[#allocation12 + $0x40] sm:$0xff]  ;;  %v3161_v30 = vld [vmem:[#allocation12 + $0x48] sm:$0xff]  ;;  %v3210_v32 = vld [vmem:[#allocation12 + $0x1d0] sm:$0xff] }
 0x3ae   :  { %4496 = vmatprep.subr.bf16.mxu1 %v4495_v35  ;;  %v3184_v35 = vld [vmem:[#allocation12 + $0x100] sm:$0xff]  ;;  %v3193_v61 = vld [vmem:[#allocation12 + $0x148] sm:$0xff]  ;;  %v3211_v16 = vld [vmem:[#allocation12 + $0x1d8] sm:$0xff] }
 0x3af   :  { %v3192_v31 = vld [vmem:[#allocation12 + $0x140] sm:$0xff] }
 0x3b0   :  { %3986 = vmatpush1.bf16.msra.mxu0 %v3985_v39  ;;  %v3203_v39 = vld [vmem:[#allocation12 + $0x198] sm:$0xff] }
 0x3b1   :  { %4498 = vmatpush1.bf16.msra.mxu1 %v4497_v42  ;;  %3988 = vmatprep.subr.bf16.mxu0 %v3987_v43  ;;  %v4517_v42 = vpack.c.bf16 %v3153_v34, %v3152_v28  ;;  %v4549_v43 = vpack.c.bf16 %v3185_v49, %v3184_v35  ;;  %v4551_v4 = vpack.c.bf16 %v3203_v39, %v3202_v51  ;;  %v3162_v28 = vld [vmem:[#allocation12 + $0x50] sm:$0xff]  ;;  %v3163_v34 = vld [vmem:[#allocation12 + $0x58] sm:$0xff]  ;;  %v3212_v51 = vld [vmem:[#allocation12 + $0x1e0] sm:$0xff] }
 0x3b2   :  { %4500 = vmatprep.subr.bf16.mxu1 %v4499_v46  ;;  %v3186_v46 = vld [vmem:[#allocation12 + $0x110] sm:$0xff]  ;;  %v3195_v49 = vld [vmem:[#allocation12 + $0x158] sm:$0xff]  ;;  %v3213_v39 = vld [vmem:[#allocation12 + $0x1e8] sm:$0xff] }
 0x3b3   :  { %v3194_v35 = vld [vmem:[#allocation12 + $0x150] sm:$0xff] }
 0x3b4   :  { %3990 = vmatpush1.bf16.msra.mxu0 %v3989_v60  ;;  %v3205_v60 = vld [vmem:[#allocation12 + $0x1a8] sm:$0xff] }
 0x3b5   :  { %4502 = vmatpush1.bf16.msra.mxu1 %v4501_v63  ;;  %3992 = vmatprep.subr.bf16.mxu0 %v3991_v3  ;;  %v4521_v63 = vpack.c.bf16 %v3155_v45, %v3154_v27  ;;  %v4553_v3 = vpack.c.bf16 %v3187_v47, %v3186_v46  ;;  %v4555_v6 = vpack.c.bf16 %v3205_v60, %v3204_v55  ;;  %v3164_v45 = vld [vmem:[#allocation12 + $0x60] sm:$0xff]  ;;  %v3165_v46 = vld [vmem:[#allocation12 + $0x68] sm:$0xff]  ;;  %v3182_v55 = vld [vmem:[#allocation12 + $0xf0] sm:$0xff] }
 0x3b6   :  { %4504 = vmatprep.subr.bf16.mxu1 %v4503_v5  ;;  %v3188_v5 = vld [vmem:[#allocation12 + $0x120] sm:$0xff]  ;;  %v4571_v27 = vpack.c.bf16 %v3213_v39, %v3212_v51  ;;  %v4541_v47 = vpack.c.bf16 %v3165_v46, %v3164_v45  ;;  %v3183_v60 = vld [vmem:[#allocation12 + $0xf8] sm:$0xff] }
 0x3b8   :  { %3994 = vmatpush1.bf16.msra.mxu0 %v3993_v10  ;;  %v3207_v10 = vld [vmem:[#allocation12 + $0x1b8] sm:$0xff] }
 0x3b9   :  { %4506 = vmatpush1.bf16.msra.mxu1 %v4505_v11  ;;  %3996 = vmatprep.subr.bf16.mxu0 %v3995_v58  ;;  %v4525_v11 = vpack.c.bf16 %v3157_v50, %v3156_v2  ;;  %v4527_v58 = vpack.c.bf16 %v3175_v8, %v3174_v7  ;;  %v3166_v2 = vld [vmem:[#allocation12 + $0x70] sm:$0xff]  ;;  %v3167_v50 = vld [vmem:[#allocation12 + $0x78] sm:$0xff] }
 0x3ba   :  { %4508 = vmatprep.subr.bf16.mxu1 %v4507_v14  ;;  %v4559_v14 = vpack.c.bf16 %v3207_v10, %v3206_v9  ;;  %v3199_v7 = vld [vmem:[#allocation12 + $0x178] sm:$0xff] }
 0x3bb   :  { %v1990_v9 = vld [vmem:[#allocation11] sm:$0xf] }
 0x3bc   :  { %3998 = vmatpush1.bf16.msra.mxu0 %v3997_v22  ;;  %v4529_v22 = vpack.c.bf16 %v3159_v29, %v3158_v12  ;;  %v1995_v10 = vrot.slane %v1990_v9, %v5042_v53 }
 0x3bd   :  { %4510 = vmatpush1.bf16.msra.mxu1 %v4509_v23  ;;  %4000 = vmatprep.subr.bf16.mxu0 %v3999_v25  ;;  %v4561_v23 = vpack.c.bf16 %v3191_v59, %v3190_v13  ;;  %v4531_v25 = vpack.c.bf16 %v3177_v19, %v3176_v17 }
 0x3be   :  { %4512 = vmatprep.subr.bf16.mxu1 %v4511_v52  ;;  %v4563_v52 = vpack.c.bf16 %v3209_v21, %v3208_v20 }
 0x3c0   :  { %4002 = vmatpush1.bf16.msra.mxu0 %v4001_v62  ;;  %v4533_v62 = vpack.c.bf16 %v3161_v30, %v3160_v26 }
 0x3c1   :  { %4514 = vmatpush1.bf16.msra.mxu1 %v4513_v0  ;;  %4516 = vmatprep.subr.bf16.mxu0 %v4515_v33  ;;  %v4565_v0 = vpack.c.bf16 %v3193_v61, %v3192_v31  ;;  %v4535_v33 = vpack.c.bf16 %v3179_v18, %v3178_v24 }
 0x3c2   :  { %4548 = vmatprep.subr.bf16.mxu1 %v4547_v36  ;;  %v4567_v36 = vpack.c.bf16 %v3211_v16, %v3210_v32 }
 0x3c3   :  { %2574 = vmatmul.mubr.f32.vlgmr.msra.gmra.mrb[8].mxu0 %v5172_v41 }
 0x3c4   :  { %3142 = vmatmul.mubr.f32.vlgmr.msra.gmra.mrb[8].mxu1 %v5172_v41  ;;  %4518 = vmatpush3.bf16.msra.mxu0 %v4517_v42  ;;  %v4557_v41 = vpack.c.bf16 %v3189_v15, %v3188_v5  ;;  %v4537_v42 = vpack.c.bf16 %v3163_v34, %v3162_v28  ;;  %v3198_v15 = vld [vmem:[#allocation12 + $0x170] sm:$0xff] }
 0x3c5   :  { %4550 = vmatpush3.bf16.msra.mxu1 %v4549_v43  ;;  %4520 = vmatprep.subr.bf16.mxu0 %v4519_v44  ;;  %v4569_v43 = vpack.c.bf16 %v3195_v49, %v3194_v35  ;;  %v4539_v44 = vpack.c.bf16 %v3181_v38, %v3180_v37  ;;  %v4577_v8 = vpack.c.bf16 %v3199_v7, %v3198_v15 }
 0x3c6   :  { %4552 = vmatprep.subr.bf16.mxu1 %v4551_v4  ;;  %v3196_v4 = vld [vmem:[#allocation12 + $0x160] sm:$0xff] }
 0x3c7   :  { %v4573_v48 = vpack.c.bf16 %v3197_v40, %v3196_v4 }
 0x3c8   :  { %4522 = vmatpush3.bf16.msra.mxu0 %v4521_v63  ;;  %v3214_v63 = vld [vmem:[#allocation12 + $0x1f0] sm:$0xff] }
 0x3c9   :  { %4554 = vmatpush3.bf16.msra.mxu1 %v4553_v3  ;;  %4524 = vmatprep.subr.bf16.mxu0 %v4523_v1  ;;  %v4543_v3 = vpack.c.bf16 %v3183_v60, %v3182_v55  ;;  %v3215_v1 = vld [vmem:[#allocation12 + $0x1f8] sm:$0xff] }
 0x3ca   :  { %4556 = vmatprep.subr.bf16.mxu1 %v4555_v6  ;;  %v4575_v5 = vpack.c.bf16 %v3215_v1, %v3214_v63  ;;  %v4545_v6 = vpack.c.bf16 %v3167_v50, %v3166_v2 }
 0x3cc   :  { %4526 = vmatpush3.bf16.msra.mxu0 %v4525_v11  ;;  %v2003_v11 = vrot.slane %v1990_v9, %v5045_v54 }
 0x3cd   :  { %4558 = vmatpush3.bf16.msra.mxu1 %v4557_v41  ;;  %4528 = vmatprep.subr.bf16.mxu0 %v4527_v58  ;;  %v1999_v41 = vrot.slane %v1990_v9, %v5048_v56  ;;  %v2007_v58 = vrot.slane %v1990_v9, %v5051_v57 }
 0x3ce   :  { %4560 = vmatprep.subr.bf16.mxu1 %v4559_v14 }
 0x3d0   :  { %4530 = vmatpush3.bf16.msra.mxu0 %v4529_v22 }
 0x3d1   :  { %4562 = vmatpush3.bf16.msra.mxu1 %v4561_v23  ;;  %4532 = vmatprep.subr.bf16.mxu0 %v4531_v25 }
 0x3d2   :  { %4564 = vmatprep.subr.bf16.mxu1 %v4563_v52 }
 0x3d4   :  { %4534 = vmatpush3.bf16.msra.mxu0 %v4533_v62 }
 0x3d5   :  { %4566 = vmatpush3.bf16.msra.mxu1 %v4565_v0  ;;  %4536 = vmatprep.subr.bf16.mxu0 %v4535_v33 }
 0x3d6   :  { %4568 = vmatprep.subr.bf16.mxu1 %v4567_v36 }
 0x3d8   :  { %4538 = vmatpush3.bf16.msra.mxu0 %v4537_v42 }
 0x3d9   :  { %4570 = vmatpush3.bf16.msra.mxu1 %v4569_v43  ;;  %4540 = vmatprep.subr.bf16.mxu0 %v4539_v44 }
 0x3da   :  { %4572 = vmatprep.subr.bf16.mxu1 %v4571_v27 }
 0x3dc   :  { %4542 = vmatpush3.bf16.msra.mxu0 %v4541_v47 }
 0x3dd   :  { %4574 = vmatpush3.bf16.msra.mxu1 %v4573_v48  ;;  %4544 = vmatprep.subr.bf16.mxu0 %v4543_v3 }
 0x3de   :  { %4576 = vmatprep.subr.bf16.mxu1 %v4575_v5 }
 0x3e0   :  { %4546 = vmatpush3.bf16.msra.mxu0 %v4545_v6 }
 0x3e1   :  { %4578 = vmatpush3.bf16.msra.mxu1 %v4577_v8 }
 0x496   :  { %v2575_v12 = vpop.f32.mrb[8].mxu0 }
 0x497   :  { %v4579_v29 = vadd.f32 %v2575_v12, %v1995_v10  ;;  %v3143_v13 = vpop.f32.mrb[8].mxu1  ;;  %v2577_v14 = vpop.f32.mrb[9].mxu0 }
 0x498   :  { %v4581_v59 = vadd.f32 %v3143_v13, %v2003_v11  ;;  %v4580_v17 = vadd.f32 %v2577_v14, %v1999_v41  ;;  %v3145_v19 = vpop.f32.mrb[9].mxu1 }
 0x499   :  { %v4582_v20 = vadd.f32 %v3145_v19, %v2007_v58  ;;  %v3148_v22 = vmax.f32 %v4579_v29, 0.0 }
 0x49a   :  { %v3149_v21 = vmax.f32 %v4580_v17, 0.0  ;;  %v3150_v25 = vmax.f32 %v4581_v59, 0.0 }
 0x49b   :  { %v3151_v23 = vmax.f32 %v4582_v20, 0.0 }
 0x49c   :  { %3287 = vmatprep.mubr.f32.mxu0 %v3149_v21 }
 0x49d   :  { %3357 = vmatprep.mubr.f32.mxu1 %v3151_v23  ;;  %3288 = vmatmul.mubr.f32.vlgmr.msra.gmra.mrb[10].mxu0 %v3148_v22 }
 0x49e   :  { %3358 = vmatmul.mubr.f32.vlgmr.msra.gmra.mrb[10].mxu1 %v3150_v25 }
 0x49f   :  { %4799 = shalt.err (!%p4796_p4)
}
 0x4a0   :  { %s4800_s30 = scalar_lea.hbm %s5247_s7, 512 }
 0x4a1   :  { %p4801_p5 = scmp.ne.s32.totalorder %s5247_s7, %s4800_s30  ;;  %p4804_p6 = scmp.lt.u32.totalorder %s4800_s30, %s5247_s7 }
 0x4a3   :  { %p4806_p7 = pnand %p4804_p6, %p4801_p5 }
 0x4a5   :  { %4809 = shalt.err (!%p4806_p7)
}
 0x4a6   :  { %3373 = dma.vmem_to_hbm [thread:$0]  %s3371_s3, 512, %s5247_s7, [#allocation5]   ;;  %v3420_v56 = vld [vmem:[#allocation14] ss:$0 sm:$0xff] }
 0x4a7   :  { %s4858_s1 = smov [#allocation16]  }
 0x4a8   :  { %s3380_s27 = sshll.u32 %s4858_s1, 4  ;;  %s3381_s27 = int_to_ptr.vmem [resolvable:$true] %s3380_s27 }
 0x4a9   :  { %s4810_s2 = scalar_lea.vmem %s3381_s27, 32  ;;  %p4815_p9 = scmp.lt.s32.totalorder %s3381_s27, %s3381_s27 }
 0x4aa   :  { %p4811_p8 = scmp.ne.s32.totalorder %s3381_s27, %s4810_s2  ;;  %p4816_p10 = scmp.lt.s32.totalorder %s4810_s2, %s4810_s2 }
 0x4ac   :  { %p4817_p11 = por %p4816_p10, %p4815_p9 }
 0x4ae   :  { %p4818_p12 = pnand %p4817_p11, %p4811_p8 }
 0x570   :  { %v3453_v53 = vpop.f32.mrb[10].mxu0 }
 0x571   :  { %v3488_v54 = vpop.f32.mrb[10].mxu1  ;;  %v3454_v57 = vpop.f32.mrb[11].mxu0 }
 0x572   :  { %v3455_v26 = vadd.f32 %v3454_v57, %v3453_v53  ;;  %v3489_v30 = vpop.f32.mrb[11].mxu1 }
 0x573   :  { %v3490_v31 = vadd.f32 %v3489_v30, %v3488_v54 }
 0x574   :  { %v3290_v52 = vadd.f32 %v3455_v26, %v3420_v56 }
 0x576   :  { %v3360_v61 = vadd.f32 %v3490_v31, %v3290_v52 }
 0x578   :  { %3363 = vst [vmem:[#allocation16] sm:$0x3] %v3360_v61 }
 0x579   :  { %4821 = shalt.err (!%p4818_p12)
}
 0x57a   :  { %s4822_s29 = scalar_lea.hbm %s5248_s8, 32 }
 0x57b   :  { %p4823_p13 = scmp.ne.s32.totalorder %s5248_s8, %s4822_s29  ;;  %p4826_p0 = scmp.lt.u32.totalorder %s4822_s29, %s5248_s8 }
 0x57d   :  { %p4828_p1 = pnand %p4826_p0, %p4823_p13 }
 0x57f   :  { %4831 = shalt.err (!%p4828_p1)
}
 0x580   :  { %3383 = dma.vmem_to_hbm [thread:$0]  %s3381_s27, 32, %s5248_s8, [#allocation17]  }
 0x581   :  { %4840 = dma.done.wait [#allocation5], 512  }
 0x582   :  { %4841 = vsyncadd [#allocation5], 4294966784 }
 0x583   :  { %4842 = dma.done.wait [#allocation17], 32  }
 0x584   :  { %4843 = vsyncadd [#allocation17], 4294967264 }
 0x585   :  { %3390 = vsyncpa [#allocation4], 1 }
 0x586   :  { %3391 = vsyncpa [#allocation7], 1 }
 0x587   :  { %3392 = vsyncpa [#allocation10], 1 }
 0x588   :  { %3393 = vsyncpa [#allocation13], 1 }
 0x589   :  { %3394 = vsyncpa [#allocation5], 1 }
 0x58a   :  { %3395 = vsyncpa [#allocation17], 1 }

</bundles_post_ra>
